<compile_context>
chip_gen: v6e
topology: v6e:2x2x1
jax: 0.10.0
libtpu: 0.0.40
codegen_flags: <defaults>
</compile_context>

<pallas_src>
import functools

import jax
import jax.numpy as jnp
from jax.experimental import pallas as pl
from jax.experimental.pallas import tpu as pltpu


def _round_up(v, m):
    return ((v + m - 1) // m) * m


# ----------------------------------------------------------------------------
# Pallas kernel: full-K matmul + bias (+ ReLU) (+ fused residual add)
# ----------------------------------------------------------------------------
def _mm_bias_kernel(*refs, relu, has_skip):
    if has_skip:
        x_ref, w_ref, b_ref, s_ref, o_ref = refs
    else:
        x_ref, w_ref, b_ref, o_ref = refs
        s_ref = None
    acc = jnp.dot(x_ref[...], w_ref[...], preferred_element_type=jnp.float32)
    acc = acc + b_ref[...]                      # f32 epilogue (v5e-safe)
    if relu:
        acc = jnp.maximum(acc, 0.0)
    if has_skip:
        acc = acc + s_ref[...].astype(jnp.float32)
    o_ref[...] = acc.astype(o_ref.dtype)


def pallas_matmul_bias(x, w, b2d, relu=False, skip=None,
                       out_dtype=jnp.bfloat16, tm=None, tn=None):
    """y = maybe_relu(x @ w + b) [+ skip].

    x    : (M, K)   activations (cast to bf16 for the MXU)
    w    : (Kp, Np) pre-packed bf16 weight; Kp = round_up(K, 8), Np = round_up(N, 128)
    b2d  : (1, Np)  f32 bias
    skip : optional (Ms, Ns) residual added after bias/relu (same out tiling)
    Returns (M, Np); caller slices [:, :N] if N < Np.
    """
    M, K = x.shape
    Kp, Np = w.shape

    # ---- tile selection: full-K blocks, >=2 parallel grid steps when possible
    if tm is None:
        Mp8 = _round_up(M, 8)
        if Mp8 >= 1024:
            tm = 512
        elif Mp8 >= 32 and Mp8 % 32 == 0:
            tm = Mp8 // 2           # keep 2 grid steps for megacore / v7x
        else:
            tm = Mp8
    if tn is None:
        tn = min(Np, 1024)
        while Np % tn:
            tn -= 128
    Mp = _round_up(M, tm)

    xp = x.astype(jnp.bfloat16)
    if Mp != M or Kp != K:
        xp = jnp.pad(xp, ((0, Mp - M), (0, Kp - K)))

    ins = [xp, w, b2d]
    in_specs = [
        pl.BlockSpec((tm, Kp), lambda i, j: (i, 0)),   # full-K activation tile
        pl.BlockSpec((Kp, tn), lambda i, j: (0, j)),   # full-K weight tile
        pl.BlockSpec((1, tn), lambda i, j: (0, j)),    # bias
    ]
    has_skip = skip is not None
    if has_skip:
        sp = skip.astype(jnp.bfloat16)
        Ms, Ns = sp.shape
        if Ms != Mp or Ns != Np:
            sp = jnp.pad(sp, ((0, Mp - Ms), (0, Np - Ns)))
        ins.append(sp)
        in_specs.append(pl.BlockSpec((tm, tn), lambda i, j: (i, j)))

    out = pl.pallas_call(
        functools.partial(_mm_bias_kernel, relu=relu, has_skip=has_skip),
        out_shape=jax.ShapeDtypeStruct((Mp, Np), out_dtype),
        grid_spec=pltpu.PrefetchScalarGridSpec(
            num_scalar_prefetch=0,
            grid=(Mp // tm, Np // tn),
            in_specs=in_specs,
            out_specs=pl.BlockSpec((tm, tn), lambda i, j: (i, j)),
        ),
        compiler_params=pltpu.CompilerParams(
            dimension_semantics=("parallel", "parallel"),
        ),
    )(*ins)
    return out[:M]


# ----------------------------------------------------------------------------
# im2col (NHWC, XLA glue) + conv / sub-pixel transposed-conv wrappers
# ----------------------------------------------------------------------------
def _im2col_nhwc(x, k, stride, pad):
    """x: (B, H, W, C) -> (B*Ho*Wo, k*k*C), patch layout (kh, kw, C)."""
    B, H, W, C = x.shape
    if pad:
        x = jnp.pad(x, ((0, 0), (pad, pad), (pad, pad), (0, 0)))
    Ho = (H + 2 * pad - k) // stride + 1
    Wo = (W + 2 * pad - k) // stride + 1
    cols = []
    for kh in range(k):
        for kw in range(k):
            cols.append(x[:, kh:kh + stride * (Ho - 1) + 1:stride,
                             kw:kw + stride * (Wo - 1) + 1:stride, :])
    patches = jnp.concatenate(cols, axis=-1)          # (B, Ho, Wo, k*k*C)
    return patches.reshape(B * Ho * Wo, k * k * C), Ho, Wo


def _conv_nhwc(x, packed, cout, k, stride, pad, relu=True):
    wm, bm = packed
    B = x.shape[0]
    patches, Ho, Wo = _im2col_nhwc(x, k, stride, pad)
    y = pallas_matmul_bias(patches, wm, bm, relu=relu)
    return y[:, :cout].reshape(B, Ho, Wo, cout)


def _conv_transpose_nhwc(x, packed, cout, relu=True):
    """ConvTranspose2d(k=4, stride=2, pad=1) via sub-pixel decomposition."""
    wm, bm = packed
    B, H, W, _ = x.shape
    patches, _, _ = _im2col_nhwc(x, 3, 1, 1)          # un-dilated input, 3x3 patches
    y = pallas_matmul_bias(patches, wm, bm, relu=relu)
    y = y[:, :4 * cout].reshape(B, H, W, 2, 2, cout)  # (b, a, bc, sy, sx, co)
    y = jnp.transpose(y, (0, 1, 3, 2, 4, 5)).reshape(B, 2 * H, 2 * W, cout)
    return y


# ----------------------------------------------------------------------------
# Parameters: PyTorch-layout synthetic init + one-time repack for the kernels
# ----------------------------------------------------------------------------
def init_params(key, latent_dim=128):
    def uni(k_, shape, fan_in):
        bound = 1.0 / jnp.sqrt(jnp.float32(fan_in))
        return jax.random.uniform(k_, shape, jnp.float32, -bound, bound)

    keys = jax.random.split(key, 16)
    p = {}
    p["enc1_w"] = uni(keys[0], (32, 1, 4, 4), 1 * 16)
    p["enc1_b"] = uni(keys[1], (32,), 1 * 16)
    p["enc2_w"] = uni(keys[2], (64, 32, 4, 4), 32 * 16)
    p["enc2_b"] = uni(keys[3], (64,), 32 * 16)
    p["enc3_w"] = uni(keys[4], (128, 64, 4, 4), 64 * 16)
    p["enc3_b"] = uni(keys[5], (128,), 64 * 16)
    p["encl_w"] = uni(keys[6], (latent_dim, 8 * 8 * 128), 8 * 8 * 128)  # (out, in)
    p["encl_b"] = uni(keys[7], (latent_dim,), 8 * 8 * 128)
    p["decl_w"] = uni(keys[8], (8 * 8 * 128, latent_dim), latent_dim)   # (out, in)
    p["decl_b"] = uni(keys[9], (8 * 8 * 128,), latent_dim)
    p["dec3_w"] = uni(keys[10], (128, 64, 4, 4), 128 * 16)   # ConvTranspose (Cin,Cout,k,k)
    p["dec3_b"] = uni(keys[11], (64,), 128 * 16)
    p["dec2_w"] = uni(keys[12], (64, 32, 4, 4), 64 * 16)
    p["dec2_b"] = uni(keys[13], (32,), 64 * 16)
    p["dec1_w"] = uni(keys[14], (32, 1, 4, 4), 32 * 16)
    p["dec1_b"] = uni(keys[15], (1,), 32 * 16)
    return p


def _convtranspose_to_subpixel(w, b):
    """ConvTranspose2d(Cin,Cout,4,4) stride=2 pad=1 -> (9*Cin, 4*Cout) matmul weight.

    For a k=3/s=1/p=1 NHWC im2col on the un-dilated input, output (2a+sy, 2b+sx)
    with sy,sx in {0,1} uses kernel taps:
      parity 0: (patch_row, kh) in {(0,3),(1,1)};  parity 1: {(1,2),(2,0)}
    (same for columns).  Output column groups are ordered (sy, sx, cout).
    """
    Cin, Cout = w.shape[0], w.shape[1]
    Wm = jnp.zeros((3, 3, Cin, 2, 2, Cout), dtype=jnp.float32)
    taps = {0: ((0, 3), (1, 1)), 1: ((1, 2), (2, 0))}
    for sy in (0, 1):
        for sx in (0, 1):
            for pr, kh in taps[sy]:
                for pc, kw in taps[sx]:
                    Wm = Wm.at[pr, pc, :, sy, sx, :].set(w[:, :, kh, kw])
    return Wm.reshape(9 * Cin, 4 * Cout), jnp.tile(b, 4)


def prepare_params(p, latent_dim=128):
    """One-time repack: NHWC im2col layouts, sub-pixel rewrite, bf16, lane pad."""
    def pack_w(wm, bm):
        K, N = wm.shape
        Kp, Np = _round_up(K, 8), _round_up(N, 128)
        wm = jnp.pad(wm, ((0, Kp - K), (0, Np - N))).astype(jnp.bfloat16)
        bm = jnp.pad(bm.astype(jnp.float32), (0, Np - N)).reshape(1, Np)
        return wm, bm

    q = {}
    for name in ("enc1", "enc2", "enc3"):
        w, b = p[f"{name}_w"], p[f"{name}_b"]
        Cout, Cin, k, _ = w.shape
        wm = jnp.transpose(w, (2, 3, 1, 0)).reshape(k * k * Cin, Cout)  # (kh,kw,ci),co
        q[name] = pack_w(wm, b)
    # enc linear: PyTorch weight indexes its input with an NCHW flatten (c,h,w);
    # permute rows to match our NHWC flatten (h,w,c).
    wl = p["encl_w"].reshape(latent_dim, 128, 8, 8)
    wl = jnp.transpose(wl, (2, 3, 1, 0)).reshape(8 * 8 * 128, latent_dim)
    q["encl"] = pack_w(wl, p["encl_b"])
    # dec linear: permute output columns (and bias) from NCHW to NHWC ordering.
    wd = p["decl_w"].reshape(128, 8, 8, latent_dim)
    wd = jnp.transpose(wd, (3, 1, 2, 0)).reshape(latent_dim, 8 * 8 * 128)
    bd = jnp.transpose(p["decl_b"].reshape(128, 8, 8), (1, 2, 0)).reshape(-1)
    q["decl"] = pack_w(wd, bd)
    for name in ("dec3", "dec2", "dec1"):
        wm, bm = _convtranspose_to_subpixel(p[f"{name}_w"], p[f"{name}_b"])
        q[name] = pack_w(wm, bm)
    return q


# ----------------------------------------------------------------------------
# Forward pass (mirrors KappaDenoiser.forward)
# ----------------------------------------------------------------------------
def kappa_denoiser_forward(pp, x):
    if x.ndim == 3:
        x = x[:, None]
    B = x.shape[0]
    x = jnp.transpose(x, (0, 2, 3, 1)).astype(jnp.bfloat16)     # NCHW -> NHWC

    enc = _conv_nhwc(x, pp["enc1"], 32, 4, 2, 1)                # (B,32,32,32)
    enc = _conv_nhwc(enc, pp["enc2"], 64, 4, 2, 1)              # (B,16,16,64)
    enc_skip2 = enc
    enc = _conv_nhwc(enc, pp["enc3"], 128, 4, 2, 1)             # (B,8,8,128)
    enc_skip3 = enc

    lat = pallas_matmul_bias(enc.reshape(B, -1), *pp["encl"], relu=False)[:, :128]
    # dec_linear with the "+ enc_skip3" residual fused into the matmul epilogue
    dec = pallas_matmul_bias(lat, *pp["decl"], relu=False,
                             skip=enc_skip3.reshape(B, -1))
    dec = dec.reshape(B, 8, 8, 128)

    dec = _conv_transpose_nhwc(dec, pp["dec3"], 64)             # (B,16,16,64)
    dec = dec + enc_skip2
    dec = _conv_transpose_nhwc(dec, pp["dec2"], 32)             # (B,32,32,32)
    dec = _conv_transpose_nhwc(dec, pp["dec1"], 1)              # (B,64,64,1)
    return jnp.transpose(dec, (0, 3, 1, 2)).astype(jnp.float32)  # back to NCHW


if __name__ == "__main__":
    key = jax.random.PRNGKey(0)
    pkey, xkey = jax.random.split(key)
    params = init_params(pkey, latent_dim=128)
    packed = prepare_params(params, latent_dim=128)   # one-time weight repack

    # architecture (8*8*128 flatten after 3 stride-2 convs) requires 64x64 input
    x = jax.random.normal(xkey, (2, 1, 64, 64), dtype=jnp.float32)

    fwd = jax.jit(kappa_denoiser_forward)
    out = fwd(packed, x)
    jax.block_until_ready(out)

    assert out.shape == (2, 1, 64, 64), out.shape
    assert bool(jnp.all(jnp.isfinite(out)))
    assert bool(jnp.all(out >= 0.0))  # final ReLU
    print("KERNEL_OK")
</pallas_src>

<mosaic_0001>
module attributes {stable_mosaic.version = 11 : i64} {
  func.func @_mm_bias_kernel(%arg0: i32, %arg1: i32, %arg2: memref<512x16xbf16, #tpu.memory_space<vmem>>, %arg3: memref<16x128xbf16, #tpu.memory_space<vmem>>, %arg4: memref<1x128xf32, #tpu.memory_space<vmem>>, %arg5: memref<512x128xbf16, #tpu.memory_space<vmem>>) attributes {dimension_semantics = [#tpu.dimension_semantics<parallel>, #tpu.dimension_semantics<parallel>], iteration_bounds = array<i64: 4, 1>, scalar_prefetch = 0 : i64, scratch_operands = 0 : i64, tpu.core_type = #tpu.core_type<tc>, window_params = [{transform_indices = @transform_0, window_bounds = array<i64: 512, 16>}, {transform_indices = @transform_1, window_bounds = array<i64: 16, 128>}, {transform_indices = @transform_2, window_bounds = array<i64: 1, 128>}, {transform_indices = @transform_3, window_bounds = array<i64: 512, 128>}]} {
    %c0 = arith.constant 0 : index
    %c0_0 = arith.constant 0 : index
    %0 = vector.load %arg2[%c0, %c0_0] : memref<512x16xbf16, #tpu.memory_space<vmem>>, vector<512x16xbf16>
    %c0_1 = arith.constant 0 : index
    %c0_2 = arith.constant 0 : index
    %1 = vector.load %arg3[%c0_1, %c0_2] : memref<16x128xbf16, #tpu.memory_space<vmem>>, vector<16x128xbf16>
    %cst = arith.constant dense<0.000000e+00> : vector<512x128xf32>
    %2 = tpu.matmul %0, %1, %cst {dimension_numbers = #tpu.dot_dimension_numbers<[1], [0], [0], [1], [0, 0, 1, 1], [], []>} : vector<512x16xbf16>, vector<16x128xbf16>, vector<512x128xf32> -> vector<512x128xf32>
    %c0_3 = arith.constant 0 : index
    %c0_4 = arith.constant 0 : index
    %3 = vector.load %arg4[%c0_3, %c0_4] : memref<1x128xf32, #tpu.memory_space<vmem>>, vector<1x128xf32>
    %4 = vector.broadcast %3 : vector<1x128xf32> to vector<512x128xf32>
    %5 = arith.addf %2, %4 : vector<512x128xf32>
    %cst_5 = arith.constant 0.000000e+00 : f32
    %6 = vector.broadcast %cst_5 : f32 to vector<512x128xf32>
    %7 = arith.maximumf %5, %6 : vector<512x128xf32>
    %8 = arith.truncf %7 : vector<512x128xf32> to vector<512x128xbf16>
    %c0_6 = arith.constant 0 : index
    %c0_7 = arith.constant 0 : index
    %9 = vector.load %arg5[%c0_6, %c0_7] : memref<512x128xbf16, #tpu.memory_space<vmem>>, vector<512x128xbf16>
    tpu.vector_store %arg5[%c0_6, %c0_7], %8 {strides = array<i32>} : memref<512x128xbf16, #tpu.memory_space<vmem>>, vector<512x128xbf16>,
    return
  }
  func.func @transform_0(%arg0: i32, %arg1: i32) -> (i32, i32) {
    %c0_i32 = arith.constant 0 : i32
    %c0_i32_0 = arith.constant 0 : i32
    return %arg0, %c0_i32 : i32, i32
  }
  func.func @transform_1(%arg0: i32, %arg1: i32) -> (i32, i32) {
    %c0_i32 = arith.constant 0 : i32
    %c0_i32_0 = arith.constant 0 : i32
    return %c0_i32, %arg1 : i32, i32
  }
  func.func @transform_2(%arg0: i32, %arg1: i32) -> (i32, i32) {
    %c0_i32 = arith.constant 0 : i32
    %c0_i32_0 = arith.constant 0 : i32
    return %c0_i32, %arg1 : i32, i32
  }
  func.func @transform_3(%arg0: i32, %arg1: i32) -> (i32, i32) {
    %c0_i32 = arith.constant 0 : i32
    return %arg0, %arg1 : i32, i32
  }
}

module attributes {stable_mosaic.version = 11 : i64} {
  func.func @_mm_bias_kernel(%arg0: i32, %arg1: i32, %arg2: memref<256x512xbf16, #tpu.memory_space<vmem>>, %arg3: memref<512x128xbf16, #tpu.memory_space<vmem>>, %arg4: memref<1x128xf32, #tpu.memory_space<vmem>>, %arg5: memref<256x128xbf16, #tpu.memory_space<vmem>>) attributes {dimension_semantics = [#tpu.dimension_semantics<parallel>, #tpu.dimension_semantics<parallel>], iteration_bounds = array<i64: 2, 1>, scalar_prefetch = 0 : i64, scratch_operands = 0 : i64, tpu.core_type = #tpu.core_type<tc>, window_params = [{transform_indices = @transform_0, window_bounds = array<i64: 256, 512>}, {transform_indices = @transform_1, window_bounds = array<i64: 512, 128>}, {transform_indices = @transform_2, window_bounds = array<i64: 1, 128>}, {transform_indices = @transform_3, window_bounds = array<i64: 256, 128>}]} {
    %c0 = arith.constant 0 : index
    %c0_0 = arith.constant 0 : index
    %0 = vector.load %arg2[%c0, %c0_0] : memref<256x512xbf16, #tpu.memory_space<vmem>>, vector<256x512xbf16>
    %c0_1 = arith.constant 0 : index
    %c0_2 = arith.constant 0 : index
    %1 = vector.load %arg3[%c0_1, %c0_2] : memref<512x128xbf16, #tpu.memory_space<vmem>>, vector<512x128xbf16>
    %cst = arith.constant dense<0.000000e+00> : vector<256x128xf32>
    %2 = tpu.matmul %0, %1, %cst {dimension_numbers = #tpu.dot_dimension_numbers<[1], [0], [0], [1], [0, 0, 1, 1], [], []>} : vector<256x512xbf16>, vector<512x128xbf16>, vector<256x128xf32> -> vector<256x128xf32>
    %c0_3 = arith.constant 0 : index
    %c0_4 = arith.constant 0 : index
    %3 = vector.load %arg4[%c0_3, %c0_4] : memref<1x128xf32, #tpu.memory_space<vmem>>, vector<1x128xf32>
    %4 = vector.broadcast %3 : vector<1x128xf32> to vector<256x128xf32>
    %5 = arith.addf %2, %4 : vector<256x128xf32>
    %cst_5 = arith.constant 0.000000e+00 : f32
    %6 = vector.broadcast %cst_5 : f32 to vector<256x128xf32>
    %7 = arith.maximumf %5, %6 : vector<256x128xf32>
    %8 = arith.truncf %7 : vector<256x128xf32> to vector<256x128xbf16>
    %c0_6 = arith.constant 0 : index
    %c0_7 = arith.constant 0 : index
    %9 = vector.load %arg5[%c0_6, %c0_7] : memref<256x128xbf16, #tpu.memory_space<vmem>>, vector<256x128xbf16>
    tpu.vector_store %arg5[%c0_6, %c0_7], %8 {strides = array<i32>} : memref<256x128xbf16, #tpu.memory_space<vmem>>, vector<256x128xbf16>,
    return
  }
  func.func @transform_0(%arg0: i32, %arg1: i32) -> (i32, i32) {
    %c0_i32 = arith.constant 0 : i32
    %c0_i32_0 = arith.constant 0 : i32
    return %arg0, %c0_i32 : i32, i32
  }
  func.func @transform_1(%arg0: i32, %arg1: i32) -> (i32, i32) {
    %c0_i32 = arith.constant 0 : i32
    %c0_i32_0 = arith.constant 0 : i32
    return %c0_i32, %arg1 : i32, i32
  }
  func.func @transform_2(%arg0: i32, %arg1: i32) -> (i32, i32) {
    %c0_i32 = arith.constant 0 : i32
    %c0_i32_0 = arith.constant 0 : i32
    return %c0_i32, %arg1 : i32, i32
  }
  func.func @transform_3(%arg0: i32, %arg1: i32) -> (i32, i32) {
    %c0_i32 = arith.constant 0 : i32
    return %arg0, %arg1 : i32, i32
  }
}

module attributes {stable_mosaic.version = 11 : i64} {
  func.func @_mm_bias_kernel(%arg0: i32, %arg1: i32, %arg2: memref<64x1024xbf16, #tpu.memory_space<vmem>>, %arg3: memref<1024x128xbf16, #tpu.memory_space<vmem>>, %arg4: memref<1x128xf32, #tpu.memory_space<vmem>>, %arg5: memref<64x128xbf16, #tpu.memory_space<vmem>>) attributes {dimension_semantics = [#tpu.dimension_semantics<parallel>, #tpu.dimension_semantics<parallel>], iteration_bounds = array<i64: 2, 1>, scalar_prefetch = 0 : i64, scratch_operands = 0 : i64, tpu.core_type = #tpu.core_type<tc>, window_params = [{transform_indices = @transform_0, window_bounds = array<i64: 64, 1024>}, {transform_indices = @transform_1, window_bounds = array<i64: 1024, 128>}, {transform_indices = @transform_2, window_bounds = array<i64: 1, 128>}, {transform_indices = @transform_3, window_bounds = array<i64: 64, 128>}]} {
    %c0 = arith.constant 0 : index
    %c0_0 = arith.constant 0 : index
    %0 = vector.load %arg2[%c0, %c0_0] : memref<64x1024xbf16, #tpu.memory_space<vmem>>, vector<64x1024xbf16>
    %c0_1 = arith.constant 0 : index
    %c0_2 = arith.constant 0 : index
    %1 = vector.load %arg3[%c0_1, %c0_2] : memref<1024x128xbf16, #tpu.memory_space<vmem>>, vector<1024x128xbf16>
    %cst = arith.constant dense<0.000000e+00> : vector<64x128xf32>
    %2 = tpu.matmul %0, %1, %cst {dimension_numbers = #tpu.dot_dimension_numbers<[1], [0], [0], [1], [0, 0, 1, 1], [], []>} : vector<64x1024xbf16>, vector<1024x128xbf16>, vector<64x128xf32> -> vector<64x128xf32>
    %c0_3 = arith.constant 0 : index
    %c0_4 = arith.constant 0 : index
    %3 = vector.load %arg4[%c0_3, %c0_4] : memref<1x128xf32, #tpu.memory_space<vmem>>, vector<1x128xf32>
    %4 = vector.broadcast %3 : vector<1x128xf32> to vector<64x128xf32>
    %5 = arith.addf %2, %4 : vector<64x128xf32>
    %cst_5 = arith.constant 0.000000e+00 : f32
    %6 = vector.broadcast %cst_5 : f32 to vector<64x128xf32>
    %7 = arith.maximumf %5, %6 : vector<64x128xf32>
    %8 = arith.truncf %7 : vector<64x128xf32> to vector<64x128xbf16>
    %c0_6 = arith.constant 0 : index
    %c0_7 = arith.constant 0 : index
    %9 = vector.load %arg5[%c0_6, %c0_7] : memref<64x128xbf16, #tpu.memory_space<vmem>>, vector<64x128xbf16>
    tpu.vector_store %arg5[%c0_6, %c0_7], %8 {strides = array<i32>} : memref<64x128xbf16, #tpu.memory_space<vmem>>, vector<64x128xbf16>,
    return
  }
  func.func @transform_0(%arg0: i32, %arg1: i32) -> (i32, i32) {
    %c0_i32 = arith.constant 0 : i32
    %c0_i32_0 = arith.constant 0 : i32
    return %arg0, %c0_i32 : i32, i32
  }
  func.func @transform_1(%arg0: i32, %arg1: i32) -> (i32, i32) {
    %c0_i32 = arith.constant 0 : i32
    %c0_i32_0 = arith.constant 0 : i32
    return %c0_i32, %arg1 : i32, i32
  }
  func.func @transform_2(%arg0: i32, %arg1: i32) -> (i32, i32) {
    %c0_i32 = arith.constant 0 : i32
    %c0_i32_0 = arith.constant 0 : i32
    return %c0_i32, %arg1 : i32, i32
  }
  func.func @transform_3(%arg0: i32, %arg1: i32) -> (i32, i32) {
    %c0_i32 = arith.constant 0 : i32
    return %arg0, %arg1 : i32, i32
  }
}

module attributes {stable_mosaic.version = 11 : i64} {
  func.func @_mm_bias_kernel(%arg0: i32, %arg1: i32, %arg2: memref<8x8192xbf16, #tpu.memory_space<vmem>>, %arg3: memref<8192x128xbf16, #tpu.memory_space<vmem>>, %arg4: memref<1x128xf32, #tpu.memory_space<vmem>>, %arg5: memref<8x128xbf16, #tpu.memory_space<vmem>>) attributes {dimension_semantics = [#tpu.dimension_semantics<parallel>, #tpu.dimension_semantics<parallel>], iteration_bounds = array<i64: 1, 1>, scalar_prefetch = 0 : i64, scratch_operands = 0 : i64, tpu.core_type = #tpu.core_type<tc>, window_params = [{transform_indices = @transform_0, window_bounds = array<i64: 8, 8192>}, {transform_indices = @transform_1, window_bounds = array<i64: 8192, 128>}, {transform_indices = @transform_2, window_bounds = array<i64: 1, 128>}, {transform_indices = @transform_3, window_bounds = array<i64: 8, 128>}]} {
    %c0 = arith.constant 0 : index
    %c0_0 = arith.constant 0 : index
    %0 = vector.load %arg2[%c0, %c0_0] : memref<8x8192xbf16, #tpu.memory_space<vmem>>, vector<8x8192xbf16>
    %c0_1 = arith.constant 0 : index
    %c0_2 = arith.constant 0 : index
    %1 = vector.load %arg3[%c0_1, %c0_2] : memref<8192x128xbf16, #tpu.memory_space<vmem>>, vector<8192x128xbf16>
    %cst = arith.constant dense<0.000000e+00> : vector<8x128xf32>
    %2 = tpu.matmul %0, %1, %cst {dimension_numbers = #tpu.dot_dimension_numbers<[1], [0], [0], [1], [0, 0, 1, 1], [], []>} : vector<8x8192xbf16>, vector<8192x128xbf16>, vector<8x128xf32> -> vector<8x128xf32>
    %c0_3 = arith.constant 0 : index
    %c0_4 = arith.constant 0 : index
    %3 = vector.load %arg4[%c0_3, %c0_4] : memref<1x128xf32, #tpu.memory_space<vmem>>, vector<1x128xf32>
    %4 = vector.broadcast %3 : vector<1x128xf32> to vector<8x128xf32>
    %5 = arith.addf %2, %4 : vector<8x128xf32>
    %6 = arith.truncf %5 : vector<8x128xf32> to vector<8x128xbf16>
    %c0_5 = arith.constant 0 : index
    %c0_6 = arith.constant 0 : index
    %7 = vector.load %arg5[%c0_5, %c0_6] : memref<8x128xbf16, #tpu.memory_space<vmem>>, vector<8x128xbf16>
    tpu.vector_store %arg5[%c0_5, %c0_6], %6 {strides = array<i32>} : memref<8x128xbf16, #tpu.memory_space<vmem>>, vector<8x128xbf16>,
    return
  }
  func.func @transform_0(%arg0: i32, %arg1: i32) -> (i32, i32) {
    %c0_i32 = arith.constant 0 : i32
    %c0_i32_0 = arith.constant 0 : i32
    return %arg0, %c0_i32 : i32, i32
  }
  func.func @transform_1(%arg0: i32, %arg1: i32) -> (i32, i32) {
    %c0_i32 = arith.constant 0 : i32
    %c0_i32_0 = arith.constant 0 : i32
    return %c0_i32, %arg1 : i32, i32
  }
  func.func @transform_2(%arg0: i32, %arg1: i32) -> (i32, i32) {
    %c0_i32 = arith.constant 0 : i32
    %c0_i32_0 = arith.constant 0 : i32
    return %c0_i32, %arg1 : i32, i32
  }
  func.func @transform_3(%arg0: i32, %arg1: i32) -> (i32, i32) {
    %c0_i32 = arith.constant 0 : i32
    return %arg0, %arg1 : i32, i32
  }
}

module attributes {stable_mosaic.version = 11 : i64} {
  func.func @_mm_bias_kernel(%arg0: i32, %arg1: i32, %arg2: memref<8x128xbf16, #tpu.memory_space<vmem>>, %arg3: memref<128x1024xbf16, #tpu.memory_space<vmem>>, %arg4: memref<1x1024xf32, #tpu.memory_space<vmem>>, %arg5: memref<8x1024xbf16, #tpu.memory_space<vmem>>, %arg6: memref<8x1024xbf16, #tpu.memory_space<vmem>>) attributes {dimension_semantics = [#tpu.dimension_semantics<parallel>, #tpu.dimension_semantics<parallel>], iteration_bounds = array<i64: 1, 8>, scalar_prefetch = 0 : i64, scratch_operands = 0 : i64, tpu.core_type = #tpu.core_type<tc>, window_params = [{transform_indices = @transform_0, window_bounds = array<i64: 8, 128>}, {transform_indices = @transform_1, window_bounds = array<i64: 128, 1024>}, {transform_indices = @transform_2, window_bounds = array<i64: 1, 1024>}, {transform_indices = @transform_3, window_bounds = array<i64: 8, 1024>}, {transform_indices = @transform_4, window_bounds = array<i64: 8, 1024>}]} {
    %c0 = arith.constant 0 : index
    %c0_0 = arith.constant 0 : index
    %0 = vector.load %arg2[%c0, %c0_0] : memref<8x128xbf16, #tpu.memory_space<vmem>>, vector<8x128xbf16>
    %c0_1 = arith.constant 0 : index
    %c0_2 = arith.constant 0 : index
    %1 = vector.load %arg3[%c0_1, %c0_2] : memref<128x1024xbf16, #tpu.memory_space<vmem>>, vector<128x1024xbf16>
    %cst = arith.constant dense<0.000000e+00> : vector<8x1024xf32>
    %2 = tpu.matmul %0, %1, %cst {dimension_numbers = #tpu.dot_dimension_numbers<[1], [0], [0], [1], [0, 0, 1, 1], [], []>} : vector<8x128xbf16>, vector<128x1024xbf16>, vector<8x1024xf32> -> vector<8x1024xf32>
    %c0_3 = arith.constant 0 : index
    %c0_4 = arith.constant 0 : index
    %3 = vector.load %arg4[%c0_3, %c0_4] : memref<1x1024xf32, #tpu.memory_space<vmem>>, vector<1x1024xf32>
    %4 = vector.broadcast %3 : vector<1x1024xf32> to vector<8x1024xf32>
    %5 = arith.addf %2, %4 : vector<8x1024xf32>
    %c0_5 = arith.constant 0 : index
    %c0_6 = arith.constant 0 : index
    %6 = vector.load %arg5[%c0_5, %c0_6] : memref<8x1024xbf16, #tpu.memory_space<vmem>>, vector<8x1024xbf16>
    %7 = arith.extf %6 : vector<8x1024xbf16> to vector<8x1024xf32>
    %8 = arith.addf %5, %7 : vector<8x1024xf32>
    %9 = arith.truncf %8 : vector<8x1024xf32> to vector<8x1024xbf16>
    %c0_7 = arith.constant 0 : index
    %c0_8 = arith.constant 0 : index
    %10 = vector.load %arg6[%c0_7, %c0_8] : memref<8x1024xbf16, #tpu.memory_space<vmem>>, vector<8x1024xbf16>
    tpu.vector_store %arg6[%c0_7, %c0_8], %9 {strides = array<i32>} : memref<8x1024xbf16, #tpu.memory_space<vmem>>, vector<8x1024xbf16>,
    return
  }
  func.func @transform_0(%arg0: i32, %arg1: i32) -> (i32, i32) {
    %c0_i32 = arith.constant 0 : i32
    %c0_i32_0 = arith.constant 0 : i32
    return %arg0, %c0_i32 : i32, i32
  }
  func.func @transform_1(%arg0: i32, %arg1: i32) -> (i32, i32) {
    %c0_i32 = arith.constant 0 : i32
    %c0_i32_0 = arith.constant 0 : i32
    return %c0_i32, %arg1 : i32, i32
  }
  func.func @transform_2(%arg0: i32, %arg1: i32) -> (i32, i32) {
    %c0_i32 = arith.constant 0 : i32
    %c0_i32_0 = arith.constant 0 : i32
    return %c0_i32, %arg1 : i32, i32
  }
  func.func @transform_3(%arg0: i32, %arg1: i32) -> (i32, i32) {
    %c0_i32 = arith.constant 0 : i32
    return %arg0, %arg1 : i32, i32
  }
  func.func @transform_4(%arg0: i32, %arg1: i32) -> (i32, i32) {
    %c0_i32 = arith.constant 0 : i32
    return %arg0, %arg1 : i32, i32
  }
}

module attributes {stable_mosaic.version = 11 : i64} {
  func.func @_mm_bias_kernel(%arg0: i32, %arg1: i32, %arg2: memref<64x1152xbf16, #tpu.memory_space<vmem>>, %arg3: memref<1152x256xbf16, #tpu.memory_space<vmem>>, %arg4: memref<1x256xf32, #tpu.memory_space<vmem>>, %arg5: memref<64x256xbf16, #tpu.memory_space<vmem>>) attributes {dimension_semantics = [#tpu.dimension_semantics<parallel>, #tpu.dimension_semantics<parallel>], iteration_bounds = array<i64: 2, 1>, scalar_prefetch = 0 : i64, scratch_operands = 0 : i64, tpu.core_type = #tpu.core_type<tc>, window_params = [{transform_indices = @transform_0, window_bounds = array<i64: 64, 1152>}, {transform_indices = @transform_1, window_bounds = array<i64: 1152, 256>}, {transform_indices = @transform_2, window_bounds = array<i64: 1, 256>}, {transform_indices = @transform_3, window_bounds = array<i64: 64, 256>}]} {
    %c0 = arith.constant 0 : index
    %c0_0 = arith.constant 0 : index
    %0 = vector.load %arg2[%c0, %c0_0] : memref<64x1152xbf16, #tpu.memory_space<vmem>>, vector<64x1152xbf16>
    %c0_1 = arith.constant 0 : index
    %c0_2 = arith.constant 0 : index
    %1 = vector.load %arg3[%c0_1, %c0_2] : memref<1152x256xbf16, #tpu.memory_space<vmem>>, vector<1152x256xbf16>
    %cst = arith.constant dense<0.000000e+00> : vector<64x256xf32>
    %2 = tpu.matmul %0, %1, %cst {dimension_numbers = #tpu.dot_dimension_numbers<[1], [0], [0], [1], [0, 0, 1, 1], [], []>} : vector<64x1152xbf16>, vector<1152x256xbf16>, vector<64x256xf32> -> vector<64x256xf32>
    %c0_3 = arith.constant 0 : index
    %c0_4 = arith.constant 0 : index
    %3 = vector.load %arg4[%c0_3, %c0_4] : memref<1x256xf32, #tpu.memory_space<vmem>>, vector<1x256xf32>
    %4 = vector.broadcast %3 : vector<1x256xf32> to vector<64x256xf32>
    %5 = arith.addf %2, %4 : vector<64x256xf32>
    %cst_5 = arith.constant 0.000000e+00 : f32
    %6 = vector.broadcast %cst_5 : f32 to vector<64x256xf32>
    %7 = arith.maximumf %5, %6 : vector<64x256xf32>
    %8 = arith.truncf %7 : vector<64x256xf32> to vector<64x256xbf16>
    %c0_6 = arith.constant 0 : index
    %c0_7 = arith.constant 0 : index
    %9 = vector.load %arg5[%c0_6, %c0_7] : memref<64x256xbf16, #tpu.memory_space<vmem>>, vector<64x256xbf16>
    tpu.vector_store %arg5[%c0_6, %c0_7], %8 {strides = array<i32>} : memref<64x256xbf16, #tpu.memory_space<vmem>>, vector<64x256xbf16>,
    return
  }
  func.func @transform_0(%arg0: i32, %arg1: i32) -> (i32, i32) {
    %c0_i32 = arith.constant 0 : i32
    %c0_i32_0 = arith.constant 0 : i32
    return %arg0, %c0_i32 : i32, i32
  }
  func.func @transform_1(%arg0: i32, %arg1: i32) -> (i32, i32) {
    %c0_i32 = arith.constant 0 : i32
    %c0_i32_0 = arith.constant 0 : i32
    return %c0_i32, %arg1 : i32, i32
  }
  func.func @transform_2(%arg0: i32, %arg1: i32) -> (i32, i32) {
    %c0_i32 = arith.constant 0 : i32
    %c0_i32_0 = arith.constant 0 : i32
    return %c0_i32, %arg1 : i32, i32
  }
  func.func @transform_3(%arg0: i32, %arg1: i32) -> (i32, i32) {
    %c0_i32 = arith.constant 0 : i32
    return %arg0, %arg1 : i32, i32
  }
}

module attributes {stable_mosaic.version = 11 : i64} {
  func.func @_mm_bias_kernel(%arg0: i32, %arg1: i32, %arg2: memref<256x576xbf16, #tpu.memory_space<vmem>>, %arg3: memref<576x128xbf16, #tpu.memory_space<vmem>>, %arg4: memref<1x128xf32, #tpu.memory_space<vmem>>, %arg5: memref<256x128xbf16, #tpu.memory_space<vmem>>) attributes {dimension_semantics = [#tpu.dimension_semantics<parallel>, #tpu.dimension_semantics<parallel>], iteration_bounds = array<i64: 2, 1>, scalar_prefetch = 0 : i64, scratch_operands = 0 : i64, tpu.core_type = #tpu.core_type<tc>, window_params = [{transform_indices = @transform_0, window_bounds = array<i64: 256, 576>}, {transform_indices = @transform_1, window_bounds = array<i64: 576, 128>}, {transform_indices = @transform_2, window_bounds = array<i64: 1, 128>}, {transform_indices = @transform_3, window_bounds = array<i64: 256, 128>}]} {
    %c0 = arith.constant 0 : index
    %c0_0 = arith.constant 0 : index
    %0 = vector.load %arg2[%c0, %c0_0] : memref<256x576xbf16, #tpu.memory_space<vmem>>, vector<256x576xbf16>
    %c0_1 = arith.constant 0 : index
    %c0_2 = arith.constant 0 : index
    %1 = vector.load %arg3[%c0_1, %c0_2] : memref<576x128xbf16, #tpu.memory_space<vmem>>, vector<576x128xbf16>
    %cst = arith.constant dense<0.000000e+00> : vector<256x128xf32>
    %2 = tpu.matmul %0, %1, %cst {dimension_numbers = #tpu.dot_dimension_numbers<[1], [0], [0], [1], [0, 0, 1, 1], [], []>} : vector<256x576xbf16>, vector<576x128xbf16>, vector<256x128xf32> -> vector<256x128xf32>
    %c0_3 = arith.constant 0 : index
    %c0_4 = arith.constant 0 : index
    %3 = vector.load %arg4[%c0_3, %c0_4] : memref<1x128xf32, #tpu.memory_space<vmem>>, vector<1x128xf32>
    %4 = vector.broadcast %3 : vector<1x128xf32> to vector<256x128xf32>
    %5 = arith.addf %2, %4 : vector<256x128xf32>
    %cst_5 = arith.constant 0.000000e+00 : f32
    %6 = vector.broadcast %cst_5 : f32 to vector<256x128xf32>
    %7 = arith.maximumf %5, %6 : vector<256x128xf32>
    %8 = arith.truncf %7 : vector<256x128xf32> to vector<256x128xbf16>
    %c0_6 = arith.constant 0 : index
    %c0_7 = arith.constant 0 : index
    %9 = vector.load %arg5[%c0_6, %c0_7] : memref<256x128xbf16, #tpu.memory_space<vmem>>, vector<256x128xbf16>
    tpu.vector_store %arg5[%c0_6, %c0_7], %8 {strides = array<i32>} : memref<256x128xbf16, #tpu.memory_space<vmem>>, vector<256x128xbf16>,
    return
  }
  func.func @transform_0(%arg0: i32, %arg1: i32) -> (i32, i32) {
    %c0_i32 = arith.constant 0 : i32
    %c0_i32_0 = arith.constant 0 : i32
    return %arg0, %c0_i32 : i32, i32
  }
  func.func @transform_1(%arg0: i32, %arg1: i32) -> (i32, i32) {
    %c0_i32 = arith.constant 0 : i32
    %c0_i32_0 = arith.constant 0 : i32
    return %c0_i32, %arg1 : i32, i32
  }
  func.func @transform_2(%arg0: i32, %arg1: i32) -> (i32, i32) {
    %c0_i32 = arith.constant 0 : i32
    %c0_i32_0 = arith.constant 0 : i32
    return %c0_i32, %arg1 : i32, i32
  }
  func.func @transform_3(%arg0: i32, %arg1: i32) -> (i32, i32) {
    %c0_i32 = arith.constant 0 : i32
    return %arg0, %arg1 : i32, i32
  }
}

module attributes {stable_mosaic.version = 11 : i64} {
  func.func @_mm_bias_kernel(%arg0: i32, %arg1: i32, %arg2: memref<512x288xbf16, #tpu.memory_space<vmem>>, %arg3: memref<288x128xbf16, #tpu.memory_space<vmem>>, %arg4: memref<1x128xf32, #tpu.memory_space<vmem>>, %arg5: memref<512x128xbf16, #tpu.memory_space<vmem>>) attributes {dimension_semantics = [#tpu.dimension_semantics<parallel>, #tpu.dimension_semantics<parallel>], iteration_bounds = array<i64: 4, 1>, scalar_prefetch = 0 : i64, scratch_operands = 0 : i64, tpu.core_type = #tpu.core_type<tc>, window_params = [{transform_indices = @transform_0, window_bounds = array<i64: 512, 288>}, {transform_indices = @transform_1, window_bounds = array<i64: 288, 128>}, {transform_indices = @transform_2, window_bounds = array<i64: 1, 128>}, {transform_indices = @transform_3, window_bounds = array<i64: 512, 128>}]} {
    %c0 = arith.constant 0 : index
    %c0_0 = arith.constant 0 : index
    %0 = vector.load %arg2[%c0, %c0_0] : memref<512x288xbf16, #tpu.memory_space<vmem>>, vector<512x288xbf16>
    %c0_1 = arith.constant 0 : index
    %c0_2 = arith.constant 0 : index
    %1 = vector.load %arg3[%c0_1, %c0_2] : memref<288x128xbf16, #tpu.memory_space<vmem>>, vector<288x128xbf16>
    %cst = arith.constant dense<0.000000e+00> : vector<512x128xf32>
    %2 = tpu.matmul %0, %1, %cst {dimension_numbers = #tpu.dot_dimension_numbers<[1], [0], [0], [1], [0, 0, 1, 1], [], []>} : vector<512x288xbf16>, vector<288x128xbf16>, vector<512x128xf32> -> vector<512x128xf32>
    %c0_3 = arith.constant 0 : index
    %c0_4 = arith.constant 0 : index
    %3 = vector.load %arg4[%c0_3, %c0_4] : memref<1x128xf32, #tpu.memory_space<vmem>>, vector<1x128xf32>
    %4 = vector.broadcast %3 : vector<1x128xf32> to vector<512x128xf32>
    %5 = arith.addf %2, %4 : vector<512x128xf32>
    %cst_5 = arith.constant 0.000000e+00 : f32
    %6 = vector.broadcast %cst_5 : f32 to vector<512x128xf32>
    %7 = arith.maximumf %5, %6 : vector<512x128xf32>
    %8 = arith.truncf %7 : vector<512x128xf32> to vector<512x128xbf16>
    %c0_6 = arith.constant 0 : index
    %c0_7 = arith.constant 0 : index
    %9 = vector.load %arg5[%c0_6, %c0_7] : memref<512x128xbf16, #tpu.memory_space<vmem>>, vector<512x128xbf16>
    tpu.vector_store %arg5[%c0_6, %c0_7], %8 {strides = array<i32>} : memref<512x128xbf16, #tpu.memory_space<vmem>>, vector<512x128xbf16>,
    return
  }
  func.func @transform_0(%arg0: i32, %arg1: i32) -> (i32, i32) {
    %c0_i32 = arith.constant 0 : i32
    %c0_i32_0 = arith.constant 0 : i32
    return %arg0, %c0_i32 : i32, i32
  }
  func.func @transform_1(%arg0: i32, %arg1: i32) -> (i32, i32) {
    %c0_i32 = arith.constant 0 : i32
    %c0_i32_0 = arith.constant 0 : i32
    return %c0_i32, %arg1 : i32, i32
  }
  func.func @transform_2(%arg0: i32, %arg1: i32) -> (i32, i32) {
    %c0_i32 = arith.constant 0 : i32
    %c0_i32_0 = arith.constant 0 : i32
    return %c0_i32, %arg1 : i32, i32
  }
  func.func @transform_3(%arg0: i32, %arg1: i32) -> (i32, i32) {
    %c0_i32 = arith.constant 0 : i32
    return %arg0, %arg1 : i32, i32
  }
}

</mosaic_0001>

<bundles_post_ra>
// kernel: kappa_denoiser_forward.8
= control target key start
LH: loop header
LB: loop body
LE: loop exit
PB: predicated region body
PF: predicated region fallthrough
CT: control target
= control target key end

     0   :  { %8 = vsyncpa [#allocation3], 0  ;;  %s2290_s0 = inlined_call_operand.vmem [shape: bf16[2048,16], index: 0, kind: input, shape index: {}]   ;;  %s2291_s1 = inlined_call_operand.hbm [shape: bf16[16,128], index: 1, kind: input, shape index: {}]   ;;  %s2292_s2 = inlined_call_operand.hbm [shape: f32[1,128], index: 2, kind: input, shape index: {}]   ;;  %s2293_s3 = inlined_call_operand.vmem [shape: bf16[2048,128], index: 3, kind: output, shape index: {}]  }
   0x1   :  { %9 = vsyncpa [#allocation5], 0  ;;  %s2036_s12 = smov 0   ;;  %s2038_s13 = smov 0  }
   0x2   :  { %s2040_s14 = smov 0  }
   0x3 LB: > { %s1347_s15 = sadd.s32 4294967295, %s2010_s14   ;;  %s27_s16 = sadd.s32 1, %s2006_s13  ;;  %s2010_s14 = sphi %s2040_s14, %s15_s14   ;;  %s2006_s13 = sphi %s2038_s13, %s2298_s13   ;;  %s2002_s12 = sphi %s2036_s12, %s2297_s12  }
   0x4   : > { %p29_p0 = scmp.ge.s32.totalorder %s27_s16, 4  ;;  %p1349_p1 = scmp.ge.s32.totalorder %s2010_s14, 1 }
   0x5   : > { %p138_p2 = scmp.lt.s32.totalorder %s2010_s14, 5  ;;  %p2061_p4 = scmp.eq.s32.totalorder %s1347_s15, 0 }
   0x6   : > { %s2300_s16 = smov (%p29_p0, %s27_s16), 0  ;;  %s2012_s19 = smov [#allocation2]  }
   0x7   : > { %p2057_p3 = pnand %p1349_p1, %p138_p2  ;;  %s152_s20 = sshll.u32 %s2012_s19, 4  ;;  %s153_s20 = int_to_ptr.vmem [resolvable:$true] %s152_s20 }
   0x8   : > { %s2013_s22 = smov [#allocation4]   ;;  %s1939_s24 = scalar_lea.vmem %s153_s20, 128 }
   0x9   : > { %p1856_p5 = pneg %p2057_p3  ;;  %s168_s23 = sshll.u32 %s2013_s22, 4  ;;  %s169_s23 = int_to_ptr.vmem [resolvable:$true] %s168_s23 }
   0xa   : > { %p1940_p8 = scmp.ne.s32.totalorder %s153_s20, %s1939_s24  ;;  %p1947_p11 = scmp.lt.s32.totalorder %s153_s20, %s153_s20 }
   0xb   : > { %p2069_p6 = pnand %p2061_p4, %p1856_p5  ;;  %p1948_p12 = scmp.lt.s32.totalorder %s1939_s24, %s1939_s24 }
   0xd   : > { %p1930_p7 = pneg %p2069_p6  ;;  %p1949_p13 = por %p1948_p12, %p1947_p11 }
   0xf   : > { %p1942_p9 = pnand %p1940_p8, %p1930_p7 }
  0x11   : > { %p1943_p10 = pneg %p1942_p9 }
  0x13   : > { %p1950_p0 = pnand %p1949_p13, %p1943_p10 }
  0x15   : > { %1953 = shalt.err (!%p1950_p0)
}
  0x16   : > { %s2014_s25 = smov 64   ;;  %s2015_s26 = smov 4  }
  0x17   : > { %1859 = dma.hbm_to_vmem [thread:$0]  (!%p2069_p6), %s2291_s1, 128, %s153_s20, [#allocation3], %s2014_s25, %s2014_s25, %s2015_s26  }
  0x18   : > { %s1965_s29 = scalar_lea.vmem %s169_s23, 16  ;;  %s1972_s30 = scalar_lea.vmem %s169_s23, 32 }
  0x19   : > { %p1966_p1 = scmp.ne.s32.totalorder %s169_s23, %s1965_s29  ;;  %p1973_p8 = scmp.lt.s32.totalorder %s169_s23, %s169_s23 }
  0x1a   : > { %p1974_p9 = scmp.lt.s32.totalorder %s1972_s30, %s1965_s29 }
  0x1b   : > { %p1968_p2 = pnand %p1966_p1, %p1930_p7 }
  0x1c   : > { %p1975_p10 = por %p1974_p9, %p1973_p8 }
  0x1d   : > { %p1969_p5 = pneg %p1968_p2 }
  0x1f   : > { %p1976_p11 = pnand %p1975_p10, %p1969_p5 }
  0x21   : > { %1979 = shalt.err (!%p1976_p11)
}
  0x22   : > { %1862 = dma.hbm_to_vmem [thread:$0]  (!%p2069_p6), %s2292_s2, 16, %s169_s23, [#allocation5]  }
  0x23   : > { %190 = sbr.rel (%p2057_p3) target bundleno = 314 (0x13a), region = 32 }
  0x28   : > { %1993 = dma.done.wait (%p2061_p4), [#allocation3], 128  }
  0x29   : > { %1995 = vsyncadd (%p2061_p4), [#allocation3], 4294967168 }
  0x2a   : > { %1997 = dma.done.wait (%p2061_p4), [#allocation5], 16  }
  0x2b   : > { %1999 = vsyncadd (%p2061_p4), [#allocation5], 4294967280  ;;  %s1356_s6 = sshll.u32 %s2002_s12, 6  ;;  %v1895_v0 = vld [vmem:[#allocation2] sm:$0xff]   ;;  %vm476_vm0 = vcmask 130048  }
  0x2c   : > { %p222_p7 = scmp.lt.s32.totalorder %s1356_s6, 255  ;;  %1780 = vmatprep.subr.bf16.mxu0 %v1895_v0  ;;  %1846 = vmatprep.subr.bf16.mxu1 %v1895_v0  ;;  %v2176_v33 = vld [vmem:[#allocation4] ss:$0 sm:$0xff] }
  0x2d   : > { %1781 = vmatpush3.bf16.msra.mxu0 %v1895_v0  ;;  %1847 = vmatpush3.bf16.msra.mxu1 %v1895_v0 }
  0x2e   : > { %s2302_s6 = smov (!%p222_p7, %s1356_s6), 255 }
  0x2f   : > { %s1357_s7 = sshll.u32 %s2302_s6, 2 }
  0x30   : > { %s2110_s10 = scalar_lea.vmem %s2290_s0, %s1357_s7  ;;  %s2191_s15 = scalar_lea.vmem %s2293_s3, %s1357_s7 }
  0x31   : > { %v1896_v1 = vld [vmem:[%s2110_s10] sm:$0xff]   ;;  %v1898_v3 = vld [vmem:[%s2110_s10 + $0x8] sm:$0xff]   ;;  %v1900_v5 = vld [vmem:[%s2110_s10 + $0x10] sm:$0xff]  }
  0x32   : > { %v1897_v2 = vld [vmem:[%s2110_s10 + $0x80] sm:$0xff]   ;;  %1782 = vmatprep.mubr.msk.bf16.mxu0 %vm476_vm0, %v1896_v1  ;;  %v1899_v4 = vld [vmem:[%s2110_s10 + $0x88] sm:$0xff]   ;;  %v1901_v6 = vld [vmem:[%s2110_s10 + $0x90] sm:$0xff]  }
  0x33   : > { %1814 = vmatprep.mubr.msk.bf16.mxu1 %vm476_vm0, %v1897_v2  ;;  %1783 = vmatmul.mubr.msk.bf16.vlgmr.msra.gmra.mxu0 %vm476_vm0, %v1898_v3  ;;  %v1902_v7 = vld [vmem:[%s2110_s10 + $0x18] sm:$0xff]   ;;  %v1904_v9 = vld [vmem:[%s2110_s10 + $0x20] sm:$0xff]   ;;  %v1906_v11 = vld [vmem:[%s2110_s10 + $0x28] sm:$0xff]  }
  0x34   : > { %1815 = vmatmul.mubr.msk.bf16.vlgmr.msra.gmra.mxu1 %vm476_vm0, %v1899_v4  ;;  %1786 = vmatprep.mubr.msk.bf16.mxu0 %vm476_vm0, %v1900_v5  ;;  %v1903_v8 = vld [vmem:[%s2110_s10 + $0x98] sm:$0xff]   ;;  %v1905_v10 = vld [vmem:[%s2110_s10 + $0xa0] sm:$0xff]   ;;  %v1907_v12 = vld [vmem:[%s2110_s10 + $0xa8] sm:$0xff]  }
  0x35   : > { %1818 = vmatprep.mubr.msk.bf16.mxu1 %vm476_vm0, %v1901_v6  ;;  %v1908_v13 = vld [vmem:[%s2110_s10 + $0x30] sm:$0xff]   ;;  %v1910_v15 = vld [vmem:[%s2110_s10 + $0x38] sm:$0xff]   ;;  %v1912_v17 = vld [vmem:[%s2110_s10 + $0x40] sm:$0xff]  }
  0x36   : > { %v1909_v14 = vld [vmem:[%s2110_s10 + $0xb0] sm:$0xff]   ;;  %v1911_v16 = vld [vmem:[%s2110_s10 + $0xb8] sm:$0xff]   ;;  %v1913_v18 = vld [vmem:[%s2110_s10 + $0xc0] sm:$0xff]  }
  0x37   : > { %v1914_v19 = vld [vmem:[%s2110_s10 + $0x48] sm:$0xff]   ;;  %v1916_v21 = vld [vmem:[%s2110_s10 + $0x50] sm:$0xff]   ;;  %v1918_v23 = vld [vmem:[%s2110_s10 + $0x58] sm:$0xff]  }
  0x38   : > { %v1915_v20 = vld [vmem:[%s2110_s10 + $0xc8] sm:$0xff]   ;;  %v1917_v22 = vld [vmem:[%s2110_s10 + $0xd0] sm:$0xff]   ;;  %v1919_v24 = vld [vmem:[%s2110_s10 + $0xd8] sm:$0xff]  }
  0x39   : > { %v1920_v25 = vld [vmem:[%s2110_s10 + $0x60] sm:$0xff]   ;;  %v1922_v27 = vld [vmem:[%s2110_s10 + $0x68] sm:$0xff]   ;;  %v1924_v29 = vld [vmem:[%s2110_s10 + $0x70] sm:$0xff]  }
  0x3a   : > { %v1921_v26 = vld [vmem:[%s2110_s10 + $0xe0] sm:$0xff]   ;;  %v1923_v28 = vld [vmem:[%s2110_s10 + $0xe8] sm:$0xff]   ;;  %v1925_v30 = vld [vmem:[%s2110_s10 + $0xf0] sm:$0xff]  }
  0x3b   : > { %1787 = vmatmul.mubr.msk.bf16.gmra.mxu0 %vm476_vm0, %v1902_v7  ;;  %v1926_v31 = vld [vmem:[%s2110_s10 + $0x78] sm:$0xff]  }
  0x3c   : > { %1819 = vmatmul.mubr.msk.bf16.gmra.mxu1 %vm476_vm0, %v1903_v8  ;;  %1790 = vmatprep.mubr.msk.bf16.mxu0 %vm476_vm0, %v1904_v9  ;;  %v1927_v32 = vld [vmem:[%s2110_s10 + $0xf8] sm:$0xff]  }
  0x3d   : > { %1822 = vmatprep.mubr.msk.bf16.mxu1 %vm476_vm0, %v1905_v10 }
  0x43   : > { %1791 = vmatmul.mubr.msk.bf16.gmra.mxu0 %vm476_vm0, %v1906_v11 }
  0x44   : > { %1823 = vmatmul.mubr.msk.bf16.gmra.mxu1 %vm476_vm0, %v1907_v12  ;;  %1794 = vmatprep.mubr.msk.bf16.mxu0 %vm476_vm0, %v1908_v13 }
  0x45   : > { %1826 = vmatprep.mubr.msk.bf16.mxu1 %vm476_vm0, %v1909_v14 }
  0x4b   : > { %1795 = vmatmul.mubr.msk.bf16.gmra.mxu0 %vm476_vm0, %v1910_v15 }
  0x4c   : > { %1827 = vmatmul.mubr.msk.bf16.gmra.mxu1 %vm476_vm0, %v1911_v16  ;;  %1798 = vmatprep.mubr.msk.bf16.mxu0 %vm476_vm0, %v1912_v17 }
  0x4d   : > { %1830 = vmatprep.mubr.msk.bf16.mxu1 %vm476_vm0, %v1913_v18 }
  0x53   : > { %1799 = vmatmul.mubr.msk.bf16.gmra.mxu0 %vm476_vm0, %v1914_v19 }
  0x54   : > { %1831 = vmatmul.mubr.msk.bf16.gmra.mxu1 %vm476_vm0, %v1915_v20  ;;  %1802 = vmatprep.mubr.msk.bf16.mxu0 %vm476_vm0, %v1916_v21 }
  0x55   : > { %1834 = vmatprep.mubr.msk.bf16.mxu1 %vm476_vm0, %v1917_v22 }
  0x5b   : > { %1803 = vmatmul.mubr.msk.bf16.gmra.mxu0 %vm476_vm0, %v1918_v23 }
  0x5c   : > { %1835 = vmatmul.mubr.msk.bf16.gmra.mxu1 %vm476_vm0, %v1919_v24  ;;  %1806 = vmatprep.mubr.msk.bf16.mxu0 %vm476_vm0, %v1920_v25 }
  0x5d   : > { %1838 = vmatprep.mubr.msk.bf16.mxu1 %vm476_vm0, %v1921_v26 }
  0x63   : > { %1807 = vmatmul.mubr.msk.bf16.gmra.mxu0 %vm476_vm0, %v1922_v27 }
  0x64   : > { %1839 = vmatmul.mubr.msk.bf16.gmra.mxu1 %vm476_vm0, %v1923_v28  ;;  %1810 = vmatprep.mubr.msk.bf16.mxu0 %vm476_vm0, %v1924_v29 }
  0x65   : > { %1842 = vmatprep.mubr.msk.bf16.mxu1 %vm476_vm0, %v1925_v30 }
  0x6b   : > { %1811 = vmatmul.mubr.msk.bf16.gmra.mxu0 %vm476_vm0, %v1926_v31 }
  0x6c   : > { %1843 = vmatmul.mubr.msk.bf16.gmra.mxu1 %vm476_vm0, %v1927_v32 }
  0xf3   : > { %v1784_v34 = vpop.f32.mrf.mxu0 }
  0xf4   : > { %v1816_v35 = vpop.f32.mrf.mxu1  ;;  %v616_v36 = vadd.f32 %v1784_v34, %v2176_v33 }
  0xf5   : > { %v744_v37 = vadd.f32 %v1816_v35, %v2176_v33  ;;  %v607_v38 = vpop.f32.mrf.mxu0 }
  0xf6   : > { %v735_v39 = vpop.f32.mrf.mxu1  ;;  %v608_v40 = vadd.f32 %v2176_v33, %v607_v38  ;;  %v864_v46 = vmax.f32 %v616_v36, 0.0 }
  0xf7   : > { %v736_v41 = vadd.f32 %v2176_v33, %v735_v39  ;;  %v1785_v42 = vpop.f32.mrf.mxu0  ;;  %v896_v47 = vmax.f32 %v744_v37, 0.0 }
  0xf8   : > { %v1817_v43 = vpop.f32.mrf.mxu1  ;;  %v619_v44 = vadd.f32 %v1785_v42, %v2176_v33  ;;  %v862_v54 = vmax.f32 %v608_v40, 0.0 }
  0xf9   : > { %v747_v45 = vadd.f32 %v1817_v43, %v2176_v33  ;;  %v610_v48 = vpop.f32.mrf.mxu0  ;;  %v894_v55 = vmax.f32 %v736_v41, 0.0 }
  0xfa   : > { %v738_v49 = vpop.f32.mrf.mxu1  ;;  %v865_v50 = vmax.f32 %v619_v44, 0.0  ;;  %v611_v52 = vadd.f32 %v2176_v33, %v610_v48 }
  0xfb   : > { %v897_v51 = vmax.f32 %v747_v45, 0.0  ;;  %v739_v53 = vadd.f32 %v2176_v33, %v738_v49  ;;  %v1788_v56 = vpop.f32.mrf.mxu0 }
  0xfc   : > { %v1820_v57 = vpop.f32.mrf.mxu1  ;;  %v1564_v58 = vpack.c.bf16 %v865_v50, %v864_v46  ;;  %v863_v60 = vmax.f32 %v611_v52, 0.0  ;;  %v632_v62 = vadd.f32 %v1788_v56, %v2176_v33 }
  0xfd   : > { %v1644_v59 = vpack.c.bf16 %v897_v51, %v896_v47  ;;  %v895_v61 = vmax.f32 %v739_v53, 0.0  ;;  %v760_v63 = vadd.f32 %v1820_v57, %v2176_v33  ;;  %v623_v0 = vpop.f32.mrf.mxu0 }
  0xfe   : > { %v751_v1 = vpop.f32.mrf.mxu1  ;;  %1716 = vst [vmem:[%s2191_s15 + $0x8] sm:$0xff] %v1564_v58   ;;  %v1559_v2 = vpack.c.bf16 %v863_v60, %v862_v54  ;;  %v624_v4 = vadd.f32 %v2176_v33, %v623_v0  ;;  %v868_v10 = vmax.f32 %v632_v62, 0.0 }
  0xff   : > { %1732 = vst [vmem:[%s2191_s15 + $0x88] sm:$0xff] %v1644_v59   ;;  %v1639_v3 = vpack.c.bf16 %v895_v61, %v894_v55  ;;  %v752_v5 = vadd.f32 %v2176_v33, %v751_v1  ;;  %v1789_v6 = vpop.f32.mrf.mxu0  ;;  %v900_v11 = vmax.f32 %v760_v63, 0.0 }
 0x100   : > { %v1821_v7 = vpop.f32.mrf.mxu1  ;;  %1560 = vst [vmem:[%s2191_s15] sm:$0xff] %v1559_v2   ;;  %v635_v8 = vadd.f32 %v1789_v6, %v2176_v33  ;;  %v866_v18 = vmax.f32 %v624_v4, 0.0 }
 0x101   : > { %1731 = vst [vmem:[%s2191_s15 + $0x80] sm:$0xff] %v1639_v3   ;;  %v763_v9 = vadd.f32 %v1821_v7, %v2176_v33  ;;  %v626_v12 = vpop.f32.mrf.mxu0  ;;  %v898_v19 = vmax.f32 %v752_v5, 0.0 }
 0x102   : > { %v754_v13 = vpop.f32.mrf.mxu1  ;;  %v869_v14 = vmax.f32 %v635_v8, 0.0  ;;  %v627_v16 = vadd.f32 %v2176_v33, %v626_v12 }
 0x103   : > { %v901_v15 = vmax.f32 %v763_v9, 0.0  ;;  %v755_v17 = vadd.f32 %v2176_v33, %v754_v13  ;;  %v1792_v20 = vpop.f32.mrf.mxu0 }
 0x104   : > { %v1824_v21 = vpop.f32.mrf.mxu1  ;;  %v1574_v22 = vpack.c.bf16 %v869_v14, %v868_v10  ;;  %v867_v24 = vmax.f32 %v627_v16, 0.0  ;;  %v648_v26 = vadd.f32 %v1792_v20, %v2176_v33 }
 0x105   : > { %v1654_v23 = vpack.c.bf16 %v901_v15, %v900_v11  ;;  %v899_v25 = vmax.f32 %v755_v17, 0.0  ;;  %v776_v27 = vadd.f32 %v1824_v21, %v2176_v33  ;;  %v639_v28 = vpop.f32.mrf.mxu0 }
 0x106   : > { %v767_v29 = vpop.f32.mrf.mxu1  ;;  %1718 = vst [vmem:[%s2191_s15 + $0x18] sm:$0xff] %v1574_v22   ;;  %v1569_v30 = vpack.c.bf16 %v867_v24, %v866_v18  ;;  %v640_v32 = vadd.f32 %v2176_v33, %v639_v28  ;;  %v872_v39 = vmax.f32 %v648_v26, 0.0 }
 0x107   : > { %1734 = vst [vmem:[%s2191_s15 + $0x98] sm:$0xff] %v1654_v23   ;;  %v1649_v31 = vpack.c.bf16 %v899_v25, %v898_v19  ;;  %v768_v34 = vadd.f32 %v2176_v33, %v767_v29  ;;  %v1793_v35 = vpop.f32.mrf.mxu0  ;;  %v904_v40 = vmax.f32 %v776_v27, 0.0 }
 0x108   : > { %v1825_v36 = vpop.f32.mrf.mxu1  ;;  %1717 = vst [vmem:[%s2191_s15 + $0x10] sm:$0xff] %v1569_v30   ;;  %v651_v37 = vadd.f32 %v1793_v35, %v2176_v33  ;;  %v870_v47 = vmax.f32 %v640_v32, 0.0 }
 0x109   : > { %1733 = vst [vmem:[%s2191_s15 + $0x90] sm:$0xff] %v1649_v31   ;;  %v779_v38 = vadd.f32 %v1825_v36, %v2176_v33  ;;  %v642_v41 = vpop.f32.mrf.mxu0  ;;  %v902_v48 = vmax.f32 %v768_v34, 0.0 }
 0x10a   : > { %v770_v42 = vpop.f32.mrf.mxu1  ;;  %v873_v43 = vmax.f32 %v651_v37, 0.0  ;;  %v643_v45 = vadd.f32 %v2176_v33, %v642_v41 }
 0x10b   : > { %v905_v44 = vmax.f32 %v779_v38, 0.0  ;;  %v771_v46 = vadd.f32 %v2176_v33, %v770_v42  ;;  %v1796_v49 = vpop.f32.mrf.mxu0 }
 0x10c   : > { %v1828_v50 = vpop.f32.mrf.mxu1  ;;  %v1584_v51 = vpack.c.bf16 %v873_v43, %v872_v39  ;;  %v871_v53 = vmax.f32 %v643_v45, 0.0  ;;  %v664_v55 = vadd.f32 %v1796_v49, %v2176_v33 }
 0x10d   : > { %v1664_v52 = vpack.c.bf16 %v905_v44, %v904_v40  ;;  %v903_v54 = vmax.f32 %v771_v46, 0.0  ;;  %v792_v56 = vadd.f32 %v1828_v50, %v2176_v33  ;;  %v655_v57 = vpop.f32.mrf.mxu0 }
 0x10e   : > { %v783_v58 = vpop.f32.mrf.mxu1  ;;  %1720 = vst [vmem:[%s2191_s15 + $0x28] sm:$0xff] %v1584_v51   ;;  %v1579_v59 = vpack.c.bf16 %v871_v53, %v870_v47  ;;  %v656_v61 = vadd.f32 %v2176_v33, %v655_v57  ;;  %v876_v3 = vmax.f32 %v664_v55, 0.0 }
 0x10f   : > { %1736 = vst [vmem:[%s2191_s15 + $0xa8] sm:$0xff] %v1664_v52   ;;  %v1659_v60 = vpack.c.bf16 %v903_v54, %v902_v48  ;;  %v784_v62 = vadd.f32 %v2176_v33, %v783_v58  ;;  %v1797_v63 = vpop.f32.mrf.mxu0  ;;  %v908_v4 = vmax.f32 %v792_v56, 0.0 }
 0x110   : > { %v1829_v0 = vpop.f32.mrf.mxu1  ;;  %1719 = vst [vmem:[%s2191_s15 + $0x20] sm:$0xff] %v1579_v59   ;;  %v667_v1 = vadd.f32 %v1797_v63, %v2176_v33  ;;  %v874_v11 = vmax.f32 %v656_v61, 0.0 }
 0x111   : > { %1735 = vst [vmem:[%s2191_s15 + $0xa0] sm:$0xff] %v1659_v60   ;;  %v795_v2 = vadd.f32 %v1829_v0, %v2176_v33  ;;  %v658_v5 = vpop.f32.mrf.mxu0  ;;  %v906_v12 = vmax.f32 %v784_v62, 0.0 }
 0x112   : > { %v786_v6 = vpop.f32.mrf.mxu1  ;;  %v877_v7 = vmax.f32 %v667_v1, 0.0  ;;  %v659_v9 = vadd.f32 %v2176_v33, %v658_v5 }
 0x113   : > { %v909_v8 = vmax.f32 %v795_v2, 0.0  ;;  %v787_v10 = vadd.f32 %v2176_v33, %v786_v6  ;;  %v1800_v13 = vpop.f32.mrf.mxu0 }
 0x114   : > { %v1832_v14 = vpop.f32.mrf.mxu1  ;;  %v1594_v15 = vpack.c.bf16 %v877_v7, %v876_v3  ;;  %v875_v17 = vmax.f32 %v659_v9, 0.0  ;;  %v680_v19 = vadd.f32 %v1800_v13, %v2176_v33 }
 0x115   : > { %v1674_v16 = vpack.c.bf16 %v909_v8, %v908_v4  ;;  %v907_v18 = vmax.f32 %v787_v10, 0.0  ;;  %v808_v20 = vadd.f32 %v1832_v14, %v2176_v33  ;;  %v671_v21 = vpop.f32.mrf.mxu0 }
 0x116   : > { %v799_v22 = vpop.f32.mrf.mxu1  ;;  %1722 = vst [vmem:[%s2191_s15 + $0x38] sm:$0xff] %v1594_v15   ;;  %v1589_v23 = vpack.c.bf16 %v875_v17, %v874_v11  ;;  %v672_v25 = vadd.f32 %v2176_v33, %v671_v21  ;;  %v880_v31 = vmax.f32 %v680_v19, 0.0 }
 0x117   : > { %1738 = vst [vmem:[%s2191_s15 + $0xb8] sm:$0xff] %v1674_v16   ;;  %v1669_v24 = vpack.c.bf16 %v907_v18, %v906_v12  ;;  %v800_v26 = vadd.f32 %v2176_v33, %v799_v22  ;;  %v1801_v27 = vpop.f32.mrf.mxu0  ;;  %v912_v32 = vmax.f32 %v808_v20, 0.0 }
 0x118   : > { %v1833_v28 = vpop.f32.mrf.mxu1  ;;  %1721 = vst [vmem:[%s2191_s15 + $0x30] sm:$0xff] %v1589_v23   ;;  %v683_v29 = vadd.f32 %v1801_v27, %v2176_v33  ;;  %v878_v40 = vmax.f32 %v672_v25, 0.0 }
 0x119   : > { %1737 = vst [vmem:[%s2191_s15 + $0xb0] sm:$0xff] %v1669_v24   ;;  %v811_v30 = vadd.f32 %v1833_v28, %v2176_v33  ;;  %v674_v34 = vpop.f32.mrf.mxu0  ;;  %v910_v41 = vmax.f32 %v800_v26, 0.0 }
 0x11a   : > { %v802_v35 = vpop.f32.mrf.mxu1  ;;  %v881_v36 = vmax.f32 %v683_v29, 0.0  ;;  %v675_v38 = vadd.f32 %v2176_v33, %v674_v34 }
 0x11b   : > { %v913_v37 = vmax.f32 %v811_v30, 0.0  ;;  %v803_v39 = vadd.f32 %v2176_v33, %v802_v35  ;;  %v1804_v42 = vpop.f32.mrf.mxu0 }
 0x11c   : > { %v1836_v43 = vpop.f32.mrf.mxu1  ;;  %v1604_v44 = vpack.c.bf16 %v881_v36, %v880_v31  ;;  %v879_v46 = vmax.f32 %v675_v38, 0.0  ;;  %v696_v48 = vadd.f32 %v1804_v42, %v2176_v33 }
 0x11d   : > { %v1684_v45 = vpack.c.bf16 %v913_v37, %v912_v32  ;;  %v911_v47 = vmax.f32 %v803_v39, 0.0  ;;  %v824_v49 = vadd.f32 %v1836_v43, %v2176_v33  ;;  %v687_v50 = vpop.f32.mrf.mxu0 }
 0x11e   : > { %v815_v51 = vpop.f32.mrf.mxu1  ;;  %1724 = vst [vmem:[%s2191_s15 + $0x48] sm:$0xff] %v1604_v44   ;;  %v1599_v52 = vpack.c.bf16 %v879_v46, %v878_v40  ;;  %v688_v54 = vadd.f32 %v2176_v33, %v687_v50  ;;  %v884_v60 = vmax.f32 %v696_v48, 0.0 }
 0x11f   : > { %1740 = vst [vmem:[%s2191_s15 + $0xc8] sm:$0xff] %v1684_v45   ;;  %v1679_v53 = vpack.c.bf16 %v911_v47, %v910_v41  ;;  %v816_v55 = vadd.f32 %v2176_v33, %v815_v51  ;;  %v1805_v56 = vpop.f32.mrf.mxu0  ;;  %v916_v61 = vmax.f32 %v824_v49, 0.0 }
 0x120   : > { %v1837_v57 = vpop.f32.mrf.mxu1  ;;  %1723 = vst [vmem:[%s2191_s15 + $0x40] sm:$0xff] %v1599_v52   ;;  %v699_v58 = vadd.f32 %v1805_v56, %v2176_v33  ;;  %v882_v4 = vmax.f32 %v688_v54, 0.0 }
 0x121   : > { %1739 = vst [vmem:[%s2191_s15 + $0xc0] sm:$0xff] %v1679_v53   ;;  %v827_v59 = vadd.f32 %v1837_v57, %v2176_v33  ;;  %v690_v62 = vpop.f32.mrf.mxu0  ;;  %v914_v5 = vmax.f32 %v816_v55, 0.0 }
 0x122   : > { %v818_v63 = vpop.f32.mrf.mxu1  ;;  %v885_v0 = vmax.f32 %v699_v58, 0.0  ;;  %v691_v2 = vadd.f32 %v2176_v33, %v690_v62 }
 0x123   : > { %v917_v1 = vmax.f32 %v827_v59, 0.0  ;;  %v819_v3 = vadd.f32 %v2176_v33, %v818_v63  ;;  %v1808_v6 = vpop.f32.mrf.mxu0 }
 0x124   : > { %v1840_v7 = vpop.f32.mrf.mxu1  ;;  %v1614_v8 = vpack.c.bf16 %v885_v0, %v884_v60  ;;  %v883_v10 = vmax.f32 %v691_v2, 0.0  ;;  %v712_v12 = vadd.f32 %v1808_v6, %v2176_v33 }
 0x125   : > { %v1694_v9 = vpack.c.bf16 %v917_v1, %v916_v61  ;;  %v915_v11 = vmax.f32 %v819_v3, 0.0  ;;  %v840_v13 = vadd.f32 %v1840_v7, %v2176_v33  ;;  %v703_v14 = vpop.f32.mrf.mxu0 }
 0x126   : > { %v831_v15 = vpop.f32.mrf.mxu1  ;;  %1726 = vst [vmem:[%s2191_s15 + $0x58] sm:$0xff] %v1614_v8   ;;  %v1609_v16 = vpack.c.bf16 %v883_v10, %v882_v4  ;;  %v704_v18 = vadd.f32 %v2176_v33, %v703_v14  ;;  %v888_v24 = vmax.f32 %v712_v12, 0.0 }
 0x127   : > { %1742 = vst [vmem:[%s2191_s15 + $0xd8] sm:$0xff] %v1694_v9   ;;  %v1689_v17 = vpack.c.bf16 %v915_v11, %v914_v5  ;;  %v832_v19 = vadd.f32 %v2176_v33, %v831_v15  ;;  %v1809_v20 = vpop.f32.mrf.mxu0  ;;  %v920_v25 = vmax.f32 %v840_v13, 0.0 }
 0x128   : > { %v1841_v21 = vpop.f32.mrf.mxu1  ;;  %1725 = vst [vmem:[%s2191_s15 + $0x50] sm:$0xff] %v1609_v16   ;;  %v715_v22 = vadd.f32 %v1809_v20, %v2176_v33  ;;  %v886_v32 = vmax.f32 %v704_v18, 0.0 }
 0x129   : > { %1741 = vst [vmem:[%s2191_s15 + $0xd0] sm:$0xff] %v1689_v17   ;;  %v843_v23 = vadd.f32 %v1841_v21, %v2176_v33  ;;  %v706_v26 = vpop.f32.mrf.mxu0  ;;  %v918_v34 = vmax.f32 %v832_v19, 0.0 }
 0x12a   : > { %v834_v27 = vpop.f32.mrf.mxu1  ;;  %v889_v28 = vmax.f32 %v715_v22, 0.0  ;;  %v707_v30 = vadd.f32 %v2176_v33, %v706_v26 }
 0x12b   : > { %v921_v29 = vmax.f32 %v843_v23, 0.0  ;;  %v835_v31 = vadd.f32 %v2176_v33, %v834_v27  ;;  %v1812_v35 = vpop.f32.mrf.mxu0 }
 0x12c   : > { %v1844_v36 = vpop.f32.mrf.mxu1  ;;  %v1624_v37 = vpack.c.bf16 %v889_v28, %v888_v24  ;;  %v887_v39 = vmax.f32 %v707_v30, 0.0  ;;  %v728_v41 = vadd.f32 %v1812_v35, %v2176_v33 }
 0x12d   : > { %v1704_v38 = vpack.c.bf16 %v921_v29, %v920_v25  ;;  %v919_v40 = vmax.f32 %v835_v31, 0.0  ;;  %v856_v42 = vadd.f32 %v1844_v36, %v2176_v33  ;;  %v719_v43 = vpop.f32.mrf.mxu0 }
 0x12e   : > { %v847_v44 = vpop.f32.mrf.mxu1  ;;  %1728 = vst [vmem:[%s2191_s15 + $0x68] sm:$0xff] %v1624_v37   ;;  %v1619_v45 = vpack.c.bf16 %v887_v39, %v886_v32  ;;  %v720_v47 = vadd.f32 %v2176_v33, %v719_v43  ;;  %v892_v53 = vmax.f32 %v728_v41, 0.0 }
 0x12f   : > { %1744 = vst [vmem:[%s2191_s15 + $0xe8] sm:$0xff] %v1704_v38   ;;  %v1699_v46 = vpack.c.bf16 %v919_v40, %v918_v34  ;;  %v848_v48 = vadd.f32 %v2176_v33, %v847_v44  ;;  %v1813_v49 = vpop.f32.mrf.mxu0  ;;  %v924_v54 = vmax.f32 %v856_v42, 0.0 }
 0x130   : > { %v1845_v50 = vpop.f32.mrf.mxu1  ;;  %1727 = vst [vmem:[%s2191_s15 + $0x60] sm:$0xff] %v1619_v45   ;;  %v731_v51 = vadd.f32 %v1813_v49, %v2176_v33  ;;  %v890_v61 = vmax.f32 %v720_v47, 0.0 }
 0x131   : > { %1743 = vst [vmem:[%s2191_s15 + $0xe0] sm:$0xff] %v1699_v46   ;;  %v859_v52 = vadd.f32 %v1845_v50, %v2176_v33  ;;  %v722_v55 = vpop.f32.mrf.mxu0  ;;  %v922_v62 = vmax.f32 %v848_v48, 0.0 }
 0x132   : > { %v850_v56 = vpop.f32.mrf.mxu1  ;;  %v893_v57 = vmax.f32 %v731_v51, 0.0  ;;  %v723_v59 = vadd.f32 %v2176_v33, %v722_v55 }
 0x133   : > { %v925_v58 = vmax.f32 %v859_v52, 0.0  ;;  %v851_v60 = vadd.f32 %v2176_v33, %v850_v56 }
 0x134   : > { %v1634_v63 = vpack.c.bf16 %v893_v57, %v892_v53  ;;  %v891_v1 = vmax.f32 %v723_v59, 0.0 }
 0x135   : > { %v1714_v0 = vpack.c.bf16 %v925_v58, %v924_v54  ;;  %v923_v2 = vmax.f32 %v851_v60, 0.0 }
 0x136   : > { %1730 = vst [vmem:[%s2191_s15 + $0x78] sm:$0xff] %v1634_v63   ;;  %v1629_v3 = vpack.c.bf16 %v891_v1, %v890_v61 }
 0x137   : > { %1746 = vst [vmem:[%s2191_s15 + $0xf8] sm:$0xff] %v1714_v0   ;;  %v1709_v4 = vpack.c.bf16 %v923_v2, %v922_v62 }
 0x138   : > { %1729 = vst [vmem:[%s2191_s15 + $0x70] sm:$0xff] %v1629_v3  }
 0x139   : > { %1745 = vst [vmem:[%s2191_s15 + $0xf0] sm:$0xff] %v1709_v4  }
 0x13a PF: > { %s15_s14 = sadd.s32 1, %s2010_s14   ;;  %s2297_s12 = smov %s2006_s13 }
 0x13b   : > { %p12_p3 = scmp.ge.s32.totalorder %s15_s14, 6   ;;  %s2298_s13 = smov %s2300_s16 }
 0x13d   :  { %14 = sbr.rel (!%p12_p3) target bundleno = 3 (0x3), region = 73 }
 0x142   :  { %1274 = vsyncpa [#allocation3], 1 }
 0x143   :  { %1276 = vsyncpa [#allocation3 + $0x1], 1 }
 0x144   :  { %1277 = vsyncpa [#allocation5], 1 }

// kernel: kappa_denoiser_forward.9
= control target key start
LH: loop header
LB: loop body
LE: loop exit
PB: predicated region body
PF: predicated region fallthrough
CT: control target
= control target key end

     0   :  { %s2183_s12 = smov 0   ;;  %s2185_s13 = smov 0   ;;  %s2440_s0 = inlined_call_operand.vmem [shape: bf16[512,512], index: 0, kind: input, shape index: {}]   ;;  %s2441_s1 = inlined_call_operand.vmem [shape: bf16[512,128], index: 1, kind: input, shape index: {}]   ;;  %s2442_s2 = inlined_call_operand.vmem [shape: f32[1,128], index: 2, kind: input, shape index: {}]   ;;  %s2443_s3 = inlined_call_operand.vmem [shape: bf16[512,128], index: 3, kind: output, shape index: {}]  }
   0x1   :  { %s2187_s14 = smov 0  }
   0x2 LB: > { %s25_s15 = sadd.s32 1, %s2157_s13  ;;  %p1498_p0 = scmp.ge.s32.totalorder %s2161_s14, 1  ;;  %s2161_s14 = sphi %s2187_s14, %s13_s14   ;;  %s2157_s13 = sphi %s2185_s13, %s2445_s13   ;;  %s2153_s12 = sphi %s2183_s12, %s2444_s12  }
   0x3   : > { %p27_p1 = scmp.ge.s32.totalorder %s25_s15, 2  ;;  %p170_p2 = scmp.lt.s32.totalorder %s2161_s14, 3 }
   0x5   : > { %s2447_s15 = smov (%p27_p1, %s25_s15), 0  ;;  %p171_p3 = pnand %p1498_p0, %p170_p2 }
   0x6   : > { %s1499_s25 = sshll.u32 (!%p171_p3), %s2153_s12, 5 }
   0x7   : > { %174 = sbr.rel (%p171_p3) target bundleno = 376 (0x178), region = 32  ;;  %p206_p4 = scmp.lt.s32.totalorder (!%p171_p3), %s1499_s25, 63 }
   0xc   : > { %v2011_v0 = vld [vmem:[%s2441_s1 + $0x78] sm:$0xff]   ;;  %v2015_v4 = vld [vmem:[%s2441_s1 + $0x70] sm:$0xff]   ;;  %v2019_v8 = vld [vmem:[%s2441_s1 + $0x68] sm:$0xff]   ;;  %s2449_s25 = smov (!%p206_p4, %s1499_s25), 63 }
   0xd   : > { %v2012_v1 = vld [vmem:[%s2441_s1 + $0xf8] sm:$0xff]   ;;  %1763 = vmatprep.subr.bf16.mxu0 %v2011_v0  ;;  %v2016_v5 = vld [vmem:[%s2441_s1 + $0xf0] sm:$0xff]   ;;  %v2020_v9 = vld [vmem:[%s2441_s1 + $0xe8] sm:$0xff]   ;;  %s1635_s24 = sshll.u32 %s2449_s25, 4  ;;  %s1503_s17 = sshll.u32 %s2449_s25, 2 }
   0xe   : > { %v2013_v2 = vld [vmem:[%s2441_s1 + $0x38] sm:$0xff]   ;;  %1875 = vmatprep.subr.bf16.mxu1 %v2012_v1  ;;  %v2017_v6 = vld [vmem:[%s2441_s1 + $0x30] sm:$0xff]   ;;  %v2021_v10 = vld [vmem:[%s2441_s1 + $0x28] sm:$0xff]   ;;  %s2300_s12 = scalar_lea.vmem %s2440_s0, %s1635_s24  ;;  %s2384_s20 = scalar_lea.vmem %s2443_s3, %s1503_s17 }
   0xf   : > { %v2014_v3 = vld [vmem:[%s2441_s1 + $0xb8] sm:$0xff]   ;;  %1764 = vmatpush3.bf16.msra.mxu0 %v2013_v2  ;;  %v2018_v7 = vld [vmem:[%s2441_s1 + $0xb0] sm:$0xff]   ;;  %v2022_v11 = vld [vmem:[%s2441_s1 + $0xa8] sm:$0xff]  }
  0x10   : > { %1876 = vmatpush3.bf16.msra.mxu1 %v2014_v3  ;;  %1765 = vmatprep.subr.bf16.mxu0 %v2015_v4  ;;  %v2023_v12 = vld [vmem:[%s2441_s1 + $0x60] sm:$0xff]   ;;  %v2027_v16 = vld [vmem:[%s2441_s1 + $0x58] sm:$0xff]   ;;  %v2031_v20 = vld [vmem:[%s2441_s1 + $0x50] sm:$0xff]  }
  0x11   : > { %1877 = vmatprep.subr.bf16.mxu1 %v2016_v5  ;;  %v2024_v13 = vld [vmem:[%s2441_s1 + $0xe0] sm:$0xff]   ;;  %v2028_v17 = vld [vmem:[%s2441_s1 + $0xd8] sm:$0xff]   ;;  %v2032_v21 = vld [vmem:[%s2441_s1 + $0xd0] sm:$0xff]  }
  0x12   : > { %v2025_v14 = vld [vmem:[%s2441_s1 + $0x20] sm:$0xff]   ;;  %v2029_v18 = vld [vmem:[%s2441_s1 + $0x18] sm:$0xff]   ;;  %v2033_v22 = vld [vmem:[%s2441_s1 + $0x10] sm:$0xff]  }
  0x13   : > { %1766 = vmatpush3.bf16.msra.mxu0 %v2017_v6  ;;  %v2026_v15 = vld [vmem:[%s2441_s1 + $0xa0] sm:$0xff]   ;;  %v2030_v19 = vld [vmem:[%s2441_s1 + $0x98] sm:$0xff]   ;;  %v2034_v23 = vld [vmem:[%s2441_s1 + $0x90] sm:$0xff]  }
  0x14   : > { %1878 = vmatpush3.bf16.msra.mxu1 %v2018_v7  ;;  %1767 = vmatprep.subr.bf16.mxu0 %v2019_v8  ;;  %v2035_v24 = vld [vmem:[%s2441_s1 + $0x48] sm:$0xff]   ;;  %v2039_v28 = vld [vmem:[%s2441_s1 + $0x40] sm:$0xff]  }
  0x15   : > { %1879 = vmatprep.subr.bf16.mxu1 %v2020_v9  ;;  %v2036_v25 = vld [vmem:[%s2441_s1 + $0xc8] sm:$0xff]   ;;  %v2040_v29 = vld [vmem:[%s2441_s1 + $0xc0] sm:$0xff]  }
  0x16   : > { %v2037_v26 = vld [vmem:[%s2441_s1 + $0x8] sm:$0xff]   ;;  %v2041_v30 = vld [vmem:[%s2441_s1] sm:$0xff]  }
  0x17   : > { %1768 = vmatpush3.bf16.msra.mxu0 %v2021_v10  ;;  %v2038_v27 = vld [vmem:[%s2441_s1 + $0x88] sm:$0xff]   ;;  %v2042_v31 = vld [vmem:[%s2441_s1 + $0x80] sm:$0xff]  }
  0x18   : > { %1880 = vmatpush3.bf16.msra.mxu1 %v2022_v11  ;;  %1769 = vmatprep.subr.bf16.mxu0 %v2023_v12  ;;  %v2043_v32 = vld [vmem:[%s2300_s12] ss:$16 sps:$4 sm:$0xff]   ;;  %v2045_v33 = vld [vmem:[%s2300_s12 + $0x4] ss:$16 sps:$4 sm:$0xff]   ;;  %v2046_v34 = vld [vmem:[%s2300_s12 + $0x8] ss:$16 sps:$4 sm:$0xff]  }
  0x19   : > { %1881 = vmatprep.subr.bf16.mxu1 %v2024_v13  ;;  %v2048_v35 = vld [vmem:[%s2300_s12 + $0xc] ss:$16 sps:$4 sm:$0xff]   ;;  %908 = vmatprep.mubr.bf16.mxu0 %v2045_v33  ;;  %v2049_v36 = vld [vmem:[%s2300_s12 + $0x24] ss:$16 sps:$4 sm:$0xff]   ;;  %v2053_v38 = vld [vmem:[%s2300_s12 + $0x20] ss:$16 sps:$4 sm:$0xff]  }
  0x1a   : > { %1069 = vmatprep.mubr.bf16.mxu1 %v2048_v35  ;;  %v2051_v37 = vld [vmem:[%s2300_s12 + $0x2c] ss:$16 sps:$4 sm:$0xff]   ;;  %v2054_v39 = vld [vmem:[%s2300_s12 + $0x28] ss:$16 sps:$4 sm:$0xff]   ;;  %v2055_v40 = vld [vmem:[%s2300_s12 + $0x44] ss:$16 sps:$4 sm:$0xff]  }
  0x1b   : > { %1770 = vmatpush3.bf16.msra.mxu0 %v2025_v14  ;;  %v2057_v41 = vld [vmem:[%s2300_s12 + $0x4c] ss:$16 sps:$4 sm:$0xff]   ;;  %v2059_v42 = vld [vmem:[%s2300_s12 + $0x40] ss:$16 sps:$4 sm:$0xff]   ;;  %v2060_v43 = vld [vmem:[%s2300_s12 + $0x48] ss:$16 sps:$4 sm:$0xff]  }
  0x1c   : > { %1882 = vmatpush3.bf16.msra.mxu1 %v2026_v15  ;;  %1771 = vmatprep.subr.bf16.mxu0 %v2027_v16  ;;  %v2061_v44 = vld [vmem:[%s2300_s12 + $0x64] ss:$16 sps:$4 sm:$0xff]   ;;  %v2063_v45 = vld [vmem:[%s2300_s12 + $0x6c] ss:$16 sps:$4 sm:$0xff]   ;;  %v2065_v46 = vld [vmem:[%s2300_s12 + $0x60] ss:$16 sps:$4 sm:$0xff]  }
  0x1d   : > { %1883 = vmatprep.subr.bf16.mxu1 %v2028_v17  ;;  %v2066_v47 = vld [vmem:[%s2300_s12 + $0x68] ss:$16 sps:$4 sm:$0xff]   ;;  %v2067_v48 = vld [vmem:[%s2300_s12 + $0x84] ss:$16 sps:$4 sm:$0xff]   ;;  %v2069_v49 = vld [vmem:[%s2300_s12 + $0x8c] ss:$16 sps:$4 sm:$0xff]  }
  0x1e   : > { %v2071_v50 = vld [vmem:[%s2300_s12 + $0x80] ss:$16 sps:$4 sm:$0xff]   ;;  %v2072_v51 = vld [vmem:[%s2300_s12 + $0x88] ss:$16 sps:$4 sm:$0xff]   ;;  %v2073_v52 = vld [vmem:[%s2300_s12 + $0xa4] ss:$16 sps:$4 sm:$0xff]  }
  0x1f   : > { %1772 = vmatpush3.bf16.msra.mxu0 %v2029_v18  ;;  %v2075_v53 = vld [vmem:[%s2300_s12 + $0xac] ss:$16 sps:$4 sm:$0xff]   ;;  %v2077_v54 = vld [vmem:[%s2300_s12 + $0xa0] ss:$16 sps:$4 sm:$0xff]   ;;  %v2078_v55 = vld [vmem:[%s2300_s12 + $0xa8] ss:$16 sps:$4 sm:$0xff]  }
  0x20   : > { %1884 = vmatpush3.bf16.msra.mxu1 %v2030_v19  ;;  %1773 = vmatprep.subr.bf16.mxu0 %v2031_v20  ;;  %v2079_v56 = vld [vmem:[%s2300_s12 + $0xc4] ss:$16 sps:$4 sm:$0xff]   ;;  %v2081_v57 = vld [vmem:[%s2300_s12 + $0xcc] ss:$16 sps:$4 sm:$0xff]   ;;  %v2083_v58 = vld [vmem:[%s2300_s12 + $0xc0] ss:$16 sps:$4 sm:$0xff]  }
  0x21   : > { %1885 = vmatprep.subr.bf16.mxu1 %v2032_v21  ;;  %v2084_v59 = vld [vmem:[%s2300_s12 + $0xc8] ss:$16 sps:$4 sm:$0xff]   ;;  %v2085_v60 = vld [vmem:[%s2300_s12 + $0xe4] ss:$16 sps:$4 sm:$0xff]   ;;  %v2087_v61 = vld [vmem:[%s2300_s12 + $0xec] ss:$16 sps:$4 sm:$0xff]  }
  0x22   : > { %v2089_v62 = vld [vmem:[%s2300_s12 + $0xe0] ss:$16 sps:$4 sm:$0xff]   ;;  %v2090_v63 = vld [vmem:[%s2300_s12 + $0xe8] ss:$16 sps:$4 sm:$0xff]   ;;  %v2091_v0 = vld [vmem:[%s2300_s12 + $0x104] ss:$16 sps:$4 sm:$0xff]  }
  0x23   : > { %1774 = vmatpush3.bf16.msra.mxu0 %v2033_v22  ;;  %v2093_v1 = vld [vmem:[%s2300_s12 + $0x10c] ss:$16 sps:$4 sm:$0xff]   ;;  %v2095_v2 = vld [vmem:[%s2300_s12 + $0x100] ss:$16 sps:$4 sm:$0xff]   ;;  %v2096_v3 = vld [vmem:[%s2300_s12 + $0x108] ss:$16 sps:$4 sm:$0xff]  }
  0x24   : > { %1886 = vmatpush3.bf16.msra.mxu1 %v2034_v23  ;;  %1775 = vmatprep.subr.bf16.mxu0 %v2035_v24  ;;  %v2097_v4 = vld [vmem:[%s2300_s12 + $0x124] ss:$16 sps:$4 sm:$0xff]   ;;  %v2099_v5 = vld [vmem:[%s2300_s12 + $0x12c] ss:$16 sps:$4 sm:$0xff]   ;;  %v2101_v6 = vld [vmem:[%s2300_s12 + $0x120] ss:$16 sps:$4 sm:$0xff]  }
  0x25   : > { %1887 = vmatprep.subr.bf16.mxu1 %v2036_v25  ;;  %v2102_v7 = vld [vmem:[%s2300_s12 + $0x128] ss:$16 sps:$4 sm:$0xff]   ;;  %v2103_v8 = vld [vmem:[%s2300_s12 + $0x144] ss:$16 sps:$4 sm:$0xff]   ;;  %v2105_v9 = vld [vmem:[%s2300_s12 + $0x14c] ss:$16 sps:$4 sm:$0xff]  }
  0x26   : > { %v2107_v10 = vld [vmem:[%s2300_s12 + $0x140] ss:$16 sps:$4 sm:$0xff]   ;;  %v2108_v11 = vld [vmem:[%s2300_s12 + $0x148] ss:$16 sps:$4 sm:$0xff]   ;;  %v2109_v12 = vld [vmem:[%s2300_s12 + $0x164] ss:$16 sps:$4 sm:$0xff]  }
  0x27   : > { %1776 = vmatpush3.bf16.msra.mxu0 %v2037_v26  ;;  %v2111_v13 = vld [vmem:[%s2300_s12 + $0x16c] ss:$16 sps:$4 sm:$0xff]   ;;  %v2113_v14 = vld [vmem:[%s2300_s12 + $0x160] ss:$16 sps:$4 sm:$0xff]   ;;  %v2114_v15 = vld [vmem:[%s2300_s12 + $0x168] ss:$16 sps:$4 sm:$0xff]  }
  0x28   : > { %1888 = vmatpush3.bf16.msra.mxu1 %v2038_v27  ;;  %1777 = vmatprep.subr.bf16.mxu0 %v2039_v28  ;;  %v2115_v16 = vld [vmem:[%s2300_s12 + $0x184] ss:$16 sps:$4 sm:$0xff]   ;;  %v2117_v17 = vld [vmem:[%s2300_s12 + $0x18c] ss:$16 sps:$4 sm:$0xff]   ;;  %v2119_v18 = vld [vmem:[%s2300_s12 + $0x180] ss:$16 sps:$4 sm:$0xff]  }
  0x29   : > { %1889 = vmatprep.subr.bf16.mxu1 %v2040_v29  ;;  %v2120_v19 = vld [vmem:[%s2300_s12 + $0x188] ss:$16 sps:$4 sm:$0xff]   ;;  %v2121_v20 = vld [vmem:[%s2300_s12 + $0x1a4] ss:$16 sps:$4 sm:$0xff]   ;;  %v2123_v21 = vld [vmem:[%s2300_s12 + $0x1ac] ss:$16 sps:$4 sm:$0xff]  }
  0x2a   : > { %v2125_v22 = vld [vmem:[%s2300_s12 + $0x1a0] ss:$16 sps:$4 sm:$0xff]   ;;  %v2126_v23 = vld [vmem:[%s2300_s12 + $0x1a8] ss:$16 sps:$4 sm:$0xff]   ;;  %v2127_v24 = vld [vmem:[%s2300_s12 + $0x1c4] ss:$16 sps:$4 sm:$0xff]  }
  0x2b   : > { %1778 = vmatpush3.bf16.msra.mxu0 %v2041_v30  ;;  %v2129_v25 = vld [vmem:[%s2300_s12 + $0x1cc] ss:$16 sps:$4 sm:$0xff]   ;;  %v2131_v26 = vld [vmem:[%s2300_s12 + $0x1c0] ss:$16 sps:$4 sm:$0xff]   ;;  %v2132_v27 = vld [vmem:[%s2300_s12 + $0x1c8] ss:$16 sps:$4 sm:$0xff]  }
  0x2c   : > { %1890 = vmatpush3.bf16.msra.mxu1 %v2042_v31  ;;  %v2133_v28 = vld [vmem:[%s2300_s12 + $0x1e4] ss:$16 sps:$4 sm:$0xff]   ;;  %v2135_v29 = vld [vmem:[%s2300_s12 + $0x1ec] ss:$16 sps:$4 sm:$0xff]   ;;  %v2137_v30 = vld [vmem:[%s2300_s12 + $0x1e0] ss:$16 sps:$4 sm:$0xff]  }
  0x2d   : > { %v2138_v31 = vld [vmem:[%s2300_s12 + $0x1e8] ss:$16 sps:$4 sm:$0xff]  }
  0x2e   : > { %909 = vmatmul.mubr.bf16.vlgmr.msra.gmra.mxu0 %v2043_v32 }
  0x2f   : > { %1070 = vmatmul.mubr.bf16.vlgmr.msra.gmra.mxu1 %v2046_v34  ;;  %916 = vmatprep.mubr.bf16.mxu0 %v2049_v36  ;;  %v2375_v34 = vld [vmem:[%s2442_s2] ss:$0 sm:$0xff] }
  0x30   : > { %1077 = vmatprep.mubr.bf16.mxu1 %v2051_v37 }
  0x36   : > { %917 = vmatmul.mubr.bf16.gmra.mxu0 %v2053_v38 }
  0x37   : > { %1078 = vmatmul.mubr.bf16.gmra.mxu1 %v2054_v39  ;;  %924 = vmatprep.mubr.bf16.mxu0 %v2055_v40 }
  0x38   : > { %1085 = vmatprep.mubr.bf16.mxu1 %v2057_v41 }
  0x3e   : > { %925 = vmatmul.mubr.bf16.gmra.mxu0 %v2059_v42 }
  0x3f   : > { %1086 = vmatmul.mubr.bf16.gmra.mxu1 %v2060_v43  ;;  %932 = vmatprep.mubr.bf16.mxu0 %v2061_v44 }
  0x40   : > { %1093 = vmatprep.mubr.bf16.mxu1 %v2063_v45 }
  0x46   : > { %933 = vmatmul.mubr.bf16.gmra.mxu0 %v2065_v46 }
  0x47   : > { %1094 = vmatmul.mubr.bf16.gmra.mxu1 %v2066_v47  ;;  %940 = vmatprep.mubr.bf16.mxu0 %v2067_v48 }
  0x48   : > { %1101 = vmatprep.mubr.bf16.mxu1 %v2069_v49 }
  0x4e   : > { %941 = vmatmul.mubr.bf16.gmra.mxu0 %v2071_v50 }
  0x4f   : > { %1102 = vmatmul.mubr.bf16.gmra.mxu1 %v2072_v51  ;;  %948 = vmatprep.mubr.bf16.mxu0 %v2073_v52 }
  0x50   : > { %1109 = vmatprep.mubr.bf16.mxu1 %v2075_v53 }
  0x56   : > { %949 = vmatmul.mubr.bf16.gmra.mxu0 %v2077_v54 }
  0x57   : > { %1110 = vmatmul.mubr.bf16.gmra.mxu1 %v2078_v55  ;;  %956 = vmatprep.mubr.bf16.mxu0 %v2079_v56 }
  0x58   : > { %1117 = vmatprep.mubr.bf16.mxu1 %v2081_v57 }
  0x5e   : > { %957 = vmatmul.mubr.bf16.gmra.mxu0 %v2083_v58 }
  0x5f   : > { %1118 = vmatmul.mubr.bf16.gmra.mxu1 %v2084_v59  ;;  %964 = vmatprep.mubr.bf16.mxu0 %v2085_v60 }
  0x60   : > { %1125 = vmatprep.mubr.bf16.mxu1 %v2087_v61 }
  0x66   : > { %965 = vmatmul.mubr.bf16.gmra.mxu0 %v2089_v62 }
  0x67   : > { %1126 = vmatmul.mubr.bf16.gmra.mxu1 %v2090_v63  ;;  %972 = vmatprep.mubr.bf16.mxu0 %v2091_v0 }
  0x68   : > { %1133 = vmatprep.mubr.bf16.mxu1 %v2093_v1 }
  0x6e   : > { %973 = vmatmul.mubr.bf16.gmra.mxu0 %v2095_v2 }
  0x6f   : > { %1134 = vmatmul.mubr.bf16.gmra.mxu1 %v2096_v3  ;;  %980 = vmatprep.mubr.bf16.mxu0 %v2097_v4 }
  0x70   : > { %1141 = vmatprep.mubr.bf16.mxu1 %v2099_v5 }
  0x76   : > { %981 = vmatmul.mubr.bf16.gmra.mxu0 %v2101_v6 }
  0x77   : > { %1142 = vmatmul.mubr.bf16.gmra.mxu1 %v2102_v7  ;;  %988 = vmatprep.mubr.bf16.mxu0 %v2103_v8 }
  0x78   : > { %1149 = vmatprep.mubr.bf16.mxu1 %v2105_v9 }
  0x7e   : > { %989 = vmatmul.mubr.bf16.gmra.mxu0 %v2107_v10 }
  0x7f   : > { %1150 = vmatmul.mubr.bf16.gmra.mxu1 %v2108_v11  ;;  %996 = vmatprep.mubr.bf16.mxu0 %v2109_v12 }
  0x80   : > { %1157 = vmatprep.mubr.bf16.mxu1 %v2111_v13 }
  0x86   : > { %997 = vmatmul.mubr.bf16.gmra.mxu0 %v2113_v14 }
  0x87   : > { %1158 = vmatmul.mubr.bf16.gmra.mxu1 %v2114_v15  ;;  %1004 = vmatprep.mubr.bf16.mxu0 %v2115_v16 }
  0x88   : > { %1165 = vmatprep.mubr.bf16.mxu1 %v2117_v17 }
  0x8e   : > { %1005 = vmatmul.mubr.bf16.gmra.mxu0 %v2119_v18 }
  0x8f   : > { %1166 = vmatmul.mubr.bf16.gmra.mxu1 %v2120_v19  ;;  %1012 = vmatprep.mubr.bf16.mxu0 %v2121_v20 }
  0x90   : > { %1173 = vmatprep.mubr.bf16.mxu1 %v2123_v21 }
  0x96   : > { %1013 = vmatmul.mubr.bf16.gmra.mxu0 %v2125_v22 }
  0x97   : > { %1174 = vmatmul.mubr.bf16.gmra.mxu1 %v2126_v23  ;;  %1020 = vmatprep.mubr.bf16.mxu0 %v2127_v24 }
  0x98   : > { %1181 = vmatprep.mubr.bf16.mxu1 %v2129_v25 }
  0x9e   : > { %1021 = vmatmul.mubr.bf16.gmra.mxu0 %v2131_v26 }
  0x9f   : > { %1182 = vmatmul.mubr.bf16.gmra.mxu1 %v2132_v27  ;;  %1028 = vmatprep.mubr.bf16.mxu0 %v2133_v28 }
  0xa0   : > { %1189 = vmatprep.mubr.bf16.mxu1 %v2135_v29 }
  0xa6   : > { %1029 = vmatmul.mubr.bf16.gmra.mxu0 %v2137_v30 }
  0xa7   : > { %1190 = vmatmul.mubr.bf16.gmra.mxu1 %v2138_v31 }
  0xee   : > { %v1779_v32 = vpop.f32.mrf.mxu0 }
  0xef   : > { %v1891_v33 = vpop.f32.mrf.mxu1 }
  0xf0   : > { %v1780_v35 = vpop.f32.mrf.mxu0 }
  0xf1   : > { %v1781_v36 = vadd.f32 %v1780_v35, %v1779_v32  ;;  %v1892_v37 = vpop.f32.mrf.mxu1 }
  0xf2   : > { %v1782_v38 = vpop.f32.mrf.mxu0  ;;  %v1893_v42 = vadd.f32 %v1892_v37, %v1891_v33 }
  0xf3   : > { %v911_v39 = vadd.f32 %v1781_v36, %v2375_v34  ;;  %v1894_v40 = vpop.f32.mrf.mxu1 }
  0xf4   : > { %v1783_v41 = vpop.f32.mrf.mxu0 }
  0xf5   : > { %v1784_v43 = vadd.f32 %v1783_v41, %v1782_v38  ;;  %v1895_v44 = vpop.f32.mrf.mxu1  ;;  %v1072_v46 = vadd.f32 %v1893_v42, %v911_v39 }
  0xf6   : > { %v1785_v45 = vpop.f32.mrf.mxu0  ;;  %v1896_v48 = vadd.f32 %v1895_v44, %v1894_v40 }
  0xf7   : > { %v914_v47 = vadd.f32 %v1784_v43, %v2375_v34  ;;  %v1897_v49 = vpop.f32.mrf.mxu1  ;;  %v1198_v55 = vmax.f32 %v1072_v46, 0.0 }
  0xf8   : > { %v1786_v50 = vpop.f32.mrf.mxu0 }
  0xf9   : > { %v1075_v51 = vadd.f32 %v1896_v48, %v914_v47  ;;  %v1787_v52 = vadd.f32 %v1786_v50, %v1785_v45  ;;  %v1898_v53 = vpop.f32.mrf.mxu1 }
  0xfa   : > { %v1788_v54 = vpop.f32.mrf.mxu0  ;;  %v1899_v61 = vadd.f32 %v1898_v53, %v1897_v49 }
  0xfb   : > { %v1199_v56 = vmax.f32 %v1075_v51, 0.0  ;;  %v919_v57 = vadd.f32 %v1787_v52, %v2375_v34  ;;  %v1900_v58 = vpop.f32.mrf.mxu1 }
  0xfc   : > { %v1789_v59 = vpop.f32.mrf.mxu0 }
  0xfd   : > { %v1671_v60 = vpack.c.bf16 %v1199_v56, %v1198_v55  ;;  %v1790_v62 = vadd.f32 %v1789_v59, %v1788_v54  ;;  %v1901_v63 = vpop.f32.mrf.mxu1  ;;  %v1080_v1 = vadd.f32 %v1899_v61, %v919_v57 }
  0xfe   : > { %v1791_v0 = vpop.f32.mrf.mxu0  ;;  %v1902_v3 = vadd.f32 %v1901_v63, %v1900_v58 }
  0xff   : > { %1672 = vst [vmem:[%s2384_s20] sm:$0xff] %v1671_v60   ;;  %v922_v2 = vadd.f32 %v1790_v62, %v2375_v34  ;;  %v1903_v4 = vpop.f32.mrf.mxu1  ;;  %v1200_v10 = vmax.f32 %v1080_v1, 0.0 }
 0x100   : > { %v1792_v5 = vpop.f32.mrf.mxu0 }
 0x101   : > { %v1083_v6 = vadd.f32 %v1902_v3, %v922_v2  ;;  %v1793_v7 = vadd.f32 %v1792_v5, %v1791_v0  ;;  %v1904_v8 = vpop.f32.mrf.mxu1 }
 0x102   : > { %v1794_v9 = vpop.f32.mrf.mxu0  ;;  %v1905_v16 = vadd.f32 %v1904_v8, %v1903_v4 }
 0x103   : > { %v1201_v11 = vmax.f32 %v1083_v6, 0.0  ;;  %v927_v12 = vadd.f32 %v1793_v7, %v2375_v34  ;;  %v1906_v13 = vpop.f32.mrf.mxu1 }
 0x104   : > { %v1795_v14 = vpop.f32.mrf.mxu0 }
 0x105   : > { %v1676_v15 = vpack.c.bf16 %v1201_v11, %v1200_v10  ;;  %v1796_v17 = vadd.f32 %v1795_v14, %v1794_v9  ;;  %v1907_v18 = vpop.f32.mrf.mxu1  ;;  %v1088_v20 = vadd.f32 %v1905_v16, %v927_v12 }
 0x106   : > { %v1797_v19 = vpop.f32.mrf.mxu0  ;;  %v1908_v22 = vadd.f32 %v1907_v18, %v1906_v13 }
 0x107   : > { %1748 = vst [vmem:[%s2384_s20 + $0x8] sm:$0xff] %v1676_v15   ;;  %v930_v21 = vadd.f32 %v1796_v17, %v2375_v34  ;;  %v1909_v23 = vpop.f32.mrf.mxu1  ;;  %v1202_v29 = vmax.f32 %v1088_v20, 0.0 }
 0x108   : > { %v1798_v24 = vpop.f32.mrf.mxu0 }
 0x109   : > { %v1091_v25 = vadd.f32 %v1908_v22, %v930_v21  ;;  %v1799_v26 = vadd.f32 %v1798_v24, %v1797_v19  ;;  %v1910_v27 = vpop.f32.mrf.mxu1 }
 0x10a   : > { %v1800_v28 = vpop.f32.mrf.mxu0  ;;  %v1911_v36 = vadd.f32 %v1910_v27, %v1909_v23 }
 0x10b   : > { %v1203_v30 = vmax.f32 %v1091_v25, 0.0  ;;  %v935_v31 = vadd.f32 %v1799_v26, %v2375_v34  ;;  %v1912_v32 = vpop.f32.mrf.mxu1 }
 0x10c   : > { %v1801_v33 = vpop.f32.mrf.mxu0 }
 0x10d   : > { %v1681_v35 = vpack.c.bf16 %v1203_v30, %v1202_v29  ;;  %v1802_v37 = vadd.f32 %v1801_v33, %v1800_v28  ;;  %v1913_v38 = vpop.f32.mrf.mxu1  ;;  %v1096_v40 = vadd.f32 %v1911_v36, %v935_v31 }
 0x10e   : > { %v1803_v39 = vpop.f32.mrf.mxu0  ;;  %v1914_v42 = vadd.f32 %v1913_v38, %v1912_v32 }
 0x10f   : > { %1749 = vst [vmem:[%s2384_s20 + $0x10] sm:$0xff] %v1681_v35   ;;  %v938_v41 = vadd.f32 %v1802_v37, %v2375_v34  ;;  %v1915_v43 = vpop.f32.mrf.mxu1  ;;  %v1204_v49 = vmax.f32 %v1096_v40, 0.0 }
 0x110   : > { %v1804_v44 = vpop.f32.mrf.mxu0 }
 0x111   : > { %v1099_v45 = vadd.f32 %v1914_v42, %v938_v41  ;;  %v1805_v46 = vadd.f32 %v1804_v44, %v1803_v39  ;;  %v1916_v47 = vpop.f32.mrf.mxu1 }
 0x112   : > { %v1806_v48 = vpop.f32.mrf.mxu0  ;;  %v1917_v55 = vadd.f32 %v1916_v47, %v1915_v43 }
 0x113   : > { %v1205_v50 = vmax.f32 %v1099_v45, 0.0  ;;  %v943_v51 = vadd.f32 %v1805_v46, %v2375_v34  ;;  %v1918_v52 = vpop.f32.mrf.mxu1 }
 0x114   : > { %v1807_v53 = vpop.f32.mrf.mxu0 }
 0x115   : > { %v1686_v54 = vpack.c.bf16 %v1205_v50, %v1204_v49  ;;  %v1808_v56 = vadd.f32 %v1807_v53, %v1806_v48  ;;  %v1919_v57 = vpop.f32.mrf.mxu1  ;;  %v1104_v59 = vadd.f32 %v1917_v55, %v943_v51 }
 0x116   : > { %v1809_v58 = vpop.f32.mrf.mxu0  ;;  %v1920_v61 = vadd.f32 %v1919_v57, %v1918_v52 }
 0x117   : > { %1750 = vst [vmem:[%s2384_s20 + $0x18] sm:$0xff] %v1686_v54   ;;  %v946_v60 = vadd.f32 %v1808_v56, %v2375_v34  ;;  %v1921_v62 = vpop.f32.mrf.mxu1  ;;  %v1206_v4 = vmax.f32 %v1104_v59, 0.0 }
 0x118   : > { %v1810_v63 = vpop.f32.mrf.mxu0 }
 0x119   : > { %v1107_v0 = vadd.f32 %v1920_v61, %v946_v60  ;;  %v1811_v1 = vadd.f32 %v1810_v63, %v1809_v58  ;;  %v1922_v2 = vpop.f32.mrf.mxu1 }
 0x11a   : > { %v1812_v3 = vpop.f32.mrf.mxu0  ;;  %v1923_v10 = vadd.f32 %v1922_v2, %v1921_v62 }
 0x11b   : > { %v1207_v5 = vmax.f32 %v1107_v0, 0.0  ;;  %v951_v6 = vadd.f32 %v1811_v1, %v2375_v34  ;;  %v1924_v7 = vpop.f32.mrf.mxu1 }
 0x11c   : > { %v1813_v8 = vpop.f32.mrf.mxu0 }
 0x11d   : > { %v1691_v9 = vpack.c.bf16 %v1207_v5, %v1206_v4  ;;  %v1814_v11 = vadd.f32 %v1813_v8, %v1812_v3  ;;  %v1925_v12 = vpop.f32.mrf.mxu1  ;;  %v1112_v14 = vadd.f32 %v1923_v10, %v951_v6 }
 0x11e   : > { %v1815_v13 = vpop.f32.mrf.mxu0  ;;  %v1926_v16 = vadd.f32 %v1925_v12, %v1924_v7 }
 0x11f   : > { %1751 = vst [vmem:[%s2384_s20 + $0x20] sm:$0xff] %v1691_v9   ;;  %v954_v15 = vadd.f32 %v1814_v11, %v2375_v34  ;;  %v1927_v17 = vpop.f32.mrf.mxu1  ;;  %v1208_v23 = vmax.f32 %v1112_v14, 0.0 }
 0x120   : > { %v1816_v18 = vpop.f32.mrf.mxu0 }
 0x121   : > { %v1115_v19 = vadd.f32 %v1926_v16, %v954_v15  ;;  %v1817_v20 = vadd.f32 %v1816_v18, %v1815_v13  ;;  %v1928_v21 = vpop.f32.mrf.mxu1 }
 0x122   : > { %v1818_v22 = vpop.f32.mrf.mxu0  ;;  %v1929_v29 = vadd.f32 %v1928_v21, %v1927_v17 }
 0x123   : > { %v1209_v24 = vmax.f32 %v1115_v19, 0.0  ;;  %v959_v25 = vadd.f32 %v1817_v20, %v2375_v34  ;;  %v1930_v26 = vpop.f32.mrf.mxu1 }
 0x124   : > { %v1819_v27 = vpop.f32.mrf.mxu0 }
 0x125   : > { %v1696_v28 = vpack.c.bf16 %v1209_v24, %v1208_v23  ;;  %v1820_v30 = vadd.f32 %v1819_v27, %v1818_v22  ;;  %v1931_v31 = vpop.f32.mrf.mxu1  ;;  %v1120_v33 = vadd.f32 %v1929_v29, %v959_v25 }
 0x126   : > { %v1821_v32 = vpop.f32.mrf.mxu0  ;;  %v1932_v36 = vadd.f32 %v1931_v31, %v1930_v26 }
 0x127   : > { %1752 = vst [vmem:[%s2384_s20 + $0x28] sm:$0xff] %v1696_v28   ;;  %v962_v35 = vadd.f32 %v1820_v30, %v2375_v34  ;;  %v1933_v37 = vpop.f32.mrf.mxu1  ;;  %v1210_v43 = vmax.f32 %v1120_v33, 0.0 }
 0x128   : > { %v1822_v38 = vpop.f32.mrf.mxu0 }
 0x129   : > { %v1123_v39 = vadd.f32 %v1932_v36, %v962_v35  ;;  %v1823_v40 = vadd.f32 %v1822_v38, %v1821_v32  ;;  %v1934_v41 = vpop.f32.mrf.mxu1 }
 0x12a   : > { %v1824_v42 = vpop.f32.mrf.mxu0  ;;  %v1935_v49 = vadd.f32 %v1934_v41, %v1933_v37 }
 0x12b   : > { %v1211_v44 = vmax.f32 %v1123_v39, 0.0  ;;  %v967_v45 = vadd.f32 %v1823_v40, %v2375_v34  ;;  %v1936_v46 = vpop.f32.mrf.mxu1 }
 0x12c   : > { %v1825_v47 = vpop.f32.mrf.mxu0 }
 0x12d   : > { %v1701_v48 = vpack.c.bf16 %v1211_v44, %v1210_v43  ;;  %v1826_v50 = vadd.f32 %v1825_v47, %v1824_v42  ;;  %v1937_v51 = vpop.f32.mrf.mxu1  ;;  %v1128_v53 = vadd.f32 %v1935_v49, %v967_v45 }
 0x12e   : > { %v1827_v52 = vpop.f32.mrf.mxu0  ;;  %v1938_v55 = vadd.f32 %v1937_v51, %v1936_v46 }
 0x12f   : > { %1753 = vst [vmem:[%s2384_s20 + $0x30] sm:$0xff] %v1701_v48   ;;  %v970_v54 = vadd.f32 %v1826_v50, %v2375_v34  ;;  %v1939_v56 = vpop.f32.mrf.mxu1  ;;  %v1212_v62 = vmax.f32 %v1128_v53, 0.0 }
 0x130   : > { %v1828_v57 = vpop.f32.mrf.mxu0 }
 0x131   : > { %v1131_v58 = vadd.f32 %v1938_v55, %v970_v54  ;;  %v1829_v59 = vadd.f32 %v1828_v57, %v1827_v52  ;;  %v1940_v60 = vpop.f32.mrf.mxu1 }
 0x132   : > { %v1830_v61 = vpop.f32.mrf.mxu0  ;;  %v1941_v4 = vadd.f32 %v1940_v60, %v1939_v56 }
 0x133   : > { %v1213_v63 = vmax.f32 %v1131_v58, 0.0  ;;  %v975_v0 = vadd.f32 %v1829_v59, %v2375_v34  ;;  %v1942_v1 = vpop.f32.mrf.mxu1 }
 0x134   : > { %v1831_v2 = vpop.f32.mrf.mxu0 }
 0x135   : > { %v1706_v3 = vpack.c.bf16 %v1213_v63, %v1212_v62  ;;  %v1832_v5 = vadd.f32 %v1831_v2, %v1830_v61  ;;  %v1943_v6 = vpop.f32.mrf.mxu1  ;;  %v1136_v8 = vadd.f32 %v1941_v4, %v975_v0 }
 0x136   : > { %v1833_v7 = vpop.f32.mrf.mxu0  ;;  %v1944_v10 = vadd.f32 %v1943_v6, %v1942_v1 }
 0x137   : > { %1754 = vst [vmem:[%s2384_s20 + $0x38] sm:$0xff] %v1706_v3   ;;  %v978_v9 = vadd.f32 %v1832_v5, %v2375_v34  ;;  %v1945_v11 = vpop.f32.mrf.mxu1  ;;  %v1214_v17 = vmax.f32 %v1136_v8, 0.0 }
 0x138   : > { %v1834_v12 = vpop.f32.mrf.mxu0 }
 0x139   : > { %v1139_v13 = vadd.f32 %v1944_v10, %v978_v9  ;;  %v1835_v14 = vadd.f32 %v1834_v12, %v1833_v7  ;;  %v1946_v15 = vpop.f32.mrf.mxu1 }
 0x13a   : > { %v1836_v16 = vpop.f32.mrf.mxu0  ;;  %v1947_v23 = vadd.f32 %v1946_v15, %v1945_v11 }
 0x13b   : > { %v1215_v18 = vmax.f32 %v1139_v13, 0.0  ;;  %v983_v19 = vadd.f32 %v1835_v14, %v2375_v34  ;;  %v1948_v20 = vpop.f32.mrf.mxu1 }
 0x13c   : > { %v1837_v21 = vpop.f32.mrf.mxu0 }
 0x13d   : > { %v1711_v22 = vpack.c.bf16 %v1215_v18, %v1214_v17  ;;  %v1838_v24 = vadd.f32 %v1837_v21, %v1836_v16  ;;  %v1949_v25 = vpop.f32.mrf.mxu1  ;;  %v1144_v27 = vadd.f32 %v1947_v23, %v983_v19 }
 0x13e   : > { %v1839_v26 = vpop.f32.mrf.mxu0  ;;  %v1950_v29 = vadd.f32 %v1949_v25, %v1948_v20 }
 0x13f   : > { %1755 = vst [vmem:[%s2384_s20 + $0x40] sm:$0xff] %v1711_v22   ;;  %v986_v28 = vadd.f32 %v1838_v24, %v2375_v34  ;;  %v1951_v30 = vpop.f32.mrf.mxu1  ;;  %v1216_v37 = vmax.f32 %v1144_v27, 0.0 }
 0x140   : > { %v1840_v31 = vpop.f32.mrf.mxu0 }
 0x141   : > { %v1147_v32 = vadd.f32 %v1950_v29, %v986_v28  ;;  %v1841_v33 = vadd.f32 %v1840_v31, %v1839_v26  ;;  %v1952_v35 = vpop.f32.mrf.mxu1 }
 0x142   : > { %v1842_v36 = vpop.f32.mrf.mxu0  ;;  %v1953_v43 = vadd.f32 %v1952_v35, %v1951_v30 }
 0x143   : > { %v1217_v38 = vmax.f32 %v1147_v32, 0.0  ;;  %v991_v39 = vadd.f32 %v1841_v33, %v2375_v34  ;;  %v1954_v40 = vpop.f32.mrf.mxu1 }
 0x144   : > { %v1843_v41 = vpop.f32.mrf.mxu0 }
 0x145   : > { %v1716_v42 = vpack.c.bf16 %v1217_v38, %v1216_v37  ;;  %v1844_v44 = vadd.f32 %v1843_v41, %v1842_v36  ;;  %v1955_v45 = vpop.f32.mrf.mxu1  ;;  %v1152_v47 = vadd.f32 %v1953_v43, %v991_v39 }
 0x146   : > { %v1845_v46 = vpop.f32.mrf.mxu0  ;;  %v1956_v49 = vadd.f32 %v1955_v45, %v1954_v40 }
 0x147   : > { %1756 = vst [vmem:[%s2384_s20 + $0x48] sm:$0xff] %v1716_v42   ;;  %v994_v48 = vadd.f32 %v1844_v44, %v2375_v34  ;;  %v1957_v50 = vpop.f32.mrf.mxu1  ;;  %v1218_v56 = vmax.f32 %v1152_v47, 0.0 }
 0x148   : > { %v1846_v51 = vpop.f32.mrf.mxu0 }
 0x149   : > { %v1155_v52 = vadd.f32 %v1956_v49, %v994_v48  ;;  %v1847_v53 = vadd.f32 %v1846_v51, %v1845_v46  ;;  %v1958_v54 = vpop.f32.mrf.mxu1 }
 0x14a   : > { %v1848_v55 = vpop.f32.mrf.mxu0  ;;  %v1959_v62 = vadd.f32 %v1958_v54, %v1957_v50 }
 0x14b   : > { %v1219_v57 = vmax.f32 %v1155_v52, 0.0  ;;  %v999_v58 = vadd.f32 %v1847_v53, %v2375_v34  ;;  %v1960_v59 = vpop.f32.mrf.mxu1 }
 0x14c   : > { %v1849_v60 = vpop.f32.mrf.mxu0 }
 0x14d   : > { %v1721_v61 = vpack.c.bf16 %v1219_v57, %v1218_v56  ;;  %v1850_v63 = vadd.f32 %v1849_v60, %v1848_v55  ;;  %v1961_v0 = vpop.f32.mrf.mxu1  ;;  %v1160_v2 = vadd.f32 %v1959_v62, %v999_v58 }
 0x14e   : > { %v1851_v1 = vpop.f32.mrf.mxu0  ;;  %v1962_v4 = vadd.f32 %v1961_v0, %v1960_v59 }
 0x14f   : > { %1757 = vst [vmem:[%s2384_s20 + $0x50] sm:$0xff] %v1721_v61   ;;  %v1002_v3 = vadd.f32 %v1850_v63, %v2375_v34  ;;  %v1963_v5 = vpop.f32.mrf.mxu1  ;;  %v1220_v11 = vmax.f32 %v1160_v2, 0.0 }
 0x150   : > { %v1852_v6 = vpop.f32.mrf.mxu0 }
 0x151   : > { %v1163_v7 = vadd.f32 %v1962_v4, %v1002_v3  ;;  %v1853_v8 = vadd.f32 %v1852_v6, %v1851_v1  ;;  %v1964_v9 = vpop.f32.mrf.mxu1 }
 0x152   : > { %v1854_v10 = vpop.f32.mrf.mxu0  ;;  %v1965_v17 = vadd.f32 %v1964_v9, %v1963_v5 }
 0x153   : > { %v1221_v12 = vmax.f32 %v1163_v7, 0.0  ;;  %v1007_v13 = vadd.f32 %v1853_v8, %v2375_v34  ;;  %v1966_v14 = vpop.f32.mrf.mxu1 }
 0x154   : > { %v1855_v15 = vpop.f32.mrf.mxu0 }
 0x155   : > { %v1726_v16 = vpack.c.bf16 %v1221_v12, %v1220_v11  ;;  %v1856_v18 = vadd.f32 %v1855_v15, %v1854_v10  ;;  %v1967_v19 = vpop.f32.mrf.mxu1  ;;  %v1168_v21 = vadd.f32 %v1965_v17, %v1007_v13 }
 0x156   : > { %v1857_v20 = vpop.f32.mrf.mxu0  ;;  %v1968_v23 = vadd.f32 %v1967_v19, %v1966_v14 }
 0x157   : > { %1758 = vst [vmem:[%s2384_s20 + $0x58] sm:$0xff] %v1726_v16   ;;  %v1010_v22 = vadd.f32 %v1856_v18, %v2375_v34  ;;  %v1969_v24 = vpop.f32.mrf.mxu1  ;;  %v1222_v30 = vmax.f32 %v1168_v21, 0.0 }
 0x158   : > { %v1858_v25 = vpop.f32.mrf.mxu0 }
 0x159   : > { %v1171_v26 = vadd.f32 %v1968_v23, %v1010_v22  ;;  %v1859_v27 = vadd.f32 %v1858_v25, %v1857_v20  ;;  %v1970_v28 = vpop.f32.mrf.mxu1 }
 0x15a   : > { %v1860_v29 = vpop.f32.mrf.mxu0  ;;  %v1971_v37 = vadd.f32 %v1970_v28, %v1969_v24 }
 0x15b   : > { %v1223_v31 = vmax.f32 %v1171_v26, 0.0  ;;  %v1015_v32 = vadd.f32 %v1859_v27, %v2375_v34  ;;  %v1972_v33 = vpop.f32.mrf.mxu1 }
 0x15c   : > { %v1861_v35 = vpop.f32.mrf.mxu0 }
 0x15d   : > { %v1731_v36 = vpack.c.bf16 %v1223_v31, %v1222_v30  ;;  %v1862_v38 = vadd.f32 %v1861_v35, %v1860_v29  ;;  %v1973_v39 = vpop.f32.mrf.mxu1  ;;  %v1176_v41 = vadd.f32 %v1971_v37, %v1015_v32 }
 0x15e   : > { %v1863_v40 = vpop.f32.mrf.mxu0  ;;  %v1974_v43 = vadd.f32 %v1973_v39, %v1972_v33 }
 0x15f   : > { %1759 = vst [vmem:[%s2384_s20 + $0x60] sm:$0xff] %v1731_v36   ;;  %v1018_v42 = vadd.f32 %v1862_v38, %v2375_v34  ;;  %v1975_v44 = vpop.f32.mrf.mxu1  ;;  %v1224_v50 = vmax.f32 %v1176_v41, 0.0 }
 0x160   : > { %v1864_v45 = vpop.f32.mrf.mxu0 }
 0x161   : > { %v1179_v46 = vadd.f32 %v1974_v43, %v1018_v42  ;;  %v1865_v47 = vadd.f32 %v1864_v45, %v1863_v40  ;;  %v1976_v48 = vpop.f32.mrf.mxu1 }
 0x162   : > { %v1866_v49 = vpop.f32.mrf.mxu0  ;;  %v1977_v56 = vadd.f32 %v1976_v48, %v1975_v44 }
 0x163   : > { %v1225_v51 = vmax.f32 %v1179_v46, 0.0  ;;  %v1023_v52 = vadd.f32 %v1865_v47, %v2375_v34  ;;  %v1978_v53 = vpop.f32.mrf.mxu1 }
 0x164   : > { %v1867_v54 = vpop.f32.mrf.mxu0 }
 0x165   : > { %v1736_v55 = vpack.c.bf16 %v1225_v51, %v1224_v50  ;;  %v1868_v57 = vadd.f32 %v1867_v54, %v1866_v49  ;;  %v1979_v58 = vpop.f32.mrf.mxu1  ;;  %v1184_v60 = vadd.f32 %v1977_v56, %v1023_v52 }
 0x166   : > { %v1869_v59 = vpop.f32.mrf.mxu0  ;;  %v1980_v62 = vadd.f32 %v1979_v58, %v1978_v53 }
 0x167   : > { %1760 = vst [vmem:[%s2384_s20 + $0x68] sm:$0xff] %v1736_v55   ;;  %v1026_v61 = vadd.f32 %v1868_v57, %v2375_v34  ;;  %v1981_v63 = vpop.f32.mrf.mxu1  ;;  %v1226_v5 = vmax.f32 %v1184_v60, 0.0 }
 0x168   : > { %v1870_v0 = vpop.f32.mrf.mxu0 }
 0x169   : > { %v1187_v1 = vadd.f32 %v1980_v62, %v1026_v61  ;;  %v1871_v2 = vadd.f32 %v1870_v0, %v1869_v59  ;;  %v1982_v3 = vpop.f32.mrf.mxu1 }
 0x16a   : > { %v1872_v4 = vpop.f32.mrf.mxu0  ;;  %v1983_v11 = vadd.f32 %v1982_v3, %v1981_v63 }
 0x16b   : > { %v1227_v6 = vmax.f32 %v1187_v1, 0.0  ;;  %v1031_v7 = vadd.f32 %v1871_v2, %v2375_v34  ;;  %v1984_v8 = vpop.f32.mrf.mxu1 }
 0x16c   : > { %v1873_v9 = vpop.f32.mrf.mxu0 }
 0x16d   : > { %v1741_v10 = vpack.c.bf16 %v1227_v6, %v1226_v5  ;;  %v1874_v12 = vadd.f32 %v1873_v9, %v1872_v4  ;;  %v1985_v13 = vpop.f32.mrf.mxu1  ;;  %v1192_v14 = vadd.f32 %v1983_v11, %v1031_v7 }
 0x16e   : > { %v1986_v16 = vadd.f32 %v1985_v13, %v1984_v8 }
 0x16f   : > { %1761 = vst [vmem:[%s2384_s20 + $0x70] sm:$0xff] %v1741_v10   ;;  %v1034_v15 = vadd.f32 %v1874_v12, %v2375_v34  ;;  %v1228_v18 = vmax.f32 %v1192_v14, 0.0 }
 0x171   : > { %v1195_v17 = vadd.f32 %v1986_v16, %v1034_v15 }
 0x173   : > { %v1229_v19 = vmax.f32 %v1195_v17, 0.0 }
 0x175   : > { %v1746_v20 = vpack.c.bf16 %v1229_v19, %v1228_v18 }
 0x177   : > { %1762 = vst [vmem:[%s2384_s20 + $0x78] sm:$0xff] %v1746_v20  }
 0x178 PF: > { %s13_s14 = sadd.s32 1, %s2161_s14   ;;  %s2444_s12 = smov %s2157_s13 }
 0x179   : > { %p10_p5 = scmp.ge.s32.totalorder %s13_s14, 4   ;;  %s2445_s13 = smov %s2447_s15 }
 0x17b   :  { %12 = sbr.rel (!%p10_p5) target bundleno = 2 (0x2), region = 68 }

// kernel: kappa_denoiser_forward.10
= control target key start
LH: loop header
LB: loop body
LE: loop exit
PB: predicated region body
PF: predicated region fallthrough
CT: control target
= control target key end

     0   :  { %s1793_s12 = smov 0   ;;  %s1795_s13 = smov 0   ;;  %s2114_s0 = inlined_call_operand.vmem [shape: bf16[128,1024], index: 0, kind: input, shape index: {}]   ;;  %s2115_s1 = inlined_call_operand.vmem [shape: bf16[1024,128], index: 1, kind: input, shape index: {}]   ;;  %s2116_s2 = inlined_call_operand.vmem [shape: f32[1,128], index: 2, kind: input, shape index: {}]   ;;  %s2117_s3 = inlined_call_operand.vmem [shape: bf16[128,128], index: 3, kind: output, shape index: {}]  }
   0x1   :  { %s1797_s14 = smov 0  }
   0x2 LB: > { %s25_s15 = sadd.s32 1, %s1767_s13  ;;  %p1356_p0 = scmp.ge.s32.totalorder %s1771_s14, 1  ;;  %s1771_s14 = sphi %s1797_s14, %s13_s14   ;;  %s1767_s13 = sphi %s1795_s13, %s2119_s13   ;;  %s1763_s12 = sphi %s1793_s12, %s2118_s12  }
   0x3   : > { %p27_p1 = scmp.ge.s32.totalorder %s25_s15, 2  ;;  %p170_p2 = scmp.lt.s32.totalorder %s1771_s14, 3 }
   0x5   : > { %s2121_s15 = smov (%p27_p1, %s25_s15), 0  ;;  %p171_p3 = pnand %p1356_p0, %p170_p2 }
   0x6   : > { %s1357_s25 = sshll.u32 (!%p171_p3), %s1763_s12, 3 }
   0x7   : > { %174 = sbr.rel (%p171_p3) target bundleno = 312 (0x138), region = 32  ;;  %p206_p4 = scmp.lt.s32.totalorder (!%p171_p3), %s1357_s25, 15 }
   0xc   : > { %v1685_v0 = vld [vmem:[%s2115_s1 + $0x78] sm:$0xff]   ;;  %v1689_v4 = vld [vmem:[%s2115_s1 + $0x70] sm:$0xff]   ;;  %v1693_v8 = vld [vmem:[%s2115_s1 + $0x68] sm:$0xff]   ;;  %s2123_s25 = smov (!%p206_p4, %s1357_s25), 15 }
   0xd   : > { %v1686_v1 = vld [vmem:[%s2115_s1 + $0xf8] sm:$0xff]   ;;  %1501 = vmatprep.subr.bf16.mxu0 %v1685_v0  ;;  %v1690_v5 = vld [vmem:[%s2115_s1 + $0xf0] sm:$0xff]   ;;  %v1694_v9 = vld [vmem:[%s2115_s1 + $0xe8] sm:$0xff]   ;;  %s1469_s24 = sshll.u32 %s2123_s25, 5  ;;  %s1361_s10 = sshll.u32 %s2123_s25, 2 }
   0xe   : > { %v1687_v2 = vld [vmem:[%s2115_s1 + $0x38] sm:$0xff]   ;;  %1541 = vmatprep.subr.bf16.mxu1 %v1686_v1  ;;  %v1691_v6 = vld [vmem:[%s2115_s1 + $0x30] sm:$0xff]   ;;  %v1695_v10 = vld [vmem:[%s2115_s1 + $0x28] sm:$0xff]   ;;  %s1910_s12 = scalar_lea.vmem %s2114_s0, %s1469_s24  ;;  %s2083_s17 = scalar_lea.vmem %s2117_s3, %s1361_s10 }
   0xf   : > { %v1688_v3 = vld [vmem:[%s2115_s1 + $0xb8] sm:$0xff]   ;;  %1502 = vmatpush3.bf16.msra.mxu0 %v1687_v2  ;;  %v1692_v7 = vld [vmem:[%s2115_s1 + $0xb0] sm:$0xff]   ;;  %v1696_v11 = vld [vmem:[%s2115_s1 + $0xa8] sm:$0xff]  }
  0x10   : > { %1542 = vmatpush3.bf16.msra.mxu1 %v1688_v3  ;;  %1503 = vmatprep.subr.bf16.mxu0 %v1689_v4  ;;  %v1697_v12 = vld [vmem:[%s2115_s1 + $0x60] sm:$0xff]   ;;  %v1701_v16 = vld [vmem:[%s2115_s1 + $0x58] sm:$0xff]   ;;  %v1705_v20 = vld [vmem:[%s2115_s1 + $0x50] sm:$0xff]  }
  0x11   : > { %1543 = vmatprep.subr.bf16.mxu1 %v1690_v5  ;;  %v1698_v13 = vld [vmem:[%s2115_s1 + $0xe0] sm:$0xff]   ;;  %v1702_v17 = vld [vmem:[%s2115_s1 + $0xd8] sm:$0xff]   ;;  %v1706_v21 = vld [vmem:[%s2115_s1 + $0xd0] sm:$0xff]  }
  0x12   : > { %v1699_v14 = vld [vmem:[%s2115_s1 + $0x20] sm:$0xff]   ;;  %v1703_v18 = vld [vmem:[%s2115_s1 + $0x18] sm:$0xff]   ;;  %v1707_v22 = vld [vmem:[%s2115_s1 + $0x10] sm:$0xff]  }
  0x13   : > { %1504 = vmatpush3.bf16.msra.mxu0 %v1691_v6  ;;  %v1700_v15 = vld [vmem:[%s2115_s1 + $0xa0] sm:$0xff]   ;;  %v1704_v19 = vld [vmem:[%s2115_s1 + $0x98] sm:$0xff]   ;;  %v1708_v23 = vld [vmem:[%s2115_s1 + $0x90] sm:$0xff]  }
  0x14   : > { %1544 = vmatpush3.bf16.msra.mxu1 %v1692_v7  ;;  %1505 = vmatprep.subr.bf16.mxu0 %v1693_v8  ;;  %v1709_v24 = vld [vmem:[%s2115_s1 + $0x48] sm:$0xff]   ;;  %v1713_v28 = vld [vmem:[%s2115_s1 + $0x40] sm:$0xff]   ;;  %v1717_v40 = vld [vmem:[%s2115_s1 + $0x178] sm:$0xff]  }
  0x15   : > { %1545 = vmatprep.subr.bf16.mxu1 %v1694_v9  ;;  %v1710_v25 = vld [vmem:[%s2115_s1 + $0xc8] sm:$0xff]   ;;  %v1714_v29 = vld [vmem:[%s2115_s1 + $0xc0] sm:$0xff]   ;;  %v1718_v41 = vld [vmem:[%s2115_s1 + $0x1f8] sm:$0xff]  }
  0x16   : > { %v1711_v26 = vld [vmem:[%s2115_s1 + $0x8] sm:$0xff]   ;;  %v1715_v30 = vld [vmem:[%s2115_s1] sm:$0xff]   ;;  %v1719_v42 = vld [vmem:[%s2115_s1 + $0x138] sm:$0xff]  }
  0x17   : > { %1506 = vmatpush3.bf16.msra.mxu0 %v1695_v10  ;;  %v1712_v27 = vld [vmem:[%s2115_s1 + $0x88] sm:$0xff]   ;;  %v1716_v31 = vld [vmem:[%s2115_s1 + $0x80] sm:$0xff]   ;;  %v1720_v43 = vld [vmem:[%s2115_s1 + $0x1b8] sm:$0xff]  }
  0x18   : > { %1546 = vmatpush3.bf16.msra.mxu1 %v1696_v11  ;;  %1507 = vmatprep.subr.bf16.mxu0 %v1697_v12  ;;  %v229_v32 = vld [vmem:[%s1910_s12] sm:$0xff]  ;;  %v230_v34 = vld [vmem:[%s1910_s12 + $0x8] sm:$0xff]  ;;  %v1721_v44 = vld [vmem:[%s2115_s1 + $0x170] sm:$0xff]  }
  0x19   : > { %1547 = vmatprep.subr.bf16.mxu1 %v1698_v13  ;;  %v233_v33 = vld [vmem:[%s1910_s12 + $0x20] sm:$0xff]  ;;  %v234_v37 = vld [vmem:[%s1910_s12 + $0x28] sm:$0xff]  ;;  %v1722_v45 = vld [vmem:[%s2115_s1 + $0x1f0] sm:$0xff]  }
  0x1a   : > { %v1363_v35 = vcombine.low %v229_v32, %v233_v33  ;;  %v1364_v36 = vcombine.high %v229_v32, %v233_v33  ;;  %v1365_v38 = vcombine.low %v230_v34, %v234_v37  ;;  %v1366_v39 = vcombine.high %v230_v34, %v234_v37  ;;  %v1723_v46 = vld [vmem:[%s2115_s1 + $0x130] sm:$0xff]   ;;  %v237_v48 = vld [vmem:[%s1910_s12 + $0x40] sm:$0xff]  ;;  %v238_v51 = vld [vmem:[%s1910_s12 + $0x48] sm:$0xff] }
  0x1b   : > { %1508 = vmatpush3.bf16.msra.mxu0 %v1699_v14  ;;  %v1724_v47 = vld [vmem:[%s2115_s1 + $0x1b0] sm:$0xff]   ;;  %v241_v49 = vld [vmem:[%s1910_s12 + $0x60] sm:$0xff]  ;;  %v242_v52 = vld [vmem:[%s1910_s12 + $0x68] sm:$0xff] }
  0x1c   : > { %1548 = vmatpush3.bf16.msra.mxu1 %v1700_v15  ;;  %1509 = vmatprep.subr.bf16.mxu0 %v1701_v16  ;;  %v1372_v50 = vcombine.high %v237_v48, %v241_v49  ;;  %v1371_v53 = vcombine.low %v237_v48, %v241_v49  ;;  %v1374_v54 = vcombine.high %v238_v51, %v242_v52  ;;  %v1725_v56 = vld [vmem:[%s2115_s1 + $0x168] sm:$0xff]   ;;  %v1729_v60 = vld [vmem:[%s2115_s1 + $0x160] sm:$0xff]   ;;  %v1733_v8 = vld [vmem:[%s2115_s1 + $0x158] sm:$0xff]  }
  0x1d   : > { %1549 = vmatprep.subr.bf16.mxu1 %v1702_v17  ;;  %972 = vmatprep.mubr.bf16.mxu0 %v1364_v36  ;;  %v1373_v55 = vcombine.low %v238_v51, %v242_v52  ;;  %v1726_v57 = vld [vmem:[%s2115_s1 + $0x1e8] sm:$0xff]   ;;  %v1730_v61 = vld [vmem:[%s2115_s1 + $0x1e0] sm:$0xff]   ;;  %v1734_v9 = vld [vmem:[%s2115_s1 + $0x1d8] sm:$0xff]  }
  0x1e   : > { %1037 = vmatprep.mubr.bf16.mxu1 %v1366_v39  ;;  %v1727_v58 = vld [vmem:[%s2115_s1 + $0x128] sm:$0xff]   ;;  %v1731_v62 = vld [vmem:[%s2115_s1 + $0x120] sm:$0xff]   ;;  %v1735_v10 = vld [vmem:[%s2115_s1 + $0x118] sm:$0xff]  }
  0x1f   : > { %1510 = vmatpush3.bf16.msra.mxu0 %v1703_v18  ;;  %v1728_v59 = vld [vmem:[%s2115_s1 + $0x1a8] sm:$0xff]   ;;  %v1732_v63 = vld [vmem:[%s2115_s1 + $0x1a0] sm:$0xff]   ;;  %v1736_v11 = vld [vmem:[%s2115_s1 + $0x198] sm:$0xff]  }
  0x20   : > { %1550 = vmatpush3.bf16.msra.mxu1 %v1704_v19  ;;  %1511 = vmatprep.subr.bf16.mxu0 %v1705_v20  ;;  %v245_v0 = vld [vmem:[%s1910_s12 + $0x80] sm:$0xff]  ;;  %v246_v2 = vld [vmem:[%s1910_s12 + $0x88] sm:$0xff]  ;;  %v1737_v12 = vld [vmem:[%s2115_s1 + $0x150] sm:$0xff]  }
  0x21   : > { %1551 = vmatprep.subr.bf16.mxu1 %v1706_v21  ;;  %v249_v1 = vld [vmem:[%s1910_s12 + $0xa0] sm:$0xff]  ;;  %v250_v3 = vld [vmem:[%s1910_s12 + $0xa8] sm:$0xff]  ;;  %v1738_v13 = vld [vmem:[%s2115_s1 + $0x1d0] sm:$0xff]  }
  0x22   : > { %v1380_v4 = vcombine.high %v245_v0, %v249_v1  ;;  %v1382_v5 = vcombine.high %v246_v2, %v250_v3  ;;  %v1379_v6 = vcombine.low %v245_v0, %v249_v1  ;;  %v1381_v7 = vcombine.low %v246_v2, %v250_v3  ;;  %v1739_v14 = vld [vmem:[%s2115_s1 + $0x110] sm:$0xff]   ;;  %v253_v16 = vld [vmem:[%s1910_s12 + $0xc0] sm:$0xff]  ;;  %v254_v18 = vld [vmem:[%s1910_s12 + $0xc8] sm:$0xff] }
  0x23   : > { %1512 = vmatpush3.bf16.msra.mxu0 %v1707_v22  ;;  %v1740_v15 = vld [vmem:[%s2115_s1 + $0x190] sm:$0xff]   ;;  %v257_v17 = vld [vmem:[%s1910_s12 + $0xe0] sm:$0xff]  ;;  %v258_v20 = vld [vmem:[%s1910_s12 + $0xe8] sm:$0xff] }
  0x24   : > { %1552 = vmatpush3.bf16.msra.mxu1 %v1708_v23  ;;  %1513 = vmatprep.subr.bf16.mxu0 %v1709_v24  ;;  %v1388_v19 = vcombine.high %v253_v16, %v257_v17  ;;  %v1387_v21 = vcombine.low %v253_v16, %v257_v17  ;;  %v1390_v22 = vcombine.high %v254_v18, %v258_v20  ;;  %v1741_v24 = vld [vmem:[%s2115_s1 + $0x148] sm:$0xff]   ;;  %v231_v32 = vld [vmem:[%s1910_s12 + $0x10] sm:$0xff]  ;;  %v232_v36 = vld [vmem:[%s1910_s12 + $0x18] sm:$0xff] }
  0x25   : > { %1553 = vmatprep.subr.bf16.mxu1 %v1710_v25  ;;  %v1389_v23 = vcombine.low %v254_v18, %v258_v20  ;;  %v1742_v25 = vld [vmem:[%s2115_s1 + $0x1c8] sm:$0xff]   ;;  %v235_v33 = vld [vmem:[%s1910_s12 + $0x30] sm:$0xff]  ;;  %v236_v37 = vld [vmem:[%s1910_s12 + $0x38] sm:$0xff] }
  0x26   : > { %v1367_v34 = vcombine.low %v231_v32, %v235_v33  ;;  %v1369_v39 = vcombine.low %v232_v36, %v236_v37  ;;  %v248_v48 = vld [vmem:[%s1910_s12 + $0x98] sm:$0xff] }
  0x27   : > { %1514 = vmatpush3.bf16.msra.mxu0 %v1711_v26  ;;  %v1743_v26 = vld [vmem:[%s2115_s1 + $0x108] sm:$0xff]   ;;  %v252_v49 = vld [vmem:[%s1910_s12 + $0xb8] sm:$0xff] }
  0x28   : > { %1554 = vmatpush3.bf16.msra.mxu1 %v1712_v27  ;;  %1515 = vmatprep.subr.bf16.mxu0 %v1713_v28  ;;  %v1744_v27 = vld [vmem:[%s2115_s1 + $0x188] sm:$0xff]   ;;  %v1745_v28 = vld [vmem:[%s2115_s1 + $0x140] sm:$0xff]  }
  0x29   : > { %1555 = vmatprep.subr.bf16.mxu1 %v1714_v29  ;;  %v1746_v29 = vld [vmem:[%s2115_s1 + $0x1c0] sm:$0xff]  }
  0x2b   : > { %1516 = vmatpush3.bf16.msra.mxu0 %v1715_v30  ;;  %v1747_v30 = vld [vmem:[%s2115_s1 + $0x100] sm:$0xff]  }
  0x2c   : > { %1556 = vmatpush3.bf16.msra.mxu1 %v1716_v31  ;;  %1581 = vmatprep.subr.bf16.mxu0 %v1717_v40  ;;  %v1748_v31 = vld [vmem:[%s2115_s1 + $0x180] sm:$0xff]   ;;  %v1370_v40 = vcombine.high %v232_v36, %v236_v37 }
  0x2d   : > { %1621 = vmatprep.subr.bf16.mxu1 %v1718_v41  ;;  %v243_v41 = vld [vmem:[%s1910_s12 + $0x70] sm:$0xff] }
  0x2e   : > { %973 = vmatmul.mubr.bf16.vlgmr.msra.gmra.mxu0 %v1363_v35  ;;  %v1368_v35 = vcombine.high %v231_v32, %v235_v33 }
  0x2f   : > { %1038 = vmatmul.mubr.bf16.vlgmr.msra.gmra.mxu1 %v1365_v38  ;;  %1582 = vmatpush3.bf16.msra.mxu0 %v1719_v42  ;;  %v239_v38 = vld [vmem:[%s1910_s12 + $0x50] sm:$0xff]  ;;  %v240_v42 = vld [vmem:[%s1910_s12 + $0x58] sm:$0xff] }
  0x30   : > { %1622 = vmatpush3.bf16.msra.mxu1 %v1720_v43  ;;  %1583 = vmatprep.subr.bf16.mxu0 %v1721_v44  ;;  %v244_v43 = vld [vmem:[%s1910_s12 + $0x78] sm:$0xff]  ;;  %v1376_v44 = vcombine.high %v239_v38, %v243_v41 }
  0x31   : > { %1623 = vmatprep.subr.bf16.mxu1 %v1722_v45  ;;  %980 = vmatprep.mubr.bf16.mxu0 %v1372_v50  ;;  %v1378_v45 = vcombine.high %v240_v42, %v244_v43  ;;  %v1375_v50 = vcombine.low %v239_v38, %v243_v41  ;;  %v1377_v51 = vcombine.low %v240_v42, %v244_v43 }
  0x32   : > { %1045 = vmatprep.mubr.bf16.mxu1 %v1374_v54  ;;  %v255_v54 = vld [vmem:[%s1910_s12 + $0xd0] sm:$0xff] }
  0x33   : > { %1584 = vmatpush3.bf16.msra.mxu0 %v1723_v46  ;;  %v247_v46 = vld [vmem:[%s1910_s12 + $0x90] sm:$0xff] }
  0x34   : > { %1624 = vmatpush3.bf16.msra.mxu1 %v1724_v47  ;;  %1585 = vmatprep.subr.bf16.mxu0 %v1725_v56  ;;  %v251_v47 = vld [vmem:[%s1910_s12 + $0xb0] sm:$0xff]  ;;  %v256_v56 = vld [vmem:[%s1910_s12 + $0xd8] sm:$0xff] }
  0x35   : > { %1625 = vmatprep.subr.bf16.mxu1 %v1726_v57  ;;  %v1384_v52 = vcombine.high %v247_v46, %v251_v47  ;;  %v260_v57 = vld [vmem:[%s1910_s12 + $0xf8] sm:$0xff] }
  0x36   : > { %981 = vmatmul.mubr.bf16.gmra.mxu0 %v1371_v53  ;;  %v1386_v53 = vcombine.high %v248_v48, %v252_v49 }
  0x37   : > { %1046 = vmatmul.mubr.bf16.gmra.mxu1 %v1373_v55  ;;  %1586 = vmatpush3.bf16.msra.mxu0 %v1727_v58  ;;  %v259_v55 = vld [vmem:[%s1910_s12 + $0xf0] sm:$0xff]  ;;  %v1383_v58 = vcombine.low %v247_v46, %v251_v47 }
  0x38   : > { %1626 = vmatpush3.bf16.msra.mxu1 %v1728_v59  ;;  %1587 = vmatprep.subr.bf16.mxu0 %v1729_v60  ;;  %v1385_v59 = vcombine.low %v248_v48, %v252_v49  ;;  %v1392_v60 = vcombine.high %v255_v54, %v259_v55 }
  0x39   : > { %1627 = vmatprep.subr.bf16.mxu1 %v1730_v61  ;;  %988 = vmatprep.mubr.bf16.mxu0 %v1380_v4  ;;  %v1394_v61 = vcombine.high %v256_v56, %v260_v57 }
  0x3a   : > { %1053 = vmatprep.mubr.bf16.mxu1 %v1382_v5 }
  0x3b   : > { %1588 = vmatpush3.bf16.msra.mxu0 %v1731_v62  ;;  %v1391_v62 = vcombine.low %v255_v54, %v259_v55 }
  0x3c   : > { %1628 = vmatpush3.bf16.msra.mxu1 %v1732_v63  ;;  %1589 = vmatprep.subr.bf16.mxu0 %v1733_v8  ;;  %v1393_v63 = vcombine.low %v256_v56, %v260_v57 }
  0x3d   : > { %1629 = vmatprep.subr.bf16.mxu1 %v1734_v9 }
  0x3e   : > { %989 = vmatmul.mubr.bf16.gmra.mxu0 %v1379_v6 }
  0x3f   : > { %1054 = vmatmul.mubr.bf16.gmra.mxu1 %v1381_v7  ;;  %1590 = vmatpush3.bf16.msra.mxu0 %v1735_v10 }
  0x40   : > { %1630 = vmatpush3.bf16.msra.mxu1 %v1736_v11  ;;  %1591 = vmatprep.subr.bf16.mxu0 %v1737_v12 }
  0x41   : > { %1631 = vmatprep.subr.bf16.mxu1 %v1738_v13  ;;  %996 = vmatprep.mubr.bf16.mxu0 %v1388_v19 }
  0x42   : > { %1061 = vmatprep.mubr.bf16.mxu1 %v1390_v22 }
  0x43   : > { %1592 = vmatpush3.bf16.msra.mxu0 %v1739_v14 }
  0x44   : > { %1632 = vmatpush3.bf16.msra.mxu1 %v1740_v15  ;;  %1593 = vmatprep.subr.bf16.mxu0 %v1741_v24 }
  0x45   : > { %1633 = vmatprep.subr.bf16.mxu1 %v1742_v25 }
  0x46   : > { %997 = vmatmul.mubr.bf16.gmra.mxu0 %v1387_v21 }
  0x47   : > { %1062 = vmatmul.mubr.bf16.gmra.mxu1 %v1389_v23  ;;  %1594 = vmatpush3.bf16.msra.mxu0 %v1743_v26 }
  0x48   : > { %1634 = vmatpush3.bf16.msra.mxu1 %v1744_v27  ;;  %1595 = vmatprep.subr.bf16.mxu0 %v1745_v28 }
  0x49   : > { %1635 = vmatprep.subr.bf16.mxu1 %v1746_v29  ;;  %1102 = vmatprep.mubr.bf16.mxu0 %v1368_v35 }
  0x4a   : > { %1167 = vmatprep.mubr.bf16.mxu1 %v1370_v40 }
  0x4b   : > { %1596 = vmatpush3.bf16.msra.mxu0 %v1747_v30  ;;  %v2067_v30 = vld [vmem:[%s2116_s2] ss:$0 sm:$0xff] }
  0x4c   : > { %1636 = vmatpush3.bf16.msra.mxu1 %v1748_v31 }
  0x4e   : > { %1103 = vmatmul.mubr.bf16.vlgmr.msra.gmra.mxu0 %v1367_v34 }
  0x4f   : > { %1168 = vmatmul.mubr.bf16.vlgmr.msra.gmra.mxu1 %v1369_v39  ;;  %1110 = vmatprep.mubr.bf16.mxu0 %v1376_v44 }
  0x50   : > { %1175 = vmatprep.mubr.bf16.mxu1 %v1378_v45 }
  0x56   : > { %1111 = vmatmul.mubr.bf16.gmra.mxu0 %v1375_v50 }
  0x57   : > { %1176 = vmatmul.mubr.bf16.gmra.mxu1 %v1377_v51  ;;  %1118 = vmatprep.mubr.bf16.mxu0 %v1384_v52 }
  0x58   : > { %1183 = vmatprep.mubr.bf16.mxu1 %v1386_v53 }
  0x5e   : > { %1119 = vmatmul.mubr.bf16.gmra.mxu0 %v1383_v58 }
  0x5f   : > { %1184 = vmatmul.mubr.bf16.gmra.mxu1 %v1385_v59  ;;  %1126 = vmatprep.mubr.bf16.mxu0 %v1392_v60 }
  0x60   : > { %1191 = vmatprep.mubr.bf16.mxu1 %v1394_v61 }
  0x66   : > { %1127 = vmatmul.mubr.bf16.gmra.mxu0 %v1391_v62 }
  0x67   : > { %1192 = vmatmul.mubr.bf16.gmra.mxu1 %v1393_v63 }
  0xee   : > { %v1517_v0 = vpop.f32.mrf.mxu0 }
  0xef   : > { %v1557_v1 = vpop.f32.mrf.mxu1 }
  0xf0   : > { %v1518_v2 = vpop.f32.mrf.mxu0 }
  0xf1   : > { %v1558_v3 = vpop.f32.mrf.mxu1  ;;  %v1519_v28 = vadd.f32 %v1518_v2, %v1517_v0 }
  0xf2   : > { %v1520_v4 = vpop.f32.mrf.mxu0  ;;  %v1559_v37 = vadd.f32 %v1558_v3, %v1557_v1 }
  0xf3   : > { %v1560_v5 = vpop.f32.mrf.mxu1  ;;  %v975_v34 = vadd.f32 %v1519_v28, %v2067_v30 }
  0xf4   : > { %v1521_v6 = vpop.f32.mrf.mxu0 }
  0xf5   : > { %v1561_v7 = vpop.f32.mrf.mxu1  ;;  %v1522_v35 = vadd.f32 %v1521_v6, %v1520_v4  ;;  %v1040_v40 = vadd.f32 %v1559_v37, %v975_v34 }
  0xf6   : > { %v1523_v8 = vpop.f32.mrf.mxu0  ;;  %v1562_v46 = vadd.f32 %v1561_v7, %v1560_v5 }
  0xf7   : > { %v1563_v9 = vpop.f32.mrf.mxu1  ;;  %v978_v41 = vadd.f32 %v1522_v35, %v2067_v30 }
  0xf8   : > { %v1524_v10 = vpop.f32.mrf.mxu0 }
  0xf9   : > { %v1564_v11 = vpop.f32.mrf.mxu1  ;;  %v1525_v42 = vadd.f32 %v1524_v10, %v1523_v8  ;;  %v1043_v51 = vadd.f32 %v1562_v46, %v978_v41 }
  0xfa   : > { %v1526_v12 = vpop.f32.mrf.mxu0  ;;  %v1565_v57 = vadd.f32 %v1564_v11, %v1563_v9 }
  0xfb   : > { %v1566_v13 = vpop.f32.mrf.mxu1  ;;  %v983_v52 = vadd.f32 %v1525_v42, %v2067_v30 }
  0xfc   : > { %v1527_v14 = vpop.f32.mrf.mxu0 }
  0xfd   : > { %v1567_v15 = vpop.f32.mrf.mxu1  ;;  %v1528_v49 = vadd.f32 %v1527_v14, %v1526_v12  ;;  %v1048_v0 = vadd.f32 %v1565_v57, %v983_v52 }
  0xfe   : > { %v1529_v16 = vpop.f32.mrf.mxu0  ;;  %v1568_v5 = vadd.f32 %v1567_v15, %v1566_v13 }
  0xff   : > { %v2046_v17 = vpop.f32.mrf.mxu1  ;;  %v986_v62 = vadd.f32 %v1528_v49, %v2067_v30 }
 0x100   : > { %v1530_v18 = vpop.f32.mrf.mxu0 }
 0x101   : > { %v2048_v19 = vpop.f32.mrf.mxu1  ;;  %v1531_v1 = vadd.f32 %v1530_v18, %v1529_v16  ;;  %v1051_v9 = vadd.f32 %v1568_v5, %v986_v62 }
 0x102   : > { %v1532_v20 = vpop.f32.mrf.mxu0  ;;  %v1571_v35 = vadd.f32 %v2048_v19, %v2046_v17 }
 0x103   : > { %v2050_v21 = vpop.f32.mrf.mxu1  ;;  %v991_v16 = vadd.f32 %v1531_v1, %v2067_v30 }
 0x104   : > { %v1533_v22 = vpop.f32.mrf.mxu0 }
 0x105   : > { %v2052_v23 = vpop.f32.mrf.mxu1  ;;  %v1534_v11 = vadd.f32 %v1533_v22, %v1532_v20  ;;  %v1056_v41 = vadd.f32 %v1571_v35, %v991_v16 }
 0x106   : > { %v2054_v24 = vpop.f32.mrf.mxu0 }
 0x107   : > { %v2056_v25 = vpop.f32.mrf.mxu1 }
 0x108   : > { %v2058_v26 = vpop.f32.mrf.mxu0 }
 0x109   : > { %v2060_v27 = vpop.f32.mrf.mxu1 }
 0x10a   : > { %v2062_v29 = vpop.f32.mrf.mxu0 }
 0x10b   : > { %v2069_v31 = vpop.f32.mrf.mxu1 }
 0x10c   : > { %v2071_v32 = vpop.f32.mrf.mxu0 }
 0x10d   : > { %v2073_v33 = vpop.f32.mrf.mxu1 }
 0x10e   : > { %v1597_v36 = vpop.f32.mrf.mxu0 }
 0x10f   : > { %v1637_v38 = vpop.f32.mrf.mxu1 }
 0x110   : > { %v1598_v39 = vpop.f32.mrf.mxu0 }
 0x111   : > { %v1599_v43 = vadd.f32 %v1598_v39, %v1597_v36  ;;  %v1638_v44 = vpop.f32.mrf.mxu1  ;;  %v1537_v39 = vadd.f32 %v2058_v26, %v2054_v24  ;;  %v1540_v24 = vadd.f32 %v2071_v32, %v2062_v29 }
 0x112   : > { %v1600_v45 = vpop.f32.mrf.mxu0  ;;  %v1639_v53 = vadd.f32 %v1638_v44, %v1637_v38  ;;  %v994_v38 = vadd.f32 %v1534_v11, %v2067_v30 }
 0x113   : > { %v1105_v47 = vadd.f32 %v1599_v43, %v1040_v40  ;;  %v1640_v48 = vpop.f32.mrf.mxu1 }
 0x114   : > { %v1601_v50 = vpop.f32.mrf.mxu0 }
 0x115   : > { %v1602_v54 = vadd.f32 %v1601_v50, %v1600_v45  ;;  %v1641_v55 = vpop.f32.mrf.mxu1  ;;  %v1170_v58 = vadd.f32 %v1639_v53, %v1105_v47  ;;  %v1574_v45 = vadd.f32 %v2052_v23, %v2050_v21  ;;  %v999_v50 = vadd.f32 %v1537_v39, %v2067_v30 }
 0x116   : > { %v1603_v56 = vpop.f32.mrf.mxu0  ;;  %v1642_v60 = vadd.f32 %v1641_v55, %v1640_v48  ;;  %v1577_v21 = vadd.f32 %v2060_v27, %v2056_v25 }
 0x117   : > { %v1108_v59 = vadd.f32 %v1602_v54, %v1043_v51  ;;  %v1643_v61 = vpop.f32.mrf.mxu1  ;;  %v1200_v7 = vmax.f32 %v1170_v58, 0.0  ;;  %v1059_v49 = vadd.f32 %v1574_v45, %v994_v38 }
 0x118   : > { %v1604_v63 = vpop.f32.mrf.mxu0 }
 0x119   : > { %v1173_v2 = vadd.f32 %v1642_v60, %v1108_v59  ;;  %v1605_v3 = vadd.f32 %v1604_v63, %v1603_v56  ;;  %v1644_v4 = vpop.f32.mrf.mxu1  ;;  %v1064_v60 = vadd.f32 %v1577_v21, %v999_v50 }
 0x11a   : > { %v1606_v6 = vpop.f32.mrf.mxu0  ;;  %v1645_v28 = vadd.f32 %v1644_v4, %v1643_v61  ;;  %v1002_v61 = vadd.f32 %v1540_v24, %v2067_v30 }
 0x11b   : > { %v1201_v8 = vmax.f32 %v1173_v2, 0.0  ;;  %v1113_v10 = vadd.f32 %v1605_v3, %v1048_v0  ;;  %v1646_v12 = vpop.f32.mrf.mxu1  ;;  %v1580_v0 = vadd.f32 %v2073_v33, %v2069_v31 }
 0x11c   : > { %v1607_v14 = vpop.f32.mrf.mxu0 }
 0x11d   : > { %v1481_v18 = vpack.c.bf16 %v1201_v8, %v1200_v7  ;;  %v1608_v34 = vadd.f32 %v1607_v14, %v1606_v6  ;;  %v1647_v13 = vpop.f32.mrf.mxu1  ;;  %v1178_v36 = vadd.f32 %v1645_v28, %v1113_v10  ;;  %v1067_v4 = vadd.f32 %v1580_v0, %v1002_v61 }
 0x11e   : > { %v1609_v15 = vpop.f32.mrf.mxu0  ;;  %v1648_v22 = vadd.f32 %v1647_v13, %v1646_v12 }
 0x11f   : > { %1482 = vst [vmem:[%s2083_s17] sm:$0xff] %v1481_v18   ;;  %v1116_v20 = vadd.f32 %v1608_v34, %v1051_v9  ;;  %v1649_v37 = vpop.f32.mrf.mxu1  ;;  %v1202_v19 = vmax.f32 %v1178_v36, 0.0 }
 0x120   : > { %v1610_v40 = vpop.f32.mrf.mxu0 }
 0x121   : > { %v1181_v42 = vadd.f32 %v1648_v22, %v1116_v20  ;;  %v1611_v43 = vadd.f32 %v1610_v40, %v1609_v15  ;;  %v1650_v44 = vpop.f32.mrf.mxu1 }
 0x122   : > { %v1612_v17 = vpop.f32.mrf.mxu0  ;;  %v1651_v52 = vadd.f32 %v1650_v44, %v1649_v37 }
 0x123   : > { %v1203_v46 = vmax.f32 %v1181_v42, 0.0  ;;  %v1121_v47 = vadd.f32 %v1611_v43, %v1056_v41  ;;  %v1652_v48 = vpop.f32.mrf.mxu1 }
 0x124   : > { %v1613_v51 = vpop.f32.mrf.mxu0 }
 0x125   : > { %v1486_v26 = vpack.c.bf16 %v1203_v46, %v1202_v19  ;;  %v1614_v53 = vadd.f32 %v1613_v51, %v1612_v17  ;;  %v1653_v54 = vpop.f32.mrf.mxu1  ;;  %v1186_v23 = vadd.f32 %v1651_v52, %v1121_v47 }
 0x126   : > { %v1615_v55 = vpop.f32.mrf.mxu0  ;;  %v1654_v57 = vadd.f32 %v1653_v54, %v1652_v48 }
 0x127   : > { %1498 = vst [vmem:[%s2083_s17 + $0x8] sm:$0xff] %v1486_v26   ;;  %v1124_v56 = vadd.f32 %v1614_v53, %v1059_v49  ;;  %v1655_v58 = vpop.f32.mrf.mxu1  ;;  %v1204_v1 = vmax.f32 %v1186_v23, 0.0 }
 0x128   : > { %v1616_v59 = vpop.f32.mrf.mxu0 }
 0x129   : > { %v1189_v62 = vadd.f32 %v1654_v57, %v1124_v56  ;;  %v1617_v29 = vadd.f32 %v1616_v59, %v1615_v55  ;;  %v1656_v32 = vpop.f32.mrf.mxu1 }
 0x12a   : > { %v1618_v63 = vpop.f32.mrf.mxu0  ;;  %v1657_v6 = vadd.f32 %v1656_v32, %v1655_v58 }
 0x12b   : > { %v1205_v2 = vmax.f32 %v1189_v62, 0.0  ;;  %v1129_v25 = vadd.f32 %v1617_v29, %v1064_v60  ;;  %v1658_v27 = vpop.f32.mrf.mxu1 }
 0x12c   : > { %v1619_v3 = vpop.f32.mrf.mxu0 }
 0x12d   : > { %v1491_v5 = vpack.c.bf16 %v1205_v2, %v1204_v1  ;;  %v1620_v7 = vadd.f32 %v1619_v3, %v1618_v63  ;;  %v1659_v8 = vpop.f32.mrf.mxu1  ;;  %v1194_v30 = vadd.f32 %v1657_v6, %v1129_v25 }
 0x12e   : > { %v1660_v12 = vadd.f32 %v1659_v8, %v1658_v27 }
 0x12f   : > { %1499 = vst [vmem:[%s2083_s17 + $0x10] sm:$0xff] %v1491_v5   ;;  %v1132_v10 = vadd.f32 %v1620_v7, %v1067_v4  ;;  %v1206_v11 = vmax.f32 %v1194_v30, 0.0 }
 0x131   : > { %v1197_v9 = vadd.f32 %v1660_v12, %v1132_v10 }
 0x133   : > { %v1207_v14 = vmax.f32 %v1197_v9, 0.0 }
 0x135   : > { %v1496_v16 = vpack.c.bf16 %v1207_v14, %v1206_v11 }
 0x137   : > { %1500 = vst [vmem:[%s2083_s17 + $0x18] sm:$0xff] %v1496_v16  }
 0x138 PF: > { %s13_s14 = sadd.s32 1, %s1771_s14   ;;  %s2118_s12 = smov %s1767_s13 }
 0x139   : > { %p10_p5 = scmp.ge.s32.totalorder %s13_s14, 4   ;;  %s2119_s13 = smov %s2121_s15 }
 0x13b   :  { %12 = sbr.rel (!%p10_p5) target bundleno = 2 (0x2), region = 68 }

// kernel: kappa_denoiser_forward.12
= control target key start
LH: loop header
LB: loop body
LE: loop exit
PB: predicated region body
PF: predicated region fallthrough
CT: control target
= control target key end

     0   :  { %s1414_s15 = smov 0   ;;  %s1416_s16 = smov 0   ;;  %s1716_s0 = inlined_call_operand.vmem [shape: bf16[8,128], index: 0, kind: input, shape index: {}]   ;;  %s1717_s1 = inlined_call_operand.vmem [shape: bf16[128,8192], index: 1, kind: input, shape index: {}]   ;;  %s1718_s2 = inlined_call_operand.vmem [shape: f32[1,8192], index: 2, kind: input, shape index: {}]   ;;  %s1719_s3 = inlined_call_operand.vmem [shape: bf16[8,8192], index: 3, kind: input, shape index: {}]   ;;  %s1720_s4 = inlined_call_operand.vmem [shape: bf16[8,8192], index: 4, kind: output, shape index: {}]  }
   0x1   :  { %s1418_s17 = smov 0   ;;  %s1420_s18 = smov 0  }
   0x2   :  { %s1422_s19 = smov 0  }
   0x3 LB: > { %s23_s20 = sadd.s32 1, %s1382_s18  ;;  %p66_p1 = scmp.ne.s32.totalorder %s1374_s16, %s1370_s15  ;;  %s1386_s19 = sphi %s1422_s19, %s14_s19   ;;  %s1382_s18 = sphi %s1420_s18, %s1724_s18   ;;  %s1378_s17 = sphi %s1418_s17, %s1723_s17   ;;  %s1374_s16 = sphi %s1416_s16, %s1722_s16   ;;  %s1370_s15 = sphi %s1414_s15, %s1721_s15  }
   0x4   : > { %p24_p0 = scmp.ge.s32.totalorder %s23_s20, 8  ;;  %p67_p2 = scmp.eq.s32.totalorder %s1386_s19, 0 }
   0x5   : > { %s59_s22 = sadd.s32 1, %s1374_s16  ;;  %p1221_p5 = scmp.ge.s32.totalorder %s1386_s19, 8 }
   0x6   : > { %s1726_s20 = smov (%p24_p0, %s23_s20), 0  ;;  %p68_p3 = por %p67_p2, %p66_p1 }
   0x7   : > { %s56_s21 = ssub.s32 %s1382_s18, %s1726_s20  ;;  %181 = sbr.rel (%p1221_p5) target bundleno = 48 (0x30), region = 20 }
   0x8   : > { %p57_p4 = scmp.eq.s32.totalorder %s56_s21, 0 }
   0xa   : > { %s1449_s23 = scalar_select %p57_p4, %s1374_s16, %s59_s22  }
   0xc   : > { %184 = sbr.rel (!%p68_p3) target bundleno = 48 (0x30), region = 24  ;;  %s186_s24 = sand.u32 (%p68_p3), 1, %s1374_s16  }
   0xd   : > { %s1302_s25 = sshll.u32 (%p68_p3), %s1382_s18, 5  ;;  %s1222_s26 = sshll.u32 (%p68_p3), %s186_s24, 9 }
   0xe   : > { %s1457_s29 = scalar_lea.vmem (%p68_p3), %s1717_s1, %s1302_s25  ;;  %s1462_s30 = scalar_lea.vmem (%p68_p3), [#allocation2], %s1222_s26 }
   0xf   : > { %v204_v0 = vld [vmem:[%s1457_s29] sm:$0xff] (%p68_p3)  ;;  %v206_v1 = vld [vmem:[%s1457_s29 + $0x8] sm:$0xff] (%p68_p3)  ;;  %v208_v2 = vld [vmem:[%s1457_s29 + $0x10] sm:$0xff] (%p68_p3) }
  0x10   : > { %205 = vst [vmem:[%s1462_s30] sm:$0xff] (%p68_p3), %v204_v0  ;;  %207 = vst [vmem:[%s1462_s30 + $0x8] sm:$0xff] (%p68_p3), %v206_v1  ;;  %v210_v3 = vld [vmem:[%s1457_s29 + $0x18] sm:$0xff] (%p68_p3)  ;;  %v212_v4 = vld [vmem:[%s1457_s29 + $0x100] sm:$0xff] (%p68_p3) }
  0x11   : > { %209 = vst [vmem:[%s1462_s30 + $0x10] sm:$0xff] %v208_v2  ;;  %v214_v5 = vld [vmem:[%s1457_s29 + $0x108] sm:$0xff]  ;;  %211 = vst [vmem:[%s1462_s30 + $0x18] sm:$0xff] %v210_v3  ;;  %v216_v6 = vld [vmem:[%s1457_s29 + $0x110] sm:$0xff] }
  0x12   : > { %213 = vst [vmem:[%s1462_s30 + $0x20] sm:$0xff] %v212_v4  ;;  %215 = vst [vmem:[%s1462_s30 + $0x28] sm:$0xff] %v214_v5  ;;  %v218_v7 = vld [vmem:[%s1457_s29 + $0x118] sm:$0xff]  ;;  %v220_v8 = vld [vmem:[%s1457_s29 + $0x200] sm:$0xff] }
  0x13   : > { %217 = vst [vmem:[%s1462_s30 + $0x30] sm:$0xff] %v216_v6  ;;  %219 = vst [vmem:[%s1462_s30 + $0x38] sm:$0xff] %v218_v7  ;;  %v222_v9 = vld [vmem:[%s1457_s29 + $0x208] sm:$0xff]  ;;  %v224_v10 = vld [vmem:[%s1457_s29 + $0x210] sm:$0xff] }
  0x14   : > { %221 = vst [vmem:[%s1462_s30 + $0x40] sm:$0xff] %v220_v8  ;;  %v226_v11 = vld [vmem:[%s1457_s29 + $0x218] sm:$0xff]  ;;  %223 = vst [vmem:[%s1462_s30 + $0x48] sm:$0xff] %v222_v9  ;;  %v228_v12 = vld [vmem:[%s1457_s29 + $0x300] sm:$0xff] }
  0x15   : > { %225 = vst [vmem:[%s1462_s30 + $0x50] sm:$0xff] %v224_v10  ;;  %227 = vst [vmem:[%s1462_s30 + $0x58] sm:$0xff] %v226_v11  ;;  %v230_v13 = vld [vmem:[%s1457_s29 + $0x308] sm:$0xff]  ;;  %v232_v14 = vld [vmem:[%s1457_s29 + $0x310] sm:$0xff] }
  0x16   : > { %229 = vst [vmem:[%s1462_s30 + $0x60] sm:$0xff] %v228_v12  ;;  %231 = vst [vmem:[%s1462_s30 + $0x68] sm:$0xff] %v230_v13  ;;  %v234_v15 = vld [vmem:[%s1457_s29 + $0x318] sm:$0xff]  ;;  %v236_v16 = vld [vmem:[%s1457_s29 + $0x400] sm:$0xff] }
  0x17   : > { %233 = vst [vmem:[%s1462_s30 + $0x70] sm:$0xff] %v232_v14  ;;  %v238_v17 = vld [vmem:[%s1457_s29 + $0x408] sm:$0xff]  ;;  %235 = vst [vmem:[%s1462_s30 + $0x78] sm:$0xff] %v234_v15  ;;  %v240_v18 = vld [vmem:[%s1457_s29 + $0x410] sm:$0xff] }
  0x18   : > { %237 = vst [vmem:[%s1462_s30 + $0x80] sm:$0xff] %v236_v16  ;;  %239 = vst [vmem:[%s1462_s30 + $0x88] sm:$0xff] %v238_v17  ;;  %v242_v19 = vld [vmem:[%s1457_s29 + $0x418] sm:$0xff]  ;;  %v244_v20 = vld [vmem:[%s1457_s29 + $0x500] sm:$0xff] }
  0x19   : > { %241 = vst [vmem:[%s1462_s30 + $0x90] sm:$0xff] %v240_v18  ;;  %243 = vst [vmem:[%s1462_s30 + $0x98] sm:$0xff] %v242_v19  ;;  %v246_v21 = vld [vmem:[%s1457_s29 + $0x508] sm:$0xff]  ;;  %v248_v22 = vld [vmem:[%s1457_s29 + $0x510] sm:$0xff] }
  0x1a   : > { %245 = vst [vmem:[%s1462_s30 + $0xa0] sm:$0xff] %v244_v20  ;;  %v250_v23 = vld [vmem:[%s1457_s29 + $0x518] sm:$0xff]  ;;  %247 = vst [vmem:[%s1462_s30 + $0xa8] sm:$0xff] %v246_v21  ;;  %v252_v24 = vld [vmem:[%s1457_s29 + $0x600] sm:$0xff] }
  0x1b   : > { %249 = vst [vmem:[%s1462_s30 + $0xb0] sm:$0xff] %v248_v22  ;;  %251 = vst [vmem:[%s1462_s30 + $0xb8] sm:$0xff] %v250_v23  ;;  %v254_v25 = vld [vmem:[%s1457_s29 + $0x608] sm:$0xff]  ;;  %v256_v26 = vld [vmem:[%s1457_s29 + $0x610] sm:$0xff] }
  0x1c   : > { %253 = vst [vmem:[%s1462_s30 + $0xc0] sm:$0xff] %v252_v24  ;;  %255 = vst [vmem:[%s1462_s30 + $0xc8] sm:$0xff] %v254_v25  ;;  %v258_v27 = vld [vmem:[%s1457_s29 + $0x618] sm:$0xff]  ;;  %v260_v28 = vld [vmem:[%s1457_s29 + $0x700] sm:$0xff] }
  0x1d   : > { %257 = vst [vmem:[%s1462_s30 + $0xd0] sm:$0xff] %v256_v26  ;;  %v262_v29 = vld [vmem:[%s1457_s29 + $0x708] sm:$0xff]  ;;  %259 = vst [vmem:[%s1462_s30 + $0xd8] sm:$0xff] %v258_v27  ;;  %v264_v30 = vld [vmem:[%s1457_s29 + $0x710] sm:$0xff] }
  0x1e   : > { %261 = vst [vmem:[%s1462_s30 + $0xe0] sm:$0xff] %v260_v28  ;;  %263 = vst [vmem:[%s1462_s30 + $0xe8] sm:$0xff] %v262_v29  ;;  %v266_v31 = vld [vmem:[%s1457_s29 + $0x718] sm:$0xff]  ;;  %v268_v32 = vld [vmem:[%s1457_s29 + $0x800] sm:$0xff] }
  0x1f   : > { %265 = vst [vmem:[%s1462_s30 + $0xf0] sm:$0xff] %v264_v30  ;;  %267 = vst [vmem:[%s1462_s30 + $0xf8] sm:$0xff] %v266_v31  ;;  %v270_v33 = vld [vmem:[%s1457_s29 + $0x808] sm:$0xff]  ;;  %v272_v34 = vld [vmem:[%s1457_s29 + $0x810] sm:$0xff] }
  0x20   : > { %269 = vst [vmem:[%s1462_s30 + $0x100] sm:$0xff] %v268_v32  ;;  %v274_v35 = vld [vmem:[%s1457_s29 + $0x818] sm:$0xff]  ;;  %271 = vst [vmem:[%s1462_s30 + $0x108] sm:$0xff] %v270_v33  ;;  %v276_v36 = vld [vmem:[%s1457_s29 + $0x900] sm:$0xff] }
  0x21   : > { %273 = vst [vmem:[%s1462_s30 + $0x110] sm:$0xff] %v272_v34  ;;  %275 = vst [vmem:[%s1462_s30 + $0x118] sm:$0xff] %v274_v35  ;;  %v278_v37 = vld [vmem:[%s1457_s29 + $0x908] sm:$0xff]  ;;  %v280_v38 = vld [vmem:[%s1457_s29 + $0x910] sm:$0xff] }
  0x22   : > { %277 = vst [vmem:[%s1462_s30 + $0x120] sm:$0xff] %v276_v36  ;;  %279 = vst [vmem:[%s1462_s30 + $0x128] sm:$0xff] %v278_v37  ;;  %v282_v39 = vld [vmem:[%s1457_s29 + $0x918] sm:$0xff]  ;;  %v284_v40 = vld [vmem:[%s1457_s29 + $0xa00] sm:$0xff] }
  0x23   : > { %281 = vst [vmem:[%s1462_s30 + $0x130] sm:$0xff] %v280_v38  ;;  %v286_v41 = vld [vmem:[%s1457_s29 + $0xa08] sm:$0xff]  ;;  %283 = vst [vmem:[%s1462_s30 + $0x138] sm:$0xff] %v282_v39  ;;  %v288_v42 = vld [vmem:[%s1457_s29 + $0xa10] sm:$0xff] }
  0x24   : > { %285 = vst [vmem:[%s1462_s30 + $0x140] sm:$0xff] %v284_v40  ;;  %287 = vst [vmem:[%s1462_s30 + $0x148] sm:$0xff] %v286_v41  ;;  %v290_v43 = vld [vmem:[%s1457_s29 + $0xa18] sm:$0xff]  ;;  %v292_v44 = vld [vmem:[%s1457_s29 + $0xb00] sm:$0xff] }
  0x25   : > { %289 = vst [vmem:[%s1462_s30 + $0x150] sm:$0xff] %v288_v42  ;;  %291 = vst [vmem:[%s1462_s30 + $0x158] sm:$0xff] %v290_v43  ;;  %v294_v45 = vld [vmem:[%s1457_s29 + $0xb08] sm:$0xff]  ;;  %v296_v46 = vld [vmem:[%s1457_s29 + $0xb10] sm:$0xff] }
  0x26   : > { %293 = vst [vmem:[%s1462_s30 + $0x160] sm:$0xff] %v292_v44  ;;  %v298_v47 = vld [vmem:[%s1457_s29 + $0xb18] sm:$0xff]  ;;  %295 = vst [vmem:[%s1462_s30 + $0x168] sm:$0xff] %v294_v45  ;;  %v300_v48 = vld [vmem:[%s1457_s29 + $0xc00] sm:$0xff] }
  0x27   : > { %297 = vst [vmem:[%s1462_s30 + $0x170] sm:$0xff] %v296_v46  ;;  %299 = vst [vmem:[%s1462_s30 + $0x178] sm:$0xff] %v298_v47  ;;  %v302_v49 = vld [vmem:[%s1457_s29 + $0xc08] sm:$0xff]  ;;  %v304_v50 = vld [vmem:[%s1457_s29 + $0xc10] sm:$0xff] }
  0x28   : > { %301 = vst [vmem:[%s1462_s30 + $0x180] sm:$0xff] %v300_v48  ;;  %303 = vst [vmem:[%s1462_s30 + $0x188] sm:$0xff] %v302_v49  ;;  %v306_v51 = vld [vmem:[%s1457_s29 + $0xc18] sm:$0xff]  ;;  %v308_v52 = vld [vmem:[%s1457_s29 + $0xd00] sm:$0xff] }
  0x29   : > { %305 = vst [vmem:[%s1462_s30 + $0x190] sm:$0xff] %v304_v50  ;;  %v310_v53 = vld [vmem:[%s1457_s29 + $0xd08] sm:$0xff]  ;;  %307 = vst [vmem:[%s1462_s30 + $0x198] sm:$0xff] %v306_v51  ;;  %v312_v54 = vld [vmem:[%s1457_s29 + $0xd10] sm:$0xff] }
  0x2a   : > { %309 = vst [vmem:[%s1462_s30 + $0x1a0] sm:$0xff] %v308_v52  ;;  %311 = vst [vmem:[%s1462_s30 + $0x1a8] sm:$0xff] %v310_v53  ;;  %v314_v55 = vld [vmem:[%s1457_s29 + $0xd18] sm:$0xff]  ;;  %v316_v56 = vld [vmem:[%s1457_s29 + $0xe00] sm:$0xff] }
  0x2b   : > { %313 = vst [vmem:[%s1462_s30 + $0x1b0] sm:$0xff] %v312_v54  ;;  %315 = vst [vmem:[%s1462_s30 + $0x1b8] sm:$0xff] %v314_v55  ;;  %v318_v57 = vld [vmem:[%s1457_s29 + $0xe08] sm:$0xff]  ;;  %v320_v58 = vld [vmem:[%s1457_s29 + $0xe10] sm:$0xff] }
  0x2c   : > { %317 = vst [vmem:[%s1462_s30 + $0x1c0] sm:$0xff] %v316_v56  ;;  %v322_v59 = vld [vmem:[%s1457_s29 + $0xe18] sm:$0xff]  ;;  %319 = vst [vmem:[%s1462_s30 + $0x1c8] sm:$0xff] %v318_v57  ;;  %v324_v60 = vld [vmem:[%s1457_s29 + $0xf00] sm:$0xff] }
  0x2d   : > { %321 = vst [vmem:[%s1462_s30 + $0x1d0] sm:$0xff] %v320_v58  ;;  %323 = vst [vmem:[%s1462_s30 + $0x1d8] sm:$0xff] %v322_v59  ;;  %v326_v61 = vld [vmem:[%s1457_s29 + $0xf08] sm:$0xff]  ;;  %v328_v62 = vld [vmem:[%s1457_s29 + $0xf10] sm:$0xff] }
  0x2e   : > { %325 = vst [vmem:[%s1462_s30 + $0x1e0] sm:$0xff] %v324_v60  ;;  %327 = vst [vmem:[%s1462_s30 + $0x1e8] sm:$0xff] %v326_v61  ;;  %v330_v63 = vld [vmem:[%s1457_s29 + $0xf18] sm:$0xff] }
  0x2f   : > { %329 = vst [vmem:[%s1462_s30 + $0x1f0] sm:$0xff] %v328_v62  ;;  %331 = vst [vmem:[%s1462_s30 + $0x1f8] sm:$0xff] %v330_v63 }
  0x30 PF: > { %p1225_p6 = scmp.ge.s32.totalorder %s1386_s19, 1  ;;  %p357_p7 = scmp.lt.s32.totalorder %s1386_s19, 9 }
  0x32   : > { %p358_p8 = pnand %p1225_p6, %p357_p7 }
  0x33   : > { %s364_s5 = sand.u32 (!%p358_p8), 1, %s1370_s15   ;;  %s1227_s10 = sshll.u32 (!%p358_p8), %s1378_s17, 3 }
  0x34   : > { %361 = sbr.rel (%p358_p8) target bundleno = 327 (0x147), region = 55  ;;  %s1226_s6 = sshll.u32 (!%p358_p8), %s364_s5, 9 }
  0x35   : > { %s1594_s7 = scalar_lea.vmem (!%p358_p8), [#allocation2], %s1226_s6  ;;  %p416_p9 = scmp.lt.s32.totalorder (!%p358_p8), %s1227_s10, 63 }
  0x39   : > { %v1388_v0 = vmov 0   ;;  %v498_v1 = vld [vmem:[%s1594_s7 + $0x1c0] sm:$0xff]  ;;  %v499_v3 = vld [vmem:[%s1594_s7 + $0x1c8] sm:$0xff]  ;;  %v500_v63 = vld [vmem:[%s1594_s7 + $0x1d0] sm:$0xff]  ;;  %s1728_s10 = smov (!%p416_p9, %s1227_s10), 63 }
  0x3a   : > { %900 = vmatprep.mubr.bf16.mxu0 %v1388_v0  ;;  %941 = vmatprep.mubr.bf16.mxu1 %v1388_v0  ;;  %v502_v2 = vld [vmem:[%s1594_s7 + $0x1e0] sm:$0xff]  ;;  %v503_v5 = vld [vmem:[%s1594_s7 + $0x1e8] sm:$0xff]  ;;  %s1229_s11 = sshll.u32 %s1728_s10, 2  ;;  %s418_s14 = scalar_lea.vmem %s1718_s2, %s1728_s10 }
  0x3b   : > { %v1289_v4 = vcombine.high %v498_v1, %v502_v2  ;;  %v1288_v6 = vcombine.low %v498_v1, %v502_v2  ;;  %v490_v7 = vld [vmem:[%s1594_s7 + $0x180] sm:$0xff]  ;;  %v1291_v9 = vcombine.high %v499_v3, %v503_v5  ;;  %v1290_v10 = vcombine.low %v499_v3, %v503_v5  ;;  %v491_v12 = vld [vmem:[%s1594_s7 + $0x188] sm:$0xff]  ;;  %v504_v1 = vld [vmem:[%s1594_s7 + $0x1f0] sm:$0xff]  ;;  %s1684_s22 = scalar_lea.vmem %s1719_s3, %s1229_s11  ;;  %s1693_s25 = scalar_lea.vmem %s1720_s4, %s1229_s11 }
  0x3c   : > { %v494_v8 = vld [vmem:[%s1594_s7 + $0x1a0] sm:$0xff]  ;;  %v495_v13 = vld [vmem:[%s1594_s7 + $0x1a8] sm:$0xff]  ;;  %v501_v2 = vld [vmem:[%s1594_s7 + $0x1d8] sm:$0xff] }
  0x3d   : > { %v1281_v11 = vcombine.high %v490_v7, %v494_v8  ;;  %v482_v14 = vld [vmem:[%s1594_s7 + $0x140] sm:$0xff]  ;;  %868 = vmatprep.subr.bf16.mxu0 %v1289_v4  ;;  %v1283_v15 = vcombine.high %v491_v12, %v495_v13  ;;  %v483_v17 = vld [vmem:[%s1594_s7 + $0x148] sm:$0xff]  ;;  %909 = vmatprep.subr.bf16.mxu1 %v1291_v9  ;;  %v1280_v19 = vcombine.low %v490_v7, %v494_v8  ;;  %v505_v3 = vld [vmem:[%s1594_s7 + $0x1f8] sm:$0xff] }
  0x3e   : > { %v486_v16 = vld [vmem:[%s1594_s7 + $0x160] sm:$0xff]  ;;  %v487_v18 = vld [vmem:[%s1594_s7 + $0x168] sm:$0xff]  ;;  %869 = vmatpush1.bf16.msra.mxu0 %v1288_v6  ;;  %910 = vmatpush1.bf16.msra.mxu1 %v1290_v10  ;;  %v1282_v20 = vcombine.low %v491_v12, %v495_v13  ;;  %v1293_v6 = vcombine.high %v500_v63, %v504_v1  ;;  %v1295_v7 = vcombine.high %v501_v2, %v505_v3  ;;  %v492_v8 = vld [vmem:[%s1594_s7 + $0x190] sm:$0xff] }
  0x3f   : > { %870 = vmatprep.subr.bf16.mxu0 %v1281_v11  ;;  %v1273_v21 = vcombine.high %v482_v14, %v486_v16  ;;  %911 = vmatprep.subr.bf16.mxu1 %v1283_v15  ;;  %v1275_v22 = vcombine.high %v483_v17, %v487_v18  ;;  %v474_v23 = vld [vmem:[%s1594_s7 + $0x100] sm:$0xff]  ;;  %v475_v25 = vld [vmem:[%s1594_s7 + $0x108] sm:$0xff]  ;;  %v1272_v27 = vcombine.low %v482_v14, %v486_v16  ;;  %v496_v9 = vld [vmem:[%s1594_s7 + $0x1b0] sm:$0xff] }
  0x40   : > { %v478_v24 = vld [vmem:[%s1594_s7 + $0x120] sm:$0xff]  ;;  %v479_v26 = vld [vmem:[%s1594_s7 + $0x128] sm:$0xff]  ;;  %v1274_v28 = vcombine.low %v483_v17, %v487_v18  ;;  %v493_v10 = vld [vmem:[%s1594_s7 + $0x198] sm:$0xff]  ;;  %v1292_v13 = vcombine.low %v500_v63, %v504_v1  ;;  %v1294_v14 = vcombine.low %v501_v2, %v505_v3  ;;  %v1285_v15 = vcombine.high %v492_v8, %v496_v9 }
  0x41   : > { %v1265_v29 = vcombine.high %v474_v23, %v478_v24  ;;  %v1267_v30 = vcombine.high %v475_v25, %v479_v26  ;;  %v466_v31 = vld [vmem:[%s1594_s7 + $0xc0] sm:$0xff]  ;;  %v467_v33 = vld [vmem:[%s1594_s7 + $0xc8] sm:$0xff]  ;;  %v1264_v35 = vcombine.low %v474_v23, %v478_v24  ;;  %v1266_v36 = vcombine.low %v475_v25, %v479_v26  ;;  %v497_v11 = vld [vmem:[%s1594_s7 + $0x1b8] sm:$0xff] }
  0x42   : > { %871 = vmatpush1.bf16.msra.mxu0 %v1280_v19  ;;  %912 = vmatpush1.bf16.msra.mxu1 %v1282_v20  ;;  %v470_v32 = vld [vmem:[%s1594_s7 + $0xe0] sm:$0xff]  ;;  %v471_v34 = vld [vmem:[%s1594_s7 + $0xe8] sm:$0xff]  ;;  %v1287_v16 = vcombine.high %v493_v10, %v497_v11  ;;  %v484_v17 = vld [vmem:[%s1594_s7 + $0x150] sm:$0xff]  ;;  %v508_v3 = vlaneseq }
  0x43   : > { %872 = vmatprep.subr.bf16.mxu0 %v1273_v21  ;;  %913 = vmatprep.subr.bf16.mxu1 %v1275_v22  ;;  %v1257_v37 = vcombine.high %v466_v31, %v470_v32  ;;  %v1259_v38 = vcombine.high %v467_v33, %v471_v34  ;;  %v458_v39 = vld [vmem:[%s1594_s7 + $0x80] sm:$0xff]  ;;  %v459_v41 = vld [vmem:[%s1594_s7 + $0x88] sm:$0xff]  ;;  %v1256_v43 = vcombine.low %v466_v31, %v470_v32  ;;  %v488_v18 = vld [vmem:[%s1594_s7 + $0x170] sm:$0xff] }
  0x44   : > { %v462_v40 = vld [vmem:[%s1594_s7 + $0xa0] sm:$0xff]  ;;  %v463_v42 = vld [vmem:[%s1594_s7 + $0xa8] sm:$0xff]  ;;  %v1258_v44 = vcombine.low %v467_v33, %v471_v34  ;;  %v485_v19 = vld [vmem:[%s1594_s7 + $0x158] sm:$0xff]  ;;  %v1284_v21 = vcombine.low %v492_v8, %v496_v9  ;;  %v1286_v22 = vcombine.low %v493_v10, %v497_v11  ;;  %v1277_v23 = vcombine.high %v484_v17, %v488_v18 }
  0x45   : > { %v1249_v45 = vcombine.high %v458_v39, %v462_v40  ;;  %v1251_v46 = vcombine.high %v459_v41, %v463_v42  ;;  %v450_v47 = vld [vmem:[%s1594_s7 + $0x40] sm:$0xff]  ;;  %v451_v49 = vld [vmem:[%s1594_s7 + $0x48] sm:$0xff]  ;;  %v1248_v51 = vcombine.low %v458_v39, %v462_v40  ;;  %v1250_v52 = vcombine.low %v459_v41, %v463_v42  ;;  %v489_v20 = vld [vmem:[%s1594_s7 + $0x178] sm:$0xff] }
  0x46   : > { %873 = vmatpush1.bf16.msra.mxu0 %v1272_v27  ;;  %914 = vmatpush1.bf16.msra.mxu1 %v1274_v28  ;;  %v454_v48 = vld [vmem:[%s1594_s7 + $0x60] sm:$0xff]  ;;  %v455_v50 = vld [vmem:[%s1594_s7 + $0x68] sm:$0xff]  ;;  %v1279_v24 = vcombine.high %v485_v19, %v489_v20  ;;  %v476_v25 = vld [vmem:[%s1594_s7 + $0x110] sm:$0xff] }
  0x47   : > { %874 = vmatprep.subr.bf16.mxu0 %v1265_v29  ;;  %915 = vmatprep.subr.bf16.mxu1 %v1267_v30  ;;  %v1241_v53 = vcombine.high %v450_v47, %v454_v48  ;;  %v1243_v54 = vcombine.high %v451_v49, %v455_v50  ;;  %v442_v55 = vld [vmem:[%s1594_s7] sm:$0xff]  ;;  %v443_v57 = vld [vmem:[%s1594_s7 + $0x8] sm:$0xff]  ;;  %v1240_v59 = vcombine.low %v450_v47, %v454_v48  ;;  %v480_v26 = vld [vmem:[%s1594_s7 + $0x130] sm:$0xff] }
  0x48   : > { %v446_v56 = vld [vmem:[%s1594_s7 + $0x20] sm:$0xff]  ;;  %v447_v58 = vld [vmem:[%s1594_s7 + $0x28] sm:$0xff]  ;;  %v1242_v60 = vcombine.low %v451_v49, %v455_v50  ;;  %v477_v27 = vld [vmem:[%s1594_s7 + $0x118] sm:$0xff]  ;;  %v1276_v29 = vcombine.low %v484_v17, %v488_v18  ;;  %v1278_v30 = vcombine.low %v485_v19, %v489_v20  ;;  %v1269_v31 = vcombine.high %v476_v25, %v480_v26 }
  0x49   : > { %v1233_v61 = vcombine.high %v442_v55, %v446_v56  ;;  %v1235_v62 = vcombine.high %v443_v57, %v447_v58  ;;  %v1232_v4 = vcombine.low %v442_v55, %v446_v56  ;;  %v1234_v5 = vcombine.low %v443_v57, %v447_v58  ;;  %v1639_v12 = vld [vmem:[%s1716_s0] sm:$0xf]  ;;  %v481_v28 = vld [vmem:[%s1594_s7 + $0x138] sm:$0xff]  ;;  %v468_v33 = vld [vmem:[%s1594_s7 + $0xd0] sm:$0xff] }
  0x4a   : > { %875 = vmatpush1.bf16.msra.mxu0 %v1264_v35  ;;  %916 = vmatpush1.bf16.msra.mxu1 %v1266_v36  ;;  %v1271_v32 = vcombine.high %v477_v27, %v481_v28  ;;  %v472_v34 = vld [vmem:[%s1594_s7 + $0xf0] sm:$0xff]  ;;  %v469_v35 = vld [vmem:[%s1594_s7 + $0xd8] sm:$0xff]  ;;  %v1032_v9 = vld [vmem:[%s1684_s22] sm:$0xff] }
  0x4b   : > { %876 = vmatprep.subr.bf16.mxu0 %v1257_v37  ;;  %917 = vmatprep.subr.bf16.mxu1 %v1259_v38  ;;  %v473_v36 = vld [vmem:[%s1594_s7 + $0xf8] sm:$0xff]  ;;  %v1268_v37 = vcombine.low %v476_v25, %v480_v26  ;;  %v1261_v38 = vcombine.high %v468_v33, %v472_v34  ;;  %v460_v40 = vld [vmem:[%s1594_s7 + $0x90] sm:$0xff] }
  0x4c   : > { %v1263_v39 = vcombine.high %v469_v35, %v473_v36  ;;  %v464_v41 = vld [vmem:[%s1594_s7 + $0xb0] sm:$0xff]  ;;  %v461_v42 = vld [vmem:[%s1594_s7 + $0x98] sm:$0xff] }
  0x4d   : > { %v452_v48 = vld [vmem:[%s1594_s7 + $0x50] sm:$0xff]  ;;  %v453_v50 = vld [vmem:[%s1594_s7 + $0x58] sm:$0xff] }
  0x4e   : > { %877 = vmatpush1.bf16.msra.mxu0 %v1256_v43  ;;  %918 = vmatpush1.bf16.msra.mxu1 %v1258_v44  ;;  %v465_v43 = vld [vmem:[%s1594_s7 + $0xb8] sm:$0xff]  ;;  %v1260_v44 = vcombine.low %v468_v33, %v472_v34  ;;  %v456_v49 = vld [vmem:[%s1594_s7 + $0x70] sm:$0xff] }
  0x4f   : > { %878 = vmatprep.subr.bf16.mxu0 %v1249_v45  ;;  %919 = vmatprep.subr.bf16.mxu1 %v1251_v46  ;;  %v1262_v45 = vcombine.low %v469_v35, %v473_v36  ;;  %v1253_v46 = vcombine.high %v460_v40, %v464_v41  ;;  %v1255_v47 = vcombine.high %v461_v42, %v465_v43  ;;  %v444_v56 = vld [vmem:[%s1594_s7 + $0x10] sm:$0xff]  ;;  %v445_v58 = vld [vmem:[%s1594_s7 + $0x18] sm:$0xff] }
  0x50   : > { %v448_v57 = vld [vmem:[%s1594_s7 + $0x30] sm:$0xff] }
  0x51   : > { %v1236_v1 = vcombine.low %v444_v56, %v448_v57 }
  0x52   : > { %879 = vmatpush1.bf16.msra.mxu0 %v1248_v51  ;;  %920 = vmatpush1.bf16.msra.mxu1 %v1250_v52  ;;  %v457_v51 = vld [vmem:[%s1594_s7 + $0x78] sm:$0xff]  ;;  %v1252_v52 = vcombine.low %v460_v40, %v464_v41 }
  0x53   : > { %880 = vmatprep.subr.bf16.mxu0 %v1241_v53  ;;  %921 = vmatprep.subr.bf16.mxu1 %v1243_v54  ;;  %v1254_v53 = vcombine.low %v461_v42, %v465_v43  ;;  %v1245_v54 = vcombine.high %v452_v48, %v456_v49  ;;  %v1247_v55 = vcombine.high %v453_v50, %v457_v51  ;;  %v1034_v42 = vld [vmem:[%s1684_s22 + $0x10] sm:$0xff] }
  0x56   : > { %881 = vmatpush1.bf16.msra.mxu0 %v1240_v59  ;;  %922 = vmatpush1.bf16.msra.mxu1 %v1242_v60  ;;  %v449_v59 = vld [vmem:[%s1594_s7 + $0x38] sm:$0xff]  ;;  %v1244_v60 = vcombine.low %v452_v48, %v456_v49  ;;  %v1040_v49 = vunpack.c.l.bf16 %v1034_v42 }
  0x57   : > { %882 = vmatprep.subr.bf16.mxu0 %v1233_v61  ;;  %923 = vmatprep.subr.bf16.mxu1 %v1235_v62  ;;  %v1246_v61 = vcombine.low %v453_v50, %v457_v51  ;;  %v1237_v62 = vcombine.high %v444_v56, %v448_v57  ;;  %v1239_v63 = vcombine.high %v445_v58, %v449_v59  ;;  %v1041_v51 = vunpack.c.h.bf16 %v1034_v42 }
  0x58   : > { %v1238_v2 = vcombine.low %v445_v58, %v449_v59 }
  0x5a   : > { %883 = vmatpush1.bf16.msra.mxu0 %v1232_v4  ;;  %924 = vmatpush1.bf16.msra.mxu1 %v1234_v5  ;;  %v509_v4 = vshrl.u32 %v508_v3, 7 }
  0x5b   : > { %950 = vmatprep.subr.bf16.mxu0 %v1293_v6  ;;  %991 = vmatprep.subr.bf16.mxu1 %v1295_v7  ;;  %v506_v6 = vld [vmem:[%s418_s14] sm:$0xff] }
  0x5c   : > { %v510_v5 = vsub.s32 0, %v509_v4  ;;  %v518_v7 = vsub.s32 2, %v509_v4  ;;  %v514_v8 = vsub.s32 1, %v509_v4  ;;  %v522_v10 = vsub.s32 3, %v509_v4 }
  0x5d   : > { %901 = vmatmul.mubr.bf16.vlgmr.msra.gmra.mxu0 %v1639_v12  ;;  %942 = vmatmul.mubr.bf16.vlgmr.msra.gmra.mxu1 %v1639_v12  ;;  %v538_v40 = vsub.s32 7, %v509_v4 }
  0x5e   : > { %951 = vmatpush1.bf16.msra.mxu0 %v1292_v13  ;;  %992 = vmatpush1.bf16.msra.mxu1 %v1294_v14  ;;  %v511_v11 = vrot.slane %v506_v6, %v510_v5  ;;  %v519_v13 = vrot.slane %v506_v6, %v518_v7  ;;  %v1036_v14 = vunpack.c.l.bf16 %v1032_v9  ;;  %v523_v18 = vrot.slane %v506_v6, %v522_v10 }
  0x5f   : > { %952 = vmatprep.subr.bf16.mxu0 %v1285_v15  ;;  %993 = vmatprep.subr.bf16.mxu1 %v1287_v16  ;;  %v515_v15 = vrot.slane %v506_v6, %v514_v8 }
  0x60   : > { %982 = vmatprep.mubr.bf16.mxu0 %v1388_v0  ;;  %1023 = vmatprep.mubr.bf16.mxu1 %v1388_v0  ;;  %v1270_v0 = vcombine.low %v477_v27, %v481_v28 }
  0x62   : > { %953 = vmatpush1.bf16.msra.mxu0 %v1284_v21  ;;  %994 = vmatpush1.bf16.msra.mxu1 %v1286_v22  ;;  %v1037_v21 = vunpack.c.h.bf16 %v1032_v9 }
  0x63   : > { %954 = vmatprep.subr.bf16.mxu0 %v1277_v23  ;;  %995 = vmatprep.subr.bf16.mxu1 %v1279_v24 }
  0x66   : > { %955 = vmatpush1.bf16.msra.mxu0 %v1276_v29  ;;  %996 = vmatpush1.bf16.msra.mxu1 %v1278_v30 }
  0x67   : > { %956 = vmatprep.subr.bf16.mxu0 %v1269_v31  ;;  %997 = vmatprep.subr.bf16.mxu1 %v1271_v32 }
  0x6a   : > { %957 = vmatpush1.bf16.msra.mxu0 %v1268_v37  ;;  %998 = vmatpush1.bf16.msra.mxu1 %v1270_v0  ;;  %v526_v0 = vsub.s32 4, %v509_v4 }
  0x6b   : > { %958 = vmatprep.subr.bf16.mxu0 %v1261_v38  ;;  %999 = vmatprep.subr.bf16.mxu1 %v1263_v39  ;;  %v534_v38 = vsub.s32 6, %v509_v4  ;;  %v530_v39 = vsub.s32 5, %v509_v4 }
  0x6c   : > { %v527_v41 = vrot.slane %v506_v6, %v526_v0 }
  0x6d   : > { %v535_v43 = vrot.slane %v506_v6, %v534_v38 }
  0x6e   : > { %959 = vmatpush1.bf16.msra.mxu0 %v1260_v44  ;;  %1000 = vmatpush1.bf16.msra.mxu1 %v1262_v45  ;;  %v1035_v44 = vld [vmem:[%s1684_s22 + $0x18] sm:$0xff]  ;;  %v531_v45 = vrot.slane %v506_v6, %v530_v39 }
  0x6f   : > { %960 = vmatprep.subr.bf16.mxu0 %v1253_v46  ;;  %1001 = vmatprep.subr.bf16.mxu1 %v1255_v47  ;;  %v539_v47 = vrot.slane %v506_v6, %v538_v40 }
  0x72   : > { %961 = vmatpush1.bf16.msra.mxu0 %v1252_v52  ;;  %1002 = vmatpush1.bf16.msra.mxu1 %v1254_v53  ;;  %v1042_v53 = vunpack.c.l.bf16 %v1035_v44 }
  0x73   : > { %962 = vmatprep.subr.bf16.mxu0 %v1245_v54  ;;  %1003 = vmatprep.subr.bf16.mxu1 %v1247_v55  ;;  %v1043_v55 = vunpack.c.h.bf16 %v1035_v44 }
  0x76   : > { %963 = vmatpush1.bf16.msra.mxu0 %v1244_v60  ;;  %1004 = vmatpush1.bf16.msra.mxu1 %v1246_v61 }
  0x77   : > { %964 = vmatprep.subr.bf16.mxu0 %v1237_v62  ;;  %1005 = vmatprep.subr.bf16.mxu1 %v1239_v63 }
  0x7a   : > { %965 = vmatpush1.bf16.msra.mxu0 %v1236_v1  ;;  %1006 = vmatpush1.bf16.msra.mxu1 %v1238_v2 }
  0x7d   : > { %983 = vmatmul.mubr.bf16.vlgmr.msra.gmra.mxu0 %v1639_v12  ;;  %1024 = vmatmul.mubr.bf16.vlgmr.msra.gmra.mxu1 %v1639_v12  ;;  %v1033_v12 = vld [vmem:[%s1684_s22 + $0x8] sm:$0xff] }
  0x7e   : > { %v1038_v17 = vunpack.c.l.bf16 %v1033_v12  ;;  %v1039_v24 = vunpack.c.h.bf16 %v1033_v12 }
 0x11d   : > { %v902_v16 = vpop.f32.mrf.mxu0  ;;  %v943_v20 = vpop.f32.mrf.mxu1 }
 0x11e   : > { %v903_v19 = vadd.f32 %v902_v16, %v511_v11  ;;  %v944_v22 = vadd.f32 %v943_v20, %v519_v13 }
 0x11f   : > { %v904_v23 = vpop.f32.mrf.mxu0  ;;  %v945_v27 = vpop.f32.mrf.mxu1 }
 0x120   : > { %v1044_v25 = vadd.f32 %v1036_v14, %v903_v19  ;;  %v905_v26 = vadd.f32 %v904_v23, %v515_v15  ;;  %v1046_v28 = vadd.f32 %v1038_v17, %v944_v22  ;;  %v946_v29 = vadd.f32 %v945_v27, %v523_v18 }
 0x121   : > { %v906_v30 = vpop.f32.mrf.mxu0  ;;  %v947_v32 = vpop.f32.mrf.mxu1 }
 0x122   : > { %v1045_v31 = vadd.f32 %v1037_v21, %v905_v26  ;;  %v1047_v33 = vadd.f32 %v1039_v24, %v946_v29 }
 0x123   : > { %v907_v34 = vpop.f32.mrf.mxu0  ;;  %v948_v36 = vpop.f32.mrf.mxu1 }
 0x124   : > { %v1303_v35 = vpack.c.bf16 %v1045_v31, %v1044_v25  ;;  %v1304_v37 = vpack.c.bf16 %v1047_v33, %v1046_v28 }
 0x126   : > { %1084 = vst [vmem:[%s1693_s25] sm:$0xff] %v1303_v35  ;;  %1085 = vst [vmem:[%s1693_s25 + $0x8] sm:$0xff] %v1304_v37 }
 0x13d   : > { %v984_v46 = vpop.f32.mrf.mxu0  ;;  %v1025_v50 = vpop.f32.mrf.mxu1 }
 0x13e   : > { %v985_v48 = vadd.f32 %v984_v46, %v527_v41  ;;  %v1026_v52 = vadd.f32 %v1025_v50, %v535_v43 }
 0x13f   : > { %v986_v54 = vpop.f32.mrf.mxu0  ;;  %v1027_v57 = vpop.f32.mrf.mxu1 }
 0x140   : > { %v987_v56 = vadd.f32 %v986_v54, %v531_v45  ;;  %v1028_v58 = vadd.f32 %v1027_v57, %v539_v47  ;;  %v1048_v60 = vadd.f32 %v1040_v49, %v985_v48  ;;  %v1050_v63 = vadd.f32 %v1042_v53, %v1026_v52 }
 0x141   : > { %v988_v59 = vpop.f32.mrf.mxu0  ;;  %v1029_v62 = vpop.f32.mrf.mxu1 }
 0x142   : > { %v1049_v61 = vadd.f32 %v1041_v51, %v987_v56  ;;  %v1051_v1 = vadd.f32 %v1043_v55, %v1028_v58 }
 0x143   : > { %v989_v2 = vpop.f32.mrf.mxu0  ;;  %v1030_v4 = vpop.f32.mrf.mxu1 }
 0x144   : > { %v1305_v3 = vpack.c.bf16 %v1049_v61, %v1048_v60  ;;  %v1306_v5 = vpack.c.bf16 %v1051_v1, %v1050_v63 }
 0x146   : > { %1086 = vst [vmem:[%s1693_s25 + $0x10] sm:$0xff] %v1305_v3  ;;  %1087 = vst [vmem:[%s1693_s25 + $0x18] sm:$0xff] %v1306_v5 }
 0x147 PF: > { %s14_s19 = sadd.s32 1, %s1386_s19   ;;  %s1721_s15 = smov %s1374_s16 }
 0x148   : > { %p11_p10 = scmp.ge.s32.totalorder %s14_s19, 10   ;;  %s1722_s16 = smov %s1449_s23 }
 0x149   : > { %s1723_s17 = smov %s1382_s18  ;;  %s1724_s18 = smov %s1726_s20 }
 0x14a   :  { %13 = sbr.rel (!%p11_p10) target bundleno = 3 (0x3), region = 103 }

// kernel: kappa_denoiser_forward.11
= control target key start
LH: loop header
LB: loop body
LE: loop exit
PB: predicated region body
PF: predicated region fallthrough
CT: control target
= control target key end

     0   :  { %s9202_s1 = inlined_call_operand.vmem [shape: bf16[8192,128], index: 1, kind: input, shape index: {}]   ;;  %s9203_s0 = inlined_call_operand.vmem [shape: bf16[8,8192], index: 0, kind: input, shape index: {}]   ;;  %s9204_s2 = inlined_call_operand.vmem [shape: f32[1,128], index: 2, kind: input, shape index: {}]   ;;  %s9205_s3 = inlined_call_operand.vmem [shape: bf16[8,128], index: 3, kind: output, shape index: {}]  }
   0x1   :  { %v6941_v0 = vld [vmem:[%s9202_s1 + $0x78] sm:$0xff]   ;;  %v6945_v4 = vld [vmem:[%s9202_s1 + $0x70] sm:$0xff]   ;;  %v6949_v8 = vld [vmem:[%s9202_s1 + $0x68] sm:$0xff]  }
   0x2   :  { %v6942_v1 = vld [vmem:[%s9202_s1 + $0xf8] sm:$0xff]   ;;  %6237 = vmatprep.subr.bf16.mxu0 %v6941_v0  ;;  %v6946_v5 = vld [vmem:[%s9202_s1 + $0xf0] sm:$0xff]   ;;  %v6950_v9 = vld [vmem:[%s9202_s1 + $0xe8] sm:$0xff]  }
   0x3   :  { %v6943_v2 = vld [vmem:[%s9202_s1 + $0x38] sm:$0xff]   ;;  %6259 = vmatprep.subr.bf16.mxu1 %v6942_v1  ;;  %v6947_v6 = vld [vmem:[%s9202_s1 + $0x30] sm:$0xff]   ;;  %v6951_v10 = vld [vmem:[%s9202_s1 + $0x28] sm:$0xff]  }
   0x4   :  { %v6944_v3 = vld [vmem:[%s9202_s1 + $0xb8] sm:$0xff]   ;;  %6238 = vmatpush3.bf16.msra.mxu0 %v6943_v2  ;;  %v6948_v7 = vld [vmem:[%s9202_s1 + $0xb0] sm:$0xff]   ;;  %v6952_v11 = vld [vmem:[%s9202_s1 + $0xa8] sm:$0xff]  }
   0x5   :  { %6260 = vmatpush3.bf16.msra.mxu1 %v6944_v3  ;;  %6239 = vmatprep.subr.bf16.mxu0 %v6945_v4  ;;  %v6953_v12 = vld [vmem:[%s9202_s1 + $0x60] sm:$0xff]   ;;  %v6957_v16 = vld [vmem:[%s9202_s1 + $0x58] sm:$0xff]   ;;  %v6961_v20 = vld [vmem:[%s9202_s1 + $0x50] sm:$0xff]  }
   0x6   :  { %6261 = vmatprep.subr.bf16.mxu1 %v6946_v5  ;;  %v6954_v13 = vld [vmem:[%s9202_s1 + $0xe0] sm:$0xff]   ;;  %v6958_v17 = vld [vmem:[%s9202_s1 + $0xd8] sm:$0xff]   ;;  %v6962_v21 = vld [vmem:[%s9202_s1 + $0xd0] sm:$0xff]  }
   0x7   :  { %v6955_v14 = vld [vmem:[%s9202_s1 + $0x20] sm:$0xff]   ;;  %v6959_v18 = vld [vmem:[%s9202_s1 + $0x18] sm:$0xff]   ;;  %v6963_v22 = vld [vmem:[%s9202_s1 + $0x10] sm:$0xff]  }
   0x8   :  { %6240 = vmatpush3.bf16.msra.mxu0 %v6947_v6  ;;  %v6956_v15 = vld [vmem:[%s9202_s1 + $0xa0] sm:$0xff]   ;;  %v6960_v19 = vld [vmem:[%s9202_s1 + $0x98] sm:$0xff]   ;;  %v6964_v23 = vld [vmem:[%s9202_s1 + $0x90] sm:$0xff]  }
   0x9   :  { %6262 = vmatpush3.bf16.msra.mxu1 %v6948_v7  ;;  %6241 = vmatprep.subr.bf16.mxu0 %v6949_v8  ;;  %v6965_v24 = vld [vmem:[%s9202_s1 + $0x48] sm:$0xff]   ;;  %v6969_v28 = vld [vmem:[%s9202_s1 + $0x40] sm:$0xff]   ;;  %v6977_v38 = vld [vmem:[%s9202_s1 + $0x178] sm:$0xff]  }
   0xa   :  { %6263 = vmatprep.subr.bf16.mxu1 %v6950_v9  ;;  %v6966_v25 = vld [vmem:[%s9202_s1 + $0xc8] sm:$0xff]   ;;  %v6970_v29 = vld [vmem:[%s9202_s1 + $0xc0] sm:$0xff]   ;;  %v6978_v39 = vld [vmem:[%s9202_s1 + $0x1f8] sm:$0xff]  }
   0xb   :  { %v6967_v26 = vld [vmem:[%s9202_s1 + $0x8] sm:$0xff]   ;;  %v6971_v30 = vld [vmem:[%s9202_s1] sm:$0xff]   ;;  %v6979_v40 = vld [vmem:[%s9202_s1 + $0x138] sm:$0xff]  }
   0xc   :  { %6242 = vmatpush3.bf16.msra.mxu0 %v6951_v10  ;;  %v6968_v27 = vld [vmem:[%s9202_s1 + $0x88] sm:$0xff]   ;;  %v6972_v31 = vld [vmem:[%s9202_s1 + $0x80] sm:$0xff]   ;;  %v6980_v41 = vld [vmem:[%s9202_s1 + $0x1b8] sm:$0xff]  }
   0xd   :  { %6264 = vmatpush3.bf16.msra.mxu1 %v6952_v11  ;;  %6243 = vmatprep.subr.bf16.mxu0 %v6953_v12  ;;  %v15_v32 = vld [vmem:[%s9203_s0] sm:$0xff]  ;;  %v16_v33 = vld [vmem:[%s9203_s0 + $0x8] sm:$0xff]  ;;  %v6981_v42 = vld [vmem:[%s9202_s1 + $0x170] sm:$0xff]  }
   0xe   :  { %6265 = vmatprep.subr.bf16.mxu1 %v6954_v13  ;;  %v5661_v34 = vcombine.low %v15_v32, %v15_v32  ;;  %v5662_v35 = vcombine.high %v15_v32, %v15_v32  ;;  %v5663_v36 = vcombine.low %v16_v33, %v16_v33  ;;  %v5664_v37 = vcombine.high %v16_v33, %v16_v33  ;;  %v6982_v43 = vld [vmem:[%s9202_s1 + $0x1f0] sm:$0xff]   ;;  %v6985_v46 = vld [vmem:[%s9202_s1 + $0x168] sm:$0xff]   ;;  %v6989_v50 = vld [vmem:[%s9202_s1 + $0x160] sm:$0xff]  }
   0xf   :  { %v6983_v44 = vld [vmem:[%s9202_s1 + $0x130] sm:$0xff]   ;;  %v6986_v47 = vld [vmem:[%s9202_s1 + $0x1e8] sm:$0xff]   ;;  %v6990_v51 = vld [vmem:[%s9202_s1 + $0x1e0] sm:$0xff]  }
  0x10   :  { %6244 = vmatpush3.bf16.msra.mxu0 %v6955_v14  ;;  %4406 = vmatprep.mubr.bf16.mxu0 %v5662_v35  ;;  %v6984_v45 = vld [vmem:[%s9202_s1 + $0x1b0] sm:$0xff]   ;;  %v6987_v48 = vld [vmem:[%s9202_s1 + $0x128] sm:$0xff]   ;;  %v6991_v52 = vld [vmem:[%s9202_s1 + $0x120] sm:$0xff]  }
  0x11   :  { %6266 = vmatpush3.bf16.msra.mxu1 %v6956_v15  ;;  %6245 = vmatprep.subr.bf16.mxu0 %v6957_v16  ;;  %v6988_v49 = vld [vmem:[%s9202_s1 + $0x1a8] sm:$0xff]   ;;  %v6992_v53 = vld [vmem:[%s9202_s1 + $0x1a0] sm:$0xff]   ;;  %v6993_v54 = vld [vmem:[%s9202_s1 + $0x158] sm:$0xff]  }
  0x12   :  { %6267 = vmatprep.subr.bf16.mxu1 %v6958_v17  ;;  %4446 = vmatprep.mubr.bf16.mxu1 %v5664_v37  ;;  %v6994_v55 = vld [vmem:[%s9202_s1 + $0x1d8] sm:$0xff]   ;;  %v6997_v58 = vld [vmem:[%s9202_s1 + $0x150] sm:$0xff]   ;;  %v7001_v62 = vld [vmem:[%s9202_s1 + $0x148] sm:$0xff]  }
  0x13   :  { %v6995_v56 = vld [vmem:[%s9202_s1 + $0x118] sm:$0xff]   ;;  %v6998_v59 = vld [vmem:[%s9202_s1 + $0x1d0] sm:$0xff]   ;;  %v7002_v63 = vld [vmem:[%s9202_s1 + $0x1c8] sm:$0xff]  }
  0x14   :  { %6246 = vmatpush3.bf16.msra.mxu0 %v6959_v18  ;;  %v6996_v57 = vld [vmem:[%s9202_s1 + $0x198] sm:$0xff]   ;;  %v6999_v60 = vld [vmem:[%s9202_s1 + $0x110] sm:$0xff]   ;;  %v7003_v0 = vld [vmem:[%s9202_s1 + $0x108] sm:$0xff]  }
  0x15   :  { %6268 = vmatpush3.bf16.msra.mxu1 %v6960_v19  ;;  %6247 = vmatprep.subr.bf16.mxu0 %v6961_v20  ;;  %v7000_v61 = vld [vmem:[%s9202_s1 + $0x190] sm:$0xff]   ;;  %v7004_v1 = vld [vmem:[%s9202_s1 + $0x188] sm:$0xff]   ;;  %v7005_v2 = vld [vmem:[%s9202_s1 + $0x140] sm:$0xff]  }
  0x16   :  { %6269 = vmatprep.subr.bf16.mxu1 %v6962_v21  ;;  %v7006_v3 = vld [vmem:[%s9202_s1 + $0x1c0] sm:$0xff]   ;;  %v17_v6 = vld [vmem:[%s9203_s0 + $0x10] sm:$0xff]  ;;  %v18_v9 = vld [vmem:[%s9203_s0 + $0x18] sm:$0xff] }
  0x17   :  { %v7007_v4 = vld [vmem:[%s9202_s1 + $0x100] sm:$0xff]   ;;  %v5665_v7 = vcombine.low %v17_v6, %v17_v6  ;;  %v5666_v8 = vcombine.high %v17_v6, %v17_v6  ;;  %v5667_v10 = vcombine.low %v18_v9, %v18_v9  ;;  %v5668_v11 = vcombine.high %v18_v9, %v18_v9  ;;  %v7013_v12 = vld [vmem:[%s9202_s1 + $0x278] sm:$0xff]   ;;  %v7017_v16 = vld [vmem:[%s9202_s1 + $0x270] sm:$0xff]  }
  0x18   :  { %6248 = vmatpush3.bf16.msra.mxu0 %v6963_v22  ;;  %v7008_v5 = vld [vmem:[%s9202_s1 + $0x180] sm:$0xff]   ;;  %v7014_v13 = vld [vmem:[%s9202_s1 + $0x2f8] sm:$0xff]   ;;  %v7018_v17 = vld [vmem:[%s9202_s1 + $0x2f0] sm:$0xff]  }
  0x19   :  { %6270 = vmatpush3.bf16.msra.mxu1 %v6964_v23  ;;  %6249 = vmatprep.subr.bf16.mxu0 %v6965_v24  ;;  %v7015_v14 = vld [vmem:[%s9202_s1 + $0x238] sm:$0xff]   ;;  %v7019_v18 = vld [vmem:[%s9202_s1 + $0x230] sm:$0xff]   ;;  %v7021_v20 = vld [vmem:[%s9202_s1 + $0x268] sm:$0xff]  }
  0x1a   :  { %6271 = vmatprep.subr.bf16.mxu1 %v6966_v25  ;;  %v7016_v15 = vld [vmem:[%s9202_s1 + $0x2b8] sm:$0xff]   ;;  %v7020_v19 = vld [vmem:[%s9202_s1 + $0x2b0] sm:$0xff]   ;;  %v7022_v21 = vld [vmem:[%s9202_s1 + $0x2e8] sm:$0xff]  }
  0x1b   :  { %v7023_v22 = vld [vmem:[%s9202_s1 + $0x228] sm:$0xff]   ;;  %v7025_v24 = vld [vmem:[%s9202_s1 + $0x260] sm:$0xff]   ;;  %v7033_v32 = vld [vmem:[%s9202_s1 + $0x250] sm:$0xff]  }
  0x1c   :  { %6250 = vmatpush3.bf16.msra.mxu0 %v6967_v26  ;;  %v7024_v23 = vld [vmem:[%s9202_s1 + $0x2a8] sm:$0xff]   ;;  %v7026_v25 = vld [vmem:[%s9202_s1 + $0x2e0] sm:$0xff]   ;;  %v7034_v33 = vld [vmem:[%s9202_s1 + $0x2d0] sm:$0xff]  }
  0x1d   :  { %6272 = vmatpush3.bf16.msra.mxu1 %v6968_v27  ;;  %6251 = vmatprep.subr.bf16.mxu0 %v6969_v28  ;;  %v7027_v26 = vld [vmem:[%s9202_s1 + $0x220] sm:$0xff]   ;;  %v7029_v28 = vld [vmem:[%s9202_s1 + $0x258] sm:$0xff]   ;;  %v7036_v35 = vld [vmem:[%s9202_s1 + $0x290] sm:$0xff]  }
  0x1e   :  { %6273 = vmatprep.subr.bf16.mxu1 %v6970_v29  ;;  %v7028_v27 = vld [vmem:[%s9202_s1 + $0x2a0] sm:$0xff]   ;;  %v7030_v29 = vld [vmem:[%s9202_s1 + $0x2d8] sm:$0xff]   ;;  %v7038_v37 = vld [vmem:[%s9202_s1 + $0x2c8] sm:$0xff]  }
  0x1f   :  { %v7069_v6 = vld [vmem:[%s9202_s1 + $0x350] sm:$0xff]  }
  0x20   :  { %6252 = vmatpush3.bf16.msra.mxu0 %v6971_v30  ;;  %v7031_v30 = vld [vmem:[%s9202_s1 + $0x218] sm:$0xff]   ;;  %v7072_v9 = vld [vmem:[%s9202_s1 + $0x390] sm:$0xff]  }
  0x21   :  { %6274 = vmatpush3.bf16.msra.mxu1 %v6972_v31  ;;  %6281 = vmatprep.subr.bf16.mxu0 %v6977_v38  ;;  %v7032_v31 = vld [vmem:[%s9202_s1 + $0x298] sm:$0xff]   ;;  %v7039_v38 = vld [vmem:[%s9202_s1 + $0x208] sm:$0xff]  }
  0x22   :  { %6303 = vmatprep.subr.bf16.mxu1 %v6978_v39  ;;  %v7040_v39 = vld [vmem:[%s9202_s1 + $0x288] sm:$0xff]  }
  0x23   :  { %4407 = vmatmul.mubr.bf16.vlgmr.msra.gmra.mxu0 %v5661_v34  ;;  %v7035_v34 = vld [vmem:[%s9202_s1 + $0x210] sm:$0xff]  }
  0x24   :  { %4447 = vmatmul.mubr.bf16.vlgmr.msra.gmra.mxu1 %v5663_v36  ;;  %6282 = vmatpush3.bf16.msra.mxu0 %v6979_v40  ;;  %v7037_v36 = vld [vmem:[%s9202_s1 + $0x248] sm:$0xff]   ;;  %v7041_v40 = vld [vmem:[%s9202_s1 + $0x240] sm:$0xff]  }
  0x25   :  { %6304 = vmatpush3.bf16.msra.mxu1 %v6980_v41  ;;  %6283 = vmatprep.subr.bf16.mxu0 %v6981_v42  ;;  %v7042_v41 = vld [vmem:[%s9202_s1 + $0x2c0] sm:$0xff]  }
  0x26   :  { %6305 = vmatprep.subr.bf16.mxu1 %v6982_v43  ;;  %4486 = vmatprep.mubr.bf16.mxu0 %v5666_v8  ;;  %v7043_v42 = vld [vmem:[%s9202_s1 + $0x200] sm:$0xff]   ;;  %v7071_v8 = vld [vmem:[%s9202_s1 + $0x310] sm:$0xff]  }
  0x27   :  { %4526 = vmatprep.mubr.bf16.mxu1 %v5668_v11  ;;  %v7044_v43 = vld [vmem:[%s9202_s1 + $0x280] sm:$0xff]   ;;  %v7074_v11 = vld [vmem:[%s9202_s1 + $0x3c8] sm:$0xff]  }
  0x28   :  { %6284 = vmatpush3.bf16.msra.mxu0 %v6983_v44  ;;  %v19_v44 = vld [vmem:[%s9203_s0 + $0x20] sm:$0xff] }
  0x29   :  { %6306 = vmatpush3.bf16.msra.mxu1 %v6984_v45  ;;  %6285 = vmatprep.subr.bf16.mxu0 %v6985_v46  ;;  %v20_v45 = vld [vmem:[%s9203_s0 + $0x28] sm:$0xff]  ;;  %v5669_v46 = vcombine.low %v19_v44, %v19_v44 }
  0x2a   :  { %6307 = vmatprep.subr.bf16.mxu1 %v6986_v47  ;;  %v5670_v47 = vcombine.high %v19_v44, %v19_v44  ;;  %v7105_v44 = vld [vmem:[%s9202_s1 + $0x450] sm:$0xff]  }
  0x2c   :  { %6286 = vmatpush3.bf16.msra.mxu0 %v6987_v48  ;;  %v5671_v48 = vcombine.low %v20_v45, %v20_v45 }
  0x2d   :  { %6308 = vmatpush3.bf16.msra.mxu1 %v6988_v49  ;;  %6287 = vmatprep.subr.bf16.mxu0 %v6989_v50  ;;  %v5672_v49 = vcombine.high %v20_v45, %v20_v45  ;;  %v7049_v50 = vld [vmem:[%s9202_s1 + $0x378] sm:$0xff]   ;;  %v7106_v45 = vld [vmem:[%s9202_s1 + $0x4d0] sm:$0xff]  }
  0x2e   :  { %6309 = vmatprep.subr.bf16.mxu1 %v6990_v51  ;;  %v7050_v51 = vld [vmem:[%s9202_s1 + $0x3f8] sm:$0xff]  }
  0x30   :  { %6288 = vmatpush3.bf16.msra.mxu0 %v6991_v52  ;;  %v7051_v52 = vld [vmem:[%s9202_s1 + $0x338] sm:$0xff]  }
  0x31   :  { %6310 = vmatpush3.bf16.msra.mxu1 %v6992_v53  ;;  %6289 = vmatprep.subr.bf16.mxu0 %v6993_v54  ;;  %v7052_v53 = vld [vmem:[%s9202_s1 + $0x3b8] sm:$0xff]   ;;  %v7053_v54 = vld [vmem:[%s9202_s1 + $0x370] sm:$0xff]  }
  0x32   :  { %6311 = vmatprep.subr.bf16.mxu1 %v6994_v55  ;;  %v7054_v55 = vld [vmem:[%s9202_s1 + $0x3f0] sm:$0xff]  }
  0x34   :  { %6290 = vmatpush3.bf16.msra.mxu0 %v6995_v56  ;;  %v7055_v56 = vld [vmem:[%s9202_s1 + $0x330] sm:$0xff]  }
  0x35   :  { %6312 = vmatpush3.bf16.msra.mxu1 %v6996_v57  ;;  %6291 = vmatprep.subr.bf16.mxu0 %v6997_v58  ;;  %v7056_v57 = vld [vmem:[%s9202_s1 + $0x3b0] sm:$0xff]   ;;  %v7057_v58 = vld [vmem:[%s9202_s1 + $0x368] sm:$0xff]  }
  0x36   :  { %6313 = vmatprep.subr.bf16.mxu1 %v6998_v59  ;;  %v7058_v59 = vld [vmem:[%s9202_s1 + $0x3e8] sm:$0xff]  }
  0x38   :  { %6292 = vmatpush3.bf16.msra.mxu0 %v6999_v60  ;;  %v7059_v60 = vld [vmem:[%s9202_s1 + $0x328] sm:$0xff]  }
  0x39   :  { %6314 = vmatpush3.bf16.msra.mxu1 %v7000_v61  ;;  %6293 = vmatprep.subr.bf16.mxu0 %v7001_v62  ;;  %v7060_v61 = vld [vmem:[%s9202_s1 + $0x3a8] sm:$0xff]   ;;  %v7061_v62 = vld [vmem:[%s9202_s1 + $0x360] sm:$0xff]  }
  0x3a   :  { %6315 = vmatprep.subr.bf16.mxu1 %v7002_v63  ;;  %v7062_v63 = vld [vmem:[%s9202_s1 + $0x3e0] sm:$0xff]  }
  0x3c   :  { %6294 = vmatpush3.bf16.msra.mxu0 %v7003_v0  ;;  %v7063_v0 = vld [vmem:[%s9202_s1 + $0x320] sm:$0xff]  }
  0x3d   :  { %6316 = vmatpush3.bf16.msra.mxu1 %v7004_v1  ;;  %6295 = vmatprep.subr.bf16.mxu0 %v7005_v2  ;;  %v7064_v1 = vld [vmem:[%s9202_s1 + $0x3a0] sm:$0xff]   ;;  %v7065_v2 = vld [vmem:[%s9202_s1 + $0x358] sm:$0xff]  }
  0x3e   :  { %6317 = vmatprep.subr.bf16.mxu1 %v7006_v3  ;;  %v7066_v3 = vld [vmem:[%s9202_s1 + $0x3d8] sm:$0xff]  }
  0x40   :  { %6296 = vmatpush3.bf16.msra.mxu0 %v7007_v4  ;;  %v7067_v4 = vld [vmem:[%s9202_s1 + $0x318] sm:$0xff]  }
  0x41   :  { %6318 = vmatpush3.bf16.msra.mxu1 %v7008_v5  ;;  %6325 = vmatprep.subr.bf16.mxu0 %v7013_v12  ;;  %v7068_v5 = vld [vmem:[%s9202_s1 + $0x398] sm:$0xff]   ;;  %v7075_v12 = vld [vmem:[%s9202_s1 + $0x308] sm:$0xff]  }
  0x42   :  { %6347 = vmatprep.subr.bf16.mxu1 %v7014_v13  ;;  %v7076_v13 = vld [vmem:[%s9202_s1 + $0x388] sm:$0xff]  }
  0x43   :  { %4487 = vmatmul.mubr.bf16.vlgmr.msra.gmra.mxu0 %v5665_v7  ;;  %v7070_v7 = vld [vmem:[%s9202_s1 + $0x3d0] sm:$0xff]  }
  0x44   :  { %4527 = vmatmul.mubr.bf16.vlgmr.msra.gmra.mxu1 %v5667_v10  ;;  %6326 = vmatpush3.bf16.msra.mxu0 %v7015_v14  ;;  %v7073_v10 = vld [vmem:[%s9202_s1 + $0x348] sm:$0xff]   ;;  %v7077_v14 = vld [vmem:[%s9202_s1 + $0x340] sm:$0xff]  }
  0x45   :  { %6348 = vmatpush3.bf16.msra.mxu1 %v7016_v15  ;;  %6327 = vmatprep.subr.bf16.mxu0 %v7017_v16  ;;  %v7078_v15 = vld [vmem:[%s9202_s1 + $0x3c0] sm:$0xff]  }
  0x46   :  { %6349 = vmatprep.subr.bf16.mxu1 %v7018_v17  ;;  %4566 = vmatprep.mubr.bf16.mxu0 %v5670_v47  ;;  %v7079_v16 = vld [vmem:[%s9202_s1 + $0x300] sm:$0xff]   ;;  %v7108_v47 = vld [vmem:[%s9202_s1 + $0x490] sm:$0xff]  }
  0x47   :  { %4606 = vmatprep.mubr.bf16.mxu1 %v5672_v49  ;;  %v7080_v17 = vld [vmem:[%s9202_s1 + $0x380] sm:$0xff]   ;;  %v7110_v49 = vld [vmem:[%s9202_s1 + $0x4c8] sm:$0xff]  }
  0x48   :  { %6328 = vmatpush3.bf16.msra.mxu0 %v7019_v18  ;;  %v21_v18 = vld [vmem:[%s9203_s0 + $0x30] sm:$0xff] }
  0x49   :  { %6350 = vmatpush3.bf16.msra.mxu1 %v7020_v19  ;;  %6329 = vmatprep.subr.bf16.mxu0 %v7021_v20  ;;  %v22_v19 = vld [vmem:[%s9203_s0 + $0x38] sm:$0xff]  ;;  %v5673_v20 = vcombine.low %v21_v18, %v21_v18 }
  0x4a   :  { %6351 = vmatprep.subr.bf16.mxu1 %v7022_v21  ;;  %v5674_v21 = vcombine.high %v21_v18, %v21_v18  ;;  %v7141_v18 = vld [vmem:[%s9202_s1 + $0x550] sm:$0xff]  }
  0x4c   :  { %6330 = vmatpush3.bf16.msra.mxu0 %v7023_v22  ;;  %v5675_v22 = vcombine.low %v22_v19, %v22_v19 }
  0x4d   :  { %6352 = vmatpush3.bf16.msra.mxu1 %v7024_v23  ;;  %6331 = vmatprep.subr.bf16.mxu0 %v7025_v24  ;;  %v7085_v23 = vld [vmem:[%s9202_s1 + $0x478] sm:$0xff]   ;;  %v5676_v24 = vcombine.high %v22_v19, %v22_v19  ;;  %v7142_v19 = vld [vmem:[%s9202_s1 + $0x5d0] sm:$0xff]  }
  0x4e   :  { %6353 = vmatprep.subr.bf16.mxu1 %v7026_v25  ;;  %v7086_v25 = vld [vmem:[%s9202_s1 + $0x4f8] sm:$0xff]  }
  0x50   :  { %6332 = vmatpush3.bf16.msra.mxu0 %v7027_v26  ;;  %v7087_v26 = vld [vmem:[%s9202_s1 + $0x438] sm:$0xff]  }
  0x51   :  { %6354 = vmatpush3.bf16.msra.mxu1 %v7028_v27  ;;  %6333 = vmatprep.subr.bf16.mxu0 %v7029_v28  ;;  %v7088_v27 = vld [vmem:[%s9202_s1 + $0x4b8] sm:$0xff]   ;;  %v7089_v28 = vld [vmem:[%s9202_s1 + $0x470] sm:$0xff]  }
  0x52   :  { %6355 = vmatprep.subr.bf16.mxu1 %v7030_v29  ;;  %v7090_v29 = vld [vmem:[%s9202_s1 + $0x4f0] sm:$0xff]  }
  0x54   :  { %6334 = vmatpush3.bf16.msra.mxu0 %v7031_v30  ;;  %v7091_v30 = vld [vmem:[%s9202_s1 + $0x430] sm:$0xff]  }
  0x55   :  { %6356 = vmatpush3.bf16.msra.mxu1 %v7032_v31  ;;  %6335 = vmatprep.subr.bf16.mxu0 %v7033_v32  ;;  %v7092_v31 = vld [vmem:[%s9202_s1 + $0x4b0] sm:$0xff]   ;;  %v7093_v32 = vld [vmem:[%s9202_s1 + $0x468] sm:$0xff]  }
  0x56   :  { %6357 = vmatprep.subr.bf16.mxu1 %v7034_v33  ;;  %v7094_v33 = vld [vmem:[%s9202_s1 + $0x4e8] sm:$0xff]  }
  0x58   :  { %6336 = vmatpush3.bf16.msra.mxu0 %v7035_v34  ;;  %v7095_v34 = vld [vmem:[%s9202_s1 + $0x428] sm:$0xff]  }
  0x59   :  { %6358 = vmatpush3.bf16.msra.mxu1 %v7036_v35  ;;  %6337 = vmatprep.subr.bf16.mxu0 %v7037_v36  ;;  %v7096_v35 = vld [vmem:[%s9202_s1 + $0x4a8] sm:$0xff]   ;;  %v7097_v36 = vld [vmem:[%s9202_s1 + $0x460] sm:$0xff]  }
  0x5a   :  { %6359 = vmatprep.subr.bf16.mxu1 %v7038_v37  ;;  %v7098_v37 = vld [vmem:[%s9202_s1 + $0x4e0] sm:$0xff]  }
  0x5c   :  { %6338 = vmatpush3.bf16.msra.mxu0 %v7039_v38  ;;  %v7099_v38 = vld [vmem:[%s9202_s1 + $0x420] sm:$0xff]  }
  0x5d   :  { %6360 = vmatpush3.bf16.msra.mxu1 %v7040_v39  ;;  %6339 = vmatprep.subr.bf16.mxu0 %v7041_v40  ;;  %v7100_v39 = vld [vmem:[%s9202_s1 + $0x4a0] sm:$0xff]   ;;  %v7101_v40 = vld [vmem:[%s9202_s1 + $0x458] sm:$0xff]  }
  0x5e   :  { %6361 = vmatprep.subr.bf16.mxu1 %v7042_v41  ;;  %v7102_v41 = vld [vmem:[%s9202_s1 + $0x4d8] sm:$0xff]  }
  0x60   :  { %6340 = vmatpush3.bf16.msra.mxu0 %v7043_v42  ;;  %v7103_v42 = vld [vmem:[%s9202_s1 + $0x418] sm:$0xff]  }
  0x61   :  { %6362 = vmatpush3.bf16.msra.mxu1 %v7044_v43  ;;  %6369 = vmatprep.subr.bf16.mxu0 %v7049_v50  ;;  %v7104_v43 = vld [vmem:[%s9202_s1 + $0x498] sm:$0xff]   ;;  %v7111_v50 = vld [vmem:[%s9202_s1 + $0x408] sm:$0xff]  }
  0x62   :  { %6391 = vmatprep.subr.bf16.mxu1 %v7050_v51  ;;  %v7112_v51 = vld [vmem:[%s9202_s1 + $0x488] sm:$0xff]  }
  0x63   :  { %4567 = vmatmul.mubr.bf16.vlgmr.msra.gmra.mxu0 %v5669_v46  ;;  %v7107_v46 = vld [vmem:[%s9202_s1 + $0x410] sm:$0xff]  }
  0x64   :  { %4607 = vmatmul.mubr.bf16.vlgmr.msra.gmra.mxu1 %v5671_v48  ;;  %6370 = vmatpush3.bf16.msra.mxu0 %v7051_v52  ;;  %v7109_v48 = vld [vmem:[%s9202_s1 + $0x448] sm:$0xff]   ;;  %v7113_v52 = vld [vmem:[%s9202_s1 + $0x440] sm:$0xff]  }
  0x65   :  { %6392 = vmatpush3.bf16.msra.mxu1 %v7052_v53  ;;  %6371 = vmatprep.subr.bf16.mxu0 %v7053_v54  ;;  %v7114_v53 = vld [vmem:[%s9202_s1 + $0x4c0] sm:$0xff]  }
  0x66   :  { %6393 = vmatprep.subr.bf16.mxu1 %v7054_v55  ;;  %4646 = vmatprep.mubr.bf16.mxu0 %v5674_v21  ;;  %v7115_v54 = vld [vmem:[%s9202_s1 + $0x400] sm:$0xff]   ;;  %v7144_v21 = vld [vmem:[%s9202_s1 + $0x590] sm:$0xff]  }
  0x67   :  { %4686 = vmatprep.mubr.bf16.mxu1 %v5676_v24  ;;  %v7116_v55 = vld [vmem:[%s9202_s1 + $0x480] sm:$0xff]   ;;  %v7147_v24 = vld [vmem:[%s9202_s1 + $0x508] sm:$0xff]  }
  0x68   :  { %6372 = vmatpush3.bf16.msra.mxu0 %v7055_v56  ;;  %v23_v56 = vld [vmem:[%s9203_s0 + $0x40] sm:$0xff] }
  0x69   :  { %6394 = vmatpush3.bf16.msra.mxu1 %v7056_v57  ;;  %6373 = vmatprep.subr.bf16.mxu0 %v7057_v58  ;;  %v5677_v57 = vcombine.low %v23_v56, %v23_v56  ;;  %v5678_v58 = vcombine.high %v23_v56, %v23_v56  ;;  %v7177_v56 = vld [vmem:[%s9202_s1 + $0x650] sm:$0xff]  }
  0x6a   :  { %6395 = vmatprep.subr.bf16.mxu1 %v7058_v59  ;;  %v24_v59 = vld [vmem:[%s9203_s0 + $0x48] sm:$0xff] }
  0x6c   :  { %6374 = vmatpush3.bf16.msra.mxu0 %v7059_v60  ;;  %v5679_v60 = vcombine.low %v24_v59, %v24_v59 }
  0x6d   :  { %6396 = vmatpush3.bf16.msra.mxu1 %v7060_v61  ;;  %6375 = vmatprep.subr.bf16.mxu0 %v7061_v62  ;;  %v5680_v61 = vcombine.high %v24_v59, %v24_v59  ;;  %v7121_v62 = vld [vmem:[%s9202_s1 + $0x578] sm:$0xff]   ;;  %v7180_v59 = vld [vmem:[%s9202_s1 + $0x690] sm:$0xff]  }
  0x6e   :  { %6397 = vmatprep.subr.bf16.mxu1 %v7062_v63  ;;  %v7122_v63 = vld [vmem:[%s9202_s1 + $0x5f8] sm:$0xff]  }
  0x70   :  { %6376 = vmatpush3.bf16.msra.mxu0 %v7063_v0  ;;  %v7123_v0 = vld [vmem:[%s9202_s1 + $0x538] sm:$0xff]  }
  0x71   :  { %6398 = vmatpush3.bf16.msra.mxu1 %v7064_v1  ;;  %6377 = vmatprep.subr.bf16.mxu0 %v7065_v2  ;;  %v7124_v1 = vld [vmem:[%s9202_s1 + $0x5b8] sm:$0xff]   ;;  %v7125_v2 = vld [vmem:[%s9202_s1 + $0x570] sm:$0xff]  }
  0x72   :  { %6399 = vmatprep.subr.bf16.mxu1 %v7066_v3  ;;  %v7126_v3 = vld [vmem:[%s9202_s1 + $0x5f0] sm:$0xff]  }
  0x74   :  { %6378 = vmatpush3.bf16.msra.mxu0 %v7067_v4  ;;  %v7127_v4 = vld [vmem:[%s9202_s1 + $0x530] sm:$0xff]  }
  0x75   :  { %6400 = vmatpush3.bf16.msra.mxu1 %v7068_v5  ;;  %6379 = vmatprep.subr.bf16.mxu0 %v7069_v6  ;;  %v7128_v5 = vld [vmem:[%s9202_s1 + $0x5b0] sm:$0xff]   ;;  %v7129_v6 = vld [vmem:[%s9202_s1 + $0x568] sm:$0xff]  }
  0x76   :  { %6401 = vmatprep.subr.bf16.mxu1 %v7070_v7  ;;  %v7130_v7 = vld [vmem:[%s9202_s1 + $0x5e8] sm:$0xff]  }
  0x78   :  { %6380 = vmatpush3.bf16.msra.mxu0 %v7071_v8  ;;  %v7131_v8 = vld [vmem:[%s9202_s1 + $0x528] sm:$0xff]  }
  0x79   :  { %6402 = vmatpush3.bf16.msra.mxu1 %v7072_v9  ;;  %6381 = vmatprep.subr.bf16.mxu0 %v7073_v10  ;;  %v7132_v9 = vld [vmem:[%s9202_s1 + $0x5a8] sm:$0xff]   ;;  %v7133_v10 = vld [vmem:[%s9202_s1 + $0x560] sm:$0xff]  }
  0x7a   :  { %6403 = vmatprep.subr.bf16.mxu1 %v7074_v11  ;;  %v7134_v11 = vld [vmem:[%s9202_s1 + $0x5e0] sm:$0xff]  }
  0x7c   :  { %6382 = vmatpush3.bf16.msra.mxu0 %v7075_v12  ;;  %v7135_v12 = vld [vmem:[%s9202_s1 + $0x520] sm:$0xff]  }
  0x7d   :  { %6404 = vmatpush3.bf16.msra.mxu1 %v7076_v13  ;;  %6383 = vmatprep.subr.bf16.mxu0 %v7077_v14  ;;  %v7136_v13 = vld [vmem:[%s9202_s1 + $0x5a0] sm:$0xff]   ;;  %v7137_v14 = vld [vmem:[%s9202_s1 + $0x558] sm:$0xff]  }
  0x7e   :  { %6405 = vmatprep.subr.bf16.mxu1 %v7078_v15  ;;  %v7138_v15 = vld [vmem:[%s9202_s1 + $0x5d8] sm:$0xff]  }
  0x80   :  { %6384 = vmatpush3.bf16.msra.mxu0 %v7079_v16  ;;  %v7139_v16 = vld [vmem:[%s9202_s1 + $0x518] sm:$0xff]  }
  0x81   :  { %6406 = vmatpush3.bf16.msra.mxu1 %v7080_v17  ;;  %6413 = vmatprep.subr.bf16.mxu0 %v7085_v23  ;;  %v7140_v17 = vld [vmem:[%s9202_s1 + $0x598] sm:$0xff]   ;;  %v7146_v23 = vld [vmem:[%s9202_s1 + $0x5c8] sm:$0xff]  }
  0x82   :  { %6435 = vmatprep.subr.bf16.mxu1 %v7086_v25  ;;  %v7148_v25 = vld [vmem:[%s9202_s1 + $0x588] sm:$0xff]  }
  0x83   :  { %4647 = vmatmul.mubr.bf16.vlgmr.msra.gmra.mxu0 %v5673_v20  ;;  %v7143_v20 = vld [vmem:[%s9202_s1 + $0x510] sm:$0xff]  }
  0x84   :  { %4687 = vmatmul.mubr.bf16.vlgmr.msra.gmra.mxu1 %v5675_v22  ;;  %6414 = vmatpush3.bf16.msra.mxu0 %v7087_v26  ;;  %v7145_v22 = vld [vmem:[%s9202_s1 + $0x548] sm:$0xff]   ;;  %v7149_v26 = vld [vmem:[%s9202_s1 + $0x540] sm:$0xff]  }
  0x85   :  { %6436 = vmatpush3.bf16.msra.mxu1 %v7088_v27  ;;  %6415 = vmatprep.subr.bf16.mxu0 %v7089_v28  ;;  %v7150_v27 = vld [vmem:[%s9202_s1 + $0x5c0] sm:$0xff]  }
  0x86   :  { %6437 = vmatprep.subr.bf16.mxu1 %v7090_v29  ;;  %4726 = vmatprep.mubr.bf16.mxu0 %v5678_v58  ;;  %v7151_v28 = vld [vmem:[%s9202_s1 + $0x500] sm:$0xff]   ;;  %v7179_v58 = vld [vmem:[%s9202_s1 + $0x610] sm:$0xff]  }
  0x87   :  { %4766 = vmatprep.mubr.bf16.mxu1 %v5680_v61  ;;  %v7152_v29 = vld [vmem:[%s9202_s1 + $0x580] sm:$0xff]   ;;  %v7182_v61 = vld [vmem:[%s9202_s1 + $0x6c8] sm:$0xff]  }
  0x88   :  { %6416 = vmatpush3.bf16.msra.mxu0 %v7091_v30  ;;  %v25_v30 = vld [vmem:[%s9203_s0 + $0x50] sm:$0xff] }
  0x89   :  { %6438 = vmatpush3.bf16.msra.mxu1 %v7092_v31  ;;  %6417 = vmatprep.subr.bf16.mxu0 %v7093_v32  ;;  %v26_v31 = vld [vmem:[%s9203_s0 + $0x58] sm:$0xff]  ;;  %v5681_v32 = vcombine.low %v25_v30, %v25_v30 }
  0x8a   :  { %6439 = vmatprep.subr.bf16.mxu1 %v7094_v33  ;;  %v5682_v33 = vcombine.high %v25_v30, %v25_v30  ;;  %v7200_v30 = vld [vmem:[%s9202_s1 + $0x7b0] sm:$0xff]  }
  0x8c   :  { %6418 = vmatpush3.bf16.msra.mxu0 %v7095_v34  ;;  %v5683_v34 = vcombine.low %v26_v31, %v26_v31 }
  0x8d   :  { %6440 = vmatpush3.bf16.msra.mxu1 %v7096_v35  ;;  %6419 = vmatprep.subr.bf16.mxu0 %v7097_v36  ;;  %v5684_v35 = vcombine.high %v26_v31, %v26_v31  ;;  %v7157_v36 = vld [vmem:[%s9202_s1 + $0x678] sm:$0xff]   ;;  %v7201_v31 = vld [vmem:[%s9202_s1 + $0x768] sm:$0xff]  }
  0x8e   :  { %6441 = vmatprep.subr.bf16.mxu1 %v7098_v37  ;;  %v7158_v37 = vld [vmem:[%s9202_s1 + $0x6f8] sm:$0xff]  }
  0x90   :  { %6420 = vmatpush3.bf16.msra.mxu0 %v7099_v38  ;;  %v7159_v38 = vld [vmem:[%s9202_s1 + $0x638] sm:$0xff]  }
  0x91   :  { %6442 = vmatpush3.bf16.msra.mxu1 %v7100_v39  ;;  %6421 = vmatprep.subr.bf16.mxu0 %v7101_v40  ;;  %v7160_v39 = vld [vmem:[%s9202_s1 + $0x6b8] sm:$0xff]   ;;  %v7161_v40 = vld [vmem:[%s9202_s1 + $0x670] sm:$0xff]  }
  0x92   :  { %6443 = vmatprep.subr.bf16.mxu1 %v7102_v41  ;;  %v7162_v41 = vld [vmem:[%s9202_s1 + $0x6f0] sm:$0xff]  }
  0x94   :  { %6422 = vmatpush3.bf16.msra.mxu0 %v7103_v42  ;;  %v7163_v42 = vld [vmem:[%s9202_s1 + $0x630] sm:$0xff]  }
  0x95   :  { %6444 = vmatpush3.bf16.msra.mxu1 %v7104_v43  ;;  %6423 = vmatprep.subr.bf16.mxu0 %v7105_v44  ;;  %v7164_v43 = vld [vmem:[%s9202_s1 + $0x6b0] sm:$0xff]   ;;  %v7165_v44 = vld [vmem:[%s9202_s1 + $0x668] sm:$0xff]  }
  0x96   :  { %6445 = vmatprep.subr.bf16.mxu1 %v7106_v45  ;;  %v7166_v45 = vld [vmem:[%s9202_s1 + $0x6e8] sm:$0xff]  }
  0x98   :  { %6424 = vmatpush3.bf16.msra.mxu0 %v7107_v46  ;;  %v7167_v46 = vld [vmem:[%s9202_s1 + $0x628] sm:$0xff]  }
  0x99   :  { %6446 = vmatpush3.bf16.msra.mxu1 %v7108_v47  ;;  %6425 = vmatprep.subr.bf16.mxu0 %v7109_v48  ;;  %v7168_v47 = vld [vmem:[%s9202_s1 + $0x6a8] sm:$0xff]   ;;  %v7169_v48 = vld [vmem:[%s9202_s1 + $0x660] sm:$0xff]  }
  0x9a   :  { %6447 = vmatprep.subr.bf16.mxu1 %v7110_v49  ;;  %v7170_v49 = vld [vmem:[%s9202_s1 + $0x6e0] sm:$0xff]  }
  0x9c   :  { %6426 = vmatpush3.bf16.msra.mxu0 %v7111_v50  ;;  %v7171_v50 = vld [vmem:[%s9202_s1 + $0x620] sm:$0xff]  }
  0x9d   :  { %6448 = vmatpush3.bf16.msra.mxu1 %v7112_v51  ;;  %6427 = vmatprep.subr.bf16.mxu0 %v7113_v52  ;;  %v7172_v51 = vld [vmem:[%s9202_s1 + $0x6a0] sm:$0xff]   ;;  %v7173_v52 = vld [vmem:[%s9202_s1 + $0x658] sm:$0xff]  }
  0x9e   :  { %6449 = vmatprep.subr.bf16.mxu1 %v7114_v53  ;;  %v7174_v53 = vld [vmem:[%s9202_s1 + $0x6d8] sm:$0xff]  }
  0xa0   :  { %6428 = vmatpush3.bf16.msra.mxu0 %v7115_v54  ;;  %v7175_v54 = vld [vmem:[%s9202_s1 + $0x618] sm:$0xff]  }
  0xa1   :  { %6450 = vmatpush3.bf16.msra.mxu1 %v7116_v55  ;;  %6457 = vmatprep.subr.bf16.mxu0 %v7121_v62  ;;  %v7176_v55 = vld [vmem:[%s9202_s1 + $0x698] sm:$0xff]   ;;  %v7183_v62 = vld [vmem:[%s9202_s1 + $0x608] sm:$0xff]  }
  0xa2   :  { %6479 = vmatprep.subr.bf16.mxu1 %v7122_v63  ;;  %v7184_v63 = vld [vmem:[%s9202_s1 + $0x688] sm:$0xff]  }
  0xa3   :  { %4727 = vmatmul.mubr.bf16.vlgmr.msra.gmra.mxu0 %v5677_v57  ;;  %v7178_v57 = vld [vmem:[%s9202_s1 + $0x6d0] sm:$0xff]  }
  0xa4   :  { %4767 = vmatmul.mubr.bf16.vlgmr.msra.gmra.mxu1 %v5679_v60  ;;  %6458 = vmatpush3.bf16.msra.mxu0 %v7123_v0  ;;  %v7181_v60 = vld [vmem:[%s9202_s1 + $0x648] sm:$0xff]   ;;  %v7185_v0 = vld [vmem:[%s9202_s1 + $0x640] sm:$0xff]  }
  0xa5   :  { %6480 = vmatpush3.bf16.msra.mxu1 %v7124_v1  ;;  %6459 = vmatprep.subr.bf16.mxu0 %v7125_v2  ;;  %v7186_v1 = vld [vmem:[%s9202_s1 + $0x6c0] sm:$0xff]  }
  0xa6   :  { %6481 = vmatprep.subr.bf16.mxu1 %v7126_v3  ;;  %4806 = vmatprep.mubr.bf16.mxu0 %v5682_v33  ;;  %v7187_v2 = vld [vmem:[%s9202_s1 + $0x600] sm:$0xff]   ;;  %v7203_v33 = vld [vmem:[%s9202_s1 + $0x728] sm:$0xff]  }
  0xa7   :  { %4846 = vmatprep.mubr.bf16.mxu1 %v5684_v35  ;;  %v7188_v3 = vld [vmem:[%s9202_s1 + $0x680] sm:$0xff]  }
  0xa8   :  { %6460 = vmatpush3.bf16.msra.mxu0 %v7127_v4  ;;  %v27_v4 = vld [vmem:[%s9203_s0 + $0x60] sm:$0xff] }
  0xa9   :  { %6482 = vmatpush3.bf16.msra.mxu1 %v7128_v5  ;;  %6461 = vmatprep.subr.bf16.mxu0 %v7129_v6  ;;  %v28_v5 = vld [vmem:[%s9203_s0 + $0x68] sm:$0xff]  ;;  %v7205_v35 = vld [vmem:[%s9202_s1 + $0x760] sm:$0xff]  }
  0xaa   :  { %6483 = vmatprep.subr.bf16.mxu1 %v7130_v7 }
  0xac   :  { %6462 = vmatpush3.bf16.msra.mxu0 %v7131_v8  ;;  %v5685_v8 = vcombine.low %v27_v4, %v27_v4 }
  0xad   :  { %6484 = vmatpush3.bf16.msra.mxu1 %v7132_v9  ;;  %6463 = vmatprep.subr.bf16.mxu0 %v7133_v10  ;;  %v5686_v9 = vcombine.high %v27_v4, %v27_v4  ;;  %v5687_v10 = vcombine.low %v28_v5, %v28_v5 }
  0xae   :  { %6485 = vmatprep.subr.bf16.mxu1 %v7134_v11  ;;  %v7193_v11 = vld [vmem:[%s9202_s1 + $0x778] sm:$0xff]  }
  0xb0   :  { %6464 = vmatpush3.bf16.msra.mxu0 %v7135_v12  ;;  %v5688_v12 = vcombine.high %v28_v5, %v28_v5 }
  0xb1   :  { %6486 = vmatpush3.bf16.msra.mxu1 %v7136_v13  ;;  %6465 = vmatprep.subr.bf16.mxu0 %v7137_v14  ;;  %v7194_v13 = vld [vmem:[%s9202_s1 + $0x7f8] sm:$0xff]  }
  0xb2   :  { %6487 = vmatprep.subr.bf16.mxu1 %v7138_v15 }
  0xb4   :  { %6466 = vmatpush3.bf16.msra.mxu0 %v7139_v16  ;;  %v7195_v16 = vld [vmem:[%s9202_s1 + $0x738] sm:$0xff]  }
  0xb5   :  { %6488 = vmatpush3.bf16.msra.mxu1 %v7140_v17  ;;  %6467 = vmatprep.subr.bf16.mxu0 %v7141_v18 }
  0xb6   :  { %6489 = vmatprep.subr.bf16.mxu1 %v7142_v19  ;;  %v7196_v19 = vld [vmem:[%s9202_s1 + $0x7b8] sm:$0xff]  }
  0xb8   :  { %6468 = vmatpush3.bf16.msra.mxu0 %v7143_v20  ;;  %v5660_v20 = vld [vmem:[%s9204_s2] ss:$0 sm:$0xff] }
  0xb9   :  { %6490 = vmatpush3.bf16.msra.mxu1 %v7144_v21  ;;  %6469 = vmatprep.subr.bf16.mxu0 %v7145_v22 }
  0xba   :  { %6491 = vmatprep.subr.bf16.mxu1 %v7146_v23 }
  0xbc   :  { %6470 = vmatpush3.bf16.msra.mxu0 %v7147_v24  ;;  %v7197_v24 = vld [vmem:[%s9202_s1 + $0x770] sm:$0xff]  }
  0xbd   :  { %6492 = vmatpush3.bf16.msra.mxu1 %v7148_v25  ;;  %6471 = vmatprep.subr.bf16.mxu0 %v7149_v26  ;;  %v7198_v25 = vld [vmem:[%s9202_s1 + $0x7f0] sm:$0xff]  }
  0xbe   :  { %6493 = vmatprep.subr.bf16.mxu1 %v7150_v27 }
  0xc0   :  { %6472 = vmatpush3.bf16.msra.mxu0 %v7151_v28 }
  0xc1   :  { %6494 = vmatpush3.bf16.msra.mxu1 %v7152_v29  ;;  %6501 = vmatprep.subr.bf16.mxu0 %v7157_v36  ;;  %v7199_v29 = vld [vmem:[%s9202_s1 + $0x730] sm:$0xff]   ;;  %v7206_v36 = vld [vmem:[%s9202_s1 + $0x7e0] sm:$0xff]  }
  0xc2   :  { %6523 = vmatprep.subr.bf16.mxu1 %v7158_v37  ;;  %v7207_v37 = vld [vmem:[%s9202_s1 + $0x720] sm:$0xff]  }
  0xc3   :  { %4807 = vmatmul.mubr.bf16.vlgmr.msra.gmra.mxu0 %v5681_v32  ;;  %v7202_v32 = vld [vmem:[%s9202_s1 + $0x7e8] sm:$0xff]  }
  0xc4   :  { %4847 = vmatmul.mubr.bf16.vlgmr.msra.gmra.mxu1 %v5683_v34  ;;  %6502 = vmatpush3.bf16.msra.mxu0 %v7159_v38  ;;  %v7204_v34 = vld [vmem:[%s9202_s1 + $0x7a8] sm:$0xff]   ;;  %v7208_v38 = vld [vmem:[%s9202_s1 + $0x7a0] sm:$0xff]  }
  0xc5   :  { %6524 = vmatpush3.bf16.msra.mxu1 %v7160_v39  ;;  %6503 = vmatprep.subr.bf16.mxu0 %v7161_v40  ;;  %v7209_v39 = vld [vmem:[%s9202_s1 + $0x758] sm:$0xff]  }
  0xc6   :  { %6525 = vmatprep.subr.bf16.mxu1 %v7162_v41  ;;  %4886 = vmatprep.mubr.bf16.mxu0 %v5686_v9  ;;  %v7210_v40 = vld [vmem:[%s9202_s1 + $0x7d8] sm:$0xff]  }
  0xc7   :  { %4926 = vmatprep.mubr.bf16.mxu1 %v5688_v12  ;;  %v7211_v41 = vld [vmem:[%s9202_s1 + $0x718] sm:$0xff]  }
  0xc8   :  { %6504 = vmatpush3.bf16.msra.mxu0 %v7163_v42  ;;  %v7212_v42 = vld [vmem:[%s9202_s1 + $0x798] sm:$0xff]  }
  0xc9   :  { %6526 = vmatpush3.bf16.msra.mxu1 %v7164_v43  ;;  %6505 = vmatprep.subr.bf16.mxu0 %v7165_v44  ;;  %v7213_v43 = vld [vmem:[%s9202_s1 + $0x750] sm:$0xff]  }
  0xca   :  { %6527 = vmatprep.subr.bf16.mxu1 %v7166_v45  ;;  %v7214_v44 = vld [vmem:[%s9202_s1 + $0x7d0] sm:$0xff]  }
  0xcb   :  { %v7215_v45 = vld [vmem:[%s9202_s1 + $0x710] sm:$0xff]  }
  0xcc   :  { %6506 = vmatpush3.bf16.msra.mxu0 %v7167_v46  ;;  %v7216_v46 = vld [vmem:[%s9202_s1 + $0x790] sm:$0xff]  }
  0xcd   :  { %6528 = vmatpush3.bf16.msra.mxu1 %v7168_v47  ;;  %6507 = vmatprep.subr.bf16.mxu0 %v7169_v48  ;;  %v7217_v47 = vld [vmem:[%s9202_s1 + $0x748] sm:$0xff]  }
  0xce   :  { %6529 = vmatprep.subr.bf16.mxu1 %v7170_v49  ;;  %v7218_v48 = vld [vmem:[%s9202_s1 + $0x7c8] sm:$0xff]  }
  0xcf   :  { %v7219_v49 = vld [vmem:[%s9202_s1 + $0x708] sm:$0xff]  }
  0xd0   :  { %6508 = vmatpush3.bf16.msra.mxu0 %v7171_v50  ;;  %v7220_v50 = vld [vmem:[%s9202_s1 + $0x788] sm:$0xff]  }
  0xd1   :  { %6530 = vmatpush3.bf16.msra.mxu1 %v7172_v51  ;;  %6509 = vmatprep.subr.bf16.mxu0 %v7173_v52  ;;  %v7221_v51 = vld [vmem:[%s9202_s1 + $0x740] sm:$0xff]  }
  0xd2   :  { %6531 = vmatprep.subr.bf16.mxu1 %v7174_v53  ;;  %v7222_v52 = vld [vmem:[%s9202_s1 + $0x7c0] sm:$0xff]  }
  0xd3   :  { %v7223_v53 = vld [vmem:[%s9202_s1 + $0x700] sm:$0xff]  }
  0xd4   :  { %6510 = vmatpush3.bf16.msra.mxu0 %v7175_v54  ;;  %v7224_v54 = vld [vmem:[%s9202_s1 + $0x780] sm:$0xff]  }
  0xd5   :  { %6532 = vmatpush3.bf16.msra.mxu1 %v7176_v55  ;;  %6511 = vmatprep.subr.bf16.mxu0 %v7177_v56  ;;  %v29_v55 = vld [vmem:[%s9203_s0 + $0x70] sm:$0xff]  ;;  %v30_v56 = vld [vmem:[%s9203_s0 + $0x78] sm:$0xff] }
  0xd6   :  { %6533 = vmatprep.subr.bf16.mxu1 %v7178_v57 }
  0xd8   :  { %6512 = vmatpush3.bf16.msra.mxu0 %v7179_v58 }
  0xd9   :  { %6534 = vmatpush3.bf16.msra.mxu1 %v7180_v59  ;;  %6513 = vmatprep.subr.bf16.mxu0 %v7181_v60  ;;  %v5689_v59 = vcombine.low %v29_v55, %v29_v55  ;;  %v5690_v60 = vcombine.high %v29_v55, %v29_v55 }
  0xda   :  { %6535 = vmatprep.subr.bf16.mxu1 %v7182_v61  ;;  %v5691_v61 = vcombine.low %v30_v56, %v30_v56 }
  0xdc   :  { %6514 = vmatpush3.bf16.msra.mxu0 %v7183_v62  ;;  %v7229_v62 = vld [vmem:[%s9202_s1 + $0x878] sm:$0xff]  }
  0xdd   :  { %6536 = vmatpush3.bf16.msra.mxu1 %v7184_v63  ;;  %6515 = vmatprep.subr.bf16.mxu0 %v7185_v0  ;;  %v5692_v63 = vcombine.high %v30_v56, %v30_v56  ;;  %v7230_v0 = vld [vmem:[%s9202_s1 + $0x8f8] sm:$0xff]  }
  0xde   :  { %6537 = vmatprep.subr.bf16.mxu1 %v7186_v1 }
  0xe0   :  { %6516 = vmatpush3.bf16.msra.mxu0 %v7187_v2 }
  0xe1   :  { %6538 = vmatpush3.bf16.msra.mxu1 %v7188_v3  ;;  %6545 = vmatprep.subr.bf16.mxu0 %v7193_v11  ;;  %v7231_v3 = vld [vmem:[%s9202_s1 + $0x838] sm:$0xff]   ;;  %v7234_v11 = vld [vmem:[%s9202_s1 + $0x8f0] sm:$0xff]  }
  0xe2   :  { %6567 = vmatprep.subr.bf16.mxu1 %v7194_v13 }
  0xe3   :  { %v6253_v6 = vpop.f32.mrf.mxu0  ;;  %4887 = vmatmul.mubr.bf16.vlgmr.msra.gmra.mxu0 %v5685_v8 }
  0xe4   :  { %v6275_v7 = vpop.f32.mrf.mxu1  ;;  %4927 = vmatmul.mubr.bf16.vlgmr.msra.gmra.mxu1 %v5687_v10  ;;  %6546 = vmatpush3.bf16.msra.mxu0 %v7195_v16  ;;  %v7233_v10 = vld [vmem:[%s9202_s1 + $0x870] sm:$0xff]  }
  0xe5   :  { %v6254_v14 = vpop.f32.mrf.mxu0  ;;  %6568 = vmatpush3.bf16.msra.mxu1 %v7196_v19  ;;  %6547 = vmatprep.subr.bf16.mxu0 %v7197_v24  ;;  %v7236_v16 = vld [vmem:[%s9202_s1 + $0x8b0] sm:$0xff]   ;;  %v7239_v19 = vld [vmem:[%s9202_s1 + $0x828] sm:$0xff]   ;;  %v7244_v24 = vld [vmem:[%s9202_s1 + $0x8a0] sm:$0xff]  }
  0xe6   :  { %v6276_v15 = vpop.f32.mrf.mxu1  ;;  %v6255_v17 = vadd.f32 %v6254_v14, %v6253_v6  ;;  %6569 = vmatprep.subr.bf16.mxu1 %v7198_v25  ;;  %4966 = vmatprep.mubr.bf16.mxu0 %v5690_v60  ;;  %v7232_v6 = vld [vmem:[%s9202_s1 + $0x8b8] sm:$0xff]   ;;  %v7269_v60 = vld [vmem:[%s9202_s1 + $0x970] sm:$0xff]  }
  0xe7   :  { %v6277_v18 = vadd.f32 %v6276_v15, %v6275_v7  ;;  %v6256_v21 = vpop.f32.mrf.mxu0  ;;  %5006 = vmatprep.mubr.bf16.mxu1 %v5692_v63  ;;  %v7235_v15 = vld [vmem:[%s9202_s1 + $0x830] sm:$0xff]   ;;  %v7245_v25 = vld [vmem:[%s9202_s1 + $0x858] sm:$0xff]  }
  0xe8   :  { %v6278_v22 = vpop.f32.mrf.mxu1  ;;  %v4409_v23 = vadd.f32 %v6255_v17, %v5660_v20  ;;  %6548 = vmatpush3.bf16.msra.mxu0 %v7199_v29  ;;  %v7237_v17 = vld [vmem:[%s9202_s1 + $0x868] sm:$0xff]   ;;  %v7241_v21 = vld [vmem:[%s9202_s1 + $0x860] sm:$0xff]   ;;  %v7249_v29 = vld [vmem:[%s9202_s1 + $0x850] sm:$0xff]  }
  0xe9   :  { %v6257_v26 = vpop.f32.mrf.mxu0  ;;  %6570 = vmatpush3.bf16.msra.mxu1 %v7200_v30  ;;  %6549 = vmatprep.subr.bf16.mxu0 %v7201_v31  ;;  %v7240_v20 = vld [vmem:[%s9202_s1 + $0x8a8] sm:$0xff]   ;;  %v7242_v22 = vld [vmem:[%s9202_s1 + $0x8e0] sm:$0xff]   ;;  %v7250_v30 = vld [vmem:[%s9202_s1 + $0x8d0] sm:$0xff]  }
  0xea   :  { %v6279_v27 = vpop.f32.mrf.mxu1  ;;  %v8272_v28 = vadd.f32 %v6277_v18, %v4409_v23  ;;  %6571 = vmatprep.subr.bf16.mxu1 %v7202_v32  ;;  %v7238_v18 = vld [vmem:[%s9202_s1 + $0x8e8] sm:$0xff]   ;;  %v7243_v23 = vld [vmem:[%s9202_s1 + $0x820] sm:$0xff]   ;;  %v7246_v26 = vld [vmem:[%s9202_s1 + $0x8d8] sm:$0xff]  }
  0xeb   :  { %v7247_v27 = vld [vmem:[%s9202_s1 + $0x818] sm:$0xff]   ;;  %v7251_v31 = vld [vmem:[%s9202_s1 + $0x810] sm:$0xff]  }
  0xec   :  { %6550 = vmatpush3.bf16.msra.mxu0 %v7203_v33  ;;  %v7252_v32 = vld [vmem:[%s9202_s1 + $0x890] sm:$0xff]   ;;  %v7253_v33 = vld [vmem:[%s9202_s1 + $0x848] sm:$0xff]  }
  0xed   :  { %6572 = vmatpush3.bf16.msra.mxu1 %v7204_v34  ;;  %6551 = vmatprep.subr.bf16.mxu0 %v7205_v35  ;;  %v7254_v34 = vld [vmem:[%s9202_s1 + $0x8c8] sm:$0xff]   ;;  %v7270_v63 = vld [vmem:[%s9202_s1 + $0x9f0] sm:$0xff]  }
  0xee   :  { %6573 = vmatprep.subr.bf16.mxu1 %v7206_v36  ;;  %v7255_v35 = vld [vmem:[%s9202_s1 + $0x808] sm:$0xff]  }
  0xef   :  { %v7256_v36 = vld [vmem:[%s9202_s1 + $0x888] sm:$0xff]  }
  0xf0   :  { %6552 = vmatpush3.bf16.msra.mxu0 %v7207_v37  ;;  %v7257_v37 = vld [vmem:[%s9202_s1 + $0x840] sm:$0xff]  }
  0xf1   :  { %6574 = vmatpush3.bf16.msra.mxu1 %v7208_v38  ;;  %6553 = vmatprep.subr.bf16.mxu0 %v7209_v39  ;;  %v7258_v38 = vld [vmem:[%s9202_s1 + $0x8c0] sm:$0xff]  }
  0xf2   :  { %6575 = vmatprep.subr.bf16.mxu1 %v7210_v40  ;;  %v7259_v39 = vld [vmem:[%s9202_s1 + $0x800] sm:$0xff]  }
  0xf3   :  { %v7260_v40 = vld [vmem:[%s9202_s1 + $0x880] sm:$0xff]  }
  0xf4   :  { %6554 = vmatpush3.bf16.msra.mxu0 %v7211_v41  ;;  %v31_v41 = vld [vmem:[%s9203_s0 + $0x80] sm:$0xff] }
  0xf5   :  { %6576 = vmatpush3.bf16.msra.mxu1 %v7212_v42  ;;  %6555 = vmatprep.subr.bf16.mxu0 %v7213_v43  ;;  %v5693_v43 = vcombine.low %v31_v41, %v31_v41 }
  0xf6   :  { %6577 = vmatprep.subr.bf16.mxu1 %v7214_v44  ;;  %v5694_v44 = vcombine.high %v31_v41, %v31_v41  ;;  %v7304_v41 = vld [vmem:[%s9202_s1 + $0xab8] sm:$0xff]  }
  0xf8   :  { %6556 = vmatpush3.bf16.msra.mxu0 %v7215_v45  ;;  %v32_v45 = vld [vmem:[%s9203_s0 + $0x88] sm:$0xff] }
  0xf9   :  { %6578 = vmatpush3.bf16.msra.mxu1 %v7216_v46  ;;  %6557 = vmatprep.subr.bf16.mxu0 %v7217_v47  ;;  %v5695_v47 = vcombine.low %v32_v45, %v32_v45 }
  0xfa   :  { %6579 = vmatprep.subr.bf16.mxu1 %v7218_v48  ;;  %v5696_v48 = vcombine.high %v32_v45, %v32_v45 }
  0xfc   :  { %6558 = vmatpush3.bf16.msra.mxu0 %v7219_v49  ;;  %v7265_v49 = vld [vmem:[%s9202_s1 + $0x978] sm:$0xff]  }
  0xfd   :  { %6580 = vmatpush3.bf16.msra.mxu1 %v7220_v50  ;;  %6559 = vmatprep.subr.bf16.mxu0 %v7221_v51  ;;  %v7266_v51 = vld [vmem:[%s9202_s1 + $0x9f8] sm:$0xff]  }
  0xfe   :  { %6581 = vmatprep.subr.bf16.mxu1 %v7222_v52 }
 0x100   :  { %6560 = vmatpush3.bf16.msra.mxu0 %v7223_v53 }
 0x101   :  { %6582 = vmatpush3.bf16.msra.mxu1 %v7224_v54  ;;  %6589 = vmatprep.subr.bf16.mxu0 %v7229_v62  ;;  %v7267_v54 = vld [vmem:[%s9202_s1 + $0x938] sm:$0xff]  }
 0x102   :  { %6611 = vmatprep.subr.bf16.mxu1 %v7230_v0 }
 0x103   :  { %v6297_v57 = vpop.f32.mrf.mxu0  ;;  %4967 = vmatmul.mubr.bf16.vlgmr.msra.gmra.mxu0 %v5689_v59 }
 0x104   :  { %v6319_v58 = vpop.f32.mrf.mxu1  ;;  %5007 = vmatmul.mubr.bf16.vlgmr.msra.gmra.mxu1 %v5691_v61  ;;  %6590 = vmatpush3.bf16.msra.mxu0 %v7231_v3  ;;  %v7273_v3 = vld [vmem:[%s9202_s1 + $0x968] sm:$0xff]  }
 0x105   :  { %v6298_v1 = vpop.f32.mrf.mxu0  ;;  %6612 = vmatpush3.bf16.msra.mxu1 %v7232_v6  ;;  %6591 = vmatprep.subr.bf16.mxu0 %v7233_v10  ;;  %v7276_v6 = vld [vmem:[%s9202_s1 + $0x9a8] sm:$0xff]   ;;  %v7280_v10 = vld [vmem:[%s9202_s1 + $0x9a0] sm:$0xff]  }
 0x106   :  { %v6320_v2 = vpop.f32.mrf.mxu1  ;;  %v6299_v4 = vadd.f32 %v6298_v1, %v6297_v57  ;;  %6613 = vmatprep.subr.bf16.mxu1 %v7234_v11  ;;  %5046 = vmatprep.mubr.bf16.mxu0 %v5694_v44  ;;  %v7268_v57 = vld [vmem:[%s9202_s1 + $0x9b8] sm:$0xff]   ;;  %v7271_v1 = vld [vmem:[%s9202_s1 + $0x930] sm:$0xff]  }
 0x107   :  { %v6321_v5 = vadd.f32 %v6320_v2, %v6319_v58  ;;  %v6300_v7 = vpop.f32.mrf.mxu0  ;;  %5086 = vmatprep.mubr.bf16.mxu1 %v5696_v48  ;;  %v7272_v2 = vld [vmem:[%s9202_s1 + $0x9b0] sm:$0xff]   ;;  %v7281_v11 = vld [vmem:[%s9202_s1 + $0x958] sm:$0xff]  }
 0x108   :  { %v6322_v8 = vpop.f32.mrf.mxu1  ;;  %v4489_v9 = vadd.f32 %v6299_v4, %v8272_v28  ;;  %6592 = vmatpush3.bf16.msra.mxu0 %v7235_v15  ;;  %v7248_v28 = vld [vmem:[%s9202_s1 + $0x898] sm:$0xff]   ;;  %v7274_v4 = vld [vmem:[%s9202_s1 + $0x9e8] sm:$0xff]   ;;  %v7277_v7 = vld [vmem:[%s9202_s1 + $0x960] sm:$0xff]  }
 0x109   :  { %v6301_v12 = vpop.f32.mrf.mxu0  ;;  %6614 = vmatpush3.bf16.msra.mxu1 %v7236_v16  ;;  %6593 = vmatprep.subr.bf16.mxu0 %v7237_v17  ;;  %v7278_v8 = vld [vmem:[%s9202_s1 + $0x9e0] sm:$0xff]   ;;  %v7285_v15 = vld [vmem:[%s9202_s1 + $0x950] sm:$0xff]  }
 0x10a   :  { %v6323_v13 = vpop.f32.mrf.mxu1  ;;  %v8377_v14 = vadd.f32 %v6321_v5, %v4489_v9  ;;  %6615 = vmatprep.subr.bf16.mxu1 %v7238_v18  ;;  %v7275_v5 = vld [vmem:[%s9202_s1 + $0x928] sm:$0xff]   ;;  %v7279_v9 = vld [vmem:[%s9202_s1 + $0x920] sm:$0xff]   ;;  %v7282_v12 = vld [vmem:[%s9202_s1 + $0x9d8] sm:$0xff]  }
 0x10b   :  { %v7283_v13 = vld [vmem:[%s9202_s1 + $0x918] sm:$0xff]   ;;  %v7286_v16 = vld [vmem:[%s9202_s1 + $0x9d0] sm:$0xff]  }
 0x10c   :  { %6594 = vmatpush3.bf16.msra.mxu0 %v7239_v19  ;;  %v7287_v17 = vld [vmem:[%s9202_s1 + $0x910] sm:$0xff]   ;;  %v7289_v19 = vld [vmem:[%s9202_s1 + $0x948] sm:$0xff]  }
 0x10d   :  { %6616 = vmatpush3.bf16.msra.mxu1 %v7240_v20  ;;  %6595 = vmatprep.subr.bf16.mxu0 %v7241_v21  ;;  %v7288_v18 = vld [vmem:[%s9202_s1 + $0x990] sm:$0xff]   ;;  %v7290_v20 = vld [vmem:[%s9202_s1 + $0x9c8] sm:$0xff]  }
 0x10e   :  { %6617 = vmatprep.subr.bf16.mxu1 %v7242_v22  ;;  %v7291_v21 = vld [vmem:[%s9202_s1 + $0x908] sm:$0xff]  }
 0x10f   :  { %v7292_v22 = vld [vmem:[%s9202_s1 + $0x988] sm:$0xff]  }
 0x110   :  { %6596 = vmatpush3.bf16.msra.mxu0 %v7243_v23  ;;  %v7293_v23 = vld [vmem:[%s9202_s1 + $0x940] sm:$0xff]  }
 0x111   :  { %6618 = vmatpush3.bf16.msra.mxu1 %v7244_v24  ;;  %6597 = vmatprep.subr.bf16.mxu0 %v7245_v25  ;;  %v7294_v24 = vld [vmem:[%s9202_s1 + $0x9c0] sm:$0xff]  }
 0x112   :  { %6619 = vmatprep.subr.bf16.mxu1 %v7246_v26  ;;  %v7295_v25 = vld [vmem:[%s9202_s1 + $0x900] sm:$0xff]  }
 0x113   :  { %v7296_v26 = vld [vmem:[%s9202_s1 + $0x980] sm:$0xff]  }
 0x114   :  { %6598 = vmatpush3.bf16.msra.mxu0 %v7247_v27  ;;  %v33_v27 = vld [vmem:[%s9203_s0 + $0x90] sm:$0xff] }
 0x115   :  { %6620 = vmatpush3.bf16.msra.mxu1 %v7248_v28  ;;  %6599 = vmatprep.subr.bf16.mxu0 %v7249_v29  ;;  %v34_v28 = vld [vmem:[%s9203_s0 + $0x98] sm:$0xff] }
 0x116   :  { %6621 = vmatprep.subr.bf16.mxu1 %v7250_v30  ;;  %v5697_v30 = vcombine.low %v33_v27, %v33_v27 }
 0x118   :  { %6600 = vmatpush3.bf16.msra.mxu0 %v7251_v31  ;;  %v5698_v31 = vcombine.high %v33_v27, %v33_v27 }
 0x119   :  { %6622 = vmatpush3.bf16.msra.mxu1 %v7252_v32  ;;  %6601 = vmatprep.subr.bf16.mxu0 %v7253_v33  ;;  %v5699_v32 = vcombine.low %v34_v28, %v34_v28  ;;  %v5700_v33 = vcombine.high %v34_v28, %v34_v28  ;;  %v7340_v28 = vld [vmem:[%s9202_s1 + $0xbb8] sm:$0xff]  }
 0x11a   :  { %6623 = vmatprep.subr.bf16.mxu1 %v7254_v34 }
 0x11c   :  { %6602 = vmatpush3.bf16.msra.mxu0 %v7255_v35  ;;  %v7301_v35 = vld [vmem:[%s9202_s1 + $0xa78] sm:$0xff]  }
 0x11d   :  { %6624 = vmatpush3.bf16.msra.mxu1 %v7256_v36  ;;  %6603 = vmatprep.subr.bf16.mxu0 %v7257_v37  ;;  %v7302_v36 = vld [vmem:[%s9202_s1 + $0xaf8] sm:$0xff]  }
 0x11e   :  { %6625 = vmatprep.subr.bf16.mxu1 %v7258_v38  ;;  %v7303_v38 = vld [vmem:[%s9202_s1 + $0xa38] sm:$0xff]  }
 0x120   :  { %6604 = vmatpush3.bf16.msra.mxu0 %v7259_v39 }
 0x121   :  { %6626 = vmatpush3.bf16.msra.mxu1 %v7260_v40  ;;  %6633 = vmatprep.subr.bf16.mxu0 %v7265_v49 }
 0x122   :  { %6655 = vmatprep.subr.bf16.mxu1 %v7266_v51 }
 0x123   :  { %v6341_v42 = vpop.f32.mrf.mxu0  ;;  %5047 = vmatmul.mubr.bf16.vlgmr.msra.gmra.mxu0 %v5693_v43 }
 0x124   :  { %v6363_v46 = vpop.f32.mrf.mxu1  ;;  %5087 = vmatmul.mubr.bf16.vlgmr.msra.gmra.mxu1 %v5695_v47  ;;  %6634 = vmatpush3.bf16.msra.mxu0 %v7267_v54  ;;  %v7306_v47 = vld [vmem:[%s9202_s1 + $0xaf0] sm:$0xff]   ;;  %v7310_v54 = vld [vmem:[%s9202_s1 + $0xae8] sm:$0xff]  }
 0x125   :  { %v6342_v50 = vpop.f32.mrf.mxu0  ;;  %6656 = vmatpush3.bf16.msra.mxu1 %v7268_v57  ;;  %6635 = vmatprep.subr.bf16.mxu0 %v7269_v60  ;;  %v7313_v57 = vld [vmem:[%s9202_s1 + $0xa60] sm:$0xff]  }
 0x126   :  { %v6343_v52 = vadd.f32 %v6342_v50, %v6341_v42  ;;  %v6364_v53 = vpop.f32.mrf.mxu1  ;;  %6657 = vmatprep.subr.bf16.mxu1 %v7270_v63  ;;  %5126 = vmatprep.mubr.bf16.mxu0 %v5698_v31  ;;  %v7307_v50 = vld [vmem:[%s9202_s1 + $0xa30] sm:$0xff]   ;;  %v7316_v60 = vld [vmem:[%s9202_s1 + $0xaa0] sm:$0xff]   ;;  %v7319_v63 = vld [vmem:[%s9202_s1 + $0xa18] sm:$0xff]  }
 0x127   :  { %v6365_v55 = vadd.f32 %v6364_v53, %v6363_v46  ;;  %v6344_v56 = vpop.f32.mrf.mxu0  ;;  %5166 = vmatprep.mubr.bf16.mxu1 %v5700_v33  ;;  %v7305_v46 = vld [vmem:[%s9202_s1 + $0xa70] sm:$0xff]   ;;  %v7309_v53 = vld [vmem:[%s9202_s1 + $0xa68] sm:$0xff]  }
 0x128   :  { %v4569_v58 = vadd.f32 %v6343_v52, %v8377_v14  ;;  %v6366_v59 = vpop.f32.mrf.mxu1  ;;  %6636 = vmatpush3.bf16.msra.mxu0 %v7271_v1  ;;  %v7284_v14 = vld [vmem:[%s9202_s1 + $0x998] sm:$0xff]   ;;  %v7308_v52 = vld [vmem:[%s9202_s1 + $0xab0] sm:$0xff]   ;;  %v7312_v56 = vld [vmem:[%s9202_s1 + $0xaa8] sm:$0xff]  }
 0x129   :  { %v6345_v61 = vpop.f32.mrf.mxu0  ;;  %6658 = vmatpush3.bf16.msra.mxu1 %v7272_v2  ;;  %6637 = vmatprep.subr.bf16.mxu0 %v7273_v3  ;;  %v7315_v59 = vld [vmem:[%s9202_s1 + $0xa20] sm:$0xff]   ;;  %v7321_v1 = vld [vmem:[%s9202_s1 + $0xa50] sm:$0xff]  }
 0x12a   :  { %v8479_v62 = vadd.f32 %v6365_v55, %v4569_v58  ;;  %v6367_v0 = vpop.f32.mrf.mxu1  ;;  %6659 = vmatprep.subr.bf16.mxu1 %v7274_v4  ;;  %v7311_v55 = vld [vmem:[%s9202_s1 + $0xa28] sm:$0xff]   ;;  %v7314_v58 = vld [vmem:[%s9202_s1 + $0xae0] sm:$0xff]   ;;  %v7317_v61 = vld [vmem:[%s9202_s1 + $0xa58] sm:$0xff]  }
 0x12b   :  { %v7320_v0 = vld [vmem:[%s9202_s1 + $0xa98] sm:$0xff]   ;;  %v7322_v2 = vld [vmem:[%s9202_s1 + $0xad0] sm:$0xff]  }
 0x12c   :  { %6638 = vmatpush3.bf16.msra.mxu0 %v7275_v5  ;;  %v7323_v3 = vld [vmem:[%s9202_s1 + $0xa10] sm:$0xff]   ;;  %v7325_v5 = vld [vmem:[%s9202_s1 + $0xa48] sm:$0xff]  }
 0x12d   :  { %6660 = vmatpush3.bf16.msra.mxu1 %v7276_v6  ;;  %6639 = vmatprep.subr.bf16.mxu0 %v7277_v7  ;;  %v7324_v4 = vld [vmem:[%s9202_s1 + $0xa90] sm:$0xff]   ;;  %v7326_v6 = vld [vmem:[%s9202_s1 + $0xac8] sm:$0xff]  }
 0x12e   :  { %6661 = vmatprep.subr.bf16.mxu1 %v7278_v8  ;;  %v7327_v7 = vld [vmem:[%s9202_s1 + $0xa08] sm:$0xff]   ;;  %v7342_v33 = vld [vmem:[%s9202_s1 + $0xbf0] sm:$0xff]  }
 0x12f   :  { %v7328_v8 = vld [vmem:[%s9202_s1 + $0xa88] sm:$0xff]  }
 0x130   :  { %6640 = vmatpush3.bf16.msra.mxu0 %v7279_v9  ;;  %v7329_v9 = vld [vmem:[%s9202_s1 + $0xa40] sm:$0xff]  }
 0x131   :  { %6662 = vmatpush3.bf16.msra.mxu1 %v7280_v10  ;;  %6641 = vmatprep.subr.bf16.mxu0 %v7281_v11  ;;  %v7330_v10 = vld [vmem:[%s9202_s1 + $0xac0] sm:$0xff]  }
 0x132   :  { %6663 = vmatprep.subr.bf16.mxu1 %v7282_v12  ;;  %v7331_v11 = vld [vmem:[%s9202_s1 + $0xa00] sm:$0xff]  }
 0x133   :  { %v7332_v12 = vld [vmem:[%s9202_s1 + $0xa80] sm:$0xff]  }
 0x134   :  { %6642 = vmatpush3.bf16.msra.mxu0 %v7283_v13  ;;  %v35_v13 = vld [vmem:[%s9203_s0 + $0xa0] sm:$0xff] }
 0x135   :  { %6664 = vmatpush3.bf16.msra.mxu1 %v7284_v14  ;;  %6643 = vmatprep.subr.bf16.mxu0 %v7285_v15  ;;  %v36_v14 = vld [vmem:[%s9203_s0 + $0xa8] sm:$0xff] }
 0x136   :  { %6665 = vmatprep.subr.bf16.mxu1 %v7286_v16 }
 0x138   :  { %6644 = vmatpush3.bf16.msra.mxu0 %v7287_v17  ;;  %v5701_v17 = vcombine.low %v35_v13, %v35_v13 }
 0x139   :  { %6666 = vmatpush3.bf16.msra.mxu1 %v7288_v18  ;;  %6645 = vmatprep.subr.bf16.mxu0 %v7289_v19  ;;  %v5702_v18 = vcombine.high %v35_v13, %v35_v13  ;;  %v5703_v19 = vcombine.low %v36_v14, %v36_v14 }
 0x13a   :  { %6667 = vmatprep.subr.bf16.mxu1 %v7290_v20  ;;  %v7337_v20 = vld [vmem:[%s9202_s1 + $0xb78] sm:$0xff]  }
 0x13c   :  { %6646 = vmatpush3.bf16.msra.mxu0 %v7291_v21  ;;  %v5704_v21 = vcombine.high %v36_v14, %v36_v14 }
 0x13d   :  { %6668 = vmatpush3.bf16.msra.mxu1 %v7292_v22  ;;  %6647 = vmatprep.subr.bf16.mxu0 %v7293_v23  ;;  %v7338_v22 = vld [vmem:[%s9202_s1 + $0xbf8] sm:$0xff]  }
 0x13e   :  { %6669 = vmatprep.subr.bf16.mxu1 %v7294_v24 }
 0x140   :  { %6648 = vmatpush3.bf16.msra.mxu0 %v7295_v25  ;;  %v7339_v25 = vld [vmem:[%s9202_s1 + $0xb38] sm:$0xff]  }
 0x141   :  { %6670 = vmatpush3.bf16.msra.mxu1 %v7296_v26  ;;  %6677 = vmatprep.subr.bf16.mxu0 %v7301_v35 }
 0x142   :  { %6699 = vmatprep.subr.bf16.mxu1 %v7302_v36 }
 0x143   :  { %v6385_v29 = vpop.f32.mrf.mxu0  ;;  %5127 = vmatmul.mubr.bf16.vlgmr.msra.gmra.mxu0 %v5697_v30 }
 0x144   :  { %v6407_v34 = vpop.f32.mrf.mxu1  ;;  %5167 = vmatmul.mubr.bf16.vlgmr.msra.gmra.mxu1 %v5699_v32  ;;  %6678 = vmatpush3.bf16.msra.mxu0 %v7303_v38  ;;  %v7341_v32 = vld [vmem:[%s9202_s1 + $0xb70] sm:$0xff]  }
 0x145   :  { %v6386_v37 = vpop.f32.mrf.mxu0  ;;  %6700 = vmatpush3.bf16.msra.mxu1 %v7304_v41  ;;  %6679 = vmatprep.subr.bf16.mxu0 %v7305_v46  ;;  %v7344_v38 = vld [vmem:[%s9202_s1 + $0xbb0] sm:$0xff]   ;;  %v7347_v41 = vld [vmem:[%s9202_s1 + $0xb28] sm:$0xff]   ;;  %v7352_v46 = vld [vmem:[%s9202_s1 + $0xba0] sm:$0xff]  }
 0x146   :  { %v6387_v39 = vadd.f32 %v6386_v37, %v6385_v29  ;;  %v6408_v40 = vpop.f32.mrf.mxu1  ;;  %6701 = vmatprep.subr.bf16.mxu1 %v7306_v47  ;;  %5206 = vmatprep.mubr.bf16.mxu0 %v5702_v18  ;;  %v7343_v37 = vld [vmem:[%s9202_s1 + $0xb30] sm:$0xff]   ;;  %v7353_v47 = vld [vmem:[%s9202_s1 + $0xb58] sm:$0xff]  }
 0x147   :  { %v6409_v42 = vadd.f32 %v6408_v40, %v6407_v34  ;;  %v6388_v43 = vpop.f32.mrf.mxu0  ;;  %5246 = vmatprep.mubr.bf16.mxu1 %v5704_v21  ;;  %v7346_v40 = vld [vmem:[%s9202_s1 + $0xbe8] sm:$0xff]   ;;  %v7377_v18 = vld [vmem:[%s9202_s1 + $0xc70] sm:$0xff]  }
 0x148   :  { %v4649_v44 = vadd.f32 %v6387_v39, %v8479_v62  ;;  %v6410_v45 = vpop.f32.mrf.mxu1  ;;  %6680 = vmatpush3.bf16.msra.mxu0 %v7307_v50  ;;  %v7318_v62 = vld [vmem:[%s9202_s1 + $0xad8] sm:$0xff]   ;;  %v7345_v39 = vld [vmem:[%s9202_s1 + $0xb68] sm:$0xff]   ;;  %v7349_v43 = vld [vmem:[%s9202_s1 + $0xb60] sm:$0xff]  }
 0x149   :  { %v6389_v48 = vpop.f32.mrf.mxu0  ;;  %6702 = vmatpush3.bf16.msra.mxu1 %v7308_v52  ;;  %6681 = vmatprep.subr.bf16.mxu0 %v7309_v53  ;;  %v7351_v45 = vld [vmem:[%s9202_s1 + $0xb20] sm:$0xff]   ;;  %v7356_v50 = vld [vmem:[%s9202_s1 + $0xb98] sm:$0xff]   ;;  %v7358_v52 = vld [vmem:[%s9202_s1 + $0xbd0] sm:$0xff]  }
 0x14a   :  { %v8587_v49 = vadd.f32 %v6409_v42, %v4649_v44  ;;  %v6411_v51 = vpop.f32.mrf.mxu1  ;;  %6703 = vmatprep.subr.bf16.mxu1 %v7310_v54  ;;  %v7348_v42 = vld [vmem:[%s9202_s1 + $0xba8] sm:$0xff]   ;;  %v7350_v44 = vld [vmem:[%s9202_s1 + $0xbe0] sm:$0xff]   ;;  %v7354_v48 = vld [vmem:[%s9202_s1 + $0xbd8] sm:$0xff]  }
 0x14b   :  { %v7357_v51 = vld [vmem:[%s9202_s1 + $0xb50] sm:$0xff]  }
 0x14c   :  { %6682 = vmatpush3.bf16.msra.mxu0 %v7311_v55  ;;  %v7359_v53 = vld [vmem:[%s9202_s1 + $0xb10] sm:$0xff]   ;;  %v7361_v55 = vld [vmem:[%s9202_s1 + $0xb48] sm:$0xff]  }
 0x14d   :  { %6704 = vmatpush3.bf16.msra.mxu1 %v7312_v56  ;;  %6683 = vmatprep.subr.bf16.mxu0 %v7313_v57  ;;  %v7360_v54 = vld [vmem:[%s9202_s1 + $0xb90] sm:$0xff]   ;;  %v7362_v56 = vld [vmem:[%s9202_s1 + $0xbc8] sm:$0xff]  }
 0x14e   :  { %6705 = vmatprep.subr.bf16.mxu1 %v7314_v58  ;;  %v7363_v57 = vld [vmem:[%s9202_s1 + $0xb08] sm:$0xff]   ;;  %v7378_v21 = vld [vmem:[%s9202_s1 + $0xcf0] sm:$0xff]  }
 0x14f   :  { %v7364_v58 = vld [vmem:[%s9202_s1 + $0xb88] sm:$0xff]  }
 0x150   :  { %6684 = vmatpush3.bf16.msra.mxu0 %v7315_v59  ;;  %v7365_v59 = vld [vmem:[%s9202_s1 + $0xb40] sm:$0xff]  }
 0x151   :  { %6706 = vmatpush3.bf16.msra.mxu1 %v7316_v60  ;;  %6685 = vmatprep.subr.bf16.mxu0 %v7317_v61  ;;  %v7366_v60 = vld [vmem:[%s9202_s1 + $0xbc0] sm:$0xff]  }
 0x152   :  { %6707 = vmatprep.subr.bf16.mxu1 %v7318_v62  ;;  %v7367_v61 = vld [vmem:[%s9202_s1 + $0xb00] sm:$0xff]  }
 0x153   :  { %v7368_v62 = vld [vmem:[%s9202_s1 + $0xb80] sm:$0xff]  }
 0x154   :  { %6686 = vmatpush3.bf16.msra.mxu0 %v7319_v63  ;;  %v37_v63 = vld [vmem:[%s9203_s0 + $0xb0] sm:$0xff] }
 0x155   :  { %6708 = vmatpush3.bf16.msra.mxu1 %v7320_v0  ;;  %6687 = vmatprep.subr.bf16.mxu0 %v7321_v1  ;;  %v5705_v1 = vcombine.low %v37_v63, %v37_v63 }
 0x156   :  { %6709 = vmatprep.subr.bf16.mxu1 %v7322_v2  ;;  %v5706_v2 = vcombine.high %v37_v63, %v37_v63  ;;  %v7412_v63 = vld [vmem:[%s9202_s1 + $0xdb8] sm:$0xff]  }
 0x158   :  { %6688 = vmatpush3.bf16.msra.mxu0 %v7323_v3  ;;  %v38_v3 = vld [vmem:[%s9203_s0 + $0xb8] sm:$0xff] }
 0x159   :  { %6710 = vmatpush3.bf16.msra.mxu1 %v7324_v4  ;;  %6689 = vmatprep.subr.bf16.mxu0 %v7325_v5  ;;  %v5707_v5 = vcombine.low %v38_v3, %v38_v3 }
 0x15a   :  { %6711 = vmatprep.subr.bf16.mxu1 %v7326_v6  ;;  %v5708_v6 = vcombine.high %v38_v3, %v38_v3 }
 0x15c   :  { %6690 = vmatpush3.bf16.msra.mxu0 %v7327_v7  ;;  %v7373_v7 = vld [vmem:[%s9202_s1 + $0xc78] sm:$0xff]  }
 0x15d   :  { %6712 = vmatpush3.bf16.msra.mxu1 %v7328_v8  ;;  %6691 = vmatprep.subr.bf16.mxu0 %v7329_v9  ;;  %v7374_v9 = vld [vmem:[%s9202_s1 + $0xcf8] sm:$0xff]  }
 0x15e   :  { %6713 = vmatprep.subr.bf16.mxu1 %v7330_v10 }
 0x160   :  { %6692 = vmatpush3.bf16.msra.mxu0 %v7331_v11 }
 0x161   :  { %6714 = vmatpush3.bf16.msra.mxu1 %v7332_v12  ;;  %6721 = vmatprep.subr.bf16.mxu0 %v7337_v20  ;;  %v7375_v12 = vld [vmem:[%s9202_s1 + $0xc38] sm:$0xff]  }
 0x162   :  { %6743 = vmatprep.subr.bf16.mxu1 %v7338_v22 }
 0x163   :  { %v6429_v15 = vpop.f32.mrf.mxu0  ;;  %5207 = vmatmul.mubr.bf16.vlgmr.msra.gmra.mxu0 %v5701_v17 }
 0x164   :  { %v6451_v16 = vpop.f32.mrf.mxu1  ;;  %5247 = vmatmul.mubr.bf16.vlgmr.msra.gmra.mxu1 %v5703_v19  ;;  %6722 = vmatpush3.bf16.msra.mxu0 %v7339_v25  ;;  %v7381_v25 = vld [vmem:[%s9202_s1 + $0xc68] sm:$0xff]  }
 0x165   :  { %v6430_v23 = vpop.f32.mrf.mxu0  ;;  %6744 = vmatpush3.bf16.msra.mxu1 %v7340_v28  ;;  %6723 = vmatprep.subr.bf16.mxu0 %v7341_v32  ;;  %v7384_v28 = vld [vmem:[%s9202_s1 + $0xca8] sm:$0xff]   ;;  %v7388_v32 = vld [vmem:[%s9202_s1 + $0xca0] sm:$0xff]  }
 0x166   :  { %v6452_v24 = vpop.f32.mrf.mxu1  ;;  %v6431_v26 = vadd.f32 %v6430_v23, %v6429_v15  ;;  %6745 = vmatprep.subr.bf16.mxu1 %v7342_v33  ;;  %5286 = vmatprep.mubr.bf16.mxu0 %v5706_v2  ;;  %v7376_v15 = vld [vmem:[%s9202_s1 + $0xcb8] sm:$0xff]   ;;  %v7379_v23 = vld [vmem:[%s9202_s1 + $0xc30] sm:$0xff]  }
 0x167   :  { %v6453_v27 = vadd.f32 %v6452_v24, %v6451_v16  ;;  %v6432_v29 = vpop.f32.mrf.mxu0  ;;  %5326 = vmatprep.mubr.bf16.mxu1 %v5708_v6  ;;  %v7380_v24 = vld [vmem:[%s9202_s1 + $0xcb0] sm:$0xff]   ;;  %v7389_v33 = vld [vmem:[%s9202_s1 + $0xc58] sm:$0xff]  }
 0x168   :  { %v6454_v30 = vpop.f32.mrf.mxu1  ;;  %v4729_v31 = vadd.f32 %v6431_v26, %v8587_v49  ;;  %6724 = vmatpush3.bf16.msra.mxu0 %v7343_v37  ;;  %v7355_v49 = vld [vmem:[%s9202_s1 + $0xb18] sm:$0xff]   ;;  %v7382_v26 = vld [vmem:[%s9202_s1 + $0xce8] sm:$0xff]   ;;  %v7385_v29 = vld [vmem:[%s9202_s1 + $0xc60] sm:$0xff]  }
 0x169   :  { %v6433_v34 = vpop.f32.mrf.mxu0  ;;  %6746 = vmatpush3.bf16.msra.mxu1 %v7344_v38  ;;  %6725 = vmatprep.subr.bf16.mxu0 %v7345_v39  ;;  %v7386_v30 = vld [vmem:[%s9202_s1 + $0xce0] sm:$0xff]   ;;  %v7393_v37 = vld [vmem:[%s9202_s1 + $0xc50] sm:$0xff]  }
 0x16a   :  { %v6455_v35 = vpop.f32.mrf.mxu1  ;;  %v8692_v36 = vadd.f32 %v6453_v27, %v4729_v31  ;;  %6747 = vmatprep.subr.bf16.mxu1 %v7346_v40  ;;  %v7383_v27 = vld [vmem:[%s9202_s1 + $0xc28] sm:$0xff]   ;;  %v7387_v31 = vld [vmem:[%s9202_s1 + $0xc20] sm:$0xff]   ;;  %v7390_v34 = vld [vmem:[%s9202_s1 + $0xcd8] sm:$0xff]  }
 0x16b   :  { %v7391_v35 = vld [vmem:[%s9202_s1 + $0xc18] sm:$0xff]   ;;  %v7394_v38 = vld [vmem:[%s9202_s1 + $0xcd0] sm:$0xff]  }
 0x16c   :  { %6726 = vmatpush3.bf16.msra.mxu0 %v7347_v41  ;;  %v7395_v39 = vld [vmem:[%s9202_s1 + $0xc10] sm:$0xff]   ;;  %v7397_v41 = vld [vmem:[%s9202_s1 + $0xc48] sm:$0xff]  }
 0x16d   :  { %6748 = vmatpush3.bf16.msra.mxu1 %v7348_v42  ;;  %6727 = vmatprep.subr.bf16.mxu0 %v7349_v43  ;;  %v7396_v40 = vld [vmem:[%s9202_s1 + $0xc90] sm:$0xff]   ;;  %v7398_v42 = vld [vmem:[%s9202_s1 + $0xcc8] sm:$0xff]  }
 0x16e   :  { %6749 = vmatprep.subr.bf16.mxu1 %v7350_v44  ;;  %v7399_v43 = vld [vmem:[%s9202_s1 + $0xc08] sm:$0xff]  }
 0x16f   :  { %v7400_v44 = vld [vmem:[%s9202_s1 + $0xc88] sm:$0xff]  }
 0x170   :  { %6728 = vmatpush3.bf16.msra.mxu0 %v7351_v45  ;;  %v7401_v45 = vld [vmem:[%s9202_s1 + $0xc40] sm:$0xff]  }
 0x171   :  { %6750 = vmatpush3.bf16.msra.mxu1 %v7352_v46  ;;  %6729 = vmatprep.subr.bf16.mxu0 %v7353_v47  ;;  %v7402_v46 = vld [vmem:[%s9202_s1 + $0xcc0] sm:$0xff]  }
 0x172   :  { %6751 = vmatprep.subr.bf16.mxu1 %v7354_v48  ;;  %v7403_v47 = vld [vmem:[%s9202_s1 + $0xc00] sm:$0xff]  }
 0x173   :  { %v7404_v48 = vld [vmem:[%s9202_s1 + $0xc80] sm:$0xff]  }
 0x174   :  { %6730 = vmatpush3.bf16.msra.mxu0 %v7355_v49  ;;  %v39_v49 = vld [vmem:[%s9203_s0 + $0xc0] sm:$0xff] }
 0x175   :  { %6752 = vmatpush3.bf16.msra.mxu1 %v7356_v50  ;;  %6731 = vmatprep.subr.bf16.mxu0 %v7357_v51  ;;  %v40_v50 = vld [vmem:[%s9203_s0 + $0xc8] sm:$0xff] }
 0x176   :  { %6753 = vmatprep.subr.bf16.mxu1 %v7358_v52  ;;  %v5709_v52 = vcombine.low %v39_v49, %v39_v49 }
 0x178   :  { %6732 = vmatpush3.bf16.msra.mxu0 %v7359_v53  ;;  %v5710_v53 = vcombine.high %v39_v49, %v39_v49  ;;  %v7448_v49 = vld [vmem:[%s9202_s1 + $0xeb8] sm:$0xff]  }
 0x179   :  { %6754 = vmatpush3.bf16.msra.mxu1 %v7360_v54  ;;  %6733 = vmatprep.subr.bf16.mxu0 %v7361_v55  ;;  %v5711_v54 = vcombine.low %v40_v50, %v40_v50  ;;  %v5712_v55 = vcombine.high %v40_v50, %v40_v50 }
 0x17a   :  { %6755 = vmatprep.subr.bf16.mxu1 %v7362_v56 }
 0x17c   :  { %6734 = vmatpush3.bf16.msra.mxu0 %v7363_v57  ;;  %v7409_v57 = vld [vmem:[%s9202_s1 + $0xd78] sm:$0xff]  }
 0x17d   :  { %6756 = vmatpush3.bf16.msra.mxu1 %v7364_v58  ;;  %6735 = vmatprep.subr.bf16.mxu0 %v7365_v59  ;;  %v7410_v58 = vld [vmem:[%s9202_s1 + $0xdf8] sm:$0xff]  }
 0x17e   :  { %6757 = vmatprep.subr.bf16.mxu1 %v7366_v60  ;;  %v7411_v60 = vld [vmem:[%s9202_s1 + $0xd38] sm:$0xff]  }
 0x180   :  { %6736 = vmatpush3.bf16.msra.mxu0 %v7367_v61 }
 0x181   :  { %6758 = vmatpush3.bf16.msra.mxu1 %v7368_v62  ;;  %6765 = vmatprep.subr.bf16.mxu0 %v7373_v7 }
 0x182   :  { %6787 = vmatprep.subr.bf16.mxu1 %v7374_v9 }
 0x183   :  { %v6473_v0 = vpop.f32.mrf.mxu0  ;;  %5287 = vmatmul.mubr.bf16.vlgmr.msra.gmra.mxu0 %v5705_v1 }
 0x184   :  { %v6495_v4 = vpop.f32.mrf.mxu1  ;;  %5327 = vmatmul.mubr.bf16.vlgmr.msra.gmra.mxu1 %v5707_v5  ;;  %6766 = vmatpush3.bf16.msra.mxu0 %v7375_v12  ;;  %v7414_v5 = vld [vmem:[%s9202_s1 + $0xdf0] sm:$0xff]   ;;  %v7418_v12 = vld [vmem:[%s9202_s1 + $0xde8] sm:$0xff]  }
 0x185   :  { %v6474_v8 = vpop.f32.mrf.mxu0  ;;  %6788 = vmatpush3.bf16.msra.mxu1 %v7376_v15  ;;  %6767 = vmatprep.subr.bf16.mxu0 %v7377_v18  ;;  %v7421_v15 = vld [vmem:[%s9202_s1 + $0xd60] sm:$0xff]  }
 0x186   :  { %v6475_v10 = vadd.f32 %v6474_v8, %v6473_v0  ;;  %v6496_v11 = vpop.f32.mrf.mxu1  ;;  %6789 = vmatprep.subr.bf16.mxu1 %v7378_v21  ;;  %5366 = vmatprep.mubr.bf16.mxu0 %v5710_v53  ;;  %v7415_v8 = vld [vmem:[%s9202_s1 + $0xd30] sm:$0xff]   ;;  %v7424_v18 = vld [vmem:[%s9202_s1 + $0xda0] sm:$0xff]   ;;  %v7427_v21 = vld [vmem:[%s9202_s1 + $0xd18] sm:$0xff]  }
 0x187   :  { %v6497_v13 = vadd.f32 %v6496_v11, %v6495_v4  ;;  %v6476_v14 = vpop.f32.mrf.mxu0  ;;  %5406 = vmatprep.mubr.bf16.mxu1 %v5712_v55  ;;  %v7413_v4 = vld [vmem:[%s9202_s1 + $0xd70] sm:$0xff]   ;;  %v7417_v11 = vld [vmem:[%s9202_s1 + $0xd68] sm:$0xff]  }
 0x188   :  { %v4809_v16 = vadd.f32 %v6475_v10, %v8692_v36  ;;  %v6498_v17 = vpop.f32.mrf.mxu1  ;;  %6768 = vmatpush3.bf16.msra.mxu0 %v7379_v23  ;;  %v7392_v36 = vld [vmem:[%s9202_s1 + $0xc98] sm:$0xff]   ;;  %v7416_v10 = vld [vmem:[%s9202_s1 + $0xdb0] sm:$0xff]   ;;  %v7420_v14 = vld [vmem:[%s9202_s1 + $0xda8] sm:$0xff]  }
 0x189   :  { %v6477_v19 = vpop.f32.mrf.mxu0  ;;  %6790 = vmatpush3.bf16.msra.mxu1 %v7380_v24  ;;  %6769 = vmatprep.subr.bf16.mxu0 %v7381_v25  ;;  %v7423_v17 = vld [vmem:[%s9202_s1 + $0xd20] sm:$0xff]   ;;  %v7429_v23 = vld [vmem:[%s9202_s1 + $0xd50] sm:$0xff]  }
 0x18a   :  { %v8794_v20 = vadd.f32 %v6497_v13, %v4809_v16  ;;  %v6499_v22 = vpop.f32.mrf.mxu1  ;;  %6791 = vmatprep.subr.bf16.mxu1 %v7382_v26  ;;  %v7419_v13 = vld [vmem:[%s9202_s1 + $0xd28] sm:$0xff]   ;;  %v7422_v16 = vld [vmem:[%s9202_s1 + $0xde0] sm:$0xff]   ;;  %v7425_v19 = vld [vmem:[%s9202_s1 + $0xd58] sm:$0xff]  }
 0x18b   :  { %v7428_v22 = vld [vmem:[%s9202_s1 + $0xd98] sm:$0xff]   ;;  %v7430_v24 = vld [vmem:[%s9202_s1 + $0xdd0] sm:$0xff]  }
 0x18c   :  { %6770 = vmatpush3.bf16.msra.mxu0 %v7383_v27  ;;  %v7431_v25 = vld [vmem:[%s9202_s1 + $0xd10] sm:$0xff]   ;;  %v7433_v27 = vld [vmem:[%s9202_s1 + $0xd48] sm:$0xff]  }
 0x18d   :  { %6792 = vmatpush3.bf16.msra.mxu1 %v7384_v28  ;;  %6771 = vmatprep.subr.bf16.mxu0 %v7385_v29  ;;  %v7432_v26 = vld [vmem:[%s9202_s1 + $0xd90] sm:$0xff]   ;;  %v7434_v28 = vld [vmem:[%s9202_s1 + $0xdc8] sm:$0xff]  }
 0x18e   :  { %6793 = vmatprep.subr.bf16.mxu1 %v7386_v30  ;;  %v7435_v29 = vld [vmem:[%s9202_s1 + $0xd08] sm:$0xff]   ;;  %v7450_v55 = vld [vmem:[%s9202_s1 + $0xef0] sm:$0xff]  }
 0x18f   :  { %v7436_v30 = vld [vmem:[%s9202_s1 + $0xd88] sm:$0xff]  }
 0x190   :  { %6772 = vmatpush3.bf16.msra.mxu0 %v7387_v31  ;;  %v7437_v31 = vld [vmem:[%s9202_s1 + $0xd40] sm:$0xff]  }
 0x191   :  { %6794 = vmatpush3.bf16.msra.mxu1 %v7388_v32  ;;  %6773 = vmatprep.subr.bf16.mxu0 %v7389_v33  ;;  %v7438_v32 = vld [vmem:[%s9202_s1 + $0xdc0] sm:$0xff]  }
 0x192   :  { %6795 = vmatprep.subr.bf16.mxu1 %v7390_v34  ;;  %v7439_v33 = vld [vmem:[%s9202_s1 + $0xd00] sm:$0xff]  }
 0x193   :  { %v7440_v34 = vld [vmem:[%s9202_s1 + $0xd80] sm:$0xff]  }
 0x194   :  { %6774 = vmatpush3.bf16.msra.mxu0 %v7391_v35  ;;  %v41_v35 = vld [vmem:[%s9203_s0 + $0xd0] sm:$0xff] }
 0x195   :  { %6796 = vmatpush3.bf16.msra.mxu1 %v7392_v36  ;;  %6775 = vmatprep.subr.bf16.mxu0 %v7393_v37  ;;  %v42_v36 = vld [vmem:[%s9203_s0 + $0xd8] sm:$0xff] }
 0x196   :  { %6797 = vmatprep.subr.bf16.mxu1 %v7394_v38  ;;  %v5713_v38 = vcombine.low %v41_v35, %v41_v35 }
 0x198   :  { %6776 = vmatpush3.bf16.msra.mxu0 %v7395_v39  ;;  %v5714_v39 = vcombine.high %v41_v35, %v41_v35 }
 0x199   :  { %6798 = vmatpush3.bf16.msra.mxu1 %v7396_v40  ;;  %6777 = vmatprep.subr.bf16.mxu0 %v7397_v41  ;;  %v5715_v40 = vcombine.low %v42_v36, %v42_v36 }
 0x19a   :  { %6799 = vmatprep.subr.bf16.mxu1 %v7398_v42  ;;  %v7445_v42 = vld [vmem:[%s9202_s1 + $0xe78] sm:$0xff]  }
 0x19c   :  { %6778 = vmatpush3.bf16.msra.mxu0 %v7399_v43  ;;  %v5716_v43 = vcombine.high %v42_v36, %v42_v36  ;;  %v7484_v36 = vld [vmem:[%s9202_s1 + $0xfb8] sm:$0xff]  }
 0x19d   :  { %6800 = vmatpush3.bf16.msra.mxu1 %v7400_v44  ;;  %6779 = vmatprep.subr.bf16.mxu0 %v7401_v45  ;;  %v7446_v44 = vld [vmem:[%s9202_s1 + $0xef8] sm:$0xff]  }
 0x19e   :  { %6801 = vmatprep.subr.bf16.mxu1 %v7402_v46  ;;  %v7447_v46 = vld [vmem:[%s9202_s1 + $0xe38] sm:$0xff]  }
 0x1a0   :  { %6780 = vmatpush3.bf16.msra.mxu0 %v7403_v47 }
 0x1a1   :  { %6802 = vmatpush3.bf16.msra.mxu1 %v7404_v48  ;;  %6809 = vmatprep.subr.bf16.mxu0 %v7409_v57 }
 0x1a2   :  { %6831 = vmatprep.subr.bf16.mxu1 %v7410_v58  ;;  %v7451_v58 = vld [vmem:[%s9202_s1 + $0xe30] sm:$0xff]  }
 0x1a3   :  { %v6517_v51 = vpop.f32.mrf.mxu0  ;;  %5367 = vmatmul.mubr.bf16.vlgmr.msra.gmra.mxu0 %v5709_v52 }
 0x1a4   :  { %v6539_v56 = vpop.f32.mrf.mxu1  ;;  %5407 = vmatmul.mubr.bf16.vlgmr.msra.gmra.mxu1 %v5711_v54  ;;  %6810 = vmatpush3.bf16.msra.mxu0 %v7411_v60  ;;  %v7449_v54 = vld [vmem:[%s9202_s1 + $0xe70] sm:$0xff]  }
 0x1a5   :  { %v6518_v59 = vpop.f32.mrf.mxu0  ;;  %6832 = vmatpush3.bf16.msra.mxu1 %v7412_v63  ;;  %6811 = vmatprep.subr.bf16.mxu0 %v7413_v4  ;;  %v7452_v60 = vld [vmem:[%s9202_s1 + $0xeb0] sm:$0xff]   ;;  %v7455_v63 = vld [vmem:[%s9202_s1 + $0xe28] sm:$0xff]   ;;  %v7460_v4 = vld [vmem:[%s9202_s1 + $0xea0] sm:$0xff]  }
 0x1a6   :  { %v6519_v61 = vadd.f32 %v6518_v59, %v6517_v51  ;;  %v6540_v62 = vpop.f32.mrf.mxu1  ;;  %6833 = vmatprep.subr.bf16.mxu1 %v7414_v5  ;;  %5446 = vmatprep.mubr.bf16.mxu0 %v5714_v39  ;;  %v7461_v5 = vld [vmem:[%s9202_s1 + $0xe58] sm:$0xff]  }
 0x1a7   :  { %v6541_v0 = vadd.f32 %v6540_v62, %v6539_v56  ;;  %v6520_v1 = vpop.f32.mrf.mxu0  ;;  %5486 = vmatprep.mubr.bf16.mxu1 %v5716_v43  ;;  %v7454_v62 = vld [vmem:[%s9202_s1 + $0xee8] sm:$0xff]  }
 0x1a8   :  { %v4889_v2 = vadd.f32 %v6519_v61, %v8794_v20  ;;  %v6542_v3 = vpop.f32.mrf.mxu1  ;;  %6812 = vmatpush3.bf16.msra.mxu0 %v7415_v8  ;;  %v7426_v20 = vld [vmem:[%s9202_s1 + $0xdd8] sm:$0xff]   ;;  %v7453_v61 = vld [vmem:[%s9202_s1 + $0xe68] sm:$0xff]   ;;  %v7457_v1 = vld [vmem:[%s9202_s1 + $0xe60] sm:$0xff]  }
 0x1a9   :  { %v6521_v6 = vpop.f32.mrf.mxu0  ;;  %6834 = vmatpush3.bf16.msra.mxu1 %v7416_v10  ;;  %6813 = vmatprep.subr.bf16.mxu0 %v7417_v11  ;;  %v7459_v3 = vld [vmem:[%s9202_s1 + $0xe20] sm:$0xff]   ;;  %v7464_v8 = vld [vmem:[%s9202_s1 + $0xe98] sm:$0xff]   ;;  %v7466_v10 = vld [vmem:[%s9202_s1 + $0xed0] sm:$0xff]  }
 0x1aa   :  { %v8902_v7 = vadd.f32 %v6541_v0, %v4889_v2  ;;  %v6543_v9 = vpop.f32.mrf.mxu1  ;;  %6835 = vmatprep.subr.bf16.mxu1 %v7418_v12  ;;  %v7456_v0 = vld [vmem:[%s9202_s1 + $0xea8] sm:$0xff]   ;;  %v7458_v2 = vld [vmem:[%s9202_s1 + $0xee0] sm:$0xff]   ;;  %v7462_v6 = vld [vmem:[%s9202_s1 + $0xed8] sm:$0xff]  }
 0x1ab   :  { %v7465_v9 = vld [vmem:[%s9202_s1 + $0xe50] sm:$0xff]  }
 0x1ac   :  { %6814 = vmatpush3.bf16.msra.mxu0 %v7419_v13  ;;  %v7467_v11 = vld [vmem:[%s9202_s1 + $0xe10] sm:$0xff]   ;;  %v7469_v13 = vld [vmem:[%s9202_s1 + $0xe48] sm:$0xff]  }
 0x1ad   :  { %6836 = vmatpush3.bf16.msra.mxu1 %v7420_v14  ;;  %6815 = vmatprep.subr.bf16.mxu0 %v7421_v15  ;;  %v7468_v12 = vld [vmem:[%s9202_s1 + $0xe90] sm:$0xff]   ;;  %v7470_v14 = vld [vmem:[%s9202_s1 + $0xec8] sm:$0xff]  }
 0x1ae   :  { %6837 = vmatprep.subr.bf16.mxu1 %v7422_v16  ;;  %v7471_v15 = vld [vmem:[%s9202_s1 + $0xe08] sm:$0xff]  }
 0x1af   :  { %v7472_v16 = vld [vmem:[%s9202_s1 + $0xe88] sm:$0xff]  }
 0x1b0   :  { %6816 = vmatpush3.bf16.msra.mxu0 %v7423_v17  ;;  %v7473_v17 = vld [vmem:[%s9202_s1 + $0xe40] sm:$0xff]  }
 0x1b1   :  { %6838 = vmatpush3.bf16.msra.mxu1 %v7424_v18  ;;  %6817 = vmatprep.subr.bf16.mxu0 %v7425_v19  ;;  %v7474_v18 = vld [vmem:[%s9202_s1 + $0xec0] sm:$0xff]  }
 0x1b2   :  { %6839 = vmatprep.subr.bf16.mxu1 %v7426_v20  ;;  %v7475_v19 = vld [vmem:[%s9202_s1 + $0xe00] sm:$0xff]  }
 0x1b3   :  { %v7476_v20 = vld [vmem:[%s9202_s1 + $0xe80] sm:$0xff]  }
 0x1b4   :  { %6818 = vmatpush3.bf16.msra.mxu0 %v7427_v21  ;;  %v43_v21 = vld [vmem:[%s9203_s0 + $0xe0] sm:$0xff] }
 0x1b5   :  { %6840 = vmatpush3.bf16.msra.mxu1 %v7428_v22  ;;  %6819 = vmatprep.subr.bf16.mxu0 %v7429_v23  ;;  %v5717_v22 = vcombine.low %v43_v21, %v43_v21  ;;  %v5718_v23 = vcombine.high %v43_v21, %v43_v21 }
 0x1b6   :  { %6841 = vmatprep.subr.bf16.mxu1 %v7430_v24  ;;  %v44_v24 = vld [vmem:[%s9203_s0 + $0xe8] sm:$0xff] }
 0x1b8   :  { %6820 = vmatpush3.bf16.msra.mxu0 %v7431_v25 }
 0x1b9   :  { %6842 = vmatpush3.bf16.msra.mxu1 %v7432_v26  ;;  %6821 = vmatprep.subr.bf16.mxu0 %v7433_v27  ;;  %v5719_v27 = vcombine.low %v44_v24, %v44_v24 }
 0x1ba   :  { %6843 = vmatprep.subr.bf16.mxu1 %v7434_v28  ;;  %v5720_v28 = vcombine.high %v44_v24, %v44_v24 }
 0x1bc   :  { %6822 = vmatpush3.bf16.msra.mxu0 %v7435_v29  ;;  %v7481_v29 = vld [vmem:[%s9202_s1 + $0xf78] sm:$0xff]  }
 0x1bd   :  { %6844 = vmatpush3.bf16.msra.mxu1 %v7436_v30  ;;  %6823 = vmatprep.subr.bf16.mxu0 %v7437_v31  ;;  %v7482_v30 = vld [vmem:[%s9202_s1 + $0xff8] sm:$0xff]  }
 0x1be   :  { %6845 = vmatprep.subr.bf16.mxu1 %v7438_v32 }
 0x1c0   :  { %6824 = vmatpush3.bf16.msra.mxu0 %v7439_v33  ;;  %v7483_v33 = vld [vmem:[%s9202_s1 + $0xf38] sm:$0xff]  }
 0x1c1   :  { %6846 = vmatpush3.bf16.msra.mxu1 %v7440_v34  ;;  %6853 = vmatprep.subr.bf16.mxu0 %v7445_v42 }
 0x1c2   :  { %6875 = vmatprep.subr.bf16.mxu1 %v7446_v44 }
 0x1c3   :  { %v6561_v37 = vpop.f32.mrf.mxu0  ;;  %5447 = vmatmul.mubr.bf16.vlgmr.msra.gmra.mxu0 %v5713_v38 }
 0x1c4   :  { %v6583_v41 = vpop.f32.mrf.mxu1  ;;  %5487 = vmatmul.mubr.bf16.vlgmr.msra.gmra.mxu1 %v5715_v40  ;;  %6854 = vmatpush3.bf16.msra.mxu0 %v7447_v46  ;;  %v7485_v40 = vld [vmem:[%s9202_s1 + $0xf70] sm:$0xff]  }
 0x1c5   :  { %v6562_v45 = vpop.f32.mrf.mxu0  ;;  %6876 = vmatpush3.bf16.msra.mxu1 %v7448_v49  ;;  %6855 = vmatprep.subr.bf16.mxu0 %v7449_v54  ;;  %v7488_v46 = vld [vmem:[%s9202_s1 + $0xfb0] sm:$0xff]   ;;  %v7491_v49 = vld [vmem:[%s9202_s1 + $0xf28] sm:$0xff]   ;;  %v7496_v54 = vld [vmem:[%s9202_s1 + $0xfa0] sm:$0xff]  }
 0x1c6   :  { %v6563_v47 = vadd.f32 %v6562_v45, %v6561_v37  ;;  %v6584_v48 = vpop.f32.mrf.mxu1  ;;  %6877 = vmatprep.subr.bf16.mxu1 %v7450_v55  ;;  %5526 = vmatprep.mubr.bf16.mxu0 %v5718_v23  ;;  %v7487_v45 = vld [vmem:[%s9202_s1 + $0xf30] sm:$0xff]   ;;  %v7497_v55 = vld [vmem:[%s9202_s1 + $0xf58] sm:$0xff]  }
 0x1c7   :  { %v6585_v50 = vadd.f32 %v6584_v48, %v6583_v41  ;;  %v6564_v51 = vpop.f32.mrf.mxu0  ;;  %5566 = vmatprep.mubr.bf16.mxu1 %v5720_v28  ;;  %v7486_v41 = vld [vmem:[%s9202_s1 + $0xff0] sm:$0xff]   ;;  %v7490_v48 = vld [vmem:[%s9202_s1 + $0xfe8] sm:$0xff]  }
 0x1c8   :  { %v4969_v52 = vadd.f32 %v6563_v47, %v8902_v7  ;;  %v6586_v53 = vpop.f32.mrf.mxu1  ;;  %6856 = vmatpush3.bf16.msra.mxu0 %v7451_v58  ;;  %v7463_v7 = vld [vmem:[%s9202_s1 + $0xe18] sm:$0xff]   ;;  %v7489_v47 = vld [vmem:[%s9202_s1 + $0xf68] sm:$0xff]   ;;  %v7493_v51 = vld [vmem:[%s9202_s1 + $0xf60] sm:$0xff]  }
 0x1c9   :  { %v6565_v56 = vpop.f32.mrf.mxu0  ;;  %6878 = vmatpush3.bf16.msra.mxu1 %v7452_v60  ;;  %6857 = vmatprep.subr.bf16.mxu0 %v7453_v61  ;;  %v7495_v53 = vld [vmem:[%s9202_s1 + $0xf20] sm:$0xff]   ;;  %v7500_v58 = vld [vmem:[%s9202_s1 + $0xf98] sm:$0xff]   ;;  %v7502_v60 = vld [vmem:[%s9202_s1 + $0xfd0] sm:$0xff]  }
 0x1ca   :  { %v9007_v57 = vadd.f32 %v6585_v50, %v4969_v52  ;;  %v6587_v59 = vpop.f32.mrf.mxu1  ;;  %6879 = vmatprep.subr.bf16.mxu1 %v7454_v62  ;;  %v7492_v50 = vld [vmem:[%s9202_s1 + $0xfa8] sm:$0xff]   ;;  %v7494_v52 = vld [vmem:[%s9202_s1 + $0xfe0] sm:$0xff]   ;;  %v7498_v56 = vld [vmem:[%s9202_s1 + $0xfd8] sm:$0xff]  }
 0x1cb   :  { %v7501_v59 = vld [vmem:[%s9202_s1 + $0xf50] sm:$0xff]  }
 0x1cc   :  { %6858 = vmatpush3.bf16.msra.mxu0 %v7455_v63  ;;  %v7503_v61 = vld [vmem:[%s9202_s1 + $0xf10] sm:$0xff]   ;;  %v7505_v63 = vld [vmem:[%s9202_s1 + $0xf48] sm:$0xff]  }
 0x1cd   :  { %6880 = vmatpush3.bf16.msra.mxu1 %v7456_v0  ;;  %6859 = vmatprep.subr.bf16.mxu0 %v7457_v1  ;;  %v7504_v62 = vld [vmem:[%s9202_s1 + $0xf90] sm:$0xff]   ;;  %v7506_v0 = vld [vmem:[%s9202_s1 + $0xfc8] sm:$0xff]  }
 0x1ce   :  { %6881 = vmatprep.subr.bf16.mxu1 %v7458_v2  ;;  %v7507_v1 = vld [vmem:[%s9202_s1 + $0xf08] sm:$0xff]  }
 0x1cf   :  { %v7508_v2 = vld [vmem:[%s9202_s1 + $0xf88] sm:$0xff]  }
 0x1d0   :  { %6860 = vmatpush3.bf16.msra.mxu0 %v7459_v3  ;;  %v7509_v3 = vld [vmem:[%s9202_s1 + $0xf40] sm:$0xff]  }
 0x1d1   :  { %6882 = vmatpush3.bf16.msra.mxu1 %v7460_v4  ;;  %6861 = vmatprep.subr.bf16.mxu0 %v7461_v5  ;;  %v7510_v4 = vld [vmem:[%s9202_s1 + $0xfc0] sm:$0xff]  }
 0x1d2   :  { %6883 = vmatprep.subr.bf16.mxu1 %v7462_v6  ;;  %v7511_v5 = vld [vmem:[%s9202_s1 + $0xf00] sm:$0xff]  }
 0x1d3   :  { %v7512_v6 = vld [vmem:[%s9202_s1 + $0xf80] sm:$0xff]  }
 0x1d4   :  { %6862 = vmatpush3.bf16.msra.mxu0 %v7463_v7  ;;  %v45_v7 = vld [vmem:[%s9203_s0 + $0xf0] sm:$0xff] }
 0x1d5   :  { %6884 = vmatpush3.bf16.msra.mxu1 %v7464_v8  ;;  %6863 = vmatprep.subr.bf16.mxu0 %v7465_v9  ;;  %v46_v8 = vld [vmem:[%s9203_s0 + $0xf8] sm:$0xff] }
 0x1d6   :  { %6885 = vmatprep.subr.bf16.mxu1 %v7466_v10  ;;  %v5721_v10 = vcombine.low %v45_v7, %v45_v7 }
 0x1d8   :  { %6864 = vmatpush3.bf16.msra.mxu0 %v7467_v11  ;;  %v5722_v11 = vcombine.high %v45_v7, %v45_v7 }
 0x1d9   :  { %6886 = vmatpush3.bf16.msra.mxu1 %v7468_v12  ;;  %6865 = vmatprep.subr.bf16.mxu0 %v7469_v13  ;;  %v5723_v12 = vcombine.low %v46_v8, %v46_v8  ;;  %v5724_v13 = vcombine.high %v46_v8, %v46_v8 }
 0x1da   :  { %6887 = vmatprep.subr.bf16.mxu1 %v7470_v14 }
 0x1dc   :  { %6866 = vmatpush3.bf16.msra.mxu0 %v7471_v15 }
 0x1dd   :  { %6888 = vmatpush3.bf16.msra.mxu1 %v7472_v16  ;;  %6867 = vmatprep.subr.bf16.mxu0 %v7473_v17 }
 0x1de   :  { %6889 = vmatprep.subr.bf16.mxu1 %v7474_v18 }
 0x1e0   :  { %6868 = vmatpush3.bf16.msra.mxu0 %v7475_v19 }
 0x1e1   :  { %6890 = vmatpush3.bf16.msra.mxu1 %v7476_v20  ;;  %6897 = vmatprep.subr.bf16.mxu0 %v7481_v29 }
 0x1e2   :  { %6919 = vmatprep.subr.bf16.mxu1 %v7482_v30 }
 0x1e3   :  { %v6605_v25 = vpop.f32.mrf.mxu0  ;;  %5527 = vmatmul.mubr.bf16.vlgmr.msra.gmra.mxu0 %v5717_v22 }
 0x1e4   :  { %v6627_v26 = vpop.f32.mrf.mxu1  ;;  %5567 = vmatmul.mubr.bf16.vlgmr.msra.gmra.mxu1 %v5719_v27  ;;  %6898 = vmatpush3.bf16.msra.mxu0 %v7483_v33 }
 0x1e5   :  { %v6606_v31 = vpop.f32.mrf.mxu0  ;;  %6920 = vmatpush3.bf16.msra.mxu1 %v7484_v36  ;;  %6899 = vmatprep.subr.bf16.mxu0 %v7485_v40 }
 0x1e6   :  { %v6628_v32 = vpop.f32.mrf.mxu1  ;;  %v6607_v34 = vadd.f32 %v6606_v31, %v6605_v25  ;;  %6921 = vmatprep.subr.bf16.mxu1 %v7486_v41  ;;  %5606 = vmatprep.mubr.bf16.mxu0 %v5722_v11 }
 0x1e7   :  { %v6629_v35 = vadd.f32 %v6628_v32, %v6627_v26  ;;  %v6608_v37 = vpop.f32.mrf.mxu0  ;;  %5646 = vmatprep.mubr.bf16.mxu1 %v5724_v13 }
 0x1e8   :  { %v6630_v38 = vpop.f32.mrf.mxu1  ;;  %v5049_v39 = vadd.f32 %v6607_v34, %v9007_v57  ;;  %6900 = vmatpush3.bf16.msra.mxu0 %v7487_v45  ;;  %v7499_v57 = vld [vmem:[%s9202_s1 + $0xf18] sm:$0xff]  }
 0x1e9   :  { %v6609_v42 = vpop.f32.mrf.mxu0  ;;  %6922 = vmatpush3.bf16.msra.mxu1 %v7488_v46  ;;  %6901 = vmatprep.subr.bf16.mxu0 %v7489_v47 }
 0x1ea   :  { %v6631_v43 = vpop.f32.mrf.mxu1  ;;  %v9112_v44 = vadd.f32 %v6629_v35, %v5049_v39  ;;  %6923 = vmatprep.subr.bf16.mxu1 %v7490_v48 }
 0x1ec   :  { %6902 = vmatpush3.bf16.msra.mxu0 %v7491_v49 }
 0x1ed   :  { %6924 = vmatpush3.bf16.msra.mxu1 %v7492_v50  ;;  %6903 = vmatprep.subr.bf16.mxu0 %v7493_v51 }
 0x1ee   :  { %6925 = vmatprep.subr.bf16.mxu1 %v7494_v52 }
 0x1f0   :  { %6904 = vmatpush3.bf16.msra.mxu0 %v7495_v53 }
 0x1f1   :  { %6926 = vmatpush3.bf16.msra.mxu1 %v7496_v54  ;;  %6905 = vmatprep.subr.bf16.mxu0 %v7497_v55 }
 0x1f2   :  { %6927 = vmatprep.subr.bf16.mxu1 %v7498_v56 }
 0x1f4   :  { %6906 = vmatpush3.bf16.msra.mxu0 %v7499_v57 }
 0x1f5   :  { %6928 = vmatpush3.bf16.msra.mxu1 %v7500_v58  ;;  %6907 = vmatprep.subr.bf16.mxu0 %v7501_v59 }
 0x1f6   :  { %6929 = vmatprep.subr.bf16.mxu1 %v7502_v60 }
 0x1f8   :  { %6908 = vmatpush3.bf16.msra.mxu0 %v7503_v61 }
 0x1f9   :  { %6930 = vmatpush3.bf16.msra.mxu1 %v7504_v62  ;;  %6909 = vmatprep.subr.bf16.mxu0 %v7505_v63 }
 0x1fa   :  { %6931 = vmatprep.subr.bf16.mxu1 %v7506_v0 }
 0x1fc   :  { %6910 = vmatpush3.bf16.msra.mxu0 %v7507_v1 }
 0x1fd   :  { %6932 = vmatpush3.bf16.msra.mxu1 %v7508_v2  ;;  %6911 = vmatprep.subr.bf16.mxu0 %v7509_v3 }
 0x1fe   :  { %6933 = vmatprep.subr.bf16.mxu1 %v7510_v4 }
 0x200   :  { %6912 = vmatpush3.bf16.msra.mxu0 %v7511_v5 }
 0x201   :  { %6934 = vmatpush3.bf16.msra.mxu1 %v7512_v6 }
 0x203   :  { %v6649_v9 = vpop.f32.mrf.mxu0  ;;  %5607 = vmatmul.mubr.bf16.vlgmr.msra.gmra.mxu0 %v5721_v10 }
 0x204   :  { %v6671_v14 = vpop.f32.mrf.mxu1  ;;  %5647 = vmatmul.mubr.bf16.vlgmr.msra.gmra.mxu1 %v5723_v12 }
 0x205   :  { %v6650_v15 = vpop.f32.mrf.mxu0 }
 0x206   :  { %v6651_v16 = vadd.f32 %v6650_v15, %v6649_v9  ;;  %v6672_v17 = vpop.f32.mrf.mxu1 }
 0x207   :  { %v6673_v18 = vadd.f32 %v6672_v17, %v6671_v14  ;;  %v6652_v19 = vpop.f32.mrf.mxu0 }
 0x208   :  { %v5129_v20 = vadd.f32 %v6651_v16, %v9112_v44  ;;  %v6674_v21 = vpop.f32.mrf.mxu1 }
 0x209   :  { %v6653_v22 = vpop.f32.mrf.mxu0 }
 0x20a   :  { %v5169_v23 = vadd.f32 %v6673_v18, %v5129_v20  ;;  %v6675_v24 = vpop.f32.mrf.mxu1 }
 0x223   :  { %v6693_v25 = vpop.f32.mrf.mxu0 }
 0x224   :  { %v6715_v26 = vpop.f32.mrf.mxu1 }
 0x225   :  { %v6694_v27 = vpop.f32.mrf.mxu0 }
 0x226   :  { %v6695_v28 = vadd.f32 %v6694_v27, %v6693_v25  ;;  %v6716_v29 = vpop.f32.mrf.mxu1 }
 0x227   :  { %v6717_v30 = vadd.f32 %v6716_v29, %v6715_v26  ;;  %v6696_v31 = vpop.f32.mrf.mxu0 }
 0x228   :  { %v5209_v32 = vadd.f32 %v6695_v28, %v5169_v23  ;;  %v6718_v33 = vpop.f32.mrf.mxu1 }
 0x229   :  { %v6697_v34 = vpop.f32.mrf.mxu0 }
 0x22a   :  { %v5249_v35 = vadd.f32 %v6717_v30, %v5209_v32  ;;  %v6719_v36 = vpop.f32.mrf.mxu1 }
 0x243   :  { %v6737_v37 = vpop.f32.mrf.mxu0 }
 0x244   :  { %v6759_v38 = vpop.f32.mrf.mxu1 }
 0x245   :  { %v6738_v39 = vpop.f32.mrf.mxu0 }
 0x246   :  { %v6760_v40 = vpop.f32.mrf.mxu1  ;;  %v6739_v41 = vadd.f32 %v6738_v39, %v6737_v37 }
 0x247   :  { %v6761_v42 = vadd.f32 %v6760_v40, %v6759_v38  ;;  %v6740_v43 = vpop.f32.mrf.mxu0 }
 0x248   :  { %v6762_v44 = vpop.f32.mrf.mxu1  ;;  %v5289_v45 = vadd.f32 %v6739_v41, %v5249_v35 }
 0x249   :  { %v6741_v46 = vpop.f32.mrf.mxu0 }
 0x24a   :  { %v6763_v47 = vpop.f32.mrf.mxu1  ;;  %v5329_v48 = vadd.f32 %v6761_v42, %v5289_v45 }
 0x263   :  { %v6781_v49 = vpop.f32.mrf.mxu0 }
 0x264   :  { %v6803_v50 = vpop.f32.mrf.mxu1 }
 0x265   :  { %v6782_v51 = vpop.f32.mrf.mxu0 }
 0x266   :  { %v6783_v52 = vadd.f32 %v6782_v51, %v6781_v49  ;;  %v6804_v53 = vpop.f32.mrf.mxu1 }
 0x267   :  { %v6805_v54 = vadd.f32 %v6804_v53, %v6803_v50  ;;  %v6784_v55 = vpop.f32.mrf.mxu0 }
 0x268   :  { %v5369_v56 = vadd.f32 %v6783_v52, %v5329_v48  ;;  %v6806_v57 = vpop.f32.mrf.mxu1 }
 0x269   :  { %v6785_v58 = vpop.f32.mrf.mxu0 }
 0x26a   :  { %v5409_v59 = vadd.f32 %v6805_v54, %v5369_v56  ;;  %v6807_v60 = vpop.f32.mrf.mxu1 }
 0x283   :  { %v6825_v61 = vpop.f32.mrf.mxu0 }
 0x284   :  { %v6847_v62 = vpop.f32.mrf.mxu1 }
 0x285   :  { %v6826_v63 = vpop.f32.mrf.mxu0 }
 0x286   :  { %v6848_v0 = vpop.f32.mrf.mxu1  ;;  %v6827_v13 = vadd.f32 %v6826_v63, %v6825_v61 }
 0x287   :  { %v6828_v1 = vpop.f32.mrf.mxu0  ;;  %v6849_v15 = vadd.f32 %v6848_v0, %v6847_v62 }
 0x288   :  { %v6850_v2 = vpop.f32.mrf.mxu1  ;;  %v5449_v14 = vadd.f32 %v6827_v13, %v5409_v59 }
 0x289   :  { %v6829_v3 = vpop.f32.mrf.mxu0 }
 0x28a   :  { %v6851_v4 = vpop.f32.mrf.mxu1  ;;  %v5489_v17 = vadd.f32 %v6849_v15, %v5449_v14 }
 0x2a3   :  { %v6869_v5 = vpop.f32.mrf.mxu0 }
 0x2a4   :  { %v6891_v6 = vpop.f32.mrf.mxu1 }
 0x2a5   :  { %v6870_v7 = vpop.f32.mrf.mxu0 }
 0x2a6   :  { %v6892_v8 = vpop.f32.mrf.mxu1  ;;  %v6871_v16 = vadd.f32 %v6870_v7, %v6869_v5 }
 0x2a7   :  { %v6872_v9 = vpop.f32.mrf.mxu0  ;;  %v6893_v19 = vadd.f32 %v6892_v8, %v6891_v6 }
 0x2a8   :  { %v6894_v10 = vpop.f32.mrf.mxu1  ;;  %v5529_v18 = vadd.f32 %v6871_v16, %v5489_v17 }
 0x2a9   :  { %v6873_v11 = vpop.f32.mrf.mxu0 }
 0x2aa   :  { %v6895_v12 = vpop.f32.mrf.mxu1  ;;  %v5569_v23 = vadd.f32 %v6893_v19, %v5529_v18 }
 0x2c3   :  { %v6913_v20 = vpop.f32.mrf.mxu0 }
 0x2c4   :  { %v6935_v21 = vpop.f32.mrf.mxu1 }
 0x2c5   :  { %v6914_v22 = vpop.f32.mrf.mxu0 }
 0x2c6   :  { %v6915_v24 = vadd.f32 %v6914_v22, %v6913_v20  ;;  %v6936_v25 = vpop.f32.mrf.mxu1 }
 0x2c7   :  { %v6916_v26 = vpop.f32.mrf.mxu0  ;;  %v6937_v28 = vadd.f32 %v6936_v25, %v6935_v21 }
 0x2c8   :  { %v5609_v27 = vadd.f32 %v6915_v24, %v5569_v23  ;;  %v6938_v29 = vpop.f32.mrf.mxu1 }
 0x2c9   :  { %v6917_v30 = vpop.f32.mrf.mxu0 }
 0x2ca   :  { %v5649_v31 = vadd.f32 %v6937_v28, %v5609_v27  ;;  %v6939_v32 = vpop.f32.mrf.mxu1 }
 0x2cc   :  { %v5654_v33 = vpack.c.bf16 %v5649_v31, %v5649_v31 }
 0x2ce   :  { %5655 = vst [vmem:[%s9205_s3] sm:$0xf] %v5654_v33 }

// kernel: kappa_denoiser_forward.13
= control target key start
LH: loop header
LB: loop body
LE: loop exit
PB: predicated region body
PF: predicated region fallthrough
CT: control target
= control target key end

     0   :  { %s2458_s12 = smov 0   ;;  %s2460_s13 = smov 0   ;;  %s3095_s0 = inlined_call_operand.vmem [shape: bf16[128,1152], index: 0, kind: input, shape index: {}]   ;;  %s3096_s1 = inlined_call_operand.vmem [shape: bf16[1152,256], index: 1, kind: input, shape index: {}]   ;;  %s3097_s2 = inlined_call_operand.vmem [shape: f32[1,256], index: 2, kind: input, shape index: {}]   ;;  %s3098_s3 = inlined_call_operand.vmem [shape: bf16[128,256], index: 3, kind: output, shape index: {}]  }
   0x1   :  { %s2462_s14 = smov 0  }
   0x2 LB: > { %s25_s15 = sadd.s32 1, %s2431_s13  ;;  %p1898_p0 = scmp.ge.s32.totalorder %s2435_s14, 1  ;;  %s2435_s14 = sphi %s2462_s14, %s13_s14   ;;  %s2431_s13 = sphi %s2460_s13, %s3122_s13   ;;  %s2427_s12 = sphi %s2458_s12, %s3121_s12  }
   0x3   : > { %p27_p1 = scmp.ge.s32.totalorder %s25_s15, 2  ;;  %p174_p2 = scmp.lt.s32.totalorder %s2435_s14, 3 }
   0x5   : > { %s3124_s15 = smov (%p27_p1, %s25_s15), 0  ;;  %p175_p3 = pnand %p1898_p0, %p174_p2 }
   0x7   : > { %178 = sbr.rel (%p175_p3) target bundleno = 388 (0x184), region = 32 }
   0xc   : > { %v2145_v0 = vld [vmem:[%s3096_s1 + $0x74] ss:$8 sps:$4 sm:$0xff]   ;;  %v2149_v2 = vld [vmem:[%s3096_s1 + $0x70] ss:$8 sps:$4 sm:$0xff]   ;;  %v2151_v4 = vld [vmem:[%s3096_s1 + $0x64] ss:$8 sps:$4 sm:$0xff]  }
   0xd   : > { %v2147_v1 = vld [vmem:[%s3096_s1 + $0x174] ss:$8 sps:$4 sm:$0xff]   ;;  %1344 = vmatprep.subr.bf16.mxu0 %v2145_v0  ;;  %v2150_v3 = vld [vmem:[%s3096_s1 + $0x170] ss:$8 sps:$4 sm:$0xff]   ;;  %v2153_v5 = vld [vmem:[%s3096_s1 + $0x164] ss:$8 sps:$4 sm:$0xff]  }
   0xe   : > { %1417 = vmatprep.subr.bf16.mxu1 %v2147_v1  ;;  %1345 = vmatpush1.bf16.msra.mxu0 %v2149_v2  ;;  %v2155_v6 = vld [vmem:[%s3096_s1 + $0x60] ss:$8 sps:$4 sm:$0xff]   ;;  %v2157_v8 = vld [vmem:[%s3096_s1 + $0x54] ss:$8 sps:$4 sm:$0xff]   ;;  %v2161_v10 = vld [vmem:[%s3096_s1 + $0x50] ss:$8 sps:$4 sm:$0xff]  }
   0xf   : > { %1418 = vmatpush1.bf16.msra.mxu1 %v2150_v3  ;;  %1346 = vmatprep.subr.bf16.mxu0 %v2151_v4  ;;  %v2156_v7 = vld [vmem:[%s3096_s1 + $0x160] ss:$8 sps:$4 sm:$0xff]   ;;  %v2159_v9 = vld [vmem:[%s3096_s1 + $0x154] ss:$8 sps:$4 sm:$0xff]   ;;  %v2162_v11 = vld [vmem:[%s3096_s1 + $0x150] ss:$8 sps:$4 sm:$0xff]  }
  0x10   : > { %1419 = vmatprep.subr.bf16.mxu1 %v2153_v5  ;;  %v2163_v12 = vld [vmem:[%s3096_s1 + $0x44] ss:$8 sps:$4 sm:$0xff]   ;;  %v2167_v14 = vld [vmem:[%s3096_s1 + $0x40] ss:$8 sps:$4 sm:$0xff]   ;;  %v2169_v16 = vld [vmem:[%s3096_s1 + $0x34] ss:$8 sps:$4 sm:$0xff]  }
  0x11   : > { %v2165_v13 = vld [vmem:[%s3096_s1 + $0x144] ss:$8 sps:$4 sm:$0xff]   ;;  %v2168_v15 = vld [vmem:[%s3096_s1 + $0x140] ss:$8 sps:$4 sm:$0xff]   ;;  %v2171_v17 = vld [vmem:[%s3096_s1 + $0x134] ss:$8 sps:$4 sm:$0xff]  }
  0x12   : > { %1347 = vmatpush1.bf16.msra.mxu0 %v2155_v6  ;;  %v2173_v18 = vld [vmem:[%s3096_s1 + $0x30] ss:$8 sps:$4 sm:$0xff]   ;;  %v2175_v20 = vld [vmem:[%s3096_s1 + $0x24] ss:$8 sps:$4 sm:$0xff]   ;;  %v2179_v22 = vld [vmem:[%s3096_s1 + $0x20] ss:$8 sps:$4 sm:$0xff]  }
  0x13   : > { %1420 = vmatpush1.bf16.msra.mxu1 %v2156_v7  ;;  %1348 = vmatprep.subr.bf16.mxu0 %v2157_v8  ;;  %v2174_v19 = vld [vmem:[%s3096_s1 + $0x130] ss:$8 sps:$4 sm:$0xff]   ;;  %v2177_v21 = vld [vmem:[%s3096_s1 + $0x124] ss:$8 sps:$4 sm:$0xff]   ;;  %v2180_v23 = vld [vmem:[%s3096_s1 + $0x120] ss:$8 sps:$4 sm:$0xff]  }
  0x14   : > { %1421 = vmatprep.subr.bf16.mxu1 %v2159_v9  ;;  %v2181_v24 = vld [vmem:[%s3096_s1 + $0x14] ss:$8 sps:$4 sm:$0xff]   ;;  %v2185_v26 = vld [vmem:[%s3096_s1 + $0x10] ss:$8 sps:$4 sm:$0xff]   ;;  %v2187_v28 = vld [vmem:[%s3096_s1 + $0x4] ss:$8 sps:$4 sm:$0xff]  }
  0x15   : > { %v2183_v25 = vld [vmem:[%s3096_s1 + $0x114] ss:$8 sps:$4 sm:$0xff]   ;;  %v2186_v27 = vld [vmem:[%s3096_s1 + $0x110] ss:$8 sps:$4 sm:$0xff]   ;;  %v2189_v29 = vld [vmem:[%s3096_s1 + $0x104] ss:$8 sps:$4 sm:$0xff]  }
  0x16   : > { %1349 = vmatpush1.bf16.msra.mxu0 %v2161_v10  ;;  %s1899_s30 = sshll.u32 %s2427_s12, 3  ;;  %v2191_v30 = vld [vmem:[%s3096_s1] ss:$8 sps:$4 sm:$0xff]   ;;  %v2193_v32 = vld [vmem:[%s3096_s1 + $0xf4] ss:$8 sps:$4 sm:$0xff]  }
  0x17   : > { %1422 = vmatpush1.bf16.msra.mxu1 %v2162_v11  ;;  %1350 = vmatprep.subr.bf16.mxu0 %v2163_v12  ;;  %v2192_v31 = vld [vmem:[%s3096_s1 + $0x100] ss:$8 sps:$4 sm:$0xff]   ;;  %p214_p4 = scmp.lt.s32.totalorder %s1899_s30, 15  ;;  %v2195_v33 = vld [vmem:[%s3096_s1 + $0x1f4] ss:$8 sps:$4 sm:$0xff]  }
  0x18   : > { %1423 = vmatprep.subr.bf16.mxu1 %v2165_v13  ;;  %v2197_v34 = vld [vmem:[%s3096_s1 + $0xf0] ss:$8 sps:$4 sm:$0xff]   ;;  %v2199_v36 = vld [vmem:[%s3096_s1 + $0xe4] ss:$8 sps:$4 sm:$0xff]   ;;  %v2203_v38 = vld [vmem:[%s3096_s1 + $0xe0] ss:$8 sps:$4 sm:$0xff]  }
  0x19   : > { %v2198_v35 = vld [vmem:[%s3096_s1 + $0x1f0] ss:$8 sps:$4 sm:$0xff]   ;;  %s3126_s30 = smov (!%p214_p4, %s1899_s30), 15  ;;  %v2201_v37 = vld [vmem:[%s3096_s1 + $0x1e4] ss:$8 sps:$4 sm:$0xff]  }
  0x1a   : > { %1351 = vmatpush1.bf16.msra.mxu0 %v2167_v14  ;;  %v2204_v39 = vld [vmem:[%s3096_s1 + $0x1e0] ss:$8 sps:$4 sm:$0xff]   ;;  %v2205_v40 = vld [vmem:[%s3096_s1 + $0xd4] ss:$8 sps:$4 sm:$0xff]   ;;  %s2119_s29 = smul.u32 36, %s3126_s30  ;;  %s2094_s19 = sshll.u32 %s3126_s30, 3 }
  0x1b   : > { %1424 = vmatpush1.bf16.msra.mxu1 %v2168_v15  ;;  %1352 = vmatprep.subr.bf16.mxu0 %v2169_v16  ;;  %v2207_v41 = vld [vmem:[%s3096_s1 + $0x1d4] ss:$8 sps:$4 sm:$0xff]   ;;  %v2209_v42 = vld [vmem:[%s3096_s1 + $0xd0] ss:$8 sps:$4 sm:$0xff]   ;;  %v2211_v44 = vld [vmem:[%s3096_s1 + $0xc4] ss:$8 sps:$4 sm:$0xff]   ;;  %s3068_s21 = scalar_lea.vmem %s3098_s3, %s2094_s19 }
  0x1c   : > { %1425 = vmatprep.subr.bf16.mxu1 %v2171_v17  ;;  %v2210_v43 = vld [vmem:[%s3096_s1 + $0x1d0] ss:$8 sps:$4 sm:$0xff]   ;;  %s2620_s17 = scalar_lea.vmem %s3095_s0, %s2119_s29  ;;  %v2213_v45 = vld [vmem:[%s3096_s1 + $0x1c4] ss:$8 sps:$4 sm:$0xff]   ;;  %v2215_v46 = vld [vmem:[%s3096_s1 + $0xc0] ss:$8 sps:$4 sm:$0xff]  }
  0x1d   : > { %v2216_v47 = vld [vmem:[%s3096_s1 + $0x1c0] ss:$8 sps:$4 sm:$0xff]   ;;  %v2217_v48 = vld [vmem:[%s3096_s1 + $0xb4] ss:$8 sps:$4 sm:$0xff]   ;;  %v2246_v51 = vld [vmem:[%s2620_s17 + $0xc] ss:$36 sps:$4 sm:$0xff]  }
  0x1e   : > { %1353 = vmatpush1.bf16.msra.mxu0 %v2173_v18  ;;  %v2243_v49 = vld [vmem:[%s2620_s17 + $0x4] ss:$36 sps:$4 sm:$0xff]   ;;  %v2219_v50 = vld [vmem:[%s3096_s1 + $0x1b4] ss:$8 sps:$4 sm:$0xff]   ;;  %v2221_v52 = vld [vmem:[%s3096_s1 + $0xb0] ss:$8 sps:$4 sm:$0xff]   ;;  %1449 = vmatprep.mubr.bf16.mxu1 %v2246_v51 }
  0x1f   : > { %1426 = vmatpush1.bf16.msra.mxu1 %v2174_v19  ;;  %1354 = vmatprep.subr.bf16.mxu0 %v2175_v20  ;;  %v2222_v53 = vld [vmem:[%s3096_s1 + $0x1b0] ss:$8 sps:$4 sm:$0xff]   ;;  %v2223_v54 = vld [vmem:[%s3096_s1 + $0xa4] ss:$8 sps:$4 sm:$0xff]   ;;  %v2227_v56 = vld [vmem:[%s3096_s1 + $0xa0] ss:$8 sps:$4 sm:$0xff]  }
  0x20   : > { %1427 = vmatprep.subr.bf16.mxu1 %v2177_v21  ;;  %1376 = vmatprep.mubr.bf16.mxu0 %v2243_v49  ;;  %v2225_v55 = vld [vmem:[%s3096_s1 + $0x1a4] ss:$8 sps:$4 sm:$0xff]   ;;  %v2228_v57 = vld [vmem:[%s3096_s1 + $0x1a0] ss:$8 sps:$4 sm:$0xff]   ;;  %v2229_v58 = vld [vmem:[%s3096_s1 + $0x94] ss:$8 sps:$4 sm:$0xff]  }
  0x21   : > { %v2231_v59 = vld [vmem:[%s3096_s1 + $0x194] ss:$8 sps:$4 sm:$0xff]   ;;  %v2233_v60 = vld [vmem:[%s3096_s1 + $0x90] ss:$8 sps:$4 sm:$0xff]   ;;  %v2235_v62 = vld [vmem:[%s3096_s1 + $0x84] ss:$8 sps:$4 sm:$0xff]  }
  0x22   : > { %1355 = vmatpush1.bf16.msra.mxu0 %v2179_v22  ;;  %v2234_v61 = vld [vmem:[%s3096_s1 + $0x190] ss:$8 sps:$4 sm:$0xff]   ;;  %v2237_v63 = vld [vmem:[%s3096_s1 + $0x184] ss:$8 sps:$4 sm:$0xff]   ;;  %v2239_v0 = vld [vmem:[%s3096_s1 + $0x80] ss:$8 sps:$4 sm:$0xff]  }
  0x23   : > { %1428 = vmatpush1.bf16.msra.mxu1 %v2180_v23  ;;  %1356 = vmatprep.subr.bf16.mxu0 %v2181_v24  ;;  %v2240_v1 = vld [vmem:[%s3096_s1 + $0x180] ss:$8 sps:$4 sm:$0xff]   ;;  %v2249_v2 = vld [vmem:[%s3096_s1 + $0x274] ss:$8 sps:$4 sm:$0xff]   ;;  %v2247_v6 = vld [vmem:[%s3096_s1 + $0x270] ss:$8 sps:$4 sm:$0xff]  }
  0x24   : > { %1429 = vmatprep.subr.bf16.mxu1 %v2183_v25  ;;  %v2252_v3 = vld [vmem:[%s3096_s1 + $0x374] ss:$8 sps:$4 sm:$0xff]   ;;  %v2241_v4 = vld [vmem:[%s2620_s17] ss:$36 sps:$4 sm:$0xff]   ;;  %v2244_v5 = vld [vmem:[%s2620_s17 + $0x8] ss:$36 sps:$4 sm:$0xff]  }
  0x25   : > { %v2250_v7 = vld [vmem:[%s3096_s1 + $0x370] ss:$8 sps:$4 sm:$0xff]   ;;  %v2255_v8 = vld [vmem:[%s3096_s1 + $0x264] ss:$8 sps:$4 sm:$0xff]   ;;  %v2253_v10 = vld [vmem:[%s3096_s1 + $0x260] ss:$8 sps:$4 sm:$0xff]  }
  0x26   : > { %1357 = vmatpush1.bf16.msra.mxu0 %v2185_v26  ;;  %v2258_v9 = vld [vmem:[%s3096_s1 + $0x364] ss:$8 sps:$4 sm:$0xff]   ;;  %v2256_v12 = vld [vmem:[%s3096_s1 + $0x360] ss:$8 sps:$4 sm:$0xff]   ;;  %v2261_v13 = vld [vmem:[%s3096_s1 + $0x254] ss:$8 sps:$4 sm:$0xff]  }
  0x27   : > { %1430 = vmatpush1.bf16.msra.mxu1 %v2186_v27  ;;  %1358 = vmatprep.subr.bf16.mxu0 %v2187_v28  ;;  %v2295_v11 = vld [vmem:[%s2620_s17 + $0x4c] ss:$36 sps:$4 sm:$0xff]   ;;  %v2264_v14 = vld [vmem:[%s3096_s1 + $0x354] ss:$8 sps:$4 sm:$0xff]   ;;  %v2265_v22 = vld [vmem:[%s3096_s1 + $0x240] ss:$8 sps:$4 sm:$0xff]  }
  0x28   : > { %1431 = vmatprep.subr.bf16.mxu1 %v2189_v29  ;;  %v2259_v15 = vld [vmem:[%s3096_s1 + $0x250] ss:$8 sps:$4 sm:$0xff]   ;;  %v2303_v17 = vld [vmem:[%s2620_s17 + $0x48] ss:$36 sps:$4 sm:$0xff]   ;;  %v2273_v25 = vld [vmem:[%s3096_s1 + $0x234] ss:$8 sps:$4 sm:$0xff]  }
  0x29   : > { %v2262_v16 = vld [vmem:[%s3096_s1 + $0x350] ss:$8 sps:$4 sm:$0xff]   ;;  %v2267_v20 = vld [vmem:[%s3096_s1 + $0x244] ss:$8 sps:$4 sm:$0xff]   ;;  %v2268_v24 = vld [vmem:[%s3096_s1 + $0x340] ss:$8 sps:$4 sm:$0xff]  }
  0x2a   : > { %1359 = vmatpush1.bf16.msra.mxu0 %v2191_v30  ;;  %v2304_v18 = vld [vmem:[%s2620_s17 + $0x54] ss:$36 sps:$4 sm:$0xff]   ;;  %v2270_v21 = vld [vmem:[%s3096_s1 + $0x344] ss:$8 sps:$4 sm:$0xff]   ;;  %v2322_v30 = vld [vmem:[%s2620_s17 + $0x9c] ss:$36 sps:$4 sm:$0xff]  }
  0x2b   : > { %1432 = vmatpush1.bf16.msra.mxu1 %v2192_v31  ;;  %1360 = vmatprep.subr.bf16.mxu0 %v2193_v32  ;;  %v2306_v19 = vld [vmem:[%s2620_s17 + $0x50] ss:$36 sps:$4 sm:$0xff]   ;;  %v2324_v31 = vld [vmem:[%s2620_s17 + $0x98] ss:$36 sps:$4 sm:$0xff]   ;;  %v2279_v32 = vld [vmem:[%s3096_s1 + $0x224] ss:$8 sps:$4 sm:$0xff]  }
  0x2c   : > { %1433 = vmatprep.subr.bf16.mxu1 %v2195_v33  ;;  %v2313_v23 = vld [vmem:[%s2620_s17 + $0x94] ss:$36 sps:$4 sm:$0xff]   ;;  %v2282_v33 = vld [vmem:[%s3096_s1 + $0x324] ss:$8 sps:$4 sm:$0xff]  }
  0x2d   : > { %v2276_v26 = vld [vmem:[%s3096_s1 + $0x334] ss:$8 sps:$4 sm:$0xff]   ;;  %v2271_v27 = vld [vmem:[%s3096_s1 + $0x230] ss:$8 sps:$4 sm:$0xff]  }
  0x2e   : > { %1361 = vmatpush2.bf16.msra.mxu0 %v2197_v34  ;;  %v2274_v28 = vld [vmem:[%s3096_s1 + $0x330] ss:$8 sps:$4 sm:$0xff]   ;;  %v2277_v34 = vld [vmem:[%s3096_s1 + $0x220] ss:$8 sps:$4 sm:$0xff]   ;;  %v2302_v49 = vld [vmem:[%s3096_s1 + $0x3f4] ss:$8 sps:$4 sm:$0xff]  }
  0x2f   : > { %1434 = vmatpush2.bf16.msra.mxu1 %v2198_v35  ;;  %1362 = vmatprep.subr.bf16.mxu0 %v2199_v36  ;;  %v2321_v29 = vld [vmem:[%s2620_s17 + $0x90] ss:$36 sps:$4 sm:$0xff]   ;;  %v2331_v35 = vld [vmem:[%s2620_s17 + $0xdc] ss:$36 sps:$4 sm:$0xff]  }
  0x30   : > { %1435 = vmatprep.subr.bf16.mxu1 %v2201_v37  ;;  %v2280_v36 = vld [vmem:[%s3096_s1 + $0x320] ss:$8 sps:$4 sm:$0xff]   ;;  %v2285_v37 = vld [vmem:[%s3096_s1 + $0x214] ss:$8 sps:$4 sm:$0xff]   ;;  %v2300_v51 = vld [vmem:[%s3096_s1 + $0x3f0] ss:$8 sps:$4 sm:$0xff]  }
  0x32   : > { %1363 = vmatpush2.bf16.msra.mxu0 %v2203_v38  ;;  %v2288_v38 = vld [vmem:[%s3096_s1 + $0x314] ss:$8 sps:$4 sm:$0xff]  }
  0x33   : > { %1436 = vmatpush2.bf16.msra.mxu1 %v2204_v39  ;;  %1364 = vmatprep.subr.bf16.mxu0 %v2205_v40  ;;  %v2283_v39 = vld [vmem:[%s3096_s1 + $0x210] ss:$8 sps:$4 sm:$0xff]  }
  0x34   : > { %1437 = vmatprep.subr.bf16.mxu1 %v2207_v41  ;;  %v2286_v40 = vld [vmem:[%s3096_s1 + $0x310] ss:$8 sps:$4 sm:$0xff]  }
  0x35   : > { %v2339_v41 = vld [vmem:[%s2620_s17 + $0xd8] ss:$36 sps:$4 sm:$0xff]  }
  0x36   : > { %1365 = vmatpush2.bf16.msra.mxu0 %v2209_v42  ;;  %v2340_v42 = vld [vmem:[%s2620_s17 + $0xe4] ss:$36 sps:$4 sm:$0xff]  }
  0x37   : > { %1438 = vmatpush2.bf16.msra.mxu1 %v2210_v43  ;;  %1366 = vmatprep.subr.bf16.mxu0 %v2211_v44  ;;  %v2342_v43 = vld [vmem:[%s2620_s17 + $0xe0] ss:$36 sps:$4 sm:$0xff]  }
  0x38   : > { %1439 = vmatprep.subr.bf16.mxu1 %v2213_v45  ;;  %v2291_v44 = vld [vmem:[%s3096_s1 + $0x204] ss:$8 sps:$4 sm:$0xff]  }
  0x39   : > { %v2294_v45 = vld [vmem:[%s3096_s1 + $0x304] ss:$8 sps:$4 sm:$0xff]  }
  0x3a   : > { %1367 = vmatpush2.bf16.msra.mxu0 %v2215_v46  ;;  %v2289_v46 = vld [vmem:[%s3096_s1 + $0x200] ss:$8 sps:$4 sm:$0xff]  }
  0x3b   : > { %1440 = vmatpush2.bf16.msra.mxu1 %v2216_v47  ;;  %1368 = vmatprep.subr.bf16.mxu0 %v2217_v48  ;;  %v2292_v47 = vld [vmem:[%s3096_s1 + $0x300] ss:$8 sps:$4 sm:$0xff]   ;;  %v2299_v48 = vld [vmem:[%s3096_s1 + $0x2f4] ss:$8 sps:$4 sm:$0xff]  }
  0x3c   : > { %1441 = vmatprep.subr.bf16.mxu1 %v2219_v50  ;;  %v2297_v50 = vld [vmem:[%s3096_s1 + $0x2f0] ss:$8 sps:$4 sm:$0xff]  }
  0x3e   : > { %1369 = vmatpush2.bf16.msra.mxu0 %v2221_v52  ;;  %v2309_v52 = vld [vmem:[%s3096_s1 + $0x2e4] ss:$8 sps:$4 sm:$0xff]  }
  0x3f   : > { %1442 = vmatpush2.bf16.msra.mxu1 %v2222_v53  ;;  %1370 = vmatprep.subr.bf16.mxu0 %v2223_v54  ;;  %v2312_v53 = vld [vmem:[%s3096_s1 + $0x3e4] ss:$8 sps:$4 sm:$0xff]   ;;  %v2363_v54 = vld [vmem:[%s2620_s17 + $0x14] ss:$36 sps:$4 sm:$0xff]  }
  0x40   : > { %1443 = vmatprep.subr.bf16.mxu1 %v2225_v55  ;;  %v2366_v55 = vld [vmem:[%s2620_s17 + $0x1c] ss:$36 sps:$4 sm:$0xff]  }
  0x42   : > { %1371 = vmatpush2.bf16.msra.mxu0 %v2227_v56  ;;  %v2307_v56 = vld [vmem:[%s3096_s1 + $0x2e0] ss:$8 sps:$4 sm:$0xff]  }
  0x43   : > { %1444 = vmatpush2.bf16.msra.mxu1 %v2228_v57  ;;  %1372 = vmatprep.subr.bf16.mxu0 %v2229_v58  ;;  %v2310_v57 = vld [vmem:[%s3096_s1 + $0x3e0] ss:$8 sps:$4 sm:$0xff]   ;;  %v2317_v58 = vld [vmem:[%s3096_s1 + $0x2d4] ss:$8 sps:$4 sm:$0xff]  }
  0x44   : > { %1445 = vmatprep.subr.bf16.mxu1 %v2231_v59  ;;  %v2320_v59 = vld [vmem:[%s3096_s1 + $0x3d4] ss:$8 sps:$4 sm:$0xff]  }
  0x46   : > { %1373 = vmatpush2.bf16.msra.mxu0 %v2233_v60  ;;  %v2315_v60 = vld [vmem:[%s3096_s1 + $0x2d0] ss:$8 sps:$4 sm:$0xff]  }
  0x47   : > { %1446 = vmatpush2.bf16.msra.mxu1 %v2234_v61  ;;  %1374 = vmatprep.subr.bf16.mxu0 %v2235_v62  ;;  %v2318_v61 = vld [vmem:[%s3096_s1 + $0x3d0] ss:$8 sps:$4 sm:$0xff]   ;;  %v2327_v62 = vld [vmem:[%s3096_s1 + $0x2c4] ss:$8 sps:$4 sm:$0xff]  }
  0x48   : > { %1447 = vmatprep.subr.bf16.mxu1 %v2237_v63  ;;  %v2330_v63 = vld [vmem:[%s3096_s1 + $0x3c4] ss:$8 sps:$4 sm:$0xff]  }
  0x4a   : > { %1375 = vmatpush2.bf16.msra.mxu0 %v2239_v0  ;;  %v2325_v0 = vld [vmem:[%s3096_s1 + $0x2c0] ss:$8 sps:$4 sm:$0xff]  }
  0x4b   : > { %1448 = vmatpush2.bf16.msra.mxu1 %v2240_v1  ;;  %1490 = vmatprep.subr.bf16.mxu0 %v2249_v2  ;;  %v2328_v1 = vld [vmem:[%s3096_s1 + $0x3c0] ss:$8 sps:$4 sm:$0xff]   ;;  %v2335_v2 = vld [vmem:[%s3096_s1 + $0x2b4] ss:$8 sps:$4 sm:$0xff]  }
  0x4c   : > { %1563 = vmatprep.subr.bf16.mxu1 %v2252_v3  ;;  %v2338_v3 = vld [vmem:[%s3096_s1 + $0x3b4] ss:$8 sps:$4 sm:$0xff]  }
  0x4d   : > { %1377 = vmatmul.mubr.bf16.vlgmr.msra.gmra.mxu0 %v2241_v4  ;;  %v2333_v4 = vld [vmem:[%s3096_s1 + $0x2b0] ss:$8 sps:$4 sm:$0xff]  }
  0x4e   : > { %1450 = vmatmul.mubr.bf16.vlgmr.msra.gmra.mxu1 %v2244_v5  ;;  %1491 = vmatpush1.bf16.msra.mxu0 %v2247_v6  ;;  %v2336_v5 = vld [vmem:[%s3096_s1 + $0x3b0] ss:$8 sps:$4 sm:$0xff]   ;;  %v2345_v6 = vld [vmem:[%s3096_s1 + $0x2a4] ss:$8 sps:$4 sm:$0xff]  }
  0x4f   : > { %1564 = vmatpush1.bf16.msra.mxu1 %v2250_v7  ;;  %1492 = vmatprep.subr.bf16.mxu0 %v2255_v8  ;;  %v2348_v7 = vld [vmem:[%s3096_s1 + $0x3a4] ss:$8 sps:$4 sm:$0xff]   ;;  %v2343_v8 = vld [vmem:[%s3096_s1 + $0x2a0] ss:$8 sps:$4 sm:$0xff]  }
  0x50   : > { %1565 = vmatprep.subr.bf16.mxu1 %v2258_v9  ;;  %1386 = vmatprep.mubr.bf16.mxu0 %v2295_v11  ;;  %v2346_v9 = vld [vmem:[%s3096_s1 + $0x3a0] ss:$8 sps:$4 sm:$0xff]   ;;  %v2354_v11 = vld [vmem:[%s3096_s1 + $0x394] ss:$8 sps:$4 sm:$0xff]  }
  0x51   : > { %1459 = vmatprep.mubr.bf16.mxu1 %v2304_v18  ;;  %v2369_v18 = vld [vmem:[%s3096_s1 + $0x474] ss:$8 sps:$4 sm:$0xff]  }
  0x52   : > { %1493 = vmatpush1.bf16.msra.mxu0 %v2253_v10  ;;  %v2351_v10 = vld [vmem:[%s3096_s1 + $0x294] ss:$8 sps:$4 sm:$0xff]  }
  0x53   : > { %1566 = vmatpush1.bf16.msra.mxu1 %v2256_v12  ;;  %1494 = vmatprep.subr.bf16.mxu0 %v2261_v13  ;;  %v2349_v12 = vld [vmem:[%s3096_s1 + $0x290] ss:$8 sps:$4 sm:$0xff]  }
  0x54   : > { %1567 = vmatprep.subr.bf16.mxu1 %v2264_v14  ;;  %v2352_v13 = vld [vmem:[%s3096_s1 + $0x390] ss:$8 sps:$4 sm:$0xff]   ;;  %v2357_v14 = vld [vmem:[%s3096_s1 + $0x284] ss:$8 sps:$4 sm:$0xff]  }
  0x55   : > { %1387 = vmatmul.mubr.bf16.gmra.mxu0 %v2303_v17  ;;  %v2358_v17 = vld [vmem:[%s3096_s1 + $0x380] ss:$8 sps:$4 sm:$0xff]  }
  0x56   : > { %1460 = vmatmul.mubr.bf16.gmra.mxu1 %v2306_v19  ;;  %1495 = vmatpush1.bf16.msra.mxu0 %v2259_v15  ;;  %v2360_v15 = vld [vmem:[%s3096_s1 + $0x384] ss:$8 sps:$4 sm:$0xff]   ;;  %v2361_v19 = vld [vmem:[%s2620_s17 + $0x10] ss:$36 sps:$4 sm:$0xff]  }
  0x57   : > { %1568 = vmatpush1.bf16.msra.mxu1 %v2262_v16  ;;  %1496 = vmatprep.subr.bf16.mxu0 %v2267_v20  ;;  %v2355_v16 = vld [vmem:[%s3096_s1 + $0x280] ss:$8 sps:$4 sm:$0xff]   ;;  %v2364_v20 = vld [vmem:[%s2620_s17 + $0x18] ss:$36 sps:$4 sm:$0xff]  }
  0x58   : > { %1569 = vmatprep.subr.bf16.mxu1 %v2270_v21  ;;  %1396 = vmatprep.mubr.bf16.mxu0 %v2313_v23  ;;  %v2367_v21 = vld [vmem:[%s3096_s1 + $0x470] ss:$8 sps:$4 sm:$0xff]   ;;  %v2373_v23 = vld [vmem:[%s2620_s17 + $0x5c] ss:$36 sps:$4 sm:$0xff]  }
  0x59   : > { %1469 = vmatprep.mubr.bf16.mxu1 %v2322_v30  ;;  %v2384_v30 = vld [vmem:[%s3096_s1 + $0x444] ss:$8 sps:$4 sm:$0xff]  }
  0x5a   : > { %1497 = vmatpush1.bf16.msra.mxu0 %v2265_v22  ;;  %v2372_v22 = vld [vmem:[%s3096_s1 + $0x464] ss:$8 sps:$4 sm:$0xff]  }
  0x5b   : > { %1570 = vmatpush1.bf16.msra.mxu1 %v2268_v24  ;;  %1498 = vmatprep.subr.bf16.mxu0 %v2273_v25  ;;  %v2375_v24 = vld [vmem:[%s2620_s17 + $0x64] ss:$36 sps:$4 sm:$0xff]  }
  0x5c   : > { %1571 = vmatprep.subr.bf16.mxu1 %v2276_v26  ;;  %v2370_v25 = vld [vmem:[%s3096_s1 + $0x460] ss:$8 sps:$4 sm:$0xff]   ;;  %v2381_v26 = vld [vmem:[%s3096_s1 + $0x454] ss:$8 sps:$4 sm:$0xff]  }
  0x5d   : > { %1397 = vmatmul.mubr.bf16.gmra.mxu0 %v2321_v29  ;;  %v2379_v29 = vld [vmem:[%s3096_s1 + $0x450] ss:$8 sps:$4 sm:$0xff]  }
  0x5e   : > { %1470 = vmatmul.mubr.bf16.gmra.mxu1 %v2324_v31  ;;  %1499 = vmatpush1.bf16.msra.mxu0 %v2271_v27  ;;  %v2377_v27 = vld [vmem:[%s2620_s17 + $0x58] ss:$36 sps:$4 sm:$0xff]   ;;  %v2385_v31 = vld [vmem:[%s2620_s17 + $0xa4] ss:$36 sps:$4 sm:$0xff]  }
  0x5f   : > { %1572 = vmatpush1.bf16.msra.mxu1 %v2274_v28  ;;  %1500 = vmatprep.subr.bf16.mxu0 %v2279_v32  ;;  %v2378_v28 = vld [vmem:[%s2620_s17 + $0x60] ss:$36 sps:$4 sm:$0xff]   ;;  %v2387_v32 = vld [vmem:[%s2620_s17 + $0xac] ss:$36 sps:$4 sm:$0xff]  }
  0x60   : > { %1573 = vmatprep.subr.bf16.mxu1 %v2282_v33  ;;  %1406 = vmatprep.mubr.bf16.mxu0 %v2331_v35  ;;  %v2382_v33 = vld [vmem:[%s3096_s1 + $0x440] ss:$8 sps:$4 sm:$0xff]  }
  0x61   : > { %1479 = vmatprep.mubr.bf16.mxu1 %v2340_v42  ;;  %v2389_v35 = vld [vmem:[%s2620_s17 + $0xa0] ss:$36 sps:$4 sm:$0xff]   ;;  %v2405_v42 = vld [vmem:[%s3096_s1 + $0x414] ss:$8 sps:$4 sm:$0xff]  }
  0x62   : > { %1501 = vmatpush1.bf16.msra.mxu0 %v2277_v34  ;;  %v2393_v34 = vld [vmem:[%s3096_s1 + $0x434] ss:$8 sps:$4 sm:$0xff]  }
  0x63   : > { %1574 = vmatpush1.bf16.msra.mxu1 %v2280_v36  ;;  %1502 = vmatprep.subr.bf16.mxu0 %v2285_v37  ;;  %v2390_v36 = vld [vmem:[%s2620_s17 + $0xa8] ss:$36 sps:$4 sm:$0xff]   ;;  %v2391_v37 = vld [vmem:[%s3096_s1 + $0x430] ss:$8 sps:$4 sm:$0xff]  }
  0x64   : > { %1575 = vmatprep.subr.bf16.mxu1 %v2288_v38  ;;  %v2396_v38 = vld [vmem:[%s3096_s1 + $0x424] ss:$8 sps:$4 sm:$0xff]  }
  0x65   : > { %1407 = vmatmul.mubr.bf16.gmra.mxu0 %v2339_v41  ;;  %v2394_v41 = vld [vmem:[%s3096_s1 + $0x420] ss:$8 sps:$4 sm:$0xff]  }
  0x66   : > { %1480 = vmatmul.mubr.bf16.gmra.mxu1 %v2342_v43  ;;  %1503 = vmatpush1.bf16.msra.mxu0 %v2283_v39  ;;  %v2397_v39 = vld [vmem:[%s2620_s17 + $0xec] ss:$36 sps:$4 sm:$0xff]  }
  0x67   : > { %1576 = vmatpush1.bf16.msra.mxu1 %v2286_v40  ;;  %1504 = vmatprep.subr.bf16.mxu0 %v2291_v44  ;;  %v2399_v40 = vld [vmem:[%s2620_s17 + $0xf4] ss:$36 sps:$4 sm:$0xff]   ;;  %v2401_v43 = vld [vmem:[%s2620_s17 + $0xe8] ss:$36 sps:$4 sm:$0xff]  }
  0x68   : > { %1577 = vmatprep.subr.bf16.mxu1 %v2294_v45  ;;  %1522 = vmatprep.mubr.bf16.mxu0 %v2363_v54  ;;  %v2402_v44 = vld [vmem:[%s2620_s17 + $0xf0] ss:$36 sps:$4 sm:$0xff]  }
  0x69   : > { %1595 = vmatprep.mubr.bf16.mxu1 %v2366_v55  ;;  %v2403_v45 = vld [vmem:[%s3096_s1 + $0x410] ss:$8 sps:$4 sm:$0xff]  }
  0x6a   : > { %1505 = vmatpush1.bf16.msra.mxu0 %v2289_v46  ;;  %v2408_v46 = vld [vmem:[%s3096_s1 + $0x404] ss:$8 sps:$4 sm:$0xff]  }
  0x6b   : > { %1578 = vmatpush1.bf16.msra.mxu1 %v2292_v47  ;;  %1506 = vmatprep.subr.bf16.mxu0 %v2299_v48  ;;  %v2406_v47 = vld [vmem:[%s3096_s1 + $0x400] ss:$8 sps:$4 sm:$0xff]   ;;  %v2437_v48 = vmov 0  }
  0x6c   : > { %1579 = vmatprep.subr.bf16.mxu1 %v2302_v49  ;;  %v2409_v49 = vld [vmem:[%s2620_s17 + $0x20] ss:$36 sps:$4 sm:$0xff]  }
  0x6e   : > { %1507 = vmatpush2.bf16.msra.mxu0 %v2297_v50  ;;  %v2410_v50 = vld [vmem:[%s2620_s17 + $0xb0] ss:$36 sps:$4 sm:$0xff]  }
  0x6f   : > { %1580 = vmatpush2.bf16.msra.mxu1 %v2300_v51  ;;  %1508 = vmatprep.subr.bf16.mxu0 %v2309_v52  ;;  %v2411_v51 = vld [vmem:[%s2620_s17 + $0x68] ss:$36 sps:$4 sm:$0xff]   ;;  %v2412_v52 = vld [vmem:[%s2620_s17 + $0xf8] ss:$36 sps:$4 sm:$0xff]  }
  0x70   : > { %1581 = vmatprep.subr.bf16.mxu1 %v2312_v53 }
  0x72   : > { %1509 = vmatpush2.bf16.msra.mxu0 %v2307_v56 }
  0x73   : > { %1582 = vmatpush2.bf16.msra.mxu1 %v2310_v57  ;;  %1510 = vmatprep.subr.bf16.mxu0 %v2317_v58 }
  0x74   : > { %1583 = vmatprep.subr.bf16.mxu1 %v2320_v59 }
  0x76   : > { %1511 = vmatpush2.bf16.msra.mxu0 %v2315_v60 }
  0x77   : > { %1584 = vmatpush2.bf16.msra.mxu1 %v2318_v61  ;;  %1512 = vmatprep.subr.bf16.mxu0 %v2327_v62 }
  0x78   : > { %1585 = vmatprep.subr.bf16.mxu1 %v2330_v63 }
  0x7a   : > { %1513 = vmatpush2.bf16.msra.mxu0 %v2325_v0 }
  0x7b   : > { %1586 = vmatpush2.bf16.msra.mxu1 %v2328_v1  ;;  %1514 = vmatprep.subr.bf16.mxu0 %v2335_v2 }
  0x7c   : > { %1587 = vmatprep.subr.bf16.mxu1 %v2338_v3 }
  0x7e   : > { %1515 = vmatpush2.bf16.msra.mxu0 %v2333_v4 }
  0x7f   : > { %1588 = vmatpush2.bf16.msra.mxu1 %v2336_v5  ;;  %1516 = vmatprep.subr.bf16.mxu0 %v2345_v6 }
  0x80   : > { %1589 = vmatprep.subr.bf16.mxu1 %v2348_v7 }
  0x82   : > { %1517 = vmatpush2.bf16.msra.mxu0 %v2343_v8 }
  0x83   : > { %1590 = vmatpush2.bf16.msra.mxu1 %v2346_v9  ;;  %1518 = vmatprep.subr.bf16.mxu0 %v2351_v10 }
  0x84   : > { %1591 = vmatprep.subr.bf16.mxu1 %v2354_v11 }
  0x86   : > { %1519 = vmatpush2.bf16.msra.mxu0 %v2349_v12 }
  0x87   : > { %1592 = vmatpush2.bf16.msra.mxu1 %v2352_v13  ;;  %1520 = vmatprep.subr.bf16.mxu0 %v2357_v14 }
  0x88   : > { %1593 = vmatprep.subr.bf16.mxu1 %v2360_v15 }
  0x8a   : > { %1521 = vmatpush2.bf16.msra.mxu0 %v2355_v16 }
  0x8b   : > { %1594 = vmatpush2.bf16.msra.mxu1 %v2358_v17  ;;  %1636 = vmatprep.subr.bf16.mxu0 %v2369_v18 }
  0x8c   : > { %2103 = vmatprep.subr.bf16.mxu1 %v2369_v18 }
  0x8d   : > { %1523 = vmatmul.mubr.bf16.vlgmr.msra.gmra.mxu0 %v2361_v19 }
  0x8e   : > { %1596 = vmatmul.mubr.bf16.vlgmr.msra.gmra.mxu1 %v2364_v20  ;;  %1637 = vmatpush1.bf16.msra.mxu0 %v2367_v21 }
  0x8f   : > { %2111 = vmatpush1.bf16.msra.mxu1 %v2367_v21  ;;  %1638 = vmatprep.subr.bf16.mxu0 %v2372_v22 }
  0x90   : > { %2104 = vmatprep.subr.bf16.mxu1 %v2372_v22  ;;  %1532 = vmatprep.mubr.bf16.mxu0 %v2373_v23 }
  0x91   : > { %1605 = vmatprep.mubr.bf16.mxu1 %v2375_v24 }
  0x92   : > { %1639 = vmatpush1.bf16.msra.mxu0 %v2370_v25 }
  0x93   : > { %2112 = vmatpush1.bf16.msra.mxu1 %v2370_v25  ;;  %1640 = vmatprep.subr.bf16.mxu0 %v2381_v26 }
  0x94   : > { %2105 = vmatprep.subr.bf16.mxu1 %v2381_v26 }
  0x95   : > { %1533 = vmatmul.mubr.bf16.gmra.mxu0 %v2377_v27  ;;  %v430_v27 = vlaneseq }
  0x96   : > { %1606 = vmatmul.mubr.bf16.gmra.mxu1 %v2378_v28  ;;  %1641 = vmatpush1.bf16.msra.mxu0 %v2379_v29 }
  0x97   : > { %2113 = vmatpush1.bf16.msra.mxu1 %v2379_v29  ;;  %1642 = vmatprep.subr.bf16.mxu0 %v2384_v30 }
  0x98   : > { %2106 = vmatprep.subr.bf16.mxu1 %v2384_v30  ;;  %1542 = vmatprep.mubr.bf16.mxu0 %v2385_v31 }
  0x99   : > { %1615 = vmatprep.mubr.bf16.mxu1 %v2387_v32  ;;  %v431_v32 = vshrl.u32 %v430_v27, 7 }
  0x9a   : > { %1643 = vmatpush1.bf16.msra.mxu0 %v2382_v33 }
  0x9b   : > { %2114 = vmatpush1.bf16.msra.mxu1 %v2382_v33  ;;  %1644 = vmatprep.subr.bf16.mxu0 %v2393_v34 }
  0x9c   : > { %2107 = vmatprep.subr.bf16.mxu1 %v2393_v34 }
  0x9d   : > { %1543 = vmatmul.mubr.bf16.gmra.mxu0 %v2389_v35 }
  0x9e   : > { %1616 = vmatmul.mubr.bf16.gmra.mxu1 %v2390_v36  ;;  %1645 = vmatpush1.bf16.msra.mxu0 %v2391_v37 }
  0x9f   : > { %2115 = vmatpush1.bf16.msra.mxu1 %v2391_v37  ;;  %1646 = vmatprep.subr.bf16.mxu0 %v2396_v38  ;;  %v432_v37 = vsub.s32 0, %v431_v32 }
  0xa0   : > { %2108 = vmatprep.subr.bf16.mxu1 %v2396_v38  ;;  %1552 = vmatprep.mubr.bf16.mxu0 %v2397_v39  ;;  %v428_v38 = vld [vmem:[%s3097_s2] sm:$0x3]  ;;  %v436_v39 = vsub.s32 1, %v431_v32 }
  0xa1   : > { %1625 = vmatprep.mubr.bf16.mxu1 %v2399_v40 }
  0xa2   : > { %1647 = vmatpush1.bf16.msra.mxu0 %v2394_v41 }
  0xa3   : > { %2116 = vmatpush1.bf16.msra.mxu1 %v2394_v41  ;;  %1648 = vmatprep.subr.bf16.mxu0 %v2405_v42 }
  0xa4   : > { %2109 = vmatprep.subr.bf16.mxu1 %v2405_v42 }
  0xa5   : > { %1553 = vmatmul.mubr.bf16.gmra.mxu0 %v2401_v43 }
  0xa6   : > { %1626 = vmatmul.mubr.bf16.gmra.mxu1 %v2402_v44  ;;  %1649 = vmatpush1.bf16.msra.mxu0 %v2403_v45  ;;  %v433_v44 = vrot.slane %v428_v38, %v432_v37 }
  0xa7   : > { %2117 = vmatpush1.bf16.msra.mxu1 %v2403_v45  ;;  %1650 = vmatprep.subr.bf16.mxu0 %v2408_v46  ;;  %v437_v45 = vrot.slane %v428_v38, %v436_v39 }
  0xa8   : > { %2110 = vmatprep.subr.bf16.mxu1 %v2408_v46  ;;  %1668 = vmatprep.mubr.bf16.mxu0 %v2437_v48 }
  0xa9   : > { %1688 = vmatprep.mubr.bf16.mxu1 %v2437_v48 }
  0xaa   : > { %1651 = vmatpush1.bf16.msra.mxu0 %v2406_v47 }
  0xab   : > { %2118 = vmatpush1.bf16.msra.mxu1 %v2406_v47 }
  0xad   : > { %1669 = vmatmul.mubr.bf16.vlgmr.msra.gmra.mxu0 %v2409_v49 }
  0xae   : > { %1689 = vmatmul.mubr.bf16.vlgmr.msra.gmra.mxu1 %v2410_v50  ;;  %1678 = vmatprep.mubr.bf16.mxu0 %v2437_v48 }
  0xaf   : > { %1698 = vmatprep.mubr.bf16.mxu1 %v2437_v48 }
  0xb5   : > { %1679 = vmatmul.mubr.bf16.gmra.mxu0 %v2411_v51 }
  0xb6   : > { %1699 = vmatmul.mubr.bf16.gmra.mxu1 %v2412_v52 }
 0x10d   : > { %v1378_v53 = vpop.f32.mrf.mxu0 }
 0x10e   : > { %v2955_v54 = vpop.f32.mrf.mxu1  ;;  %v1379_v50 = vadd.f32 %v1378_v53, %v433_v44 }
 0x10f   : > { %v1380_v55 = vpop.f32.mrf.mxu0 }
 0x110   : > { %v2957_v56 = vpop.f32.mrf.mxu1  ;;  %v1381_v52 = vadd.f32 %v1380_v55, %v437_v45  ;;  %v1452_v37 = vadd.f32 %v2955_v54, %v1379_v50 }
 0x111   : > { %v1382_v57 = vpop.f32.mrf.mxu0 }
 0x112   : > { %v2959_v58 = vpop.f32.mrf.mxu1  ;;  %v1383_v27 = vadd.f32 %v1382_v57, %v433_v44  ;;  %v1454_v53 = vadd.f32 %v2957_v56, %v1381_v52 }
 0x113   : > { %v1384_v59 = vpop.f32.mrf.mxu0 }
 0x114   : > { %v2961_v60 = vpop.f32.mrf.mxu1  ;;  %v1456_v55 = vadd.f32 %v2959_v58, %v1383_v27 }
 0x115   : > { %v1388_v61 = vpop.f32.mrf.mxu0 }
 0x116   : > { %v2963_v62 = vpop.f32.mrf.mxu1 }
 0x117   : > { %v1390_v63 = vpop.f32.mrf.mxu0 }
 0x118   : > { %v2965_v0 = vpop.f32.mrf.mxu1 }
 0x119   : > { %v1392_v1 = vpop.f32.mrf.mxu0 }
 0x11a   : > { %v2967_v2 = vpop.f32.mrf.mxu1  ;;  %v1393_v38 = vadd.f32 %v1392_v1, %v433_v44 }
 0x11b   : > { %v1394_v3 = vpop.f32.mrf.mxu0 }
 0x11c   : > { %v2969_v4 = vpop.f32.mrf.mxu1  ;;  %v1395_v39 = vadd.f32 %v1394_v3, %v437_v45 }
 0x11d   : > { %v1398_v5 = vpop.f32.mrf.mxu0 }
 0x11e   : > { %v1471_v6 = vpop.f32.mrf.mxu1  ;;  %v1399_v51 = vadd.f32 %v1398_v5, %v433_v44 }
 0x11f   : > { %v1400_v7 = vpop.f32.mrf.mxu0 }
 0x120   : > { %v2971_v8 = vpop.f32.mrf.mxu1  ;;  %v1401_v32 = vadd.f32 %v1400_v7, %v437_v45 }
 0x121   : > { %v1402_v9 = vpop.f32.mrf.mxu0 }
 0x122   : > { %v2973_v10 = vpop.f32.mrf.mxu1  ;;  %v1403_v57 = vadd.f32 %v1402_v9, %v433_v44  ;;  %v1468_v9 = vadd.f32 %v2969_v4, %v1395_v39 }
 0x123   : > { %v1404_v11 = vpop.f32.mrf.mxu0 }
 0x124   : > { %v2975_v12 = vpop.f32.mrf.mxu1  ;;  %v1405_v5 = vadd.f32 %v1404_v11, %v437_v45 }
 0x125   : > { %v1408_v13 = vpop.f32.mrf.mxu0 }
 0x126   : > { %v2977_v14 = vpop.f32.mrf.mxu1 }
 0x127   : > { %v2979_v15 = vpop.f32.mrf.mxu0 }
 0x128   : > { %v2981_v16 = vpop.f32.mrf.mxu1  ;;  %v1411_v56 = vadd.f32 %v2979_v15, %v437_v45 }
 0x129   : > { %v2983_v17 = vpop.f32.mrf.mxu0 }
 0x12a   : > { %v2985_v18 = vpop.f32.mrf.mxu1 }
 0x12b   : > { %v2987_v19 = vpop.f32.mrf.mxu0 }
 0x12c   : > { %v2989_v20 = vpop.f32.mrf.mxu1 }
 0x14d   : > { %v1524_v21 = vpop.f32.mrf.mxu0 }
 0x14e   : > { %v2991_v22 = vpop.f32.mrf.mxu1 }
 0x14f   : > { %v1526_v23 = vpop.f32.mrf.mxu0 }
 0x150   : > { %v2993_v24 = vpop.f32.mrf.mxu1  ;;  %v1527_v11 = vadd.f32 %v1526_v23, %v1454_v53  ;;  %v1484_v23 = vadd.f32 %v2981_v16, %v1411_v56 }
 0x151   : > { %v2995_v25 = vpop.f32.mrf.mxu0 }
 0x152   : > { %v2997_v26 = vpop.f32.mrf.mxu1 }
 0x153   : > { %3099 = vst [vmem:[#allocation2_spill] sm:$0xff] %v2997_v26  ;;  %v2999_v28 = vpop.f32.mrf.mxu0  ;;  %v1472_v26 = vadd.f32 %v1471_v6, %v1399_v51  ;;  %v1466_v6 = vadd.f32 %v2967_v2, %v1393_v38  ;;  %v1529_v2 = vadd.f32 %v2995_v25, %v1456_v55 }
 0x154   : > { %v3001_v29 = vpop.f32.mrf.mxu1 }
 0x155   : > { %3100 = vst [vmem:[#allocation3_spill] sm:$0xff] %v3001_v29  ;;  %v3003_v30 = vpop.f32.mrf.mxu0 }
 0x156   : > { %v3005_v31 = vpop.f32.mrf.mxu1 }
 0x157   : > { %3101 = vst [vmem:[#allocation4_spill] sm:$0xff] %v3005_v31  ;;  %v3007_v33 = vpop.f32.mrf.mxu0 }
 0x158   : > { %v3009_v34 = vpop.f32.mrf.mxu1 }
 0x159   : > { %3102 = vst [vmem:[#allocation5_spill] sm:$0xff] %v3009_v34  ;;  %v3011_v35 = vpop.f32.mrf.mxu0  ;;  %v1389_v34 = vadd.f32 %v1388_v61, %v433_v44  ;;  %v1409_v61 = vadd.f32 %v1408_v13, %v433_v44  ;;  %v1476_v13 = vadd.f32 %v2973_v10, %v1403_v57 }
 0x15a   : > { %3103 = vst [vmem:[#allocation6_spill] sm:$0xff] %v3011_v35  ;;  %v3013_v36 = vpop.f32.mrf.mxu1 }
 0x15b   : > { %3104 = vst [vmem:[#allocation7_spill] sm:$0xff] %v3013_v36  ;;  %v3018_v40 = vpop.f32.mrf.mxu0  ;;  %v1462_v54 = vadd.f32 %v2963_v62, %v1389_v34  ;;  %v1415_v62 = vadd.f32 %v2987_v19, %v437_v45  ;;  %v1482_v15 = vadd.f32 %v2977_v14, %v1409_v61 }
 0x15c   : > { %3105 = vst [vmem:[#allocation8_spill] sm:$0xff] %v3018_v40  ;;  %v3020_v41 = vpop.f32.mrf.mxu1  ;;  %v1385_v40 = vadd.f32 %v1384_v59, %v437_v45  ;;  %v1474_v59 = vadd.f32 %v2971_v8, %v1401_v32  ;;  %v3111_v51 = vld [vmem:[#allocation3_spill] sm:$0xff] }
 0x15d   : > { %3106 = vst [vmem:[#allocation9_spill] sm:$0xff] %v3020_v41  ;;  %v1544_v42 = vpop.f32.mrf.mxu0  ;;  %v1391_v41 = vadd.f32 %v1390_v63, %v437_v45  ;;  %v1525_v63 = vadd.f32 %v1524_v21, %v1452_v37  ;;  %v1478_v21 = vadd.f32 %v2975_v12, %v1405_v5  ;;  %v1535_v12 = vadd.f32 %v3003_v30, %v1462_v54 }
 0x15e   : > { %v1617_v43 = vpop.f32.mrf.mxu1  ;;  %v1545_v7 = vadd.f32 %v1544_v42, %v1472_v26  ;;  %v1488_v25 = vadd.f32 %v2989_v20, %v1415_v62 }
 0x15f   : > { %v1546_v46 = vpop.f32.mrf.mxu0  ;;  %v1464_v1 = vadd.f32 %v2965_v0, %v1391_v41  ;;  %v1598_v34 = vadd.f32 %v2991_v22, %v1525_v63  ;;  %v1600_v41 = vadd.f32 %v2993_v24, %v1527_v11 }
 0x160   : > { %v1619_v47 = vpop.f32.mrf.mxu1  ;;  %v1547_v8 = vadd.f32 %v1546_v46, %v1474_v59  ;;  %v1618_v4 = vadd.f32 %v1617_v43, %v1545_v7  ;;  %v3114_v53 = vld [vmem:[#allocation5_spill] sm:$0xff] }
 0x161   : > { %v1548_v48 = vpop.f32.mrf.mxu0  ;;  %v1537_v43 = vadd.f32 %v3007_v33, %v1464_v1  ;;  %v3116_v63 = vld [vmem:[#allocation6_spill] sm:$0xff] }
 0x162   : > { %v3022_v49 = vpop.f32.mrf.mxu1  ;;  %v1620_v42 = vadd.f32 %v1619_v47, %v1547_v8  ;;  %v3112_v47 = vld [vmem:[#allocation4_spill] sm:$0xff]  ;;  %v1539_v7 = vadd.f32 %v3116_v63, %v1466_v6 }
 0x163   : > { %3107 = vst [vmem:[#allocation10_spill] sm:$0xff] %v3022_v49  ;;  %v1550_v36 = vpop.f32.mrf.mxu0  ;;  %v1608_v52 = vadd.f32 %v3112_v47, %v1535_v12  ;;  %v1610_v55 = vadd.f32 %v3114_v53, %v1537_v43  ;;  %v3118_v8 = vld [vmem:[#allocation8_spill] sm:$0xff] }
 0x164   : > { %v3024_v35 = vpop.f32.mrf.mxu1  ;;  %v1551_v16 = vadd.f32 %v1550_v36, %v1478_v21 }
 0x165   : > { %3108 = vst [vmem:[#allocation11_spill] sm:$0xff] %v3024_v35  ;;  %v1554_v31 = vpop.f32.mrf.mxu0 }
 0x166   : > { %v3026_v29 = vpop.f32.mrf.mxu1  ;;  %v1555_v46 = vadd.f32 %v1554_v31, %v1482_v15 }
 0x167   : > { %3109 = vst [vmem:[#allocation12_spill] sm:$0xff] %v3026_v29  ;;  %v1556_v49 = vpop.f32.mrf.mxu0  ;;  %v1458_v29 = vadd.f32 %v2961_v60, %v1385_v40  ;;  %v1413_v60 = vadd.f32 %v2983_v17, %v433_v44  ;;  %v1549_v17 = vadd.f32 %v1548_v48, %v1476_v13  ;;  %v1541_v13 = vadd.f32 %v3118_v8, %v1468_v9 }
 0x168   : > { %v3031_v35 = vpop.f32.mrf.mxu1 }
 0x169   : > { %v1558_v3 = vpop.f32.mrf.mxu0  ;;  %v1531_v10 = vadd.f32 %v2999_v28, %v1458_v29  ;;  %v1486_v22 = vadd.f32 %v2985_v18, %v1413_v60  ;;  %v3110_v29 = vld [vmem:[#allocation2_spill] sm:$0xff]  ;;  %v1557_v18 = vadd.f32 %v1556_v49, %v1484_v23 }
 0x16a   : > { %v3038_v58 = vpop.f32.mrf.mxu1  ;;  %v1602_v30 = vadd.f32 %v3110_v29, %v1529_v2  ;;  %v3113_v27 = vld [vmem:[#allocation10_spill] sm:$0xff]  ;;  %v3120_v29 = vld [vmem:[#allocation9_spill] sm:$0xff] }
 0x16b   : > { %v1560_v0 = vpop.f32.mrf.mxu0  ;;  %v1604_v24 = vadd.f32 %v3111_v51, %v1531_v10  ;;  %v1622_v32 = vadd.f32 %v3113_v27, %v1549_v17  ;;  %v1559_v21 = vadd.f32 %v1558_v3, %v1486_v22  ;;  %v1630_v2 = vadd.f32 %v3031_v35, %v1557_v18 }
 0x16c   : > { %v3046_v26 = vpop.f32.mrf.mxu1  ;;  %v3115_v57 = vld [vmem:[#allocation11_spill] sm:$0xff] }
 0x16d   : > { %v1670_v40 = vpop.f32.mrf.mxu0  ;;  %v1624_v31 = vadd.f32 %v3115_v57, %v1551_v16 }
 0x16e   : > { %v1690_v19 = vpop.f32.mrf.mxu1  ;;  %v1671_v44 = vadd.f32 %v1670_v40, %v1598_v34  ;;  %v3117_v54 = vld [vmem:[#allocation12_spill] sm:$0xff] }
 0x16f   : > { %v1691_v14 = vadd.f32 %v1690_v19, %v1618_v4  ;;  %v1672_v45 = vpop.f32.mrf.mxu0  ;;  %v1628_v1 = vadd.f32 %v3117_v54, %v1555_v46  ;;  %v1561_v4 = vadd.f32 %v1560_v0, %v1488_v25 }
 0x170   : > { %v1692_v28 = vpop.f32.mrf.mxu1  ;;  %v1673_v48 = vadd.f32 %v1672_v45, %v1600_v41  ;;  %v1709_v38 = vmax.f32 %v1671_v44, 0.0 }
 0x171   : > { %v1693_v50 = vadd.f32 %v1692_v28, %v1620_v42  ;;  %v1674_v37 = vpop.f32.mrf.mxu0  ;;  %v1717_v33 = vmax.f32 %v1691_v14, 0.0  ;;  %v3119_v42 = vld [vmem:[#allocation7_spill] sm:$0xff]  ;;  %v1632_v14 = vadd.f32 %v3038_v58, %v1559_v21  ;;  %v1634_v46 = vadd.f32 %v3046_v26, %v1561_v4 }
 0x172   : > { %v1694_v20 = vpop.f32.mrf.mxu1  ;;  %v1710_v36 = vmax.f32 %v1673_v48, 0.0  ;;  %v1675_v5 = vadd.f32 %v1674_v37, %v1602_v30  ;;  %v1612_v44 = vadd.f32 %v3119_v42, %v1539_v7  ;;  %v1614_v30 = vadd.f32 %v3120_v29, %v1541_v13 }
 0x173   : > { %v1718_v39 = vmax.f32 %v1693_v50, 0.0  ;;  %v1695_v59 = vadd.f32 %v1694_v20, %v1622_v32  ;;  %v1676_v49 = vpop.f32.mrf.mxu0 }
 0x174   : > { %v1696_v61 = vpop.f32.mrf.mxu1  ;;  %v2095_v56 = vpack.c.bf16 %v1710_v36, %v1709_v38  ;;  %v1677_v60 = vadd.f32 %v1676_v49, %v1604_v24  ;;  %v1711_v12 = vmax.f32 %v1675_v5, 0.0 }
 0x175   : > { %v2099_v11 = vpack.c.bf16 %v1718_v39, %v1717_v33  ;;  %v1697_v62 = vadd.f32 %v1696_v61, %v1624_v31  ;;  %v1680_v15 = vpop.f32.mrf.mxu0  ;;  %v1719_v6 = vmax.f32 %v1695_v59, 0.0 }
 0x176   : > { %v1700_v34 = vpop.f32.mrf.mxu1  ;;  %1773 = vst [vmem:[%s3068_s21] sm:$0xff] %v2095_v56  ;;  %v1681_v23 = vadd.f32 %v1680_v15, %v1608_v52  ;;  %v1712_v17 = vmax.f32 %v1677_v60, 0.0 }
 0x177   : > { %1777 = vst [vmem:[%s3068_s21 + $0x20] sm:$0xff] %v2099_v11  ;;  %v1701_v10 = vadd.f32 %v1700_v34, %v1628_v1  ;;  %v1720_v40 = vmax.f32 %v1697_v62, 0.0  ;;  %v1682_v19 = vpop.f32.mrf.mxu0 }
 0x178   : > { %v1702_v41 = vpop.f32.mrf.mxu1  ;;  %v1683_v3 = vadd.f32 %v1682_v19, %v1610_v55  ;;  %v2096_v35 = vpack.c.bf16 %v1712_v17, %v1711_v12  ;;  %v1713_v43 = vmax.f32 %v1681_v23, 0.0 }
 0x179   : > { %v1703_v9 = vadd.f32 %v1702_v41, %v1630_v2  ;;  %v2100_v0 = vpack.c.bf16 %v1720_v40, %v1719_v6  ;;  %v1684_v22 = vpop.f32.mrf.mxu0  ;;  %v1721_v16 = vmax.f32 %v1701_v10, 0.0 }
 0x17a   : > { %v1704_v25 = vpop.f32.mrf.mxu1  ;;  %v1714_v45 = vmax.f32 %v1683_v3, 0.0  ;;  %1774 = vst [vmem:[%s3068_s21 + $0x8] sm:$0xff] %v2096_v35  ;;  %v1685_v48 = vadd.f32 %v1684_v22, %v1612_v44 }
 0x17b   : > { %v1722_v28 = vmax.f32 %v1703_v9, 0.0  ;;  %1778 = vst [vmem:[%s3068_s21 + $0x28] sm:$0xff] %v2100_v0  ;;  %v1705_v50 = vadd.f32 %v1704_v25, %v1632_v14  ;;  %v1686_v58 = vpop.f32.mrf.mxu0 }
 0x17c   : > { %v1706_v51 = vpop.f32.mrf.mxu1  ;;  %v2097_v24 = vpack.c.bf16 %v1714_v45, %v1713_v43  ;;  %v1687_v52 = vadd.f32 %v1686_v58, %v1614_v30  ;;  %v1715_v32 = vmax.f32 %v1685_v48, 0.0 }
 0x17d   : > { %v2101_v47 = vpack.c.bf16 %v1722_v28, %v1721_v16  ;;  %v1707_v27 = vadd.f32 %v1706_v51, %v1634_v46  ;;  %v1723_v18 = vmax.f32 %v1705_v50, 0.0 }
 0x17e   : > { %1775 = vst [vmem:[%s3068_s21 + $0x10] sm:$0xff] %v2097_v24  ;;  %v1716_v37 = vmax.f32 %v1687_v52, 0.0 }
 0x17f   : > { %1779 = vst [vmem:[%s3068_s21 + $0x30] sm:$0xff] %v2101_v47  ;;  %v1724_v20 = vmax.f32 %v1707_v27, 0.0 }
 0x180   : > { %v2098_v38 = vpack.c.bf16 %v1716_v37, %v1715_v32 }
 0x181   : > { %v2102_v26 = vpack.c.bf16 %v1724_v20, %v1723_v18 }
 0x182   : > { %1776 = vst [vmem:[%s3068_s21 + $0x18] sm:$0xff] %v2098_v38 }
 0x183   : > { %1780 = vst [vmem:[%s3068_s21 + $0x38] sm:$0xff] %v2102_v26 }
 0x184 PF: > { %s13_s14 = sadd.s32 1, %s2435_s14   ;;  %s3121_s12 = smov %s2431_s13 }
 0x185   : > { %p10_p5 = scmp.ge.s32.totalorder %s13_s14, 4   ;;  %s3122_s13 = smov %s3124_s15 }
 0x187   :  { %12 = sbr.rel (!%p10_p5) target bundleno = 2 (0x2), region = 68 }

// kernel: kappa_denoiser_forward.14
= control target key start
LH: loop header
LB: loop body
LE: loop exit
PB: predicated region body
PF: predicated region fallthrough
CT: control target
= control target key end

     0   :  { %s2668_s12 = smov 0   ;;  %s2670_s13 = smov 0   ;;  %s3194_s0 = inlined_call_operand.vmem [shape: bf16[512,576], index: 0, kind: input, shape index: {}]   ;;  %s3195_s1 = inlined_call_operand.vmem [shape: bf16[576,128], index: 1, kind: input, shape index: {}]   ;;  %s3196_s2 = inlined_call_operand.vmem [shape: f32[1,128], index: 2, kind: input, shape index: {}]   ;;  %s3197_s3 = inlined_call_operand.vmem [shape: bf16[512,128], index: 3, kind: output, shape index: {}]  }
   0x1   :  { %s2672_s14 = smov 0  }
   0x2 LB: > { %s25_s15 = sadd.s32 1, %s2642_s13  ;;  %p1852_p0 = scmp.ge.s32.totalorder %s2646_s14, 1  ;;  %s2646_s14 = sphi %s2672_s14, %s13_s14   ;;  %s2642_s13 = sphi %s2670_s13, %s3243_s13   ;;  %s2638_s12 = sphi %s2668_s12, %s3242_s12  }
   0x3   : > { %p27_p1 = scmp.ge.s32.totalorder %s25_s15, 2  ;;  %p170_p2 = scmp.lt.s32.totalorder %s2646_s14, 3 }
   0x5   : > { %s3245_s15 = smov (%p27_p1, %s25_s15), 0  ;;  %p171_p3 = pnand %p1852_p0, %p170_p2 }
   0x7   : > { %174 = sbr.rel (%p171_p3) target bundleno = 407 (0x197), region = 32 }
   0xc   : > { %v2476_v0 = vld [vmem:[%s3195_s1 + $0x78] sm:$0xff]   ;;  %s1853_s18 = sshll.u32 %s2638_s12, 5  ;;  %v2478_v2 = vld [vmem:[%s3195_s1 + $0x70] sm:$0xff]   ;;  %v2480_v4 = vld [vmem:[%s3195_s1 + $0x68] sm:$0xff]   ;;  %vm1020_vm0 = vcmask 523264  }
   0xd   : > { %v2477_v1 = vld [vmem:[%s3195_s1 + $0x38] sm:$0xff]   ;;  %2151 = vmatprep.subr.bf16.mxu0 %v2476_v0  ;;  %2435 = vmatprep.subr.bf16.mxu1 %v2476_v0  ;;  %p206_p4 = scmp.lt.s32.totalorder %s1853_s18, 63  ;;  %v2479_v3 = vld [vmem:[%s3195_s1 + $0x30] sm:$0xff]   ;;  %v2481_v5 = vld [vmem:[%s3195_s1 + $0x28] sm:$0xff]  }
   0xe   : > { %2152 = vmatpush3.bf16.msra.mxu0 %v2477_v1  ;;  %2443 = vmatpush3.bf16.msra.mxu1 %v2477_v1  ;;  %v2482_v6 = vld [vmem:[%s3195_s1 + $0x60] sm:$0xff]   ;;  %v2484_v8 = vld [vmem:[%s3195_s1 + $0x58] sm:$0xff]   ;;  %v2486_v10 = vld [vmem:[%s3195_s1 + $0x50] sm:$0xff]  }
   0xf   : > { %2153 = vmatprep.subr.bf16.mxu0 %v2478_v2  ;;  %2436 = vmatprep.subr.bf16.mxu1 %v2478_v2  ;;  %s3247_s18 = smov (!%p206_p4, %s1853_s18), 63  ;;  %v2483_v7 = vld [vmem:[%s3195_s1 + $0x20] sm:$0xff]   ;;  %v2485_v9 = vld [vmem:[%s3195_s1 + $0x18] sm:$0xff]   ;;  %v2487_v13 = vld [vmem:[%s3195_s1 + $0x10] sm:$0xff]  }
  0x10   : > { %s2451_s4 = smul.u32 20, %s3247_s18  ;;  %v2488_v14 = vld [vmem:[%s3195_s1 + $0x48] sm:$0xff]   ;;  %v2490_v16 = vld [vmem:[%s3195_s1 + $0x40] sm:$0xff]   ;;  %v2498_v18 = vld [vmem:[%s3195_s1 + $0xf8] sm:$0xff]   ;;  %s1856_s27 = sshll.u32 %s3247_s18, 2 }
  0x11   : > { %v2489_v15 = vld [vmem:[%s3195_s1 + $0x8] sm:$0xff]   ;;  %v2491_v17 = vld [vmem:[%s3195_s1] sm:$0xff]   ;;  %v2501_v19 = vld [vmem:[%s3195_s1 + $0x118] sm:$0xff]   ;;  %s3063_s29 = scalar_lea.vmem %s3197_s3, %s1856_s27 }
  0x12   : > { %2154 = vmatpush3.bf16.msra.mxu0 %v2479_v3  ;;  %2444 = vmatpush3.bf16.msra.mxu1 %v2479_v3  ;;  %s2719_s11 = scalar_lea.vmem %s3194_s0, %s2451_s4  ;;  %v2499_v22 = vld [vmem:[%s3195_s1 + $0xb8] sm:$0xff]   ;;  %v2500_v23 = vld [vmem:[%s3195_s1 + $0xf0] sm:$0xff]   ;;  %v2509_v28 = vld [vmem:[%s3195_s1 + $0xe8] sm:$0xff]  }
  0x13   : > { %2155 = vmatprep.subr.bf16.mxu0 %v2480_v4  ;;  %2437 = vmatprep.subr.bf16.mxu1 %v2480_v4  ;;  %v2494_v11 = vld [vmem:[%s2719_s11 + $0x4] ss:$20 sps:$4 sm:$0xff]   ;;  %v2492_v20 = vld [vmem:[%s2719_s11] ss:$20 sps:$4 sm:$0xff]   ;;  %v2507_v27 = vld [vmem:[%s2719_s11 + $0x28] ss:$20 sps:$4 sm:$0xff]  }
  0x14   : > { %v2497_v12 = vld [vmem:[%s2719_s11 + $0x1e4] ss:$20 sps:$4 sm:$0xff]   ;;  %1101 = vmatprep.mubr.bf16.mxu0 %v2494_v11  ;;  %v2495_v21 = vld [vmem:[%s2719_s11 + $0x1e0] ss:$20 sps:$4 sm:$0xff]   ;;  %v2508_v29 = vld [vmem:[%s2719_s11 + $0x208] ss:$20 sps:$4 sm:$0xff]  }
  0x15   : > { %1197 = vmatprep.mubr.bf16.mxu1 %v2497_v12  ;;  %v2503_v24 = vld [vmem:[%s2719_s11 + $0x2c] ss:$20 sps:$4 sm:$0xff]   ;;  %v2502_v26 = vld [vmem:[%s3195_s1 + $0xb0] sm:$0xff]   ;;  %v2519_v37 = vld [vmem:[%s3195_s1 + $0xd8] sm:$0xff]  }
  0x16   : > { %2156 = vmatpush3.bf16.msra.mxu0 %v2481_v5  ;;  %2445 = vmatpush3.bf16.msra.mxu1 %v2481_v5  ;;  %v2505_v25 = vld [vmem:[%s2719_s11 + $0x20c] ss:$20 sps:$4 sm:$0xff]   ;;  %v2513_v32 = vld [vmem:[%s2719_s11 + $0x54] ss:$20 sps:$4 sm:$0xff]   ;;  %v2517_v36 = vld [vmem:[%s2719_s11 + $0x50] ss:$20 sps:$4 sm:$0xff]  }
  0x17   : > { %2157 = vmatprep.subr.bf16.mxu0 %v2482_v6  ;;  %2438 = vmatprep.subr.bf16.mxu1 %v2482_v6  ;;  %v2510_v30 = vld [vmem:[%s3195_s1 + $0xa8] sm:$0xff]   ;;  %v2511_v31 = vld [vmem:[%s3195_s1 + $0xe0] sm:$0xff]   ;;  %v2532_v35 = vld [vmem:[%s3195_s1 + $0x110] sm:$0xff]  }
  0x18   : > { %v2515_v33 = vld [vmem:[%s2719_s11 + $0x234] ss:$20 sps:$4 sm:$0xff]   ;;  %v2512_v34 = vld [vmem:[%s3195_s1 + $0xa0] sm:$0xff]   ;;  %v2520_v39 = vld [vmem:[%s3195_s1 + $0x98] sm:$0xff]  }
  0x19   : > { %v2518_v38 = vld [vmem:[%s2719_s11 + $0x230] ss:$20 sps:$4 sm:$0xff]   ;;  %v2527_v44 = vld [vmem:[%s2719_s11 + $0x78] ss:$20 sps:$4 sm:$0xff]   ;;  %v2536_v53 = vld [vmem:[%s2719_s11 + $0x8] ss:$20 sps:$4 sm:$0xff]  }
  0x1a   : > { %2158 = vmatpush3.bf16.msra.mxu0 %v2483_v7  ;;  %2446 = vmatpush3.bf16.msra.mxu1 %v2483_v7  ;;  %v2521_v40 = vld [vmem:[%s3195_s1 + $0xd0] sm:$0xff]   ;;  %v2528_v45 = vld [vmem:[%s2719_s11 + $0x258] ss:$20 sps:$4 sm:$0xff]   ;;  %v2531_v49 = vld [vmem:[%s3195_s1 + $0xc0] sm:$0xff]  }
  0x1b   : > { %2159 = vmatprep.subr.bf16.mxu0 %v2484_v8  ;;  %2439 = vmatprep.subr.bf16.mxu1 %v2484_v8  ;;  %v2523_v41 = vld [vmem:[%s2719_s11 + $0x7c] ss:$20 sps:$4 sm:$0xff]   ;;  %v2529_v46 = vld [vmem:[%s3195_s1 + $0xc8] sm:$0xff]   ;;  %v2534_v50 = vld [vmem:[%s2719_s11 + $0xa4] ss:$20 sps:$4 sm:$0xff]  }
  0x1c   : > { %v2525_v42 = vld [vmem:[%s2719_s11 + $0x25c] ss:$20 sps:$4 sm:$0xff]   ;;  %v2552_v47 = vld [vmem:[%s3195_s1 + $0x108] sm:$0xff]   ;;  %v2533_v52 = vld [vmem:[%s3195_s1 + $0x80] sm:$0xff]  }
  0x1d   : > { %v2522_v43 = vld [vmem:[%s3195_s1 + $0x90] sm:$0xff]   ;;  %v2530_v48 = vld [vmem:[%s3195_s1 + $0x88] sm:$0xff]   ;;  %v2571_v56 = vld [vmem:[%s3195_s1 + $0x100] sm:$0xff]  }
  0x1e   : > { %2160 = vmatpush3.bf16.msra.mxu0 %v2485_v9  ;;  %2447 = vmatpush3.bf16.msra.mxu1 %v2485_v9  ;;  %v2538_v51 = vld [vmem:[%s2719_s11 + $0xc] ss:$20 sps:$4 sm:$0xff]   ;;  %v2542_v57 = vld [vmem:[%s2719_s11 + $0x34] ss:$20 sps:$4 sm:$0xff]   ;;  %v2545_v59 = vld [vmem:[%s2719_s11 + $0x30] ss:$20 sps:$4 sm:$0xff]  }
  0x1f   : > { %2161 = vmatprep.subr.bf16.mxu0 %v2486_v10  ;;  %2440 = vmatprep.subr.bf16.mxu1 %v2486_v10  ;;  %v2539_v54 = vld [vmem:[%s2719_s11 + $0xa0] ss:$20 sps:$4 sm:$0xff]   ;;  %v2544_v58 = vld [vmem:[%s2719_s11 + $0xc8] ss:$20 sps:$4 sm:$0xff]   ;;  %v2550_v62 = vld [vmem:[%s2719_s11 + $0xf0] ss:$20 sps:$4 sm:$0xff]  }
  0x20   : > { %v2540_v55 = vld [vmem:[%s2719_s11 + $0xcc] ss:$20 sps:$4 sm:$0xff]   ;;  %v2546_v60 = vld [vmem:[%s2719_s11 + $0xf4] ss:$20 sps:$4 sm:$0xff]   ;;  %v2548_v61 = vld [vmem:[%s2719_s11 + $0x5c] ss:$20 sps:$4 sm:$0xff]  }
  0x21   : > { %v2551_v63 = vld [vmem:[%s2719_s11 + $0x58] ss:$20 sps:$4 sm:$0xff]   ;;  %v2553_v0 = vld [vmem:[%s2719_s11 + $0x11c] ss:$20 sps:$4 sm:$0xff]   ;;  %v2558_v3 = vld [vmem:[%s2719_s11 + $0x80] ss:$20 sps:$4 sm:$0xff]  }
  0x22   : > { %2162 = vmatpush3.bf16.msra.mxu0 %v2487_v13  ;;  %2448 = vmatpush3.bf16.msra.mxu1 %v2487_v13  ;;  %v2555_v1 = vld [vmem:[%s2719_s11 + $0x84] ss:$20 sps:$4 sm:$0xff]   ;;  %v2561_v5 = vld [vmem:[%s2719_s11 + $0xac] ss:$20 sps:$4 sm:$0xff]   ;;  %v2564_v7 = vld [vmem:[%s2719_s11 + $0xa8] ss:$20 sps:$4 sm:$0xff]  }
  0x23   : > { %2163 = vmatprep.subr.bf16.mxu0 %v2488_v14  ;;  %2441 = vmatprep.subr.bf16.mxu1 %v2488_v14  ;;  %v2557_v2 = vld [vmem:[%s2719_s11 + $0x118] ss:$20 sps:$4 sm:$0xff]   ;;  %v2563_v6 = vld [vmem:[%s2719_s11 + $0x140] ss:$20 sps:$4 sm:$0xff]   ;;  %v2569_v10 = vld [vmem:[%s2719_s11 + $0x168] ss:$20 sps:$4 sm:$0xff]  }
  0x24   : > { %v2559_v4 = vld [vmem:[%s2719_s11 + $0x144] ss:$20 sps:$4 sm:$0xff]   ;;  %v2565_v8 = vld [vmem:[%s2719_s11 + $0x16c] ss:$20 sps:$4 sm:$0xff]   ;;  %v2567_v9 = vld [vmem:[%s2719_s11 + $0xd4] ss:$20 sps:$4 sm:$0xff]  }
  0x25   : > { %v2570_v11 = vld [vmem:[%s2719_s11 + $0xd0] ss:$20 sps:$4 sm:$0xff]   ;;  %v2572_v12 = vld [vmem:[%s2719_s11 + $0x194] ss:$20 sps:$4 sm:$0xff]  }
  0x26   : > { %2164 = vmatpush3.bf16.msra.mxu0 %v2489_v15  ;;  %2449 = vmatpush3.bf16.msra.mxu1 %v2489_v15  ;;  %v2574_v13 = vld [vmem:[%s2719_s11 + $0xfc] ss:$20 sps:$4 sm:$0xff]   ;;  %v2577_v15 = vld [vmem:[%s2719_s11 + $0xf8] ss:$20 sps:$4 sm:$0xff]  }
  0x27   : > { %2165 = vmatprep.subr.bf16.mxu0 %v2490_v16  ;;  %2442 = vmatprep.subr.bf16.mxu1 %v2490_v16  ;;  %v2576_v14 = vld [vmem:[%s2719_s11 + $0x190] ss:$20 sps:$4 sm:$0xff]  }
  0x28   : > { %v2578_v16 = vld [vmem:[%s2719_s11 + $0x1bc] ss:$20 sps:$4 sm:$0xff]  }
  0x2a   : > { %2166 = vmatpush3.bf16.msra.mxu0 %v2491_v17  ;;  %2450 = vmatpush3.bf16.msra.mxu1 %v2491_v17  ;;  %v2580_v17 = vld [vmem:[%s2719_s11 + $0x124] ss:$20 sps:$4 sm:$0xff]  }
  0x2b   : > { %2263 = vmatprep.subr.bf16.mxu1 %v2498_v18  ;;  %2395 = vmatprep.subr.bf16.mxu0 %v2501_v19  ;;  %v2582_v18 = vld [vmem:[%s2719_s11 + $0x1b8] ss:$20 sps:$4 sm:$0xff]  }
  0x2d   : > { %1102 = vmatmul.mubr.bf16.vlgmr.msra.gmra.mxu0 %v2492_v20  ;;  %1198 = vmatmul.mubr.bf16.vlgmr.msra.gmra.mxu1 %v2495_v21  ;;  %v2584_v20 = vld [vmem:[%s2719_s11 + $0x14c] ss:$20 sps:$4 sm:$0xff]   ;;  %v2586_v21 = vld [vmem:[%s2719_s11 + $0x10] ss:$20 sps:$4 sm:$0xff]  }
  0x2e   : > { %2264 = vmatpush3.bf16.msra.mxu1 %v2499_v22  ;;  %2396 = vmatpush3.bf16.msra.mxu0 %v2501_v19  ;;  %v2583_v19 = vld [vmem:[%s2719_s11 + $0x120] ss:$20 sps:$4 sm:$0xff]   ;;  %v2587_v22 = vld [vmem:[%s2719_s11 + $0x148] ss:$20 sps:$4 sm:$0xff]  }
  0x2f   : > { %2265 = vmatprep.subr.bf16.mxu1 %v2500_v23  ;;  %1109 = vmatprep.mubr.bf16.mxu0 %v2503_v24  ;;  %v2588_v23 = vld [vmem:[%s2719_s11 + $0x38] ss:$20 sps:$4 sm:$0xff]   ;;  %v2589_v24 = vld [vmem:[%s2719_s11 + $0x174] ss:$20 sps:$4 sm:$0xff]  }
  0x30   : > { %1205 = vmatprep.mubr.bf16.mxu1 %v2505_v25  ;;  %2397 = vmatprep.subr.bf16.mxu0 %v2532_v35  ;;  %v2591_v25 = vld [vmem:[%s2719_s11 + $0x60] ss:$20 sps:$4 sm:$0xff]  }
  0x32   : > { %2266 = vmatpush3.bf16.msra.mxu1 %v2502_v26  ;;  %2398 = vmatpush3.bf16.msra.mxu0 %v2532_v35  ;;  %v2592_v26 = vld [vmem:[%s2719_s11 + $0x170] ss:$20 sps:$4 sm:$0xff]   ;;  %v2603_v35 = vld [vmem:[%s2719_s11 + $0x128] ss:$20 sps:$4 sm:$0xff]  }
  0x33   : > { %2267 = vmatprep.subr.bf16.mxu1 %v2509_v28  ;;  %2399 = vmatprep.subr.bf16.mxu0 %v2552_v47  ;;  %v2594_v28 = vld [vmem:[%s2719_s11 + $0x19c] ss:$20 sps:$4 sm:$0xff]  }
  0x35   : > { %1110 = vmatmul.mubr.bf16.gmra.mxu0 %v2507_v27  ;;  %1206 = vmatmul.mubr.bf16.gmra.mxu1 %v2508_v29  ;;  %v2593_v27 = vld [vmem:[%s2719_s11 + $0x88] ss:$20 sps:$4 sm:$0xff]   ;;  %v2596_v29 = vld [vmem:[%s2719_s11 + $0xb0] ss:$20 sps:$4 sm:$0xff]  }
  0x36   : > { %2268 = vmatpush3.bf16.msra.mxu1 %v2510_v30  ;;  %1117 = vmatprep.mubr.bf16.mxu0 %v2513_v32  ;;  %v2597_v30 = vld [vmem:[%s2719_s11 + $0x198] ss:$20 sps:$4 sm:$0xff]  }
  0x37   : > { %2269 = vmatprep.subr.bf16.mxu1 %v2511_v31  ;;  %1213 = vmatprep.mubr.bf16.mxu1 %v2515_v33  ;;  %v2598_v31 = vld [vmem:[%s2719_s11 + $0xd8] ss:$20 sps:$4 sm:$0xff]   ;;  %v2601_v33 = vld [vmem:[%s2719_s11 + $0x100] ss:$20 sps:$4 sm:$0xff]  }
  0x38   : > { %2400 = vmatpush3.bf16.msra.mxu0 %v2552_v47  ;;  %v2599_v32 = vld [vmem:[%s2719_s11 + $0x1c4] ss:$20 sps:$4 sm:$0xff]  }
  0x39   : > { %2401 = vmatprep.subr.bf16.mxu0 %v2571_v56  ;;  %v2618_v47 = vld [vmem:[%s2719_s11 + $0x218] ss:$20 sps:$4 sm:$0xff]  }
  0x3a   : > { %2270 = vmatpush3.bf16.msra.mxu1 %v2512_v34  ;;  %v2602_v34 = vld [vmem:[%s2719_s11 + $0x1c0] ss:$20 sps:$4 sm:$0xff]  }
  0x3b   : > { %2271 = vmatprep.subr.bf16.mxu1 %v2519_v37  ;;  %v2606_v37 = vld [vmem:[%s2719_s11 + $0x150] ss:$20 sps:$4 sm:$0xff]  }
  0x3c   : > { %2402 = vmatpush3.bf16.msra.mxu0 %v2571_v56 }
  0x3d   : > { %1118 = vmatmul.mubr.bf16.gmra.mxu0 %v2517_v36  ;;  %1214 = vmatmul.mubr.bf16.gmra.mxu1 %v2518_v38  ;;  %v2604_v36 = vld [vmem:[%s2719_s11 + $0x1ec] ss:$20 sps:$4 sm:$0xff]   ;;  %v2607_v38 = vld [vmem:[%s2719_s11 + $0x1e8] ss:$20 sps:$4 sm:$0xff]  }
  0x3e   : > { %2272 = vmatpush3.bf16.msra.mxu1 %v2520_v39  ;;  %1125 = vmatprep.mubr.bf16.mxu0 %v2523_v41  ;;  %v2608_v39 = vld [vmem:[%s2719_s11 + $0x178] ss:$20 sps:$4 sm:$0xff]   ;;  %v2611_v41 = vld [vmem:[%s2719_s11 + $0x1a0] ss:$20 sps:$4 sm:$0xff]  }
  0x3f   : > { %2273 = vmatprep.subr.bf16.mxu1 %v2521_v40  ;;  %1221 = vmatprep.mubr.bf16.mxu1 %v2525_v42  ;;  %v2609_v40 = vld [vmem:[%s2719_s11 + $0x214] ss:$20 sps:$4 sm:$0xff]   ;;  %v2612_v42 = vld [vmem:[%s2719_s11 + $0x210] ss:$20 sps:$4 sm:$0xff]  }
  0x42   : > { %2274 = vmatpush3.bf16.msra.mxu1 %v2522_v43  ;;  %v2613_v43 = vld [vmem:[%s2719_s11 + $0x1c8] ss:$20 sps:$4 sm:$0xff]  }
  0x43   : > { %2275 = vmatprep.subr.bf16.mxu1 %v2529_v46  ;;  %v2617_v46 = vld [vmem:[%s2719_s11 + $0x238] ss:$20 sps:$4 sm:$0xff]  }
  0x45   : > { %1126 = vmatmul.mubr.bf16.gmra.mxu0 %v2527_v44  ;;  %1222 = vmatmul.mubr.bf16.gmra.mxu1 %v2528_v45  ;;  %v2614_v44 = vld [vmem:[%s2719_s11 + $0x23c] ss:$20 sps:$4 sm:$0xff]  }
  0x46   : > { %2276 = vmatpush3.bf16.msra.mxu1 %v2530_v48  ;;  %1133 = vmatprep.mubr.bf16.mxu0 %v2534_v50  ;;  %v2616_v45 = vld [vmem:[%s2719_s11 + $0x1f0] ss:$20 sps:$4 sm:$0xff]   ;;  %v2622_v50 = vld [vmem:[%s2719_s11 + $0x260] ss:$20 sps:$4 sm:$0xff]  }
  0x47   : > { %2277 = vmatprep.subr.bf16.mxu1 %v2531_v49  ;;  %1262 = vmatprep.mubr.bf16.mxu1 %v2538_v51  ;;  %v2619_v48 = vld [vmem:[%s2719_s11 + $0x264] ss:$20 sps:$4 sm:$0xff]   ;;  %v2621_v49 = vld [vmem:[%s2719_s11 + $0x240] ss:$20 sps:$4 sm:$0xff]   ;;  %v2623_v51 = vld [vmem:[%s2719_s11 + $0x268] ss:$20 sps:$4 sm:$0xff]  }
  0x4a   : > { %2278 = vmatpush3.bf16.msra.mxu1 %v2533_v52 }
  0x4d   : > { %1134 = vmatmul.mubr.bf16.gmra.mxu0 %v2539_v54  ;;  %1263 = vmatmul.mubr.bf16.vlgmr.msra.gmra.mxu1 %v2536_v53 }
  0x4e   : > { %1141 = vmatprep.mubr.bf16.mxu0 %v2540_v55  ;;  %1270 = vmatprep.mubr.bf16.mxu1 %v2542_v57 }
  0x55   : > { %1142 = vmatmul.mubr.bf16.gmra.mxu0 %v2544_v58  ;;  %1271 = vmatmul.mubr.bf16.gmra.mxu1 %v2545_v59 }
  0x56   : > { %1149 = vmatprep.mubr.bf16.mxu0 %v2546_v60  ;;  %1278 = vmatprep.mubr.bf16.mxu1 %v2548_v61 }
  0x5d   : > { %1150 = vmatmul.mubr.bf16.gmra.mxu0 %v2550_v62  ;;  %1279 = vmatmul.mubr.bf16.gmra.mxu1 %v2551_v63 }
  0x5e   : > { %1157 = vmatprep.mubr.bf16.mxu0 %v2553_v0  ;;  %1286 = vmatprep.mubr.bf16.mxu1 %v2555_v1 }
  0x65   : > { %1158 = vmatmul.mubr.bf16.gmra.mxu0 %v2557_v2  ;;  %1287 = vmatmul.mubr.bf16.gmra.mxu1 %v2558_v3 }
  0x66   : > { %1165 = vmatprep.mubr.bf16.mxu0 %v2559_v4  ;;  %1294 = vmatprep.mubr.bf16.mxu1 %v2561_v5 }
  0x6d   : > { %1166 = vmatmul.mubr.bf16.gmra.mxu0 %v2563_v6  ;;  %1295 = vmatmul.mubr.bf16.gmra.mxu1 %v2564_v7 }
  0x6e   : > { %1173 = vmatprep.mubr.bf16.mxu0 %v2565_v8  ;;  %1302 = vmatprep.mubr.bf16.mxu1 %v2567_v9 }
  0x75   : > { %1174 = vmatmul.mubr.bf16.gmra.mxu0 %v2569_v10  ;;  %1303 = vmatmul.mubr.bf16.gmra.mxu1 %v2570_v11 }
  0x76   : > { %1181 = vmatprep.mubr.bf16.mxu0 %v2572_v12  ;;  %1310 = vmatprep.mubr.bf16.mxu1 %v2574_v13 }
  0x7d   : > { %1182 = vmatmul.mubr.bf16.gmra.mxu0 %v2576_v14  ;;  %1311 = vmatmul.mubr.bf16.gmra.mxu1 %v2577_v15 }
  0x7e   : > { %1189 = vmatprep.mubr.bf16.mxu0 %v2578_v16  ;;  %1318 = vmatprep.mubr.bf16.mxu1 %v2580_v17 }
  0x85   : > { %1190 = vmatmul.mubr.bf16.gmra.mxu0 %v2582_v18  ;;  %1319 = vmatmul.mubr.bf16.gmra.mxu1 %v2583_v19 }
  0x86   : > { %1326 = vmatprep.mubr.bf16.mxu1 %v2584_v20  ;;  %2403 = vmatprep.mubr.msk.bf16.mxu0 %vm1020_vm0, %v2586_v21 }
  0x8d   : > { %1327 = vmatmul.mubr.bf16.gmra.mxu1 %v2587_v22  ;;  %2404 = vmatmul.mubr.msk.bf16.vlgmr.msra.gmra.mxu0 %vm1020_vm0, %v2588_v23 }
  0x8e   : > { %1334 = vmatprep.mubr.bf16.mxu1 %v2589_v24  ;;  %2407 = vmatprep.mubr.msk.bf16.mxu0 %vm1020_vm0, %v2591_v25 }
  0x95   : > { %1335 = vmatmul.mubr.bf16.gmra.mxu1 %v2592_v26  ;;  %2408 = vmatmul.mubr.msk.bf16.gmra.mxu0 %vm1020_vm0, %v2593_v27 }
  0x96   : > { %1342 = vmatprep.mubr.bf16.mxu1 %v2594_v28  ;;  %2411 = vmatprep.mubr.msk.bf16.mxu0 %vm1020_vm0, %v2596_v29 }
  0x9d   : > { %1343 = vmatmul.mubr.bf16.gmra.mxu1 %v2597_v30  ;;  %2412 = vmatmul.mubr.msk.bf16.gmra.mxu0 %vm1020_vm0, %v2598_v31 }
  0x9e   : > { %1350 = vmatprep.mubr.bf16.mxu1 %v2599_v32  ;;  %2415 = vmatprep.mubr.msk.bf16.mxu0 %vm1020_vm0, %v2601_v33 }
  0xa5   : > { %1351 = vmatmul.mubr.bf16.gmra.mxu1 %v2602_v34  ;;  %2416 = vmatmul.mubr.msk.bf16.gmra.mxu0 %vm1020_vm0, %v2603_v35 }
  0xa6   : > { %1358 = vmatprep.mubr.bf16.mxu1 %v2604_v36  ;;  %2419 = vmatprep.mubr.msk.bf16.mxu0 %vm1020_vm0, %v2606_v37 }
  0xad   : > { %1359 = vmatmul.mubr.bf16.gmra.mxu1 %v2607_v38  ;;  %2420 = vmatmul.mubr.msk.bf16.gmra.mxu0 %vm1020_vm0, %v2608_v39  ;;  %v2931_v38 = vld [vmem:[%s3196_s2] ss:$0 sm:$0xff] }
  0xae   : > { %1366 = vmatprep.mubr.bf16.mxu1 %v2609_v40  ;;  %2423 = vmatprep.mubr.msk.bf16.mxu0 %vm1020_vm0, %v2611_v41 }
  0xb5   : > { %1367 = vmatmul.mubr.bf16.gmra.mxu1 %v2612_v42  ;;  %2424 = vmatmul.mubr.msk.bf16.gmra.mxu0 %vm1020_vm0, %v2613_v43 }
  0xb6   : > { %1374 = vmatprep.mubr.bf16.mxu1 %v2614_v44  ;;  %2427 = vmatprep.mubr.msk.bf16.mxu0 %vm1020_vm0, %v2616_v45 }
  0xbd   : > { %1375 = vmatmul.mubr.bf16.gmra.mxu1 %v2617_v46  ;;  %2428 = vmatmul.mubr.msk.bf16.gmra.mxu0 %vm1020_vm0, %v2618_v47 }
  0xbe   : > { %1382 = vmatprep.mubr.bf16.mxu1 %v2619_v48  ;;  %2431 = vmatprep.mubr.msk.bf16.mxu0 %vm1020_vm0, %v2621_v49 }
  0xc5   : > { %1383 = vmatmul.mubr.bf16.gmra.mxu1 %v2622_v50  ;;  %2432 = vmatmul.mubr.msk.bf16.gmra.mxu0 %vm1020_vm0, %v2623_v51 }
  0xed   : > { %v2167_v52 = vpop.f32.mrf.mxu0  ;;  %v2239_v53 = vpop.f32.mrf.mxu1 }
  0xef   : > { %v2168_v54 = vpop.f32.mrf.mxu0  ;;  %v2240_v55 = vpop.f32.mrf.mxu1 }
  0xf0   : > { %v2169_v56 = vadd.f32 %v2168_v54, %v2167_v52  ;;  %v2898_v57 = vadd.f32 %v2240_v55, %v2239_v53 }
  0xf1   : > { %v2170_v58 = vpop.f32.mrf.mxu0  ;;  %v2242_v59 = vpop.f32.mrf.mxu1 }
  0xf2   : > { %3198 = vst [vmem:[#allocation2_spill] sm:$0xff] %v2898_v57  ;;  %v1104_v41 = vadd.f32 %v2169_v56, %v2931_v38 }
  0xf3   : > { %v2171_v60 = vpop.f32.mrf.mxu0  ;;  %v2243_v61 = vpop.f32.mrf.mxu1 }
  0xf4   : > { %v2900_v62 = vadd.f32 %v2171_v60, %v2170_v58  ;;  %v2902_v63 = vadd.f32 %v2243_v61, %v2242_v59 }
  0xf5   : > { %v2173_v0 = vpop.f32.mrf.mxu0  ;;  %v2245_v1 = vpop.f32.mrf.mxu1 }
  0xf6   : > { %3199 = vst [vmem:[#allocation3_spill] sm:$0xff] %v2902_v63 }
  0xf7   : > { %v2174_v2 = vpop.f32.mrf.mxu0  ;;  %v2246_v3 = vpop.f32.mrf.mxu1 }
  0xf8   : > { %v2904_v4 = vadd.f32 %v2174_v2, %v2173_v0  ;;  %v2906_v5 = vadd.f32 %v2246_v3, %v2245_v1 }
  0xf9   : > { %v2176_v6 = vpop.f32.mrf.mxu0  ;;  %v2248_v7 = vpop.f32.mrf.mxu1 }
  0xfa   : > { %3200 = vst [vmem:[#allocation4_spill] sm:$0xff] %v2906_v5 }
  0xfb   : > { %v2177_v8 = vpop.f32.mrf.mxu0  ;;  %v2249_v9 = vpop.f32.mrf.mxu1 }
  0xfc   : > { %v2908_v10 = vadd.f32 %v2177_v8, %v2176_v6  ;;  %v2910_v11 = vadd.f32 %v2249_v9, %v2248_v7 }
  0xfd   : > { %v2179_v12 = vpop.f32.mrf.mxu0  ;;  %v2251_v13 = vpop.f32.mrf.mxu1 }
  0xfe   : > { %3201 = vst [vmem:[#allocation5_spill] sm:$0xff] %v2910_v11 }
  0xff   : > { %v2180_v14 = vpop.f32.mrf.mxu0  ;;  %v2252_v15 = vpop.f32.mrf.mxu1 }
 0x100   : > { %v2912_v16 = vadd.f32 %v2180_v14, %v2179_v12  ;;  %v2914_v17 = vadd.f32 %v2252_v15, %v2251_v13 }
 0x101   : > { %v2182_v18 = vpop.f32.mrf.mxu0  ;;  %v2254_v19 = vpop.f32.mrf.mxu1 }
 0x102   : > { %3202 = vst [vmem:[#allocation6_spill] sm:$0xff] %v2914_v17 }
 0x103   : > { %v2183_v20 = vpop.f32.mrf.mxu0  ;;  %v2255_v21 = vpop.f32.mrf.mxu1 }
 0x104   : > { %v2916_v22 = vadd.f32 %v2183_v20, %v2182_v18  ;;  %v2918_v23 = vadd.f32 %v2255_v21, %v2254_v19 }
 0x105   : > { %v2185_v24 = vpop.f32.mrf.mxu0  ;;  %v2257_v25 = vpop.f32.mrf.mxu1 }
 0x106   : > { %3203 = vst [vmem:[#allocation7_spill] sm:$0xff] %v2918_v23 }
 0x107   : > { %v2186_v26 = vpop.f32.mrf.mxu0  ;;  %v2258_v27 = vpop.f32.mrf.mxu1 }
 0x108   : > { %v2920_v28 = vadd.f32 %v2186_v26, %v2185_v24  ;;  %v2922_v29 = vadd.f32 %v2258_v27, %v2257_v25 }
 0x109   : > { %v2188_v30 = vpop.f32.mrf.mxu0  ;;  %v2260_v31 = vpop.f32.mrf.mxu1 }
 0x10a   : > { %3204 = vst [vmem:[#allocation8_spill] sm:$0xff] %v2922_v29 }
 0x10b   : > { %v2189_v32 = vpop.f32.mrf.mxu0  ;;  %v2261_v33 = vpop.f32.mrf.mxu1 }
 0x10c   : > { %v2924_v34 = vadd.f32 %v2189_v32, %v2188_v30  ;;  %v2926_v35 = vadd.f32 %v2261_v33, %v2260_v31 }
 0x10d   : > { %v2191_v36 = vpop.f32.mrf.mxu0  ;;  %v2279_v37 = vpop.f32.mrf.mxu1 }
 0x10e   : > { %3205 = vst [vmem:[#allocation9_spill] sm:$0xff] %v2926_v35 }
 0x10f   : > { %v2192_v39 = vpop.f32.mrf.mxu0  ;;  %v2280_v40 = vpop.f32.mrf.mxu1 }
 0x110   : > { %v2934_v42 = vadd.f32 %v2192_v39, %v2191_v36  ;;  %v2281_v43 = vadd.f32 %v2280_v40, %v2279_v37 }
 0x111   : > { %v2194_v44 = vpop.f32.mrf.mxu0  ;;  %v2936_v45 = vpop.f32.mrf.mxu1 }
 0x112   : > { %v2938_v46 = vadd.f32 %v2281_v43, %v1104_v41 }
 0x113   : > { %v2195_v47 = vpop.f32.mrf.mxu0  ;;  %v2940_v48 = vpop.f32.mrf.mxu1 }
 0x114   : > { %v2942_v49 = vadd.f32 %v2195_v47, %v2194_v44 }
 0x115   : > { %v2197_v50 = vpop.f32.mrf.mxu0  ;;  %v2285_v51 = vpop.f32.mrf.mxu1 }
 0x117   : > { %v2198_v52 = vpop.f32.mrf.mxu0  ;;  %v2286_v53 = vpop.f32.mrf.mxu1 }
 0x118   : > { %v2944_v54 = vadd.f32 %v2198_v52, %v2197_v50  ;;  %v2287_v5 = vadd.f32 %v2286_v53, %v2285_v51 }
 0x119   : > { %v2200_v55 = vpop.f32.mrf.mxu0  ;;  %v2288_v56 = vpop.f32.mrf.mxu1 }
 0x11b   : > { %v2201_v58 = vpop.f32.mrf.mxu0  ;;  %v2289_v59 = vpop.f32.mrf.mxu1 }
 0x11c   : > { %v2946_v60 = vadd.f32 %v2201_v58, %v2200_v55 }
 0x11d   : > { %v2203_v61 = vpop.f32.mrf.mxu0  ;;  %v2948_v0 = vpop.f32.mrf.mxu1 }
 0x11f   : > { %v2204_v1 = vpop.f32.mrf.mxu0  ;;  %v2950_v2 = vpop.f32.mrf.mxu1 }
 0x120   : > { %v2952_v3 = vadd.f32 %v2204_v1, %v2203_v61 }
 0x121   : > { %v2206_v6 = vpop.f32.mrf.mxu0  ;;  %v2954_v7 = vpop.f32.mrf.mxu1 }
 0x123   : > { %v2207_v8 = vpop.f32.mrf.mxu0  ;;  %v2956_v9 = vpop.f32.mrf.mxu1 }
 0x124   : > { %v2958_v12 = vadd.f32 %v2207_v8, %v2206_v6 }
 0x125   : > { %v2960_v13 = vpop.f32.mrf.mxu0  ;;  %v2297_v14 = vpop.f32.mrf.mxu1 }
 0x127   : > { %v2962_v15 = vpop.f32.mrf.mxu0  ;;  %v2298_v18 = vpop.f32.mrf.mxu1 }
 0x129   : > { %v2964_v19 = vpop.f32.mrf.mxu0  ;;  %v2300_v20 = vpop.f32.mrf.mxu1 }
 0x12b   : > { %v2966_v21 = vpop.f32.mrf.mxu0  ;;  %v2301_v24 = vpop.f32.mrf.mxu1 }
 0x12d   : > { %v2968_v25 = vpop.f32.mrf.mxu0  ;;  %v2970_v26 = vpop.f32.mrf.mxu1 }
 0x12f   : > { %v2972_v27 = vpop.f32.mrf.mxu0  ;;  %v2974_v30 = vpop.f32.mrf.mxu1 }
 0x130   : > { %3206 = vst [vmem:[#allocation10_spill] sm:$0xff] %v2972_v27 }
 0x131   : > { %v2976_v31 = vpop.f32.mrf.mxu0  ;;  %v2978_v32 = vpop.f32.mrf.mxu1 }
 0x132   : > { %3207 = vst [vmem:[#allocation11_spill] sm:$0xff] %v2976_v31 }
 0x133   : > { %v2980_v33 = vpop.f32.mrf.mxu0  ;;  %v2982_v36 = vpop.f32.mrf.mxu1 }
 0x134   : > { %3208 = vst [vmem:[#allocation12_spill] sm:$0xff] %v2980_v33 }
 0x135   : > { %v2984_v37 = vpop.f32.mrf.mxu0  ;;  %v2986_v39 = vpop.f32.mrf.mxu1 }
 0x137   : > { %v2988_v40 = vpop.f32.mrf.mxu0  ;;  %v2990_v41 = vpop.f32.mrf.mxu1 }
 0x139   : > { %v2992_v43 = vpop.f32.mrf.mxu0  ;;  %v2994_v44 = vpop.f32.mrf.mxu1 }
 0x13a   : > { %3209 = vst [vmem:[#allocation13_spill] sm:$0xff] %v2992_v43 }
 0x13b   : > { %v2996_v47 = vpop.f32.mrf.mxu0  ;;  %v2998_v50 = vpop.f32.mrf.mxu1 }
 0x13c   : > { %3210 = vst [vmem:[#allocation14_spill] sm:$0xff] %v2996_v47 }
 0x13d   : > { %v3000_v52 = vpop.f32.mrf.mxu0  ;;  %v3002_v55 = vpop.f32.mrf.mxu1 }
 0x13e   : > { %3211 = vst [vmem:[#allocation15_spill] sm:$0xff] %v3000_v52  ;;  %v2290_v52 = vadd.f32 %v2289_v59, %v2288_v56  ;;  %v2299_v59 = vadd.f32 %v2298_v18, %v2297_v14  ;;  %v1120_v14 = vadd.f32 %v2912_v16, %v2931_v38 }
 0x13f   : > { %v3004_v58 = vpop.f32.mrf.mxu0  ;;  %v3006_v61 = vpop.f32.mrf.mxu1 }
 0x140   : > { %3212 = vst [vmem:[#allocation16_spill] sm:$0xff] %v3004_v58 }
 0x141   : > { %v3008_v1 = vpop.f32.mrf.mxu0  ;;  %v3010_v6 = vpop.f32.mrf.mxu1 }
 0x142   : > { %3213 = vst [vmem:[#allocation17_spill] sm:$0xff] %v3008_v1 }
 0x143   : > { %v3012_v8 = vpop.f32.mrf.mxu0  ;;  %v3014_v35 = vpop.f32.mrf.mxu1 }
 0x144   : > { %3214 = vst [vmem:[#allocation18_spill] sm:$0xff] %v3012_v8  ;;  %v1112_v8 = vadd.f32 %v2904_v4, %v2931_v38 }
 0x145   : > { %v3016_v29 = vpop.f32.mrf.mxu0  ;;  %v3018_v23 = vpop.f32.mrf.mxu1 }
 0x146   : > { %3215 = vst [vmem:[#allocation19_spill] sm:$0xff] %v3016_v29  ;;  %v1273_v31 = vadd.f32 %v2287_v5, %v1112_v8  ;;  %v1128_v5 = vadd.f32 %v2920_v28, %v2931_v38 }
 0x147   : > { %v3020_v17 = vpop.f32.mrf.mxu0  ;;  %v3022_v63 = vpop.f32.mrf.mxu1 }
 0x148   : > { %3216 = vst [vmem:[#allocation20_spill] sm:$0xff] %v3020_v17  ;;  %v1115_v17 = vadd.f32 %v2908_v10, %v2931_v38  ;;  %v1289_v16 = vadd.f32 %v2299_v59, %v1128_v5 }
 0x149   : > { %v3024_v11 = vpop.f32.mrf.mxu0  ;;  %v3026_v57 = vpop.f32.mrf.mxu1 }
 0x14a   : > { %3217 = vst [vmem:[#allocation21_spill] sm:$0xff] %v3024_v11  ;;  %v2284_v11 = vadd.f32 %v2940_v48, %v2936_v45  ;;  %v1276_v4 = vadd.f32 %v2290_v52, %v1115_v17  ;;  %v2293_v45 = vadd.f32 %v2950_v2, %v2948_v0 }
 0x14b   : > { %v3028_v1 = vpop.f32.mrf.mxu0  ;;  %v3030_v58 = vpop.f32.mrf.mxu1 }
 0x14c   : > { %3218 = vst [vmem:[#allocation22_spill] sm:$0xff] %v3028_v1  ;;  %v1107_v1 = vadd.f32 %v2900_v62, %v2931_v38 }
 0x14d   : > { %v3034_v29 = vpop.f32.mrf.mxu1  ;;  %v2405_v33 = vpop.f32.mrf.mxu0 }
 0x14e   : > { %3219 = vst [vmem:[#allocation23_spill] sm:$0xff] %v3034_v29  ;;  %v1434_v47 = vadd.f32 %v2405_v33, %v1273_v31  ;;  %v1268_v27 = vadd.f32 %v2284_v11, %v1107_v1  ;;  %v2302_v31 = vadd.f32 %v2301_v24, %v2300_v20  ;;  %v2296_v11 = vadd.f32 %v2956_v9, %v2954_v7 }
 0x14f   : > { %v3040_v51 = vpop.f32.mrf.mxu1  ;;  %v1425_v53 = vpop.f32.mrf.mxu0 }
 0x150   : > { %v1426_v29 = vadd.f32 %v1425_v53, %v2938_v46  ;;  %v1554_v17 = vmax.f32 %v1434_v47, 0.0  ;;  %v1131_v46 = vadd.f32 %v2924_v34, %v2931_v38  ;;  %v1123_v34 = vadd.f32 %v2916_v22, %v2931_v38 }
 0x151   : > { %v3044_v43 = vpop.f32.mrf.mxu1  ;;  %v2406_v56 = vpop.f32.mrf.mxu0  ;;  %v1281_v47 = vadd.f32 %v2293_v45, %v1120_v14  ;;  %v1144_v22 = vadd.f32 %v2944_v54, %v2931_v38  ;;  %v2308_v54 = vadd.f32 %v2982_v36, %v2978_v32 }
 0x152   : > { %v1437_v10 = vadd.f32 %v2406_v56, %v1276_v4  ;;  %v1552_v2 = vmax.f32 %v1426_v29, 0.0  ;;  %v1292_v1 = vadd.f32 %v2302_v31, %v1131_v46  ;;  %v2311_v29 = vadd.f32 %v2990_v41, %v2986_v39 }
 0x153   : > { %v3052_v48 = vpop.f32.mrf.mxu1  ;;  %v1428_v62 = vpop.f32.mrf.mxu0  ;;  %v1284_v59 = vadd.f32 %v2296_v11, %v1123_v34  ;;  %v1136_v41 = vadd.f32 %v2934_v42, %v2931_v38  ;;  %v1139_v46 = vadd.f32 %v2942_v49, %v2931_v38  ;;  %v2211_v42 = vadd.f32 %v2962_v15, %v2960_v13 }
 0x154   : > { %v1555_v33 = vmax.f32 %v1437_v10, 0.0  ;;  %v1429_v52 = vadd.f32 %v1428_v62, %v1268_v27  ;;  %v2305_v10 = vadd.f32 %v2974_v30, %v2970_v26  ;;  %v2314_v62 = vadd.f32 %v2998_v50, %v2994_v44 }
 0x155   : > { %v3065_v28 = vpop.f32.mrf.mxu1  ;;  %v2409_v0 = vpop.f32.mrf.mxu0  ;;  %v1305_v50 = vadd.f32 %v2311_v29, %v1144_v22  ;;  %v2323_v49 = vadd.f32 %v3022_v63, %v3018_v23  ;;  %v1300_v15 = vadd.f32 %v2308_v54, %v1139_v46  ;;  %v1152_v63 = vadd.f32 %v2952_v3, %v2931_v38 }
 0x156   : > { %v2064_v18 = vpack.c.bf16 %v1555_v33, %v1554_v17  ;;  %v1553_v20 = vmax.f32 %v1429_v52, 0.0  ;;  %v1450_v27 = vadd.f32 %v2409_v0, %v1289_v16  ;;  %v1147_v33 = vadd.f32 %v2946_v60, %v2931_v38 }
 0x157   : > { %v3069_v24 = vpop.f32.mrf.mxu1  ;;  %v1441_v7 = vpop.f32.mrf.mxu0  ;;  %v1297_v36 = vadd.f32 %v2305_v10, %v1136_v41  ;;  %v2320_v29 = vadd.f32 %v3014_v35, %v3010_v6  ;;  %v3220_v6 = vld [vmem:[#allocation10_spill] sm:$0xff] }
 0x158   : > { %2136 = vst [vmem:[%s3063_s29 + $0x8] sm:$0xff] %v2064_v18   ;;  %v2059_v9 = vpack.c.bf16 %v1553_v20, %v1552_v2  ;;  %v1442_v4 = vadd.f32 %v1441_v7, %v1281_v47  ;;  %v1558_v31 = vmax.f32 %v1450_v27, 0.0  ;;  %v1308_v2 = vadd.f32 %v2314_v62, %v1147_v33  ;;  %v3222_v41 = vld [vmem:[#allocation14_spill] sm:$0xff] }
 0x159   : > { %v3072_v8 = vpop.f32.mrf.mxu1  ;;  %v2410_v53 = vpop.f32.mrf.mxu0  ;;  %v2214_v18 = vadd.f32 %v2966_v21, %v2964_v19  ;;  %v1160_v7 = vadd.f32 %v2211_v42, %v2931_v38  ;;  %v2326_v19 = vadd.f32 %v3030_v58, %v3026_v57  ;;  %v1155_v57 = vadd.f32 %v2958_v12, %v2931_v38  ;;  %v3225_v42 = vld [vmem:[#allocation23_spill] sm:$0xff] }
 0x15a   : > { %2060 = vst [vmem:[%s3063_s29] sm:$0xff] %v2059_v9   ;;  %v1453_v56 = vadd.f32 %v2410_v53, %v1292_v1  ;;  %v1556_v52 = vmax.f32 %v1442_v4, 0.0  ;;  %v2317_v9 = vadd.f32 %v3006_v61, %v3002_v55  ;;  %v2223_v58 = vadd.f32 %v2988_v40, %v2984_v37 }
 0x15b   : > { %v3081_v5 = vpop.f32.mrf.mxu1  ;;  %v1444_v45 = vpop.f32.mrf.mxu0  ;;  %v1163_v23 = vadd.f32 %v2214_v18, %v2931_v38  ;;  %v1321_v22 = vadd.f32 %v2323_v49, %v1160_v7  ;;  %v2335_v12 = vadd.f32 %v3069_v24, %v3065_v28 }
 0x15c   : > { %v1559_v17 = vmax.f32 %v1453_v56, 0.0  ;;  %v1445_v39 = vadd.f32 %v1444_v45, %v1284_v59  ;;  %v1176_v46 = vadd.f32 %v2223_v58, %v2931_v38 }
 0x15d   : > { %v3091_v26 = vpop.f32.mrf.mxu1  ;;  %v2413_v30 = vpop.f32.mrf.mxu0  ;;  %v1324_v35 = vadd.f32 %v2326_v19, %v1163_v23 }
 0x15e   : > { %v2074_v14 = vpack.c.bf16 %v1559_v17, %v1558_v31  ;;  %v1557_v44 = vmax.f32 %v1445_v39, 0.0  ;;  %v1466_v32 = vadd.f32 %v2413_v30, %v1305_v50  ;;  %v1313_v31 = vadd.f32 %v2317_v9, %v1152_v63  ;;  %v3221_v39 = vld [vmem:[#allocation13_spill] sm:$0xff]  ;;  %v3227_v9 = vld [vmem:[#allocation20_spill] sm:$0xff] }
 0x15f   : > { %v3097_v11 = vpop.f32.mrf.mxu1  ;;  %v1457_v60 = vpop.f32.mrf.mxu0  ;;  %v2217_v17 = vadd.f32 %v3220_v6, %v2968_v25  ;;  %v2226_v33 = vadd.f32 %v3222_v41, %v3221_v39  ;;  %v2329_v25 = vadd.f32 %v3040_v51, %v3225_v42  ;;  %v1337_v7 = vadd.f32 %v2335_v12, %v1176_v46 }
 0x160   : > { %2138 = vst [vmem:[%s3063_s29 + $0x18] sm:$0xff] %v2074_v14   ;;  %v2069_v0 = vpack.c.bf16 %v1557_v44, %v1556_v52  ;;  %v1458_v34 = vadd.f32 %v1457_v60, %v1297_v36  ;;  %v1562_v21 = vmax.f32 %v1466_v32, 0.0  ;;  %v1316_v52 = vadd.f32 %v2320_v29, %v1155_v57  ;;  %v3223_v14 = vld [vmem:[#allocation11_spill] sm:$0xff]  ;;  %v3224_v44 = vld [vmem:[#allocation12_spill] sm:$0xff] }
 0x161   : > { %v3102_v20 = vpop.f32.mrf.mxu1  ;;  %v2414_v16 = vpop.f32.mrf.mxu0  ;;  %v2220_v50 = vadd.f32 %v3224_v44, %v3223_v14  ;;  %v2338_v32 = vadd.f32 %v3081_v5, %v3072_v8  ;;  %v1179_v18 = vadd.f32 %v2226_v33, %v2931_v38  ;;  %v3226_v5 = vld [vmem:[#allocation19_spill] sm:$0xff] }
 0x162   : > { %2137 = vst [vmem:[%s3063_s29 + $0x10] sm:$0xff] %v2069_v0   ;;  %v1469_v13 = vadd.f32 %v2414_v16, %v1308_v2  ;;  %v1560_v61 = vmax.f32 %v1458_v34, 0.0  ;;  %v1168_v2 = vadd.f32 %v2217_v17, %v2931_v38  ;;  %v2332_v16 = vadd.f32 %v3052_v48, %v3044_v43  ;;  %v3228_v43 = vld [vmem:[#allocation15_spill] sm:$0xff]  ;;  %v3229_v48 = vld [vmem:[#allocation16_spill] sm:$0xff] }
 0x163   : > { %v3110_v27 = vpop.f32.mrf.mxu1  ;;  %v1460_v47 = vpop.f32.mrf.mxu0  ;;  %v1171_v8 = vadd.f32 %v2220_v50, %v2931_v38  ;;  %v1340_v23 = vadd.f32 %v2338_v32, %v1179_v18  ;;  %v2229_v29 = vadd.f32 %v3229_v48, %v3228_v43  ;;  %v2341_v17 = vadd.f32 %v3097_v11, %v3091_v26  ;;  %v3234_v18 = vld [vmem:[#allocation4_spill] sm:$0xff] }
 0x164   : > { %v1563_v1 = vmax.f32 %v1469_v13, 0.0  ;;  %v1461_v53 = vadd.f32 %v1460_v47, %v1300_v15  ;;  %v2235_v47 = vadd.f32 %v3227_v9, %v3226_v5  ;;  %v1329_v63 = vadd.f32 %v2329_v25, %v1168_v2  ;;  %v3235_v9 = vld [vmem:[#allocation2_spill] sm:$0xff] }
 0x165   : > { %v2345_v4 = vpop.f32.mrf.mxu1  ;;  %v2417_v55 = vpop.f32.mrf.mxu0 }
 0x166   : > { %v2084_v56 = vpack.c.bf16 %v1563_v1, %v1562_v21  ;;  %v1561_v59 = vmax.f32 %v1461_v53, 0.0  ;;  %v1482_v62 = vadd.f32 %v2417_v55, %v1321_v22  ;;  %v3230_v55 = vld [vmem:[#allocation21_spill] sm:$0xff]  ;;  %v1192_v6 = vadd.f32 %v2235_v47, %v2931_v38 }
 0x167   : > { %v2346_v10 = vpop.f32.mrf.mxu1  ;;  %v1473_v3 = vpop.f32.mrf.mxu0  ;;  %v1200_v47 = vadd.f32 %v3235_v9, %v2931_v38 }
 0x168   : > { %2140 = vst [vmem:[%s3063_s29 + $0x28] sm:$0xff] %v2084_v56   ;;  %v2079_v45 = vpack.c.bf16 %v1561_v59, %v1560_v61  ;;  %v1474_v37 = vadd.f32 %v1473_v3, %v1313_v31  ;;  %v1566_v36 = vmax.f32 %v1482_v62, 0.0  ;;  %v3231_v61 = vld [vmem:[#allocation22_spill] sm:$0xff]  ;;  %v2347_v57 = vadd.f32 %v2346_v10, %v2345_v4  ;;  %v3232_v62 = vld [vmem:[#allocation17_spill] sm:$0xff] }
 0x169   : > { %v2348_v54 = vpop.f32.mrf.mxu1  ;;  %v2418_v30 = vpop.f32.mrf.mxu0  ;;  %v2238_v56 = vadd.f32 %v3231_v61, %v3230_v55  ;;  %v3233_v31 = vld [vmem:[#allocation18_spill] sm:$0xff]  ;;  %v1184_v4 = vadd.f32 %v2229_v29, %v2931_v38  ;;  %v3237_v29 = vld [vmem:[#allocation3_spill] sm:$0xff] }
 0x16a   : > { %2139 = vst [vmem:[%s3063_s29 + $0x20] sm:$0xff] %v2079_v45   ;;  %v1485_v40 = vadd.f32 %v2418_v30, %v1324_v35  ;;  %v1564_v13 = vmax.f32 %v1474_v37, 0.0  ;;  %v1332_v45 = vadd.f32 %v2332_v16, %v1171_v8  ;;  %v2232_v35 = vadd.f32 %v3233_v31, %v3232_v62 }
 0x16b   : > { %v2349_v60 = vpop.f32.mrf.mxu1  ;;  %v1476_v0 = vpop.f32.mrf.mxu0  ;;  %v1195_v10 = vadd.f32 %v2238_v56, %v2931_v38  ;;  %v1353_v11 = vadd.f32 %v2347_v57, %v1192_v6  ;;  %v1208_v16 = vadd.f32 %v3234_v18, %v2931_v38  ;;  %v1203_v55 = vadd.f32 %v3237_v29, %v2931_v38  ;;  %v3241_v18 = vld [vmem:[#allocation9_spill] sm:$0xff] }
 0x16c   : > { %v1567_v28 = vmax.f32 %v1485_v40, 0.0  ;;  %v1477_v24 = vadd.f32 %v1476_v0, %v1316_v52  ;;  %v2350_v33 = vadd.f32 %v2349_v60, %v2348_v54  ;;  %v2344_v40 = vadd.f32 %v3110_v27, %v3102_v20 }
 0x16d   : > { %v2351_v49 = vpop.f32.mrf.mxu1  ;;  %v2421_v34 = vpop.f32.mrf.mxu0  ;;  %v1187_v54 = vadd.f32 %v2232_v35, %v2931_v38  ;;  %v1345_v0 = vadd.f32 %v2341_v17, %v1184_v4 }
 0x16e   : > { %v2094_v51 = vpack.c.bf16 %v1567_v28, %v1566_v36  ;;  %v1565_v15 = vmax.f32 %v1477_v24, 0.0  ;;  %v1498_v53 = vadd.f32 %v2421_v34, %v1337_v7  ;;  %v1356_v32 = vadd.f32 %v2350_v33, %v1195_v10 }
 0x16f   : > { %v2352_v19 = vpop.f32.mrf.mxu1  ;;  %v1489_v21 = vpop.f32.mrf.mxu0  ;;  %v1348_v2 = vadd.f32 %v2344_v40, %v1187_v54 }
 0x170   : > { %2142 = vst [vmem:[%s3063_s29 + $0x38] sm:$0xff] %v2094_v51   ;;  %v2089_v1 = vpack.c.bf16 %v1565_v15, %v1564_v13  ;;  %v1490_v58 = vadd.f32 %v1489_v21, %v1329_v63  ;;  %v1570_v30 = vmax.f32 %v1498_v53, 0.0  ;;  %v2353_v34 = vadd.f32 %v2352_v19, %v2351_v49  ;;  %v3236_v21 = vld [vmem:[#allocation5_spill] sm:$0xff] }
 0x171   : > { %v2354_v59 = vpop.f32.mrf.mxu1  ;;  %v2422_v22 = vpop.f32.mrf.mxu0 }
 0x172   : > { %2141 = vst [vmem:[%s3063_s29 + $0x30] sm:$0xff] %v2089_v1   ;;  %v1501_v3 = vadd.f32 %v2422_v22, %v1340_v23  ;;  %v1568_v44 = vmax.f32 %v1490_v58, 0.0  ;;  %v1211_v1 = vadd.f32 %v3236_v21, %v2931_v38  ;;  %v1361_v58 = vadd.f32 %v2353_v34, %v1200_v47 }
 0x173   : > { %v2355_v39 = vpop.f32.mrf.mxu1  ;;  %v1492_v41 = vpop.f32.mrf.mxu0 }
 0x174   : > { %v1571_v12 = vmax.f32 %v1501_v3, 0.0  ;;  %v1493_v37 = vadd.f32 %v1492_v41, %v1332_v45  ;;  %v2356_v53 = vadd.f32 %v2355_v39, %v2354_v59 }
 0x175   : > { %v2357_v52 = vpop.f32.mrf.mxu1  ;;  %v2425_v14 = vpop.f32.mrf.mxu0 }
 0x176   : > { %v2104_v50 = vpack.c.bf16 %v1571_v12, %v1570_v30  ;;  %v1569_v26 = vmax.f32 %v1493_v37, 0.0  ;;  %v1514_v60 = vadd.f32 %v2425_v14, %v1353_v11  ;;  %v1364_v35 = vadd.f32 %v2356_v53, %v1203_v55  ;;  %v3238_v12 = vld [vmem:[#allocation6_spill] sm:$0xff] }
 0x177   : > { %v2358_v46 = vpop.f32.mrf.mxu1  ;;  %v1505_v42 = vpop.f32.mrf.mxu0  ;;  %v1216_v37 = vadd.f32 %v3238_v12, %v2931_v38 }
 0x178   : > { %2144 = vst [vmem:[%s3063_s29 + $0x48] sm:$0xff] %v2104_v50   ;;  %v2099_v25 = vpack.c.bf16 %v1569_v26, %v1568_v44  ;;  %v2359_v20 = vadd.f32 %v2358_v46, %v2357_v52  ;;  %v1506_v27 = vadd.f32 %v1505_v42, %v1345_v0  ;;  %v1574_v15 = vmax.f32 %v1514_v60, 0.0  ;;  %v3239_v50 = vld [vmem:[#allocation7_spill] sm:$0xff]  ;;  %v3240_v46 = vld [vmem:[#allocation8_spill] sm:$0xff] }
 0x179   : > { %v2360_v36 = vpop.f32.mrf.mxu1  ;;  %v2426_v28 = vpop.f32.mrf.mxu0  ;;  %v1219_v26 = vadd.f32 %v3239_v50, %v2931_v38  ;;  %v1224_v42 = vadd.f32 %v3240_v46, %v2931_v38 }
 0x17a   : > { %2143 = vst [vmem:[%s3063_s29 + $0x40] sm:$0xff] %v2099_v25   ;;  %v1517_v24 = vadd.f32 %v2426_v28, %v1356_v32  ;;  %v1572_v43 = vmax.f32 %v1506_v27, 0.0  ;;  %v1369_v19 = vadd.f32 %v2359_v20, %v1208_v16  ;;  %v1227_v16 = vadd.f32 %v3241_v18, %v2931_v38 }
 0x17b   : > { %v2361_v13 = vpop.f32.mrf.mxu1  ;;  %v1508_v51 = vpop.f32.mrf.mxu0 }
 0x17c   : > { %v1575_v7 = vmax.f32 %v1517_v24, 0.0  ;;  %v2362_v8 = vadd.f32 %v2361_v13, %v2360_v36  ;;  %v1509_v5 = vadd.f32 %v1508_v51, %v1348_v2 }
 0x17d   : > { %v2363_v63 = vpop.f32.mrf.mxu1  ;;  %v2429_v23 = vpop.f32.mrf.mxu0 }
 0x17e   : > { %v2114_v48 = vpack.c.bf16 %v1575_v7, %v1574_v15  ;;  %v1573_v49 = vmax.f32 %v1509_v5, 0.0  ;;  %v1530_v57 = vadd.f32 %v2429_v23, %v1369_v19  ;;  %v1372_v3 = vadd.f32 %v2362_v8, %v1211_v1 }
 0x17f   : > { %v2364_v61 = vpop.f32.mrf.mxu1  ;;  %v1521_v56 = vpop.f32.mrf.mxu0 }
 0x180   : > { %2146 = vst [vmem:[%s3063_s29 + $0x58] sm:$0xff] %v2114_v48   ;;  %v2109_v22 = vpack.c.bf16 %v1573_v49, %v1572_v43  ;;  %v1522_v59 = vadd.f32 %v1521_v56, %v1361_v58  ;;  %v1578_v39 = vmax.f32 %v1530_v57, 0.0  ;;  %v2365_v41 = vadd.f32 %v2364_v61, %v2363_v63 }
 0x181   : > { %v2366_v45 = vpop.f32.mrf.mxu1  ;;  %v2430_v62 = vpop.f32.mrf.mxu0 }
 0x182   : > { %2145 = vst [vmem:[%s3063_s29 + $0x50] sm:$0xff] %v2109_v22   ;;  %v1533_v31 = vadd.f32 %v2430_v62, %v1372_v3  ;;  %v1576_v40 = vmax.f32 %v1522_v59, 0.0  ;;  %v1377_v0 = vadd.f32 %v2365_v41, %v1216_v37 }
 0x183   : > { %v2367_v6 = vpop.f32.mrf.mxu1  ;;  %v1524_v17 = vpop.f32.mrf.mxu0 }
 0x184   : > { %v1579_v33 = vmax.f32 %v1533_v31, 0.0  ;;  %v1525_v30 = vadd.f32 %v1524_v17, %v1364_v35  ;;  %v2368_v14 = vadd.f32 %v2367_v6, %v2366_v45 }
 0x185   : > { %v2369_v4 = vpop.f32.mrf.mxu1  ;;  %v2433_v10 = vpop.f32.mrf.mxu0 }
 0x186   : > { %v2124_v52 = vpack.c.bf16 %v1579_v33, %v1578_v39  ;;  %v1577_v44 = vmax.f32 %v1525_v30, 0.0  ;;  %v1380_v27 = vadd.f32 %v2368_v14, %v1219_v26 }
 0x187   : > { %v2370_v11 = vpop.f32.mrf.mxu1  ;;  %v1537_v54 = vpop.f32.mrf.mxu0 }
 0x188   : > { %2148 = vst [vmem:[%s3063_s29 + $0x68] sm:$0xff] %v2124_v52   ;;  %v2119_v25 = vpack.c.bf16 %v1577_v44, %v1576_v40  ;;  %v2371_v60 = vadd.f32 %v2370_v11, %v2369_v4  ;;  %v1538_v20 = vadd.f32 %v1537_v54, %v1377_v0 }
 0x189   : > { %v2372_v32 = vpop.f32.mrf.mxu1  ;;  %v2434_v36 = vpop.f32.mrf.mxu0 }
 0x18a   : > { %2147 = vst [vmem:[%s3063_s29 + $0x60] sm:$0xff] %v2119_v25   ;;  %v1385_v28 = vadd.f32 %v2371_v60, %v1224_v42  ;;  %v1580_v15 = vmax.f32 %v1538_v20, 0.0 }
 0x18b   : > { %v2373_v24 = vpop.f32.mrf.mxu1  ;;  %v1540_v2 = vpop.f32.mrf.mxu0 }
 0x18c   : > { %v2374_v34 = vadd.f32 %v2373_v24, %v2372_v32  ;;  %v1541_v13 = vadd.f32 %v1540_v2, %v1380_v27  ;;  %v1546_v51 = vadd.f32 %v2433_v10, %v1385_v28 }
 0x18e   : > { %v1388_v7 = vadd.f32 %v2374_v34, %v1227_v16  ;;  %v1581_v8 = vmax.f32 %v1541_v13, 0.0  ;;  %v1582_v47 = vmax.f32 %v1546_v51, 0.0 }
 0x190   : > { %v1549_v5 = vadd.f32 %v2434_v36, %v1388_v7  ;;  %v2129_v9 = vpack.c.bf16 %v1581_v8, %v1580_v15 }
 0x192   : > { %v1583_v21 = vmax.f32 %v1549_v5, 0.0  ;;  %2149 = vst [vmem:[%s3063_s29 + $0x70] sm:$0xff] %v2129_v9  }
 0x194   : > { %v2134_v1 = vpack.c.bf16 %v1583_v21, %v1582_v47 }
 0x196   : > { %2150 = vst [vmem:[%s3063_s29 + $0x78] sm:$0xff] %v2134_v1  }
 0x197 PF: > { %s13_s14 = sadd.s32 1, %s2646_s14   ;;  %s3242_s12 = smov %s2642_s13 }
 0x198   : > { %p10_p5 = scmp.ge.s32.totalorder %s13_s14, 4   ;;  %s3243_s13 = smov %s3245_s15 }
 0x19a   :  { %12 = sbr.rel (!%p10_p5) target bundleno = 2 (0x2), region = 68 }

// kernel: kappa_denoiser_forward.15
= control target key start
LH: loop header
LB: loop body
LE: loop exit
PB: predicated region body
PF: predicated region fallthrough
CT: control target
= control target key end

     0   :  { %s2979_s12 = smov 0   ;;  %s2981_s13 = smov 0   ;;  %s3461_s0 = inlined_call_operand.vmem [shape: bf16[2048,288], index: 0, kind: input, shape index: {}]   ;;  %s3462_s1 = inlined_call_operand.vmem [shape: bf16[288,128], index: 1, kind: input, shape index: {}]   ;;  %s3463_s2 = inlined_call_operand.vmem [shape: f32[1,128], index: 2, kind: input, shape index: {}]   ;;  %s3464_s3 = inlined_call_operand.vmem [shape: bf16[2048,128], index: 3, kind: output, shape index: {}]  }
   0x1   :  { %s2983_s14 = smov 0  }
   0x2 LB: > { %s25_s15 = sadd.s32 1, %s2952_s13  ;;  %p2155_p0 = scmp.ge.s32.totalorder %s2956_s14, 1  ;;  %s2956_s14 = sphi %s2983_s14, %s13_s14   ;;  %s2952_s13 = sphi %s2981_s13, %s3466_s13   ;;  %s2948_s12 = sphi %s2979_s12, %s3465_s12  }
   0x3   : > { %p27_p1 = scmp.ge.s32.totalorder %s25_s15, 4  ;;  %p170_p2 = scmp.lt.s32.totalorder %s2956_s14, 5 }
   0x5   : > { %s3468_s15 = smov (%p27_p1, %s25_s15), 0  ;;  %p171_p3 = pnand %p2155_p0, %p170_p2 }
   0x6   : > { %s2156_s18 = sshll.u32 (!%p171_p3), %s2948_s12, 6 }
   0x7   : > { %174 = sbr.rel (%p171_p3) target bundleno = 467 (0x1d3), region = 32  ;;  %p206_p4 = scmp.lt.s32.totalorder (!%p171_p3), %s2156_s18, 255 }
   0xc   : > { %v2788_v0 = vld [vmem:[%s3462_s1 + $0x38] sm:$0xff]   ;;  %v2958_v1 = vmov 0   ;;  %v2789_v2 = vld [vmem:[%s3462_s1 + $0x30] sm:$0xff]   ;;  %v2790_v3 = vld [vmem:[%s3462_s1 + $0x28] sm:$0xff]   ;;  %s3470_s18 = smov (!%p206_p4, %s2156_s18), 255  ;;  %vm988_vm0 = vcmask 261120  }
   0xd   : > { %1085 = vmatprep.subr.bf16.mxu0 %v2958_v1  ;;  %2730 = vmatprep.subr.bf16.mxu1 %v2958_v1  ;;  %v2791_v4 = vld [vmem:[%s3462_s1 + $0x20] sm:$0xff]   ;;  %s2762_s25 = smul.u32 12, %s3470_s18  ;;  %v2792_v5 = vld [vmem:[%s3462_s1 + $0x18] sm:$0xff]   ;;  %v2793_v7 = vld [vmem:[%s3462_s1 + $0x10] sm:$0xff]   ;;  %s2159_s9 = sshll.u32 %s3470_s18, 2 }
   0xe   : > { %1086 = vmatpush1.bf16.msra.mxu0 %v2788_v0  ;;  %2746 = vmatpush1.bf16.msra.mxu1 %v2788_v0  ;;  %v2794_v9 = vld [vmem:[%s3462_s1 + $0x8] sm:$0xff]   ;;  %v2795_v10 = vld [vmem:[%s3462_s1] sm:$0xff]   ;;  %v2796_v11 = vld [vmem:[%s3462_s1 + $0x78] sm:$0xff]   ;;  %s3298_s12 = scalar_lea.vmem %s3464_s3, %s2159_s9 }
   0xf   : > { %1087 = vmatprep.subr.bf16.mxu0 %v2958_v1  ;;  %2731 = vmatprep.subr.bf16.mxu1 %v2958_v1  ;;  %s3026_s30 = scalar_lea.vmem %s3461_s0, %s2762_s25  ;;  %v2797_v12 = vld [vmem:[%s3462_s1 + $0x70] sm:$0xff]   ;;  %v2798_v13 = vld [vmem:[%s3462_s1 + $0x68] sm:$0xff]   ;;  %v2799_v14 = vld [vmem:[%s3462_s1 + $0x60] sm:$0xff]  }
  0x10   : > { %v2806_v6 = vld [vmem:[%s3026_s30 + $0x4] ss:$12 sps:$4 sm:$0xff]   ;;  %v2800_v15 = vld [vmem:[%s3462_s1 + $0x58] sm:$0xff]   ;;  %v2802_v17 = vld [vmem:[%s3462_s1 + $0x48] sm:$0xff]  }
  0x11   : > { %v2809_v8 = vld [vmem:[%s3026_s30 + $0x244] ss:$12 sps:$4 sm:$0xff]   ;;  %1117 = vmatprep.mubr.bf16.mxu0 %v2806_v6  ;;  %v2810_v19 = vld [vmem:[%s3462_s1 + $0x88] sm:$0xff]   ;;  %v2817_v27 = vld [vmem:[%s3026_s30 + $0x34] ss:$12 sps:$4 sm:$0xff]  }
  0x12   : > { %1088 = vmatpush1.bf16.msra.mxu0 %v2789_v2  ;;  %2747 = vmatpush1.bf16.msra.mxu1 %v2789_v2  ;;  %v2801_v16 = vld [vmem:[%s3462_s1 + $0x50] sm:$0xff]   ;;  %v2803_v18 = vld [vmem:[%s3462_s1 + $0x40] sm:$0xff]   ;;  %v2811_v22 = vld [vmem:[%s3026_s30 + $0x1c] ss:$12 sps:$4 sm:$0xff]  }
  0x13   : > { %1089 = vmatprep.subr.bf16.mxu0 %v2958_v1  ;;  %2732 = vmatprep.subr.bf16.mxu1 %v2958_v1  ;;  %v2804_v20 = vld [vmem:[%s3026_s30] ss:$12 sps:$4 sm:$0xff]   ;;  %v2813_v23 = vld [vmem:[%s3026_s30 + $0x25c] ss:$12 sps:$4 sm:$0xff]   ;;  %v2815_v25 = vld [vmem:[%s3026_s30 + $0x18] ss:$12 sps:$4 sm:$0xff]  }
  0x14   : > { %1309 = vmatprep.mubr.bf16.mxu1 %v2809_v8  ;;  %v2807_v21 = vld [vmem:[%s3026_s30 + $0x240] ss:$12 sps:$4 sm:$0xff]   ;;  %v2816_v26 = vld [vmem:[%s3026_s30 + $0x258] ss:$12 sps:$4 sm:$0xff]   ;;  %v2821_v29 = vld [vmem:[%s3026_s30 + $0x30] ss:$12 sps:$4 sm:$0xff]  }
  0x15   : > { %v2835_v24 = vld [vmem:[%s3462_s1 + $0x80] sm:$0xff]   ;;  %v2822_v30 = vld [vmem:[%s3026_s30 + $0x270] ss:$12 sps:$4 sm:$0xff]   ;;  %v2823_v31 = vld [vmem:[%s3026_s30 + $0x4c] ss:$12 sps:$4 sm:$0xff]  }
  0x16   : > { %1090 = vmatpush1.bf16.msra.mxu0 %v2790_v3  ;;  %2748 = vmatpush1.bf16.msra.mxu1 %v2790_v3  ;;  %v2819_v28 = vld [vmem:[%s3026_s30 + $0x274] ss:$12 sps:$4 sm:$0xff]   ;;  %v2825_v32 = vld [vmem:[%s3026_s30 + $0x28c] ss:$12 sps:$4 sm:$0xff]   ;;  %v2829_v35 = vld [vmem:[%s3026_s30 + $0x64] ss:$12 sps:$4 sm:$0xff]  }
  0x17   : > { %1091 = vmatprep.subr.bf16.mxu0 %v2958_v1  ;;  %2733 = vmatprep.subr.bf16.mxu1 %v2958_v1  ;;  %v2827_v33 = vld [vmem:[%s3026_s30 + $0x48] ss:$12 sps:$4 sm:$0xff]   ;;  %v2831_v36 = vld [vmem:[%s3026_s30 + $0x2a4] ss:$12 sps:$4 sm:$0xff]   ;;  %v2833_v37 = vld [vmem:[%s3026_s30 + $0x60] ss:$12 sps:$4 sm:$0xff]  }
  0x18   : > { %v2828_v34 = vld [vmem:[%s3026_s30 + $0x288] ss:$12 sps:$4 sm:$0xff]   ;;  %v2834_v38 = vld [vmem:[%s3026_s30 + $0x2a0] ss:$12 sps:$4 sm:$0xff]   ;;  %v2840_v41 = vld [vmem:[%s3026_s30 + $0x78] ss:$12 sps:$4 sm:$0xff]  }
  0x19   : > { %v2836_v39 = vld [vmem:[%s3026_s30 + $0x7c] ss:$12 sps:$4 sm:$0xff]   ;;  %v2841_v42 = vld [vmem:[%s3026_s30 + $0x2b8] ss:$12 sps:$4 sm:$0xff]   ;;  %v2842_v43 = vld [vmem:[%s3026_s30 + $0x94] ss:$12 sps:$4 sm:$0xff]  }
  0x1a   : > { %1092 = vmatpush1.bf16.msra.mxu0 %v2791_v4  ;;  %2749 = vmatpush1.bf16.msra.mxu1 %v2791_v4  ;;  %v2838_v40 = vld [vmem:[%s3026_s30 + $0x2bc] ss:$12 sps:$4 sm:$0xff]   ;;  %v2844_v44 = vld [vmem:[%s3026_s30 + $0x2d4] ss:$12 sps:$4 sm:$0xff]   ;;  %v2848_v47 = vld [vmem:[%s3026_s30 + $0xac] ss:$12 sps:$4 sm:$0xff]  }
  0x1b   : > { %1093 = vmatprep.subr.bf16.mxu0 %v2958_v1  ;;  %2734 = vmatprep.subr.bf16.mxu1 %v2958_v1  ;;  %v2846_v45 = vld [vmem:[%s3026_s30 + $0x90] ss:$12 sps:$4 sm:$0xff]   ;;  %v2850_v48 = vld [vmem:[%s3026_s30 + $0x2ec] ss:$12 sps:$4 sm:$0xff]   ;;  %v2852_v49 = vld [vmem:[%s3026_s30 + $0xa8] ss:$12 sps:$4 sm:$0xff]  }
  0x1c   : > { %v2847_v46 = vld [vmem:[%s3026_s30 + $0x2d0] ss:$12 sps:$4 sm:$0xff]   ;;  %v2853_v50 = vld [vmem:[%s3026_s30 + $0x2e8] ss:$12 sps:$4 sm:$0xff]   ;;  %v2857_v53 = vld [vmem:[%s3026_s30 + $0xc0] ss:$12 sps:$4 sm:$0xff]  }
  0x1d   : > { %v2854_v51 = vld [vmem:[%s3026_s30 + $0xc4] ss:$12 sps:$4 sm:$0xff]   ;;  %v2856_v52 = vld [vmem:[%s3026_s30 + $0x8] ss:$12 sps:$4 sm:$0xff]   ;;  %v2858_v54 = vld [vmem:[%s3026_s30 + $0x20] ss:$12 sps:$4 sm:$0xff]  }
  0x1e   : > { %1094 = vmatpush1.bf16.msra.mxu0 %v2792_v5  ;;  %2750 = vmatpush1.bf16.msra.mxu1 %v2792_v5  ;;  %v2859_v55 = vld [vmem:[%s3026_s30 + $0xdc] ss:$12 sps:$4 sm:$0xff]   ;;  %v2861_v56 = vld [vmem:[%s3026_s30 + $0x38] ss:$12 sps:$4 sm:$0xff]   ;;  %v2864_v59 = vld [vmem:[%s3026_s30 + $0xf4] ss:$12 sps:$4 sm:$0xff]  }
  0x1f   : > { %1095 = vmatprep.subr.bf16.mxu0 %v2958_v1  ;;  %2735 = vmatprep.subr.bf16.mxu1 %v2958_v1  ;;  %v2862_v57 = vld [vmem:[%s3026_s30 + $0xd8] ss:$12 sps:$4 sm:$0xff]   ;;  %v2863_v58 = vld [vmem:[%s3026_s30 + $0x50] ss:$12 sps:$4 sm:$0xff]   ;;  %v2866_v60 = vld [vmem:[%s3026_s30 + $0x68] ss:$12 sps:$4 sm:$0xff]  }
  0x20   : > { %v2867_v61 = vld [vmem:[%s3026_s30 + $0xf0] ss:$12 sps:$4 sm:$0xff]   ;;  %v2868_v62 = vld [vmem:[%s3026_s30 + $0x80] ss:$12 sps:$4 sm:$0xff]   ;;  %v2871_v0 = vld [vmem:[%s3026_s30 + $0x98] ss:$12 sps:$4 sm:$0xff]  }
  0x21   : > { %v2869_v63 = vld [vmem:[%s3026_s30 + $0x10c] ss:$12 sps:$4 sm:$0xff]   ;;  %v2873_v2 = vld [vmem:[%s3026_s30 + $0xb0] ss:$12 sps:$4 sm:$0xff]   ;;  %v2876_v4 = vld [vmem:[%s3026_s30 + $0xc8] ss:$12 sps:$4 sm:$0xff]  }
  0x22   : > { %1096 = vmatpush1.bf16.msra.mxu0 %v2793_v7  ;;  %2751 = vmatpush1.bf16.msra.mxu1 %v2793_v7  ;;  %v2874_v3 = vld [vmem:[%s3026_s30 + $0x124] ss:$12 sps:$4 sm:$0xff]   ;;  %v2877_v5 = vld [vmem:[%s3026_s30 + $0x120] ss:$12 sps:$4 sm:$0xff]   ;;  %v2879_v7 = vld [vmem:[%s3026_s30 + $0x13c] ss:$12 sps:$4 sm:$0xff]  }
  0x23   : > { %1097 = vmatprep.subr.bf16.mxu0 %v2958_v1  ;;  %2736 = vmatprep.subr.bf16.mxu1 %v2958_v1  ;;  %v2878_v6 = vld [vmem:[%s3026_s30 + $0xe0] ss:$12 sps:$4 sm:$0xff]   ;;  %v2881_v8 = vld [vmem:[%s3026_s30 + $0xf8] ss:$12 sps:$4 sm:$0xff]  }
  0x26   : > { %1098 = vmatpush1.bf16.msra.mxu0 %v2794_v9  ;;  %2752 = vmatpush1.bf16.msra.mxu1 %v2794_v9  ;;  %v2882_v9 = vld [vmem:[%s3026_s30 + $0x138] ss:$12 sps:$4 sm:$0xff]  }
  0x27   : > { %1099 = vmatprep.subr.bf16.mxu0 %v2958_v1  ;;  %2737 = vmatprep.subr.bf16.mxu1 %v2958_v1 }
  0x2a   : > { %1100 = vmatpush1.bf16.msra.mxu0 %v2795_v10  ;;  %2753 = vmatpush1.bf16.msra.mxu1 %v2795_v10  ;;  %v2883_v10 = vld [vmem:[%s3026_s30 + $0x110] ss:$12 sps:$4 sm:$0xff]  }
  0x2b   : > { %1101 = vmatprep.subr.bf16.mxu0 %v2958_v1  ;;  %2738 = vmatprep.subr.bf16.mxu1 %v2958_v1 }
  0x2e   : > { %1102 = vmatpush2.bf16.msra.mxu0 %v2796_v11  ;;  %2754 = vmatpush2.bf16.msra.mxu1 %v2796_v11  ;;  %v2884_v11 = vld [vmem:[%s3026_s30 + $0x154] ss:$12 sps:$4 sm:$0xff]  }
  0x2f   : > { %1103 = vmatprep.subr.bf16.mxu0 %v2958_v1  ;;  %2739 = vmatprep.subr.bf16.mxu1 %v2958_v1 }
  0x32   : > { %1104 = vmatpush2.bf16.msra.mxu0 %v2797_v12  ;;  %2755 = vmatpush2.bf16.msra.mxu1 %v2797_v12  ;;  %v2886_v12 = vld [vmem:[%s3026_s30 + $0x128] ss:$12 sps:$4 sm:$0xff]  }
  0x33   : > { %1105 = vmatprep.subr.bf16.mxu0 %v2958_v1  ;;  %2740 = vmatprep.subr.bf16.mxu1 %v2958_v1 }
  0x36   : > { %1106 = vmatpush2.bf16.msra.mxu0 %v2798_v13  ;;  %2756 = vmatpush2.bf16.msra.mxu1 %v2798_v13  ;;  %v2887_v13 = vld [vmem:[%s3026_s30 + $0x150] ss:$12 sps:$4 sm:$0xff]  }
  0x37   : > { %1107 = vmatprep.subr.bf16.mxu0 %v2958_v1  ;;  %2741 = vmatprep.subr.bf16.mxu1 %v2958_v1 }
  0x3a   : > { %1108 = vmatpush2.bf16.msra.mxu0 %v2799_v14  ;;  %2757 = vmatpush2.bf16.msra.mxu1 %v2799_v14  ;;  %v2888_v14 = vld [vmem:[%s3026_s30 + $0x140] ss:$12 sps:$4 sm:$0xff]  }
  0x3b   : > { %1109 = vmatprep.subr.bf16.mxu0 %v2958_v1  ;;  %2742 = vmatprep.subr.bf16.mxu1 %v2958_v1 }
  0x3e   : > { %1110 = vmatpush2.bf16.msra.mxu0 %v2800_v15  ;;  %2758 = vmatpush2.bf16.msra.mxu1 %v2800_v15  ;;  %v2889_v15 = vld [vmem:[%s3026_s30 + $0x16c] ss:$12 sps:$4 sm:$0xff]  }
  0x3f   : > { %1111 = vmatprep.subr.bf16.mxu0 %v2958_v1  ;;  %2743 = vmatprep.subr.bf16.mxu1 %v2958_v1 }
  0x42   : > { %1112 = vmatpush2.bf16.msra.mxu0 %v2801_v16  ;;  %2759 = vmatpush2.bf16.msra.mxu1 %v2801_v16  ;;  %v2891_v16 = vld [vmem:[%s3026_s30 + $0x158] ss:$12 sps:$4 sm:$0xff]  }
  0x43   : > { %1113 = vmatprep.subr.bf16.mxu0 %v2958_v1  ;;  %2744 = vmatprep.subr.bf16.mxu1 %v2958_v1 }
  0x46   : > { %1114 = vmatpush2.bf16.msra.mxu0 %v2802_v17  ;;  %2760 = vmatpush2.bf16.msra.mxu1 %v2802_v17  ;;  %v2892_v17 = vld [vmem:[%s3026_s30 + $0x168] ss:$12 sps:$4 sm:$0xff]  }
  0x47   : > { %1115 = vmatprep.subr.bf16.mxu0 %v2958_v1  ;;  %2745 = vmatprep.subr.bf16.mxu1 %v2958_v1  ;;  %v2872_v1 = vld [vmem:[%s3026_s30 + $0x108] ss:$12 sps:$4 sm:$0xff]  }
  0x4a   : > { %1116 = vmatpush2.bf16.msra.mxu0 %v2803_v18  ;;  %2761 = vmatpush2.bf16.msra.mxu1 %v2803_v18  ;;  %v2893_v18 = vld [vmem:[%s3026_s30 + $0x170] ss:$12 sps:$4 sm:$0xff]  }
  0x4b   : > { %2662 = vmatprep.subr.bf16.mxu1 %v2810_v19 }
  0x4d   : > { %1118 = vmatmul.mubr.bf16.vlgmr.msra.gmra.mxu0 %v2804_v20  ;;  %1310 = vmatmul.mubr.bf16.vlgmr.msra.gmra.mxu1 %v2807_v21  ;;  %v2896_v20 = vld [vmem:[%s3026_s30 + $0x188] ss:$12 sps:$4 sm:$0xff]   ;;  %v2897_v21 = vld [vmem:[%s3026_s30 + $0x180] ss:$12 sps:$4 sm:$0xff]  }
  0x4e   : > { %2663 = vmatpush3.bf16.msra.mxu1 %v2810_v19  ;;  %1125 = vmatprep.mubr.bf16.mxu0 %v2811_v22  ;;  %v2894_v19 = vld [vmem:[%s3026_s30 + $0x184] ss:$12 sps:$4 sm:$0xff]   ;;  %v2898_v22 = vld [vmem:[%s3026_s30 + $0x1a0] ss:$12 sps:$4 sm:$0xff]  }
  0x4f   : > { %1317 = vmatprep.mubr.bf16.mxu1 %v2813_v23  ;;  %2664 = vmatprep.subr.bf16.mxu1 %v2835_v24  ;;  %v2899_v23 = vld [vmem:[%s3026_s30 + $0x19c] ss:$12 sps:$4 sm:$0xff]  }
  0x52   : > { %2665 = vmatpush3.bf16.msra.mxu1 %v2835_v24  ;;  %v2901_v24 = vld [vmem:[%s3026_s30 + $0x1b8] ss:$12 sps:$4 sm:$0xff]  }
  0x55   : > { %1126 = vmatmul.mubr.bf16.gmra.mxu0 %v2815_v25  ;;  %1318 = vmatmul.mubr.bf16.gmra.mxu1 %v2816_v26  ;;  %v2902_v25 = vld [vmem:[%s3026_s30 + $0x198] ss:$12 sps:$4 sm:$0xff]   ;;  %v2903_v26 = vld [vmem:[%s3026_s30 + $0x1d0] ss:$12 sps:$4 sm:$0xff]  }
  0x56   : > { %1133 = vmatprep.mubr.bf16.mxu0 %v2817_v27  ;;  %1325 = vmatprep.mubr.bf16.mxu1 %v2819_v28  ;;  %v2904_v27 = vld [vmem:[%s3026_s30 + $0x1b4] ss:$12 sps:$4 sm:$0xff]  }
  0x57   : > { %v2906_v28 = vld [vmem:[%s3026_s30 + $0x1e8] ss:$12 sps:$4 sm:$0xff]  }
  0x5d   : > { %1134 = vmatmul.mubr.bf16.gmra.mxu0 %v2821_v29  ;;  %1326 = vmatmul.mubr.bf16.gmra.mxu1 %v2822_v30  ;;  %v2907_v29 = vld [vmem:[%s3026_s30 + $0x1b0] ss:$12 sps:$4 sm:$0xff]   ;;  %v2908_v30 = vld [vmem:[%s3026_s30 + $0x200] ss:$12 sps:$4 sm:$0xff]  }
  0x5e   : > { %1141 = vmatprep.mubr.bf16.mxu0 %v2823_v31  ;;  %1333 = vmatprep.mubr.bf16.mxu1 %v2825_v32  ;;  %v2909_v31 = vld [vmem:[%s3026_s30 + $0x1cc] ss:$12 sps:$4 sm:$0xff]  }
  0x5f   : > { %v2911_v32 = vld [vmem:[%s3026_s30 + $0x218] ss:$12 sps:$4 sm:$0xff]  }
  0x65   : > { %1142 = vmatmul.mubr.bf16.gmra.mxu0 %v2827_v33  ;;  %1334 = vmatmul.mubr.bf16.gmra.mxu1 %v2828_v34  ;;  %v2912_v33 = vld [vmem:[%s3026_s30 + $0x1c8] ss:$12 sps:$4 sm:$0xff]   ;;  %v2913_v34 = vld [vmem:[%s3026_s30 + $0x230] ss:$12 sps:$4 sm:$0xff]  }
  0x66   : > { %1149 = vmatprep.mubr.bf16.mxu0 %v2829_v35  ;;  %1341 = vmatprep.mubr.bf16.mxu1 %v2831_v36  ;;  %v2914_v35 = vld [vmem:[%s3026_s30 + $0x1e4] ss:$12 sps:$4 sm:$0xff]   ;;  %v2916_v36 = vld [vmem:[%s3026_s30 + $0x248] ss:$12 sps:$4 sm:$0xff]  }
  0x6d   : > { %1150 = vmatmul.mubr.bf16.gmra.mxu0 %v2833_v37  ;;  %1342 = vmatmul.mubr.bf16.gmra.mxu1 %v2834_v38  ;;  %v2917_v37 = vld [vmem:[%s3026_s30 + $0x1e0] ss:$12 sps:$4 sm:$0xff]  }
  0x6e   : > { %1157 = vmatprep.mubr.bf16.mxu0 %v2836_v39  ;;  %1349 = vmatprep.mubr.bf16.mxu1 %v2838_v40  ;;  %v2918_v38 = vld [vmem:[%s3026_s30 + $0x260] ss:$12 sps:$4 sm:$0xff]   ;;  %v2919_v39 = vld [vmem:[%s3026_s30 + $0x1fc] ss:$12 sps:$4 sm:$0xff]   ;;  %v2921_v40 = vld [vmem:[%s3026_s30 + $0x278] ss:$12 sps:$4 sm:$0xff]  }
  0x75   : > { %1158 = vmatmul.mubr.bf16.gmra.mxu0 %v2840_v41  ;;  %1350 = vmatmul.mubr.bf16.gmra.mxu1 %v2841_v42  ;;  %v2922_v41 = vld [vmem:[%s3026_s30 + $0x1f8] ss:$12 sps:$4 sm:$0xff]   ;;  %v2923_v42 = vld [vmem:[%s3026_s30 + $0x290] ss:$12 sps:$4 sm:$0xff]  }
  0x76   : > { %1165 = vmatprep.mubr.bf16.mxu0 %v2842_v43  ;;  %1357 = vmatprep.mubr.bf16.mxu1 %v2844_v44  ;;  %v2924_v43 = vld [vmem:[%s3026_s30 + $0x214] ss:$12 sps:$4 sm:$0xff]  }
  0x77   : > { %v2926_v44 = vld [vmem:[%s3026_s30 + $0x2a8] ss:$12 sps:$4 sm:$0xff]  }
  0x7d   : > { %1166 = vmatmul.mubr.bf16.gmra.mxu0 %v2846_v45  ;;  %1358 = vmatmul.mubr.bf16.gmra.mxu1 %v2847_v46  ;;  %v2927_v45 = vld [vmem:[%s3026_s30 + $0x210] ss:$12 sps:$4 sm:$0xff]   ;;  %v2928_v46 = vld [vmem:[%s3026_s30 + $0x2c0] ss:$12 sps:$4 sm:$0xff]  }
  0x7e   : > { %1173 = vmatprep.mubr.bf16.mxu0 %v2848_v47  ;;  %1365 = vmatprep.mubr.bf16.mxu1 %v2850_v48  ;;  %v2929_v47 = vld [vmem:[%s3026_s30 + $0x22c] ss:$12 sps:$4 sm:$0xff]  }
  0x7f   : > { %v2931_v48 = vld [vmem:[%s3026_s30 + $0x2d8] ss:$12 sps:$4 sm:$0xff]  }
  0x85   : > { %1174 = vmatmul.mubr.bf16.gmra.mxu0 %v2852_v49  ;;  %1366 = vmatmul.mubr.bf16.gmra.mxu1 %v2853_v50  ;;  %v2932_v49 = vld [vmem:[%s3026_s30 + $0x228] ss:$12 sps:$4 sm:$0xff]   ;;  %v2933_v50 = vld [vmem:[%s3026_s30 + $0x2f0] ss:$12 sps:$4 sm:$0xff]  }
  0x86   : > { %1181 = vmatprep.mubr.bf16.mxu0 %v2854_v51  ;;  %2666 = vmatprep.mubr.msk.bf16.mxu1 %vm988_vm0, %v2856_v52 }
  0x8d   : > { %1182 = vmatmul.mubr.bf16.gmra.mxu0 %v2857_v53  ;;  %2667 = vmatmul.mubr.msk.bf16.vlgmr.msra.gmra.mxu1 %vm988_vm0, %v2858_v54 }
  0x8e   : > { %1189 = vmatprep.mubr.bf16.mxu0 %v2859_v55  ;;  %2670 = vmatprep.mubr.msk.bf16.mxu1 %vm988_vm0, %v2861_v56 }
  0x95   : > { %1190 = vmatmul.mubr.bf16.gmra.mxu0 %v2862_v57  ;;  %2671 = vmatmul.mubr.msk.bf16.gmra.mxu1 %vm988_vm0, %v2863_v58 }
  0x96   : > { %1197 = vmatprep.mubr.bf16.mxu0 %v2864_v59  ;;  %2674 = vmatprep.mubr.msk.bf16.mxu1 %vm988_vm0, %v2866_v60 }
  0x9d   : > { %1198 = vmatmul.mubr.bf16.gmra.mxu0 %v2867_v61  ;;  %2675 = vmatmul.mubr.msk.bf16.gmra.mxu1 %vm988_vm0, %v2868_v62 }
  0x9e   : > { %1205 = vmatprep.mubr.bf16.mxu0 %v2869_v63  ;;  %2678 = vmatprep.mubr.msk.bf16.mxu1 %vm988_vm0, %v2871_v0 }
  0xa5   : > { %1206 = vmatmul.mubr.bf16.gmra.mxu0 %v2872_v1  ;;  %2679 = vmatmul.mubr.msk.bf16.gmra.mxu1 %vm988_vm0, %v2873_v2 }
  0xa6   : > { %1213 = vmatprep.mubr.bf16.mxu0 %v2874_v3  ;;  %2682 = vmatprep.mubr.msk.bf16.mxu1 %vm988_vm0, %v2876_v4 }
  0xad   : > { %1214 = vmatmul.mubr.bf16.gmra.mxu0 %v2877_v5  ;;  %2683 = vmatmul.mubr.msk.bf16.gmra.mxu1 %vm988_vm0, %v2878_v6 }
  0xae   : > { %1221 = vmatprep.mubr.bf16.mxu0 %v2879_v7  ;;  %2686 = vmatprep.mubr.msk.bf16.mxu1 %vm988_vm0, %v2881_v8 }
  0xb5   : > { %1222 = vmatmul.mubr.bf16.gmra.mxu0 %v2882_v9  ;;  %2687 = vmatmul.mubr.msk.bf16.gmra.mxu1 %vm988_vm0, %v2883_v10 }
  0xb6   : > { %1229 = vmatprep.mubr.bf16.mxu0 %v2884_v11  ;;  %2690 = vmatprep.mubr.msk.bf16.mxu1 %vm988_vm0, %v2886_v12 }
  0xbd   : > { %1230 = vmatmul.mubr.bf16.gmra.mxu0 %v2887_v13  ;;  %2691 = vmatmul.mubr.msk.bf16.gmra.mxu1 %vm988_vm0, %v2888_v14 }
  0xbe   : > { %1237 = vmatprep.mubr.bf16.mxu0 %v2889_v15  ;;  %2694 = vmatprep.mubr.msk.bf16.mxu1 %vm988_vm0, %v2891_v16 }
  0xc5   : > { %1238 = vmatmul.mubr.bf16.gmra.mxu0 %v2892_v17  ;;  %2695 = vmatmul.mubr.msk.bf16.gmra.mxu1 %vm988_vm0, %v2893_v18 }
  0xc6   : > { %1245 = vmatprep.mubr.bf16.mxu0 %v2894_v19  ;;  %2698 = vmatprep.mubr.msk.bf16.mxu1 %vm988_vm0, %v2896_v20 }
  0xcd   : > { %1246 = vmatmul.mubr.bf16.gmra.mxu0 %v2897_v21  ;;  %2699 = vmatmul.mubr.msk.bf16.gmra.mxu1 %vm988_vm0, %v2898_v22 }
  0xce   : > { %1253 = vmatprep.mubr.bf16.mxu0 %v2899_v23  ;;  %2702 = vmatprep.mubr.msk.bf16.mxu1 %vm988_vm0, %v2901_v24 }
  0xd5   : > { %1254 = vmatmul.mubr.bf16.gmra.mxu0 %v2902_v25  ;;  %2703 = vmatmul.mubr.msk.bf16.gmra.mxu1 %vm988_vm0, %v2903_v26 }
  0xd6   : > { %1261 = vmatprep.mubr.bf16.mxu0 %v2904_v27  ;;  %2706 = vmatprep.mubr.msk.bf16.mxu1 %vm988_vm0, %v2906_v28 }
  0xdd   : > { %1262 = vmatmul.mubr.bf16.gmra.mxu0 %v2907_v29  ;;  %2707 = vmatmul.mubr.msk.bf16.gmra.mxu1 %vm988_vm0, %v2908_v30 }
  0xde   : > { %1269 = vmatprep.mubr.bf16.mxu0 %v2909_v31  ;;  %2710 = vmatprep.mubr.msk.bf16.mxu1 %vm988_vm0, %v2911_v32 }
  0xe5   : > { %1270 = vmatmul.mubr.bf16.gmra.mxu0 %v2912_v33  ;;  %2711 = vmatmul.mubr.msk.bf16.gmra.mxu1 %vm988_vm0, %v2913_v34 }
  0xe6   : > { %1277 = vmatprep.mubr.bf16.mxu0 %v2914_v35  ;;  %2714 = vmatprep.mubr.msk.bf16.mxu1 %vm988_vm0, %v2916_v36 }
  0xed   : > { %1278 = vmatmul.mubr.bf16.gmra.mxu0 %v2917_v37  ;;  %2715 = vmatmul.mubr.msk.bf16.gmra.mxu1 %vm988_vm0, %v2918_v38 }
  0xee   : > { %1285 = vmatprep.mubr.bf16.mxu0 %v2919_v39  ;;  %2718 = vmatprep.mubr.msk.bf16.mxu1 %vm988_vm0, %v2921_v40 }
  0xf5   : > { %1286 = vmatmul.mubr.bf16.gmra.mxu0 %v2922_v41  ;;  %2719 = vmatmul.mubr.msk.bf16.gmra.mxu1 %vm988_vm0, %v2923_v42 }
  0xf6   : > { %1293 = vmatprep.mubr.bf16.mxu0 %v2924_v43  ;;  %2722 = vmatprep.mubr.msk.bf16.mxu1 %vm988_vm0, %v2926_v44 }
  0xfd   : > { %1294 = vmatmul.mubr.bf16.gmra.mxu0 %v2927_v45  ;;  %2723 = vmatmul.mubr.msk.bf16.gmra.mxu1 %vm988_vm0, %v2928_v46 }
  0xfe   : > { %1301 = vmatprep.mubr.bf16.mxu0 %v2929_v47  ;;  %2726 = vmatprep.mubr.msk.bf16.mxu1 %vm988_vm0, %v2931_v48 }
 0x105   : > { %1302 = vmatmul.mubr.bf16.gmra.mxu0 %v2932_v49  ;;  %2727 = vmatmul.mubr.msk.bf16.gmra.mxu1 %vm988_vm0, %v2933_v50 }
 0x10d   : > { %v3219_v51 = vpop.f32.mrf.mxu0  ;;  %v3221_v52 = vpop.f32.mrf.mxu1 }
 0x10f   : > { %v1121_v53 = vpop.f32.mrf.mxu0  ;;  %v1313_v54 = vpop.f32.mrf.mxu1 }
 0x110   : > { %v3282_v53 = vld [vmem:[%s3463_s2] ss:$0 sm:$0xff] }
 0x111   : > { %v3223_v55 = vpop.f32.mrf.mxu0  ;;  %v3225_v56 = vpop.f32.mrf.mxu1 }
 0x113   : > { %v1124_v57 = vpop.f32.mrf.mxu0  ;;  %v1316_v58 = vpop.f32.mrf.mxu1 }
 0x115   : > { %v1127_v59 = vpop.f32.mrf.mxu0  ;;  %v3227_v60 = vpop.f32.mrf.mxu1 }
 0x116   : > { %v1128_v58 = vadd.f32 %v3282_v53, %v1127_v59 }
 0x117   : > { %v1129_v61 = vpop.f32.mrf.mxu0  ;;  %v1321_v62 = vpop.f32.mrf.mxu1 }
 0x119   : > { %v1130_v63 = vpop.f32.mrf.mxu0  ;;  %v3229_v0 = vpop.f32.mrf.mxu1 }
 0x11b   : > { %v1132_v1 = vpop.f32.mrf.mxu0  ;;  %v1324_v2 = vpop.f32.mrf.mxu1 }
 0x11c   : > { %v1120_v1 = vadd.f32 %v3282_v53, %v3219_v51  ;;  %v1131_v2 = vadd.f32 %v3282_v53, %v1130_v63 }
 0x11d   : > { %v3231_v3 = vpop.f32.mrf.mxu0  ;;  %v3233_v4 = vpop.f32.mrf.mxu1 }
 0x11f   : > { %v1137_v5 = vpop.f32.mrf.mxu0  ;;  %v1329_v6 = vpop.f32.mrf.mxu1 }
 0x121   : > { %v3235_v7 = vpop.f32.mrf.mxu0  ;;  %v3237_v8 = vpop.f32.mrf.mxu1 }
 0x123   : > { %v1140_v9 = vpop.f32.mrf.mxu0  ;;  %v1332_v10 = vpop.f32.mrf.mxu1 }
 0x124   : > { %v1123_v10 = vadd.f32 %v3282_v53, %v3223_v55 }
 0x125   : > { %v3239_v11 = vpop.f32.mrf.mxu0  ;;  %v3241_v12 = vpop.f32.mrf.mxu1 }
 0x126   : > { %v1144_v55 = vadd.f32 %v3282_v53, %v3239_v11  ;;  %v1139_v11 = vadd.f32 %v3282_v53, %v3235_v7 }
 0x127   : > { %v1145_v13 = vpop.f32.mrf.mxu0  ;;  %v1337_v14 = vpop.f32.mrf.mxu1 }
 0x129   : > { %v3243_v15 = vpop.f32.mrf.mxu0  ;;  %v3245_v16 = vpop.f32.mrf.mxu1 }
 0x12b   : > { %v1148_v17 = vpop.f32.mrf.mxu0  ;;  %v1340_v18 = vpop.f32.mrf.mxu1 }
 0x12d   : > { %v3247_v19 = vpop.f32.mrf.mxu0  ;;  %v3249_v20 = vpop.f32.mrf.mxu1 }
 0x12f   : > { %v1153_v21 = vpop.f32.mrf.mxu0  ;;  %v1345_v22 = vpop.f32.mrf.mxu1 }
 0x131   : > { %v3251_v23 = vpop.f32.mrf.mxu0  ;;  %v3253_v24 = vpop.f32.mrf.mxu1 }
 0x133   : > { %v1156_v25 = vpop.f32.mrf.mxu0  ;;  %v1348_v26 = vpop.f32.mrf.mxu1 }
 0x135   : > { %v3255_v27 = vpop.f32.mrf.mxu0  ;;  %v3257_v28 = vpop.f32.mrf.mxu1 }
 0x137   : > { %v1161_v29 = vpop.f32.mrf.mxu0  ;;  %v1353_v30 = vpop.f32.mrf.mxu1 }
 0x139   : > { %v3259_v31 = vpop.f32.mrf.mxu0  ;;  %v3261_v32 = vpop.f32.mrf.mxu1 }
 0x13b   : > { %v1164_v33 = vpop.f32.mrf.mxu0  ;;  %v1356_v34 = vpop.f32.mrf.mxu1 }
 0x13c   : > { %v1136_v34 = vadd.f32 %v3282_v53, %v3231_v3 }
 0x13d   : > { %v3263_v35 = vpop.f32.mrf.mxu0  ;;  %v3265_v36 = vpop.f32.mrf.mxu1 }
 0x13f   : > { %v1169_v37 = vpop.f32.mrf.mxu0  ;;  %v1361_v38 = vpop.f32.mrf.mxu1 }
 0x140   : > { %v1147_v37 = vadd.f32 %v3282_v53, %v3243_v15 }
 0x141   : > { %v3267_v39 = vpop.f32.mrf.mxu0  ;;  %v3269_v40 = vpop.f32.mrf.mxu1 }
 0x143   : > { %v1172_v41 = vpop.f32.mrf.mxu0  ;;  %v1364_v42 = vpop.f32.mrf.mxu1 }
 0x145   : > { %v3271_v43 = vpop.f32.mrf.mxu0  ;;  %v3273_v44 = vpop.f32.mrf.mxu1 }
 0x147   : > { %v1177_v45 = vpop.f32.mrf.mxu0  ;;  %v1369_v46 = vpop.f32.mrf.mxu1 }
 0x149   : > { %v3275_v47 = vpop.f32.mrf.mxu0  ;;  %v3277_v48 = vpop.f32.mrf.mxu1 }
 0x14b   : > { %v1180_v49 = vpop.f32.mrf.mxu0  ;;  %v1372_v50 = vpop.f32.mrf.mxu1 }
 0x14d   : > { %v3284_v54 = vpop.f32.mrf.mxu0  ;;  %v2668_v57 = vpop.f32.mrf.mxu1 }
 0x14e   : > { %v1417_v5 = vadd.f32 %v2668_v57, %v1128_v58 }
 0x14f   : > { %v1185_v61 = vpop.f32.mrf.mxu0  ;;  %v1408_v62 = vpop.f32.mrf.mxu1 }
 0x150   : > { %v1409_v13 = vadd.f32 %v1408_v62, %v1120_v1  ;;  %v1665_v59 = vmax.f32 %v1417_v5, 0.0  ;;  %v1160_v1 = vadd.f32 %v3282_v53, %v3255_v27  ;;  %v1155_v27 = vadd.f32 %v3282_v53, %v3251_v23 }
 0x151   : > { %v3290_v6 = vpop.f32.mrf.mxu0  ;;  %v2669_v9 = vpop.f32.mrf.mxu1 }
 0x152   : > { %v1420_v14 = vadd.f32 %v2669_v9, %v1131_v2  ;;  %v1663_v25 = vmax.f32 %v1409_v13, 0.0  ;;  %v1152_v13 = vadd.f32 %v3282_v53, %v3247_v19 }
 0x153   : > { %v1188_v17 = vpop.f32.mrf.mxu0  ;;  %v1411_v18 = vpop.f32.mrf.mxu1 }
 0x154   : > { %v1666_v21 = vmax.f32 %v1420_v14, 0.0  ;;  %v1412_v22 = vadd.f32 %v1411_v18, %v1123_v10  ;;  %v1163_v14 = vadd.f32 %v3282_v53, %v3259_v31 }
 0x155   : > { %v3300_v51 = vpop.f32.mrf.mxu0  ;;  %v2672_v63 = vpop.f32.mrf.mxu1 }
 0x156   : > { %v2445_v26 = vpack.c.bf16 %v1666_v21, %v1665_v59  ;;  %v1664_v29 = vmax.f32 %v1412_v22, 0.0  ;;  %v1433_v41 = vadd.f32 %v2672_v63, %v1144_v55 }
 0x157   : > { %v1193_v30 = vpop.f32.mrf.mxu0  ;;  %v1424_v33 = vpop.f32.mrf.mxu1 }
 0x158   : > { %2597 = vst [vmem:[%s3298_s12 + $0x8] sm:$0xff] %v2445_v26   ;;  %v2440_v38 = vpack.c.bf16 %v1664_v29, %v1663_v25  ;;  %v1425_v46 = vadd.f32 %v1424_v33, %v1136_v34  ;;  %v1669_v58 = vmax.f32 %v1433_v41, 0.0  ;;  %v1176_v33 = vadd.f32 %v3282_v53, %v3271_v43 }
 0x159   : > { %v3309_v42 = vpop.f32.mrf.mxu0  ;;  %v2673_v45 = vpop.f32.mrf.mxu1 }
 0x15a   : > { %2441 = vst [vmem:[%s3298_s12] sm:$0xff] %v2440_v38   ;;  %v1436_v49 = vadd.f32 %v2673_v45, %v1147_v37  ;;  %v1667_v2 = vmax.f32 %v1425_v46, 0.0  ;;  %v1168_v45 = vadd.f32 %v3282_v53, %v3263_v35 }
 0x15b   : > { %v1196_v50 = vpop.f32.mrf.mxu0  ;;  %v1427_v57 = vpop.f32.mrf.mxu1 }
 0x15c   : > { %v1670_v3 = vmax.f32 %v1436_v49, 0.0  ;;  %v1428_v61 = vadd.f32 %v1427_v57, %v1139_v11  ;;  %v1179_v11 = vadd.f32 %v3282_v53, %v3275_v47 }
 0x15d   : > { %v3314_v62 = vpop.f32.mrf.mxu0  ;;  %v2676_v15 = vpop.f32.mrf.mxu1 }
 0x15e   : > { %v2455_v5 = vpack.c.bf16 %v1670_v3, %v1669_v58  ;;  %v1668_v9 = vmax.f32 %v1428_v61, 0.0  ;;  %v1449_v18 = vadd.f32 %v2676_v15, %v1160_v1  ;;  %v1171_v58 = vadd.f32 %v3282_v53, %v3267_v39 }
 0x15f   : > { %v1201_v7 = vpop.f32.mrf.mxu0  ;;  %v1440_v10 = vpop.f32.mrf.mxu1 }
 0x160   : > { %2599 = vst [vmem:[%s3298_s12 + $0x18] sm:$0xff] %v2455_v5   ;;  %v2450_v17 = vpack.c.bf16 %v1668_v9, %v1667_v2  ;;  %v1441_v22 = vadd.f32 %v1440_v10, %v1152_v13  ;;  %v1673_v26 = vmax.f32 %v1449_v18, 0.0  ;;  %v1192_v9 = vadd.f32 %v3282_v53, %v3300_v51 }
 0x161   : > { %v3323_v59 = vpop.f32.mrf.mxu0  ;;  %v2677_v21 = vpop.f32.mrf.mxu1  ;;  %v1195_v18 = vadd.f32 %v3282_v53, %v3309_v42 }
 0x162   : > { %2598 = vst [vmem:[%s3298_s12 + $0x10] sm:$0xff] %v2450_v17   ;;  %v1452_v63 = vadd.f32 %v2677_v21, %v1163_v14  ;;  %v1671_v34 = vmax.f32 %v1441_v22, 0.0  ;;  %v1184_v17 = vadd.f32 %v3282_v53, %v3284_v54 }
 0x163   : > { %v1204_v55 = vpop.f32.mrf.mxu0  ;;  %v1443_v25 = vpop.f32.mrf.mxu1 }
 0x164   : > { %v1674_v19 = vmax.f32 %v1452_v63, 0.0  ;;  %v1444_v29 = vadd.f32 %v1443_v25, %v1155_v27  ;;  %v1187_v55 = vadd.f32 %v3282_v53, %v3290_v6  ;;  %v1200_v6 = vadd.f32 %v3282_v53, %v3314_v62 }
 0x165   : > { %v1207_v30 = vpop.f32.mrf.mxu0  ;;  %v2680_v31 = vpop.f32.mrf.mxu1 }
 0x166   : > { %v2465_v37 = vpack.c.bf16 %v1674_v19, %v1673_v26  ;;  %v1672_v38 = vmax.f32 %v1444_v29, 0.0  ;;  %v1465_v49 = vadd.f32 %v2680_v31, %v1176_v33 }
 0x167   : > { %v1209_v41 = vpop.f32.mrf.mxu0  ;;  %v1456_v23 = vpop.f32.mrf.mxu1 }
 0x168   : > { %2601 = vst [vmem:[%s3298_s12 + $0x28] sm:$0xff] %v2465_v37   ;;  %v2460_v46 = vpack.c.bf16 %v1672_v38, %v1671_v34  ;;  %v1457_v43 = vadd.f32 %v1456_v23, %v1168_v45  ;;  %v1677_v1 = vmax.f32 %v1465_v49, 0.0  ;;  %v1208_v34 = vadd.f32 %v3282_v53, %v1207_v30 }
 0x169   : > { %v1210_v50 = vpop.f32.mrf.mxu0  ;;  %v2681_v57 = vpop.f32.mrf.mxu1 }
 0x16a   : > { %2600 = vst [vmem:[%s3298_s12 + $0x20] sm:$0xff] %v2460_v46   ;;  %v1468_v3 = vadd.f32 %v2681_v57, %v1179_v11  ;;  %v1675_v7 = vmax.f32 %v1457_v43, 0.0  ;;  %v1211_v11 = vadd.f32 %v3282_v53, %v1210_v50  ;;  %v1203_v43 = vadd.f32 %v3282_v53, %v3323_v59 }
 0x16b   : > { %v1212_v61 = vpop.f32.mrf.mxu0  ;;  %v1459_v15 = vpop.f32.mrf.mxu1 }
 0x16c   : > { %v1678_v2 = vmax.f32 %v1468_v3, 0.0  ;;  %v1460_v35 = vadd.f32 %v1459_v15, %v1171_v58 }
 0x16d   : > { %v1215_v5 = vpop.f32.mrf.mxu0  ;;  %v2684_v47 = vpop.f32.mrf.mxu1 }
 0x16e   : > { %v2475_v10 = vpack.c.bf16 %v1678_v2, %v1677_v1  ;;  %v1676_v13 = vmax.f32 %v1460_v35, 0.0  ;;  %v1481_v27 = vadd.f32 %v2684_v47, %v1192_v9  ;;  %v1216_v59 = vadd.f32 %v3282_v53, %v1215_v5 }
 0x16f   : > { %v1217_v14 = vpop.f32.mrf.mxu0  ;;  %v1472_v39 = vpop.f32.mrf.mxu1 }
 0x170   : > { %2603 = vst [vmem:[%s3298_s12 + $0x38] sm:$0xff] %v2475_v10   ;;  %v2470_v21 = vpack.c.bf16 %v1676_v13, %v1675_v7  ;;  %v1473_v51 = vadd.f32 %v1472_v39, %v1184_v17  ;;  %v1681_v29 = vmax.f32 %v1481_v27, 0.0 }
 0x171   : > { %v1218_v22 = vpop.f32.mrf.mxu0  ;;  %v2685_v63 = vpop.f32.mrf.mxu1 }
 0x172   : > { %2602 = vst [vmem:[%s3298_s12 + $0x30] sm:$0xff] %v2470_v21   ;;  %v1484_v25 = vadd.f32 %v2685_v63, %v1195_v18  ;;  %v1679_v37 = vmax.f32 %v1473_v51, 0.0  ;;  %v1219_v63 = vadd.f32 %v3282_v53, %v1218_v22 }
 0x173   : > { %v1220_v26 = vpop.f32.mrf.mxu0  ;;  %v1475_v19 = vpop.f32.mrf.mxu1 }
 0x174   : > { %v1682_v31 = vmax.f32 %v1484_v25, 0.0  ;;  %v1476_v54 = vadd.f32 %v1475_v19, %v1187_v55 }
 0x175   : > { %v1223_v33 = vpop.f32.mrf.mxu0  ;;  %v2688_v42 = vpop.f32.mrf.mxu1 }
 0x176   : > { %v2485_v38 = vpack.c.bf16 %v1682_v31, %v1681_v29  ;;  %v1680_v41 = vmax.f32 %v1476_v54, 0.0  ;;  %v1497_v49 = vadd.f32 %v2688_v42, %v1208_v34  ;;  %v1224_v47 = vadd.f32 %v3282_v53, %v1223_v33 }
 0x177   : > { %v1225_v23 = vpop.f32.mrf.mxu0  ;;  %v1488_v45 = vpop.f32.mrf.mxu1 }
 0x178   : > { %2605 = vst [vmem:[%s3298_s12 + $0x48] sm:$0xff] %v2485_v38   ;;  %v2480_v46 = vpack.c.bf16 %v1680_v41, %v1679_v37  ;;  %v1489_v30 = vadd.f32 %v1488_v45, %v1200_v6  ;;  %v1685_v1 = vmax.f32 %v1497_v49, 0.0 }
 0x179   : > { %v1226_v57 = vpop.f32.mrf.mxu0  ;;  %v2689_v58 = vpop.f32.mrf.mxu1 }
 0x17a   : > { %2604 = vst [vmem:[%s3298_s12 + $0x40] sm:$0xff] %v2480_v46   ;;  %v1500_v3 = vadd.f32 %v2689_v58, %v1211_v11  ;;  %v1683_v9 = vmax.f32 %v1489_v30, 0.0  ;;  %v1227_v39 = vadd.f32 %v3282_v53, %v1226_v57 }
 0x17b   : > { %v1228_v61 = vpop.f32.mrf.mxu0  ;;  %v1491_v15 = vpop.f32.mrf.mxu1 }
 0x17c   : > { %v1686_v2 = vmax.f32 %v1500_v3, 0.0  ;;  %v1492_v35 = vadd.f32 %v1491_v15, %v1203_v43 }
 0x17d   : > { %v1231_v62 = vpop.f32.mrf.mxu0  ;;  %v2692_v50 = vpop.f32.mrf.mxu1 }
 0x17e   : > { %v2495_v7 = vpack.c.bf16 %v1686_v2, %v1685_v1  ;;  %v1684_v10 = vmax.f32 %v1492_v35, 0.0  ;;  %v1513_v18 = vadd.f32 %v2692_v50, %v1224_v47  ;;  %v1232_v22 = vadd.f32 %v3282_v53, %v1231_v62 }
 0x17f   : > { %v1233_v13 = vpop.f32.mrf.mxu0  ;;  %v1504_v14 = vpop.f32.mrf.mxu1 }
 0x180   : > { %2607 = vst [vmem:[%s3298_s12 + $0x58] sm:$0xff] %v2495_v7   ;;  %v2490_v17 = vpack.c.bf16 %v1684_v10, %v1683_v9  ;;  %v1505_v55 = vadd.f32 %v1504_v14, %v1216_v59  ;;  %v1689_v19 = vmax.f32 %v1513_v18, 0.0 }
 0x181   : > { %v1234_v21 = vpop.f32.mrf.mxu0  ;;  %v2693_v27 = vpop.f32.mrf.mxu1 }
 0x182   : > { %2606 = vst [vmem:[%s3298_s12 + $0x50] sm:$0xff] %v2490_v17   ;;  %v1516_v51 = vadd.f32 %v2693_v27, %v1227_v39  ;;  %v1687_v33 = vmax.f32 %v1505_v55, 0.0  ;;  %v1235_v46 = vadd.f32 %v3282_v53, %v1234_v21 }
 0x183   : > { %v1236_v25 = vpop.f32.mrf.mxu0  ;;  %v1507_v26 = vpop.f32.mrf.mxu1 }
 0x184   : > { %v1690_v29 = vmax.f32 %v1516_v51, 0.0  ;;  %v1508_v31 = vadd.f32 %v1507_v26, %v1219_v63 }
 0x185   : > { %v1239_v5 = vpop.f32.mrf.mxu0  ;;  %v2696_v54 = vpop.f32.mrf.mxu1 }
 0x186   : > { %v2505_v42 = vpack.c.bf16 %v1690_v29, %v1689_v19  ;;  %v1688_v34 = vmax.f32 %v1508_v31, 0.0  ;;  %v1240_v37 = vadd.f32 %v3282_v53, %v1239_v5 }
 0x187   : > { %v1241_v38 = vpop.f32.mrf.mxu0  ;;  %v1520_v41 = vpop.f32.mrf.mxu1 }
 0x188   : > { %2609 = vst [vmem:[%s3298_s12 + $0x68] sm:$0xff] %v2505_v42   ;;  %v2500_v23 = vpack.c.bf16 %v1688_v34, %v1687_v33  ;;  %v1529_v45 = vadd.f32 %v2696_v54, %v1240_v37  ;;  %v1521_v49 = vadd.f32 %v1520_v41, %v1232_v22 }
 0x189   : > { %v1242_v6 = vpop.f32.mrf.mxu0  ;;  %v2697_v11 = vpop.f32.mrf.mxu1 }
 0x18a   : > { %2608 = vst [vmem:[%s3298_s12 + $0x60] sm:$0xff] %v2500_v23   ;;  %v1243_v57 = vadd.f32 %v3282_v53, %v1242_v6  ;;  %v1693_v61 = vmax.f32 %v1529_v45, 0.0  ;;  %v1691_v2 = vmax.f32 %v1521_v49, 0.0 }
 0x18b   : > { %v1244_v58 = vpop.f32.mrf.mxu0  ;;  %v1523_v43 = vpop.f32.mrf.mxu1 }
 0x18c   : > { %v1532_v30 = vadd.f32 %v2697_v11, %v1243_v57  ;;  %v1524_v3 = vadd.f32 %v1523_v43, %v1235_v46 }
 0x18d   : > { %v1247_v15 = vpop.f32.mrf.mxu0  ;;  %v2700_v1 = vpop.f32.mrf.mxu1 }
 0x18e   : > { %v1694_v35 = vmax.f32 %v1532_v30, 0.0  ;;  %v1692_v62 = vmax.f32 %v1524_v3, 0.0  ;;  %v1248_v50 = vadd.f32 %v3282_v53, %v1247_v15 }
 0x18f   : > { %v1249_v47 = vpop.f32.mrf.mxu0  ;;  %v1536_v9 = vpop.f32.mrf.mxu1 }
 0x190   : > { %v2515_v7 = vpack.c.bf16 %v1694_v35, %v1693_v61  ;;  %v2510_v10 = vpack.c.bf16 %v1692_v62, %v1691_v2  ;;  %v1537_v59 = vadd.f32 %v1536_v9, %v1248_v50 }
 0x191   : > { %v1250_v13 = vpop.f32.mrf.mxu0  ;;  %v2701_v14 = vpop.f32.mrf.mxu1 }
 0x192   : > { %2611 = vst [vmem:[%s3298_s12 + $0x78] sm:$0xff] %v2515_v7   ;;  %2610 = vst [vmem:[%s3298_s12 + $0x70] sm:$0xff] %v2510_v10   ;;  %v1251_v39 = vadd.f32 %v3282_v53, %v1250_v13  ;;  %v1695_v55 = vmax.f32 %v1537_v59, 0.0 }
 0x193   : > { %v1252_v17 = vpop.f32.mrf.mxu0  ;;  %v1539_v18 = vpop.f32.mrf.mxu1 }
 0x194   : > { %v1540_v21 = vadd.f32 %v1539_v18, %v1251_v39 }
 0x195   : > { %v1255_v27 = vpop.f32.mrf.mxu0  ;;  %v2704_v63 = vpop.f32.mrf.mxu1 }
 0x196   : > { %v1696_v51 = vmax.f32 %v1540_v21, 0.0  ;;  %v1256_v25 = vadd.f32 %v3282_v53, %v1255_v27  ;;  %v1320_v27 = vadd.f32 %v3282_v53, %v3227_v60  ;;  %v1315_v60 = vadd.f32 %v3282_v53, %v3225_v56 }
 0x197   : > { %v1257_v26 = vpop.f32.mrf.mxu0  ;;  %v1552_v19 = vpop.f32.mrf.mxu1 }
 0x198   : > { %v2520_v29 = vpack.c.bf16 %v1696_v51, %v1695_v55  ;;  %v1545_v54 = vadd.f32 %v2700_v1, %v1256_v25  ;;  %v1312_v26 = vadd.f32 %v3282_v53, %v3221_v52 }
 0x199   : > { %v1258_v31 = vpop.f32.mrf.mxu0  ;;  %v2705_v5 = vpop.f32.mrf.mxu1 }
 0x19a   : > { %2612 = vst [vmem:[%s3298_s12 + $0x80] sm:$0xff] %v2520_v29   ;;  %v1259_v33 = vadd.f32 %v3282_v53, %v1258_v31  ;;  %v1697_v22 = vmax.f32 %v1545_v54, 0.0  ;;  %v1323_v29 = vadd.f32 %v3282_v53, %v3229_v0 }
 0x19b   : > { %v1260_v42 = vpop.f32.mrf.mxu0  ;;  %v1555_v34 = vpop.f32.mrf.mxu1 }
 0x19c   : > { %v1548_v37 = vadd.f32 %v2701_v14, %v1259_v33 }
 0x19d   : > { %v1263_v38 = vpop.f32.mrf.mxu0  ;;  %v3375_v41 = vpop.f32.mrf.mxu1 }
 0x19e   : > { %v1698_v23 = vmax.f32 %v1548_v37, 0.0  ;;  %v1264_v45 = vadd.f32 %v3282_v53, %v1263_v38 }
 0x19f   : > { %v1265_v6 = vpop.f32.mrf.mxu0  ;;  %v1568_v11 = vpop.f32.mrf.mxu1 }
 0x1a0   : > { %v2525_v46 = vpack.c.bf16 %v1698_v23, %v1697_v22  ;;  %v1553_v58 = vadd.f32 %v1552_v19, %v1264_v45 }
 0x1a1   : > { %v1266_v49 = vpop.f32.mrf.mxu0  ;;  %v3378_v57 = vpop.f32.mrf.mxu1 }
 0x1a2   : > { %2613 = vst [vmem:[%s3298_s12 + $0x88] sm:$0xff] %v2525_v46   ;;  %v1267_v43 = vadd.f32 %v3282_v53, %v1266_v49  ;;  %v1699_v2 = vmax.f32 %v1553_v58, 0.0 }
 0x1a3   : > { %v1268_v30 = vpop.f32.mrf.mxu0  ;;  %v1571_v3 = vpop.f32.mrf.mxu1 }
 0x1a4   : > { %v1556_v61 = vadd.f32 %v1555_v34, %v1267_v43 }
 0x1a5   : > { %v1271_v15 = vpop.f32.mrf.mxu0  ;;  %v3382_v1 = vpop.f32.mrf.mxu1 }
 0x1a6   : > { %v1700_v35 = vmax.f32 %v1556_v61, 0.0  ;;  %v1272_v62 = vadd.f32 %v3282_v53, %v1271_v15 }
 0x1a7   : > { %v1273_v50 = vpop.f32.mrf.mxu0  ;;  %v3385_v47 = vpop.f32.mrf.mxu1 }
 0x1a8   : > { %v2530_v9 = vpack.c.bf16 %v1700_v35, %v1699_v2  ;;  %v1561_v13 = vadd.f32 %v2704_v63, %v1272_v62  ;;  %v1339_v62 = vadd.f32 %v3282_v53, %v3245_v16 }
 0x1a9   : > { %v1274_v7 = vpop.f32.mrf.mxu0  ;;  %v3387_v10 = vpop.f32.mrf.mxu1 }
 0x1aa   : > { %2614 = vst [vmem:[%s3298_s12 + $0x90] sm:$0xff] %v2530_v9   ;;  %v1275_v14 = vadd.f32 %v3282_v53, %v1274_v7  ;;  %v1701_v55 = vmax.f32 %v1561_v13, 0.0 }
 0x1ab   : > { %v1276_v59 = vpop.f32.mrf.mxu0  ;;  %v3391_v39 = vpop.f32.mrf.mxu1 }
 0x1ac   : > { %v1564_v17 = vadd.f32 %v2705_v5, %v1275_v14 }
 0x1ad   : > { %v1279_v18 = vpop.f32.mrf.mxu0  ;;  %v2716_v21 = vpop.f32.mrf.mxu1 }
 0x1ae   : > { %v1702_v51 = vmax.f32 %v1564_v17, 0.0  ;;  %v1280_v25 = vadd.f32 %v3282_v53, %v1279_v18  ;;  %v1609_v5 = vadd.f32 %v2716_v21, %v1320_v27  ;;  %v1331_v17 = vadd.f32 %v3282_v53, %v3237_v8 }
 0x1af   : > { %v1281_v63 = vpop.f32.mrf.mxu0  ;;  %v1600_v19 = vpop.f32.mrf.mxu1 }
 0x1b0   : > { %v2535_v31 = vpack.c.bf16 %v1702_v51, %v1701_v55  ;;  %v1569_v54 = vadd.f32 %v1568_v11, %v1280_v25  ;;  %v1601_v33 = vadd.f32 %v1600_v19, %v1312_v26  ;;  %v1713_v23 = vmax.f32 %v1609_v5, 0.0 }
 0x1b1   : > { %v1282_v42 = vpop.f32.mrf.mxu0  ;;  %v2717_v34 = vpop.f32.mrf.mxu1  ;;  %v1336_v11 = vadd.f32 %v3282_v53, %v3241_v12 }
 0x1b2   : > { %2615 = vst [vmem:[%s3298_s12 + $0x98] sm:$0xff] %v2535_v31   ;;  %v1283_v37 = vadd.f32 %v3282_v53, %v1282_v42  ;;  %v1612_v38 = vadd.f32 %v2717_v34, %v1323_v29  ;;  %v1703_v46 = vmax.f32 %v1569_v54, 0.0  ;;  %v1711_v49 = vmax.f32 %v1601_v33, 0.0 }
 0x1b3   : > { %v1284_v22 = vpop.f32.mrf.mxu0  ;;  %v1603_v52 = vpop.f32.mrf.mxu1  ;;  %v1355_v34 = vadd.f32 %v3282_v53, %v3261_v32 }
 0x1b4   : > { %v1572_v45 = vadd.f32 %v1571_v3, %v1283_v37  ;;  %v1714_v6 = vmax.f32 %v1612_v38, 0.0  ;;  %v1604_v0 = vadd.f32 %v1603_v52, %v1315_v60  ;;  %v1328_v3 = vadd.f32 %v3282_v53, %v3233_v4 }
 0x1b5   : > { %v1287_v58 = vpop.f32.mrf.mxu0  ;;  %v2720_v43 = vpop.f32.mrf.mxu1 }
 0x1b6   : > { %v1704_v30 = vmax.f32 %v1572_v45, 0.0  ;;  %v2565_v56 = vpack.c.bf16 %v1714_v6, %v1713_v23  ;;  %v1712_v61 = vmax.f32 %v1604_v0, 0.0  ;;  %v1288_v15 = vadd.f32 %v3282_v53, %v1287_v58 }
 0x1b7   : > { %v1289_v2 = vpop.f32.mrf.mxu0  ;;  %v1616_v35 = vpop.f32.mrf.mxu1  ;;  %v1625_v9 = vadd.f32 %v2720_v43, %v1336_v11  ;;  %v1347_v45 = vadd.f32 %v3282_v53, %v3253_v24 }
 0x1b8   : > { %v2540_v12 = vpack.c.bf16 %v1704_v30, %v1703_v46  ;;  %2621 = vst [vmem:[%s3298_s12 + $0xc8] sm:$0xff] %v2565_v56   ;;  %v2560_v50 = vpack.c.bf16 %v1712_v61, %v1711_v49  ;;  %v1577_v7 = vadd.f32 %v3375_v41, %v1288_v15  ;;  %v1617_v13 = vadd.f32 %v1616_v35, %v1328_v3 }
 0x1b9   : > { %v1290_v14 = vpop.f32.mrf.mxu0  ;;  %v2721_v59 = vpop.f32.mrf.mxu1  ;;  %v1717_v16 = vmax.f32 %v1625_v9, 0.0  ;;  %v1352_v41 = vadd.f32 %v3282_v53, %v3257_v28 }
 0x1ba   : > { %2616 = vst [vmem:[%s3298_s12 + $0xa0] sm:$0xff] %v2540_v12   ;;  %2620 = vst [vmem:[%s3298_s12 + $0xc0] sm:$0xff] %v2560_v50   ;;  %v1291_v4 = vadd.f32 %v3282_v53, %v1290_v14  ;;  %v1628_v18 = vadd.f32 %v2721_v59, %v1339_v62  ;;  %v1705_v26 = vmax.f32 %v1577_v7, 0.0  ;;  %v1715_v63 = vmax.f32 %v1617_v13, 0.0 }
 0x1bb   : > { %v1292_v21 = vpop.f32.mrf.mxu0  ;;  %v1619_v27 = vpop.f32.mrf.mxu1  ;;  %v1371_v12 = vadd.f32 %v3282_v53, %v3277_v48  ;;  %v1363_v59 = vadd.f32 %v3282_v53, %v3269_v40 }
 0x1bc   : > { %v1580_v55 = vadd.f32 %v3378_v57, %v1291_v4  ;;  %v1718_v51 = vmax.f32 %v1628_v18, 0.0  ;;  %v1620_v25 = vadd.f32 %v1619_v27, %v1331_v17  ;;  %v1344_v57 = vadd.f32 %v3282_v53, %v3249_v20 }
 0x1bd   : > { %v1295_v19 = vpop.f32.mrf.mxu0  ;;  %v2724_v8 = vpop.f32.mrf.mxu1 }
 0x1be   : > { %v1706_v29 = vmax.f32 %v1580_v55, 0.0  ;;  %v2575_v31 = vpack.c.bf16 %v1718_v51, %v1717_v16  ;;  %v1716_v5 = vmax.f32 %v1620_v25, 0.0  ;;  %v1296_v54 = vadd.f32 %v3282_v53, %v1295_v19 }
 0x1bf   : > { %v1297_v33 = vpop.f32.mrf.mxu0  ;;  %v1632_v42 = vpop.f32.mrf.mxu1  ;;  %v1641_v37 = vadd.f32 %v2724_v8, %v1352_v41 }
 0x1c0   : > { %v2545_v28 = vpack.c.bf16 %v1706_v29, %v1705_v26  ;;  %2623 = vst [vmem:[%s3298_s12 + $0xd8] sm:$0xff] %v2575_v31   ;;  %v2570_v60 = vpack.c.bf16 %v1716_v5, %v1715_v63  ;;  %v1585_v38 = vadd.f32 %v3385_v47, %v1296_v54  ;;  %v1633_v22 = vadd.f32 %v1632_v42, %v1344_v57 }
 0x1c1   : > { %v1298_v52 = vpop.f32.mrf.mxu0  ;;  %v2725_v23 = vpop.f32.mrf.mxu1  ;;  %v1721_v32 = vmax.f32 %v1641_v37, 0.0  ;;  %v1368_v47 = vadd.f32 %v3282_v53, %v3273_v44 }
 0x1c2   : > { %2617 = vst [vmem:[%s3298_s12 + $0xa8] sm:$0xff] %v2545_v28   ;;  %2622 = vst [vmem:[%s3298_s12 + $0xd0] sm:$0xff] %v2570_v60   ;;  %v1299_v20 = vadd.f32 %v3282_v53, %v1298_v52  ;;  %v1644_v6 = vadd.f32 %v2725_v23, %v1355_v34  ;;  %v1707_v43 = vmax.f32 %v1585_v38, 0.0  ;;  %v1719_v30 = vmax.f32 %v1633_v22, 0.0 }
 0x1c3   : > { %v1300_v0 = vpop.f32.mrf.mxu0  ;;  %v1635_v11 = vpop.f32.mrf.mxu1 }
 0x1c4   : > { %v1588_v46 = vadd.f32 %v3391_v39, %v1299_v20  ;;  %v1722_v49 = vmax.f32 %v1644_v6, 0.0  ;;  %v1636_v58 = vadd.f32 %v1635_v11, %v1347_v45  ;;  %v1360_v39 = vadd.f32 %v3282_v53, %v3265_v36 }
 0x1c5   : > { %v1303_v56 = vpop.f32.mrf.mxu0  ;;  %v2728_v24 = vpop.f32.mrf.mxu1 }
 0x1c6   : > { %v1708_v61 = vmax.f32 %v1588_v46, 0.0  ;;  %v2585_v15 = vpack.c.bf16 %v1722_v49, %v1721_v32  ;;  %v1720_v3 = vmax.f32 %v1636_v58, 0.0  ;;  %v1304_v2 = vadd.f32 %v3282_v53, %v1303_v56 }
 0x1c7   : > { %v1305_v35 = vpop.f32.mrf.mxu0  ;;  %v1648_v62 = vpop.f32.mrf.mxu1  ;;  %v1657_v9 = vadd.f32 %v2728_v24, %v1368_v47 }
 0x1c8   : > { %v2550_v44 = vpack.c.bf16 %v1708_v61, %v1707_v43  ;;  %2625 = vst [vmem:[%s3298_s12 + $0xe8] sm:$0xff] %v2585_v15   ;;  %v2580_v50 = vpack.c.bf16 %v1720_v3, %v1719_v30  ;;  %v1593_v7 = vadd.f32 %v3382_v1, %v1304_v2  ;;  %v1649_v36 = vadd.f32 %v1648_v62, %v1360_v39 }
 0x1c9   : > { %v1306_v13 = vpop.f32.mrf.mxu0  ;;  %v2729_v14 = vpop.f32.mrf.mxu1  ;;  %v1725_v21 = vmax.f32 %v1657_v9, 0.0 }
 0x1ca   : > { %2618 = vst [vmem:[%s3298_s12 + $0xb0] sm:$0xff] %v2550_v44   ;;  %2624 = vst [vmem:[%s3298_s12 + $0xe0] sm:$0xff] %v2580_v50   ;;  %v1307_v17 = vadd.f32 %v3282_v53, %v1306_v13  ;;  %v1660_v4 = vadd.f32 %v2729_v14, %v1371_v12  ;;  %v1709_v55 = vmax.f32 %v1593_v7, 0.0  ;;  %v1723_v51 = vmax.f32 %v1649_v36, 0.0 }
 0x1cb   : > { %v1308_v48 = vpop.f32.mrf.mxu0  ;;  %v1651_v18 = vpop.f32.mrf.mxu1 }
 0x1cc   : > { %v1596_v27 = vadd.f32 %v3387_v10, %v1307_v17  ;;  %v1726_v1 = vmax.f32 %v1660_v4, 0.0  ;;  %v1652_v16 = vadd.f32 %v1651_v18, %v1363_v59 }
 0x1ce   : > { %v1710_v25 = vmax.f32 %v1596_v27, 0.0  ;;  %v2595_v40 = vpack.c.bf16 %v1726_v1, %v1725_v21  ;;  %v1724_v41 = vmax.f32 %v1652_v16, 0.0 }
 0x1d0   : > { %v2555_v26 = vpack.c.bf16 %v1710_v25, %v1709_v55  ;;  %2627 = vst [vmem:[%s3298_s12 + $0xf8] sm:$0xff] %v2595_v40   ;;  %v2590_v63 = vpack.c.bf16 %v1724_v41, %v1723_v51 }
 0x1d2   : > { %2619 = vst [vmem:[%s3298_s12 + $0xb8] sm:$0xff] %v2555_v26   ;;  %2626 = vst [vmem:[%s3298_s12 + $0xf0] sm:$0xff] %v2590_v63  }
 0x1d3 PF: > { %s13_s14 = sadd.s32 1, %s2956_s14   ;;  %s3465_s12 = smov %s2952_s13 }
 0x1d4   : > { %p10_p5 = scmp.ge.s32.totalorder %s13_s14, 6   ;;  %s3466_s13 = smov %s3468_s15 }
 0x1d6   :  { %12 = sbr.rel (!%p10_p5) target bundleno = 2 (0x2), region = 68 }

</bundles_post_ra>
